<compile_context>
chip_gen: v5e
topology: v5e:2x2
jax: 0.10.0
libtpu: 0.0.40
codegen_flags: <defaults>
</compile_context>

<pallas_src>
import functools

import numpy as np
import jax
import jax.numpy as jnp
from jax import lax
from jax.experimental import pallas as pl
from jax.experimental.pallas import tpu as pltpu

H, W = 7, 5
HP, WP = H + 2, W + 2            # zero-padded image dims: 9 x 7
PPB = 64                         # padded positions per batch: 63 real + 1 alignment dummy
GUARD_POS = 8                    # guard positions above/below each tile's slab
C_IN, C1, C2 = 8, 32, 64
HIDDEN = 256
AUX = 5
AUXP = 8                         # aux features padded to 8 lanes (separate f32 matmul)
NFEAT = H * W * C2               # 2240 conv features feeding fc1
# spatial-position shift of the slab for tap (dy, dx) of a 3x3 "same" conv
TAP_SHIFTS = tuple((dy - 1) * WP + (dx - 1) for dy in range(3) for dx in range(3))


def _cnn_dqn_kernel(x_ref, aux_ref, w1_ref, b1_ref, w2_ref, b2_ref,
                    fw1_ref, waux_ref, fb1_ref, fw2_ref, fb2_ref,
                    out_ref, h1_ref, h2_ref, *, bt):
    """Fused conv3x3+ReLU -> conv3x3+ReLU -> fc+ReLU -> fc for one batch tile."""
    nr = PPB * bt                 # slab rows per tile (row = position * bt + batch)
    guard = GUARD_POS * bt        # zero guard rows so every tap shift is in-bounds

    # Row-validity mask (interior 7x5 positions), built in-kernel from an iota:
    # rows of spatial row hp are the contiguous range [(hp*WP+1)*bt, (hp*WP+1+W)*bt).
    row = lax.broadcasted_iota(jnp.int32, (nr, C1), 0)
    lo = (1 * WP + 1) * bt
    valid = (row >= lo) & (row < lo + W * bt)
    for hp in range(2, H + 1):
        lo = (hp * WP + 1) * bt
        valid = valid | ((row >= lo) & (row < lo + W * bt))

    # ---- conv1: im2col via 9 statically-shifted whole-slab slices -> one MXU matmul
    patch1 = jnp.concatenate(
        [x_ref[guard + s * bt: guard + s * bt + nr, :] for s in TAP_SHIFTS], axis=1)
    h1 = jnp.dot(patch1.astype(jnp.bfloat16), w1_ref[...],
                 preferred_element_type=jnp.float32) + b1_ref[...]
    h1 = jnp.where(valid, jnp.maximum(h1, 0.0), 0.0)   # halo rows -> true zero padding

    # Zero only the guard rows (scratch persists across grid steps); the interior
    # rows are fully overwritten every step.
    h1_ref[:guard, :] = jnp.zeros((guard, C1), jnp.float32)
    h1_ref[guard + nr: 2 * guard + nr, :] = jnp.zeros((guard, C1), jnp.float32)
    h1_ref[guard: guard + nr, :] = h1

    # ---- conv2: same trick on the layer-1 activations
    # TODO(synk): benchmark the 9-accumulating-matmul formulation vs this lane-concat.
    patch2 = jnp.concatenate(
        [h1_ref[guard + s * bt: guard + s * bt + nr, :] for s in TAP_SHIFTS], axis=1)
    h2 = jnp.dot(patch2.astype(jnp.bfloat16), w2_ref[...],
                 preferred_element_type=jnp.float32) + b2_ref[...]
    h2_ref[...] = jnp.maximum(h2, 0.0)

    # ---- fc1: the torch (C,H,W) flatten is folded into the fc1 weight layout.
    # Position-major / batch-minor slab => each spatial position's activations for
    # all bt batches are one contiguous aligned (bt, 64) block, so fc1 is 35
    # block-loads + accumulating matmuls (accumulator is 2 vregs).  Aux rides a
    # separate tiny f32 matmul to preserve its precision.
    z = jnp.dot(aux_ref[...], waux_ref[...],
                preferred_element_type=jnp.float32) + fb1_ref[...]
    for i in range(H):
        for j in range(W):
            p = (i + 1) * WP + (j + 1)          # padded spatial position
            k = i * W + j                       # fc1 weight block index
            rows = h2_ref[p * bt: (p + 1) * bt, :].astype(jnp.bfloat16)
            z = z + jnp.dot(rows, fw1_ref[k * C2: (k + 1) * C2, :],
                            preferred_element_type=jnp.float32)
    z = jnp.maximum(z, 0.0)

    # ---- fc2 (output lanes padded to 128)
    out_ref[...] = jnp.dot(z.astype(jnp.bfloat16), fw2_ref[...],
                           preferred_element_type=jnp.float32) + fb2_ref[...]


def prepare_params(params, output_dim):
    """One-time host-side repack of PyTorch-shaped params into kernel layouts."""
    w1, b1, w2, b2, fw1, fb1, fw2, fb2 = params
    # conv weights: OIHW -> (tap*Cin, Cout), tap = dy*3+dx, matching im2col columns
    w1r = jnp.transpose(w1, (2, 3, 1, 0)).reshape(9 * C_IN, C1).astype(jnp.bfloat16)
    w2r = jnp.transpose(w2, (2, 3, 1, 0)).reshape(9 * C1, C2).astype(jnp.bfloat16)

    # fc1 conv part: repack rows into 35 position blocks of 64 channel rows each,
    # matching the kernel's per-position (bt, 64) activation blocks.
    fw1_t = fw1.T.astype(jnp.float32)                         # (2245, 256)
    n = np.arange(NFEAT)
    old = (n % C2) * (H * W) + (n // C2)                      # torch (C,H,W) flatten index
    fw1p = fw1_t[:NFEAT][old].astype(jnp.bfloat16)            # (2240, 256)
    # fc1 aux part: 5 rows, zero-padded to 8, kept in f32
    wauxp = jnp.zeros((AUXP, HIDDEN), jnp.float32).at[:AUX].set(fw1_t[NFEAT:])

    # fc2: pad the output dim to a multiple of 128 lanes (sliced off outside)
    nout_pad = max(128, -(-output_dim // 128) * 128)
    fw2p = (jnp.zeros((HIDDEN, nout_pad), jnp.float32)
            .at[:, :output_dim].set(fw2.T).astype(jnp.bfloat16))
    fb2p = jnp.zeros((1, nout_pad), jnp.float32).at[:, :output_dim].set(fb2[None, :])

    return (w1r, b1.reshape(1, C1).astype(jnp.float32),
            w2r, b2.reshape(1, C2).astype(jnp.float32),
            fw1p, wauxp, fb1.reshape(1, HIDDEN).astype(jnp.float32),
            fw2p, fb2p)


@functools.partial(jax.jit, static_argnums=(3,))
def cnn_dqn_forward(viewcone, aux, prep, output_dim):
    """Pallas implementation of CNNDQN.forward (single fused kernel, batch grid)."""
    w1r, b1r, w2r, b2r, fw1p, wauxp, fb1r, fw2p, fb2p = prep
    B = viewcone.shape[0]
    bt = 8 if B <= 8 else 32                 # batch tile (rows stay 8-aligned)
    b_pad = -(-B // bt) * bt
    n_tiles = b_pad // bt
    nr = PPB * bt
    guard = GUARD_POS * bt
    rows_tile = nr + 2 * guard
    nout_pad = fw2p.shape[1]

    # input glue (tiny): NCHW -> zero-padded NHWC -> position-major / batch-minor
    # 2-D slab per tile, with per-tile zero guard rows baked in.
    x = jnp.transpose(viewcone, (0, 2, 3, 1)).astype(jnp.float32)   # (B,7,5,8)
    x = jnp.pad(x, ((0, b_pad - B), (1, 1), (1, 1), (0, 0)))        # (b_pad,9,7,8)
    x = x.reshape(b_pad, HP * WP, C_IN)
    x = jnp.pad(x, ((0, 0), (0, PPB - HP * WP), (0, 0)))            # (b_pad,64,8)
    x = x.reshape(n_tiles, bt, PPB, C_IN).transpose(0, 2, 1, 3)     # (tiles,64,bt,8)
    x = x.reshape(n_tiles, nr, C_IN)
    x = jnp.pad(x, ((0, 0), (guard, guard), (0, 0)))                # guard rows
    x = x.reshape(n_tiles * rows_tile, C_IN)

    aux_p = (jnp.zeros((b_pad, AUXP), jnp.float32)
             .at[:B, :AUX].set(aux.astype(jnp.float32)))

    flops = 2 * b_pad * ((HP * WP) * (9 * C_IN * C1 + 9 * C1 * C2)
                         + NFEAT * HIDDEN + AUXP * HIDDEN + HIDDEN * nout_pad)
    bytes_accessed = (x.size * 4 + aux_p.size * 4 + b_pad * nout_pad * 4
                      + (9 * C_IN * C1 + 9 * C1 * C2 + NFEAT * HIDDEN
                         + HIDDEN * nout_pad) * 2
                      + (AUXP * HIDDEN + C1 + C2 + HIDDEN + nout_pad) * 4)

    kernel = functools.partial(_cnn_dqn_kernel, bt=bt)
    out = pl.pallas_call(
        kernel,
        out_shape=jax.ShapeDtypeStruct((b_pad, nout_pad), jnp.float32),
        grid=(n_tiles,),
        in_specs=[
            pl.BlockSpec((rows_tile, C_IN), lambda i: (i, 0)),      # x slab tile
            pl.BlockSpec((bt, AUXP), lambda i: (i, 0)),             # aux (f32, padded)
            pl.BlockSpec((9 * C_IN, C1), lambda i: (0, 0)),         # conv1 weight (resident)
            pl.BlockSpec((1, C1), lambda i: (0, 0)),                # conv1 bias
            pl.BlockSpec((9 * C1, C2), lambda i: (0, 0)),           # conv2 weight
            pl.BlockSpec((1, C2), lambda i: (0, 0)),                # conv2 bias
            pl.BlockSpec((NFEAT, HIDDEN), lambda i: (0, 0)),        # fc1 weight (position blocks)
            pl.BlockSpec((AUXP, HIDDEN), lambda i: (0, 0)),         # fc1 aux weight (f32)
            pl.BlockSpec((1, HIDDEN), lambda i: (0, 0)),            # fc1 bias
            pl.BlockSpec((HIDDEN, nout_pad), lambda i: (0, 0)),     # fc2 weight
            pl.BlockSpec((1, nout_pad), lambda i: (0, 0)),          # fc2 bias
        ],
        out_specs=pl.BlockSpec((bt, nout_pad), lambda i: (i, 0)),
        scratch_shapes=[
            pltpu.VMEM((rows_tile, C1), jnp.float32),               # padded conv1 activations
            pltpu.VMEM((nr, C2), jnp.float32),                      # conv2 activations
        ],
        compiler_params=pltpu.CompilerParams(
            dimension_semantics=("parallel",),
            vmem_limit_bytes=32 * 1024 * 1024,
        ),
        cost_estimate=pl.CostEstimate(flops=flops, transcendentals=0,
                                      bytes_accessed=bytes_accessed),
    )(x, aux_p, w1r, b1r, w2r, b2r, fw1p, wauxp, fb1r, fw2p, fb2p)
    return out[:B, :output_dim]


def init_params(key, output_dim):
    """Deterministic synthetic params in PyTorch layouts (OIHW / (out,in))."""
    ks = jax.random.split(key, 8)

    def u(k, shape, fan_in):
        bound = 1.0 / jnp.sqrt(jnp.float32(fan_in))
        return jax.random.uniform(k, shape, jnp.float32, -bound, bound)

    w1 = u(ks[0], (C1, C_IN, 3, 3), C_IN * 9)
    b1 = u(ks[1], (C1,), C_IN * 9)
    w2 = u(ks[2], (C2, C1, 3, 3), C1 * 9)
    b2 = u(ks[3], (C2,), C1 * 9)
    fin = C2 * H * W + AUX
    fw1 = u(ks[4], (HIDDEN, fin), fin)
    fb1 = u(ks[5], (HIDDEN,), fin)
    fw2 = u(ks[6], (output_dim, HIDDEN), HIDDEN)
    fb2 = u(ks[7], (output_dim,), HIDDEN)
    return (w1, b1, w2, b2, fw1, fb1, fw2, fb2)


def reference_forward(viewcone, aux, params):
    """Pure-JAX (XLA, all-f32) reference matching the PyTorch forward semantics."""
    w1, b1, w2, b2, fw1, fb1, fw2, fb2 = params
    dn = ("NCHW", "OIHW", "NCHW")
    x = lax.conv_general_dilated(viewcone, w1, (1, 1), ((1, 1), (1, 1)),
                                 dimension_numbers=dn)
    x = jnp.maximum(x + b1[None, :, None, None], 0.0)
    x = lax.conv_general_dilated(x, w2, (1, 1), ((1, 1), (1, 1)),
                                 dimension_numbers=dn)
    x = jnp.maximum(x + b2[None, :, None, None], 0.0)
    x = x.reshape(x.shape[0], -1)
    x = jnp.concatenate([x, aux], axis=1)
    x = jnp.maximum(x @ fw1.T + fb1, 0.0)
    return x @ fw2.T + fb2


if __name__ == "__main__":
    key = jax.random.PRNGKey(0)
    k_in, k_aux, k_p = jax.random.split(key, 3)
    B, output_dim = 2, 5

    viewcone = jax.random.uniform(k_in, (B, C_IN, H, W), jnp.float32)
    aux = jax.random.uniform(k_aux, (B, AUX), jnp.float32)
    params = init_params(k_p, output_dim)
    prep = prepare_params(params, output_dim)

    q = cnn_dqn_forward(viewcone, aux, prep, output_dim)
    q = jax.block_until_ready(q)

    q_ref = reference_forward(viewcone, aux, params)
    assert q.shape == (B, output_dim)
    # bf16 weights/activations on the MXU (f32 accumulate): ~1e-3 abs error vs f32 ref.
    assert bool(jnp.allclose(q, q_ref, rtol=2e-2, atol=2e-2)), "mismatch vs reference"
    print("KERNEL_OK")
</pallas_src>

<mosaic_0001>
module attributes {stable_mosaic.version = 11 : i64} {
  func.func @_cnn_dqn_kernel(%arg0: i32, %arg1: memref<640x8xf32, #tpu.memory_space<vmem>>, %arg2: memref<8x8xf32, #tpu.memory_space<vmem>>, %arg3: memref<72x32xbf16, #tpu.memory_space<vmem>>, %arg4: memref<1x32xf32, #tpu.memory_space<vmem>>, %arg5: memref<288x64xbf16, #tpu.memory_space<vmem>>, %arg6: memref<1x64xf32, #tpu.memory_space<vmem>>, %arg7: memref<2240x256xbf16, #tpu.memory_space<vmem>>, %arg8: memref<8x256xf32, #tpu.memory_space<vmem>>, %arg9: memref<1x256xf32, #tpu.memory_space<vmem>>, %arg10: memref<256x128xbf16, #tpu.memory_space<vmem>>, %arg11: memref<1x128xf32, #tpu.memory_space<vmem>>, %arg12: memref<8x128xf32, #tpu.memory_space<vmem>>, %arg13: memref<640x32xf32, #tpu.memory_space<vmem>>, %arg14: memref<512x64xf32, #tpu.memory_space<vmem>>) attributes {dimension_semantics = [#tpu.dimension_semantics<parallel>], iteration_bounds = array<i64: 1>, scalar_prefetch = 0 : i64, scratch_operands = 2 : i64, tpu.core_type = #tpu.core_type<tc>, window_params = [{transform_indices = @transform_0, window_bounds = array<i64: 640, 8>}, {transform_indices = @transform_1, window_bounds = array<i64: 8, 8>}, {pipeline_mode = #tpu.pipeline_mode<synchronous>, transform_indices = @transform_2, window_bounds = array<i64: 72, 32>}, {pipeline_mode = #tpu.pipeline_mode<synchronous>, transform_indices = @transform_3, window_bounds = array<i64: 1, 32>}, {pipeline_mode = #tpu.pipeline_mode<synchronous>, transform_indices = @transform_4, window_bounds = array<i64: 288, 64>}, {pipeline_mode = #tpu.pipeline_mode<synchronous>, transform_indices = @transform_5, window_bounds = array<i64: 1, 64>}, {pipeline_mode = #tpu.pipeline_mode<synchronous>, transform_indices = @transform_6, window_bounds = array<i64: 2240, 256>}, {pipeline_mode = #tpu.pipeline_mode<synchronous>, transform_indices = @transform_7, window_bounds = array<i64: 8, 256>}, {pipeline_mode = #tpu.pipeline_mode<synchronous>, transform_indices = @transform_8, window_bounds = array<i64: 1, 256>}, {pipeline_mode = #tpu.pipeline_mode<synchronous>, transform_indices = @transform_9, window_bounds = array<i64: 256, 128>}, {pipeline_mode = #tpu.pipeline_mode<synchronous>, transform_indices = @transform_10, window_bounds = array<i64: 1, 128>}, {transform_indices = @transform_11, window_bounds = array<i64: 8, 128>}]} {
    %0 = tpu.iota {dimensions = array<i32: 0>} : vector<512x32xi32>
    %c64_i32 = arith.constant 64 : i32
    %1 = vector.broadcast %c64_i32 : i32 to vector<512x32xi32>
    %2 = arith.cmpi sge, %0, %1 : vector<512x32xi32>
    %c104_i32 = arith.constant 104 : i32
    %3 = vector.broadcast %c104_i32 : i32 to vector<512x32xi32>
    %4 = arith.cmpi slt, %0, %3 : vector<512x32xi32>
    %5 = arith.andi %2, %4 : vector<512x32xi1>
    %c120_i32 = arith.constant 120 : i32
    %6 = vector.broadcast %c120_i32 : i32 to vector<512x32xi32>
    %7 = arith.cmpi sge, %0, %6 : vector<512x32xi32>
    %c160_i32 = arith.constant 160 : i32
    %8 = vector.broadcast %c160_i32 : i32 to vector<512x32xi32>
    %9 = arith.cmpi slt, %0, %8 : vector<512x32xi32>
    %10 = arith.andi %7, %9 : vector<512x32xi1>
    %11 = arith.ori %5, %10 : vector<512x32xi1>
    %c176_i32 = arith.constant 176 : i32
    %12 = vector.broadcast %c176_i32 : i32 to vector<512x32xi32>
    %13 = arith.cmpi sge, %0, %12 : vector<512x32xi32>
    %c216_i32 = arith.constant 216 : i32
    %14 = vector.broadcast %c216_i32 : i32 to vector<512x32xi32>
    %15 = arith.cmpi slt, %0, %14 : vector<512x32xi32>
    %16 = arith.andi %13, %15 : vector<512x32xi1>
    %17 = arith.ori %11, %16 : vector<512x32xi1>
    %c232_i32 = arith.constant 232 : i32
    %18 = vector.broadcast %c232_i32 : i32 to vector<512x32xi32>
    %19 = arith.cmpi sge, %0, %18 : vector<512x32xi32>
    %c272_i32 = arith.constant 272 : i32
    %20 = vector.broadcast %c272_i32 : i32 to vector<512x32xi32>
    %21 = arith.cmpi slt, %0, %20 : vector<512x32xi32>
    %22 = arith.andi %19, %21 : vector<512x32xi1>
    %23 = arith.ori %17, %22 : vector<512x32xi1>
    %c288_i32 = arith.constant 288 : i32
    %24 = vector.broadcast %c288_i32 : i32 to vector<512x32xi32>
    %25 = arith.cmpi sge, %0, %24 : vector<512x32xi32>
    %c328_i32 = arith.constant 328 : i32
    %26 = vector.broadcast %c328_i32 : i32 to vector<512x32xi32>
    %27 = arith.cmpi slt, %0, %26 : vector<512x32xi32>
    %28 = arith.andi %25, %27 : vector<512x32xi1>
    %29 = arith.ori %23, %28 : vector<512x32xi1>
    %c344_i32 = arith.constant 344 : i32
    %30 = vector.broadcast %c344_i32 : i32 to vector<512x32xi32>
    %31 = arith.cmpi sge, %0, %30 : vector<512x32xi32>
    %c384_i32 = arith.constant 384 : i32
    %32 = vector.broadcast %c384_i32 : i32 to vector<512x32xi32>
    %33 = arith.cmpi slt, %0, %32 : vector<512x32xi32>
    %34 = arith.andi %31, %33 : vector<512x32xi1>
    %35 = arith.ori %29, %34 : vector<512x32xi1>
    %c400_i32 = arith.constant 400 : i32
    %36 = vector.broadcast %c400_i32 : i32 to vector<512x32xi32>
    %37 = arith.cmpi sge, %0, %36 : vector<512x32xi32>
    %c440_i32 = arith.constant 440 : i32
    %38 = vector.broadcast %c440_i32 : i32 to vector<512x32xi32>
    %39 = arith.cmpi slt, %0, %38 : vector<512x32xi32>
    %40 = arith.andi %37, %39 : vector<512x32xi1>
    %41 = arith.ori %35, %40 : vector<512x32xi1>
    %c0 = arith.constant 0 : index
    %c0_0 = arith.constant 0 : index
    %42 = vector.load %arg1[%c0, %c0_0] : memref<640x8xf32, #tpu.memory_space<vmem>>, vector<512x8xf32>
    %c8 = arith.constant 8 : index
    %c0_1 = arith.constant 0 : index
    %43 = vector.load %arg1[%c8, %c0_1] : memref<640x8xf32, #tpu.memory_space<vmem>>, vector<512x8xf32>
    %c16 = arith.constant 16 : index
    %c0_2 = arith.constant 0 : index
    %44 = vector.load %arg1[%c16, %c0_2] : memref<640x8xf32, #tpu.memory_space<vmem>>, vector<512x8xf32>
    %c56 = arith.constant 56 : index
    %c0_3 = arith.constant 0 : index
    %45 = vector.load %arg1[%c56, %c0_3] : memref<640x8xf32, #tpu.memory_space<vmem>>, vector<512x8xf32>
    %c64 = arith.constant 64 : index
    %c0_4 = arith.constant 0 : index
    %46 = vector.load %arg1[%c64, %c0_4] : memref<640x8xf32, #tpu.memory_space<vmem>>, vector<512x8xf32>
    %c72 = arith.constant 72 : index
    %c0_5 = arith.constant 0 : index
    %47 = vector.load %arg1[%c72, %c0_5] : memref<640x8xf32, #tpu.memory_space<vmem>>, vector<512x8xf32>
    %c112 = arith.constant 112 : index
    %c0_6 = arith.constant 0 : index
    %48 = vector.load %arg1[%c112, %c0_6] : memref<640x8xf32, #tpu.memory_space<vmem>>, vector<512x8xf32>
    %c120 = arith.constant 120 : index
    %c0_7 = arith.constant 0 : index
    %49 = vector.load %arg1[%c120, %c0_7] : memref<640x8xf32, #tpu.memory_space<vmem>>, vector<512x8xf32>
    %c128 = arith.constant 128 : index
    %c0_8 = arith.constant 0 : index
    %50 = vector.load %arg1[%c128, %c0_8] : memref<640x8xf32, #tpu.memory_space<vmem>>, vector<512x8xf32>
    %51 = tpu.concatenate %42, %43, %44, %45, %46, %47, %48, %49, %50 in 1 : vector<512x8xf32>, vector<512x8xf32>, vector<512x8xf32>, vector<512x8xf32>, vector<512x8xf32>, vector<512x8xf32>, vector<512x8xf32>, vector<512x8xf32>, vector<512x8xf32> -> vector<512x72xf32>
    %52 = arith.truncf %51 : vector<512x72xf32> to vector<512x72xbf16>
    %c0_9 = arith.constant 0 : index
    %c0_10 = arith.constant 0 : index
    %53 = vector.load %arg3[%c0_9, %c0_10] : memref<72x32xbf16, #tpu.memory_space<vmem>>, vector<72x32xbf16>
    %cst = arith.constant dense<0.000000e+00> : vector<512x32xf32>
    %54 = tpu.matmul %52, %53, %cst {dimension_numbers = #tpu.dot_dimension_numbers<[1], [0], [0], [1], [0, 0, 1, 1], [], []>} : vector<512x72xbf16>, vector<72x32xbf16>, vector<512x32xf32> -> vector<512x32xf32>
    %c0_11 = arith.constant 0 : index
    %c0_12 = arith.constant 0 : index
    %55 = vector.load %arg4[%c0_11, %c0_12] : memref<1x32xf32, #tpu.memory_space<vmem>>, vector<1x32xf32>
    %56 = vector.broadcast %55 : vector<1x32xf32> to vector<512x32xf32>
    %57 = arith.addf %54, %56 : vector<512x32xf32>
    %cst_13 = arith.constant 0.000000e+00 : f32
    %58 = vector.broadcast %cst_13 : f32 to vector<512x32xf32>
    %59 = arith.maximumf %57, %58 : vector<512x32xf32>
    %cst_14 = arith.constant 0.000000e+00 : f32
    %60 = vector.broadcast %cst_14 : f32 to vector<512x32xf32>
    %61 = arith.select %41, %59, %60 : vector<512x32xi1>, vector<512x32xf32>
    %cst_15 = arith.constant 0.000000e+00 : f32
    %62 = vector.broadcast %cst_15 : f32 to vector<64x32xf32>
    %c0_16 = arith.constant 0 : index
    %c0_17 = arith.constant 0 : index
    %63 = vector.load %arg13[%c0_16, %c0_17] : memref<640x32xf32, #tpu.memory_space<vmem>>, vector<64x32xf32>
    tpu.vector_store %arg13[%c0_16, %c0_17], %62 {strides = array<i32>} : memref<640x32xf32, #tpu.memory_space<vmem>>, vector<64x32xf32>,
    %cst_18 = arith.constant 0.000000e+00 : f32
    %64 = vector.broadcast %cst_18 : f32 to vector<64x32xf32>
    %c576 = arith.constant 576 : index
    %c0_19 = arith.constant 0 : index
    %65 = vector.load %arg13[%c576, %c0_19] : memref<640x32xf32, #tpu.memory_space<vmem>>, vector<64x32xf32>
    tpu.vector_store %arg13[%c576, %c0_19], %64 {strides = array<i32>} : memref<640x32xf32, #tpu.memory_space<vmem>>, vector<64x32xf32>,
    %c64_20 = arith.constant 64 : index
    %c0_21 = arith.constant 0 : index
    %66 = vector.load %arg13[%c64_20, %c0_21] : memref<640x32xf32, #tpu.memory_space<vmem>>, vector<512x32xf32>
    tpu.vector_store %arg13[%c64_20, %c0_21], %61 {strides = array<i32>} : memref<640x32xf32, #tpu.memory_space<vmem>>, vector<512x32xf32>,
    %c0_22 = arith.constant 0 : index
    %c0_23 = arith.constant 0 : index
    %67 = vector.load %arg13[%c0_22, %c0_23] : memref<640x32xf32, #tpu.memory_space<vmem>>, vector<512x32xf32>
    %c8_24 = arith.constant 8 : index
    %c0_25 = arith.constant 0 : index
    %68 = vector.load %arg13[%c8_24, %c0_25] : memref<640x32xf32, #tpu.memory_space<vmem>>, vector<512x32xf32>
    %c16_26 = arith.constant 16 : index
    %c0_27 = arith.constant 0 : index
    %69 = vector.load %arg13[%c16_26, %c0_27] : memref<640x32xf32, #tpu.memory_space<vmem>>, vector<512x32xf32>
    %c56_28 = arith.constant 56 : index
    %c0_29 = arith.constant 0 : index
    %70 = vector.load %arg13[%c56_28, %c0_29] : memref<640x32xf32, #tpu.memory_space<vmem>>, vector<512x32xf32>
    %c64_30 = arith.constant 64 : index
    %c0_31 = arith.constant 0 : index
    %71 = vector.load %arg13[%c64_30, %c0_31] : memref<640x32xf32, #tpu.memory_space<vmem>>, vector<512x32xf32>
    %c72_32 = arith.constant 72 : index
    %c0_33 = arith.constant 0 : index
    %72 = vector.load %arg13[%c72_32, %c0_33] : memref<640x32xf32, #tpu.memory_space<vmem>>, vector<512x32xf32>
    %c112_34 = arith.constant 112 : index
    %c0_35 = arith.constant 0 : index
    %73 = vector.load %arg13[%c112_34, %c0_35] : memref<640x32xf32, #tpu.memory_space<vmem>>, vector<512x32xf32>
    %c120_36 = arith.constant 120 : index
    %c0_37 = arith.constant 0 : index
    %74 = vector.load %arg13[%c120_36, %c0_37] : memref<640x32xf32, #tpu.memory_space<vmem>>, vector<512x32xf32>
    %c128_38 = arith.constant 128 : index
    %c0_39 = arith.constant 0 : index
    %75 = vector.load %arg13[%c128_38, %c0_39] : memref<640x32xf32, #tpu.memory_space<vmem>>, vector<512x32xf32>
    %76 = tpu.concatenate %67, %68, %69, %70, %71, %72, %73, %74, %75 in 1 : vector<512x32xf32>, vector<512x32xf32>, vector<512x32xf32>, vector<512x32xf32>, vector<512x32xf32>, vector<512x32xf32>, vector<512x32xf32>, vector<512x32xf32>, vector<512x32xf32> -> vector<512x288xf32>
    %77 = arith.truncf %76 : vector<512x288xf32> to vector<512x288xbf16>
    %c0_40 = arith.constant 0 : index
    %c0_41 = arith.constant 0 : index
    %78 = vector.load %arg5[%c0_40, %c0_41] : memref<288x64xbf16, #tpu.memory_space<vmem>>, vector<288x64xbf16>
    %cst_42 = arith.constant dense<0.000000e+00> : vector<512x64xf32>
    %79 = tpu.matmul %77, %78, %cst_42 {dimension_numbers = #tpu.dot_dimension_numbers<[1], [0], [0], [1], [0, 0, 1, 1], [], []>} : vector<512x288xbf16>, vector<288x64xbf16>, vector<512x64xf32> -> vector<512x64xf32>
    %c0_43 = arith.constant 0 : index
    %c0_44 = arith.constant 0 : index
    %80 = vector.load %arg6[%c0_43, %c0_44] : memref<1x64xf32, #tpu.memory_space<vmem>>, vector<1x64xf32>
    %81 = vector.broadcast %80 : vector<1x64xf32> to vector<512x64xf32>
    %82 = arith.addf %79, %81 : vector<512x64xf32>
    %cst_45 = arith.constant 0.000000e+00 : f32
    %83 = vector.broadcast %cst_45 : f32 to vector<512x64xf32>
    %84 = arith.maximumf %82, %83 : vector<512x64xf32>
    %c0_46 = arith.constant 0 : index
    %c0_47 = arith.constant 0 : index
    %85 = vector.load %arg14[%c0_46, %c0_47] : memref<512x64xf32, #tpu.memory_space<vmem>>, vector<512x64xf32>
    tpu.vector_store %arg14[%c0_46, %c0_47], %84 {strides = array<i32>} : memref<512x64xf32, #tpu.memory_space<vmem>>, vector<512x64xf32>,
    %c0_48 = arith.constant 0 : index
    %c0_49 = arith.constant 0 : index
    %86 = vector.load %arg2[%c0_48, %c0_49] : memref<8x8xf32, #tpu.memory_space<vmem>>, vector<8x8xf32>
    %c0_50 = arith.constant 0 : index
    %c0_51 = arith.constant 0 : index
    %87 = vector.load %arg8[%c0_50, %c0_51] : memref<8x256xf32, #tpu.memory_space<vmem>>, vector<8x256xf32>
    %cst_52 = arith.constant dense<0.000000e+00> : vector<8x256xf32>
    %88 = tpu.matmul %86, %87, %cst_52 {dimension_numbers = #tpu.dot_dimension_numbers<[1], [0], [0], [1], [0, 0, 1, 1], [], []>} : vector<8x8xf32>, vector<8x256xf32>, vector<8x256xf32> -> vector<8x256xf32>
    %c0_53 = arith.constant 0 : index
    %c0_54 = arith.constant 0 : index
    %89 = vector.load %arg9[%c0_53, %c0_54] : memref<1x256xf32, #tpu.memory_space<vmem>>, vector<1x256xf32>
    %90 = vector.broadcast %89 : vector<1x256xf32> to vector<8x256xf32>
    %91 = arith.addf %88, %90 : vector<8x256xf32>
    %c64_55 = arith.constant 64 : index
    %c0_56 = arith.constant 0 : index
    %92 = vector.load %arg14[%c64_55, %c0_56] : memref<512x64xf32, #tpu.memory_space<vmem>>, vector<8x64xf32>
    %93 = arith.truncf %92 : vector<8x64xf32> to vector<8x64xbf16>
    %c0_57 = arith.constant 0 : index
    %c0_58 = arith.constant 0 : index
    %94 = vector.load %arg7[%c0_57, %c0_58] : memref<2240x256xbf16, #tpu.memory_space<vmem>>, vector<64x256xbf16>
    %cst_59 = arith.constant dense<0.000000e+00> : vector<8x256xf32>
    %95 = tpu.matmul %93, %94, %cst_59 {dimension_numbers = #tpu.dot_dimension_numbers<[1], [0], [0], [1], [0, 0, 1, 1], [], []>} : vector<8x64xbf16>, vector<64x256xbf16>, vector<8x256xf32> -> vector<8x256xf32>
    %96 = arith.addf %91, %95 : vector<8x256xf32>
    %c72_60 = arith.constant 72 : index
    %c0_61 = arith.constant 0 : index
    %97 = vector.load %arg14[%c72_60, %c0_61] : memref<512x64xf32, #tpu.memory_space<vmem>>, vector<8x64xf32>
    %98 = arith.truncf %97 : vector<8x64xf32> to vector<8x64xbf16>
    %c64_62 = arith.constant 64 : index
    %c0_63 = arith.constant 0 : index
    %99 = vector.load %arg7[%c64_62, %c0_63] : memref<2240x256xbf16, #tpu.memory_space<vmem>>, vector<64x256xbf16>
    %cst_64 = arith.constant dense<0.000000e+00> : vector<8x256xf32>
    %100 = tpu.matmul %98, %99, %cst_64 {dimension_numbers = #tpu.dot_dimension_numbers<[1], [0], [0], [1], [0, 0, 1, 1], [], []>} : vector<8x64xbf16>, vector<64x256xbf16>, vector<8x256xf32> -> vector<8x256xf32>
    %101 = arith.addf %96, %100 : vector<8x256xf32>
    %c80 = arith.constant 80 : index
    %c0_65 = arith.constant 0 : index
    %102 = vector.load %arg14[%c80, %c0_65] : memref<512x64xf32, #tpu.memory_space<vmem>>, vector<8x64xf32>
    %103 = arith.truncf %102 : vector<8x64xf32> to vector<8x64xbf16>
    %c128_66 = arith.constant 128 : index
    %c0_67 = arith.constant 0 : index
    %104 = vector.load %arg7[%c128_66, %c0_67] : memref<2240x256xbf16, #tpu.memory_space<vmem>>, vector<64x256xbf16>
    %cst_68 = arith.constant dense<0.000000e+00> : vector<8x256xf32>
    %105 = tpu.matmul %103, %104, %cst_68 {dimension_numbers = #tpu.dot_dimension_numbers<[1], [0], [0], [1], [0, 0, 1, 1], [], []>} : vector<8x64xbf16>, vector<64x256xbf16>, vector<8x256xf32> -> vector<8x256xf32>
    %106 = arith.addf %101, %105 : vector<8x256xf32>
    %c88 = arith.constant 88 : index
    %c0_69 = arith.constant 0 : index
    %107 = vector.load %arg14[%c88, %c0_69] : memref<512x64xf32, #tpu.memory_space<vmem>>, vector<8x64xf32>
    %108 = arith.truncf %107 : vector<8x64xf32> to vector<8x64xbf16>
    %c192 = arith.constant 192 : index
    %c0_70 = arith.constant 0 : index
    %109 = vector.load %arg7[%c192, %c0_70] : memref<2240x256xbf16, #tpu.memory_space<vmem>>, vector<64x256xbf16>
    %cst_71 = arith.constant dense<0.000000e+00> : vector<8x256xf32>
    %110 = tpu.matmul %108, %109, %cst_71 {dimension_numbers = #tpu.dot_dimension_numbers<[1], [0], [0], [1], [0, 0, 1, 1], [], []>} : vector<8x64xbf16>, vector<64x256xbf16>, vector<8x256xf32> -> vector<8x256xf32>
    %111 = arith.addf %106, %110 : vector<8x256xf32>
    %c96 = arith.constant 96 : index
    %c0_72 = arith.constant 0 : index
    %112 = vector.load %arg14[%c96, %c0_72] : memref<512x64xf32, #tpu.memory_space<vmem>>, vector<8x64xf32>
    %113 = arith.truncf %112 : vector<8x64xf32> to vector<8x64xbf16>
    %c256 = arith.constant 256 : index
    %c0_73 = arith.constant 0 : index
    %114 = vector.load %arg7[%c256, %c0_73] : memref<2240x256xbf16, #tpu.memory_space<vmem>>, vector<64x256xbf16>
    %cst_74 = arith.constant dense<0.000000e+00> : vector<8x256xf32>
    %115 = tpu.matmul %113, %114, %cst_74 {dimension_numbers = #tpu.dot_dimension_numbers<[1], [0], [0], [1], [0, 0, 1, 1], [], []>} : vector<8x64xbf16>, vector<64x256xbf16>, vector<8x256xf32> -> vector<8x256xf32>
    %116 = arith.addf %111, %115 : vector<8x256xf32>
    %c120_75 = arith.constant 120 : index
    %c0_76 = arith.constant 0 : index
    %117 = vector.load %arg14[%c120_75, %c0_76] : memref<512x64xf32, #tpu.memory_space<vmem>>, vector<8x64xf32>
    %118 = arith.truncf %117 : vector<8x64xf32> to vector<8x64xbf16>
    %c320 = arith.constant 320 : index
    %c0_77 = arith.constant 0 : index
    %119 = vector.load %arg7[%c320, %c0_77] : memref<2240x256xbf16, #tpu.memory_space<vmem>>, vector<64x256xbf16>
    %cst_78 = arith.constant dense<0.000000e+00> : vector<8x256xf32>
    %120 = tpu.matmul %118, %119, %cst_78 {dimension_numbers = #tpu.dot_dimension_numbers<[1], [0], [0], [1], [0, 0, 1, 1], [], []>} : vector<8x64xbf16>, vector<64x256xbf16>, vector<8x256xf32> -> vector<8x256xf32>
    %121 = arith.addf %116, %120 : vector<8x256xf32>
    %c128_79 = arith.constant 128 : index
    %c0_80 = arith.constant 0 : index
    %122 = vector.load %arg14[%c128_79, %c0_80] : memref<512x64xf32, #tpu.memory_space<vmem>>, vector<8x64xf32>
    %123 = arith.truncf %122 : vector<8x64xf32> to vector<8x64xbf16>
    %c384 = arith.constant 384 : index
    %c0_81 = arith.constant 0 : index
    %124 = vector.load %arg7[%c384, %c0_81] : memref<2240x256xbf16, #tpu.memory_space<vmem>>, vector<64x256xbf16>
    %cst_82 = arith.constant dense<0.000000e+00> : vector<8x256xf32>
    %125 = tpu.matmul %123, %124, %cst_82 {dimension_numbers = #tpu.dot_dimension_numbers<[1], [0], [0], [1], [0, 0, 1, 1], [], []>} : vector<8x64xbf16>, vector<64x256xbf16>, vector<8x256xf32> -> vector<8x256xf32>
    %126 = arith.addf %121, %125 : vector<8x256xf32>
    %c136 = arith.constant 136 : index
    %c0_83 = arith.constant 0 : index
    %127 = vector.load %arg14[%c136, %c0_83] : memref<512x64xf32, #tpu.memory_space<vmem>>, vector<8x64xf32>
    %128 = arith.truncf %127 : vector<8x64xf32> to vector<8x64xbf16>
    %c448 = arith.constant 448 : index
    %c0_84 = arith.constant 0 : index
    %129 = vector.load %arg7[%c448, %c0_84] : memref<2240x256xbf16, #tpu.memory_space<vmem>>, vector<64x256xbf16>
    %cst_85 = arith.constant dense<0.000000e+00> : vector<8x256xf32>
    %130 = tpu.matmul %128, %129, %cst_85 {dimension_numbers = #tpu.dot_dimension_numbers<[1], [0], [0], [1], [0, 0, 1, 1], [], []>} : vector<8x64xbf16>, vector<64x256xbf16>, vector<8x256xf32> -> vector<8x256xf32>
    %131 = arith.addf %126, %130 : vector<8x256xf32>
    %c144 = arith.constant 144 : index
    %c0_86 = arith.constant 0 : index
    %132 = vector.load %arg14[%c144, %c0_86] : memref<512x64xf32, #tpu.memory_space<vmem>>, vector<8x64xf32>
    %133 = arith.truncf %132 : vector<8x64xf32> to vector<8x64xbf16>
    %c512 = arith.constant 512 : index
    %c0_87 = arith.constant 0 : index
    %134 = vector.load %arg7[%c512, %c0_87] : memref<2240x256xbf16, #tpu.memory_space<vmem>>, vector<64x256xbf16>
    %cst_88 = arith.constant dense<0.000000e+00> : vector<8x256xf32>
    %135 = tpu.matmul %133, %134, %cst_88 {dimension_numbers = #tpu.dot_dimension_numbers<[1], [0], [0], [1], [0, 0, 1, 1], [], []>} : vector<8x64xbf16>, vector<64x256xbf16>, vector<8x256xf32> -> vector<8x256xf32>
    %136 = arith.addf %131, %135 : vector<8x256xf32>
    %c152 = arith.constant 152 : index
    %c0_89 = arith.constant 0 : index
    %137 = vector.load %arg14[%c152, %c0_89] : memref<512x64xf32, #tpu.memory_space<vmem>>, vector<8x64xf32>
    %138 = arith.truncf %137 : vector<8x64xf32> to vector<8x64xbf16>
    %c576_90 = arith.constant 576 : index
    %c0_91 = arith.constant 0 : index
    %139 = vector.load %arg7[%c576_90, %c0_91] : memref<2240x256xbf16, #tpu.memory_space<vmem>>, vector<64x256xbf16>
    %cst_92 = arith.constant dense<0.000000e+00> : vector<8x256xf32>
    %140 = tpu.matmul %138, %139, %cst_92 {dimension_numbers = #tpu.dot_dimension_numbers<[1], [0], [0], [1], [0, 0, 1, 1], [], []>} : vector<8x64xbf16>, vector<64x256xbf16>, vector<8x256xf32> -> vector<8x256xf32>
    %141 = arith.addf %136, %140 : vector<8x256xf32>
    %c176 = arith.constant 176 : index
    %c0_93 = arith.constant 0 : index
    %142 = vector.load %arg14[%c176, %c0_93] : memref<512x64xf32, #tpu.memory_space<vmem>>, vector<8x64xf32>
    %143 = arith.truncf %142 : vector<8x64xf32> to vector<8x64xbf16>
    %c640 = arith.constant 640 : index
    %c0_94 = arith.constant 0 : index
    %144 = vector.load %arg7[%c640, %c0_94] : memref<2240x256xbf16, #tpu.memory_space<vmem>>, vector<64x256xbf16>
    %cst_95 = arith.constant dense<0.000000e+00> : vector<8x256xf32>
    %145 = tpu.matmul %143, %144, %cst_95 {dimension_numbers = #tpu.dot_dimension_numbers<[1], [0], [0], [1], [0, 0, 1, 1], [], []>} : vector<8x64xbf16>, vector<64x256xbf16>, vector<8x256xf32> -> vector<8x256xf32>
    %146 = arith.addf %141, %145 : vector<8x256xf32>
    %c184 = arith.constant 184 : index
    %c0_96 = arith.constant 0 : index
    %147 = vector.load %arg14[%c184, %c0_96] : memref<512x64xf32, #tpu.memory_space<vmem>>, vector<8x64xf32>
    %148 = arith.truncf %147 : vector<8x64xf32> to vector<8x64xbf16>
    %c704 = arith.constant 704 : index
    %c0_97 = arith.constant 0 : index
    %149 = vector.load %arg7[%c704, %c0_97] : memref<2240x256xbf16, #tpu.memory_space<vmem>>, vector<64x256xbf16>
    %cst_98 = arith.constant dense<0.000000e+00> : vector<8x256xf32>
    %150 = tpu.matmul %148, %149, %cst_98 {dimension_numbers = #tpu.dot_dimension_numbers<[1], [0], [0], [1], [0, 0, 1, 1], [], []>} : vector<8x64xbf16>, vector<64x256xbf16>, vector<8x256xf32> -> vector<8x256xf32>
    %151 = arith.addf %146, %150 : vector<8x256xf32>
    %c192_99 = arith.constant 192 : index
    %c0_100 = arith.constant 0 : index
    %152 = vector.load %arg14[%c192_99, %c0_100] : memref<512x64xf32, #tpu.memory_space<vmem>>, vector<8x64xf32>
    %153 = arith.truncf %152 : vector<8x64xf32> to vector<8x64xbf16>
    %c768 = arith.constant 768 : index
    %c0_101 = arith.constant 0 : index
    %154 = vector.load %arg7[%c768, %c0_101] : memref<2240x256xbf16, #tpu.memory_space<vmem>>, vector<64x256xbf16>
    %cst_102 = arith.constant dense<0.000000e+00> : vector<8x256xf32>
    %155 = tpu.matmul %153, %154, %cst_102 {dimension_numbers = #tpu.dot_dimension_numbers<[1], [0], [0], [1], [0, 0, 1, 1], [], []>} : vector<8x64xbf16>, vector<64x256xbf16>, vector<8x256xf32> -> vector<8x256xf32>
    %156 = arith.addf %151, %155 : vector<8x256xf32>
    %c200 = arith.constant 200 : index
    %c0_103 = arith.constant 0 : index
    %157 = vector.load %arg14[%c200, %c0_103] : memref<512x64xf32, #tpu.memory_space<vmem>>, vector<8x64xf32>
    %158 = arith.truncf %157 : vector<8x64xf32> to vector<8x64xbf16>
    %c832 = arith.constant 832 : index
    %c0_104 = arith.constant 0 : index
    %159 = vector.load %arg7[%c832, %c0_104] : memref<2240x256xbf16, #tpu.memory_space<vmem>>, vector<64x256xbf16>
    %cst_105 = arith.constant dense<0.000000e+00> : vector<8x256xf32>
    %160 = tpu.matmul %158, %159, %cst_105 {dimension_numbers = #tpu.dot_dimension_numbers<[1], [0], [0], [1], [0, 0, 1, 1], [], []>} : vector<8x64xbf16>, vector<64x256xbf16>, vector<8x256xf32> -> vector<8x256xf32>
    %161 = arith.addf %156, %160 : vector<8x256xf32>
    %c208 = arith.constant 208 : index
    %c0_106 = arith.constant 0 : index
    %162 = vector.load %arg14[%c208, %c0_106] : memref<512x64xf32, #tpu.memory_space<vmem>>, vector<8x64xf32>
    %163 = arith.truncf %162 : vector<8x64xf32> to vector<8x64xbf16>
    %c896 = arith.constant 896 : index
    %c0_107 = arith.constant 0 : index
    %164 = vector.load %arg7[%c896, %c0_107] : memref<2240x256xbf16, #tpu.memory_space<vmem>>, vector<64x256xbf16>
    %cst_108 = arith.constant dense<0.000000e+00> : vector<8x256xf32>
    %165 = tpu.matmul %163, %164, %cst_108 {dimension_numbers = #tpu.dot_dimension_numbers<[1], [0], [0], [1], [0, 0, 1, 1], [], []>} : vector<8x64xbf16>, vector<64x256xbf16>, vector<8x256xf32> -> vector<8x256xf32>
    %166 = arith.addf %161, %165 : vector<8x256xf32>
    %c232 = arith.constant 232 : index
    %c0_109 = arith.constant 0 : index
    %167 = vector.load %arg14[%c232, %c0_109] : memref<512x64xf32, #tpu.memory_space<vmem>>, vector<8x64xf32>
    %168 = arith.truncf %167 : vector<8x64xf32> to vector<8x64xbf16>
    %c960 = arith.constant 960 : index
    %c0_110 = arith.constant 0 : index
    %169 = vector.load %arg7[%c960, %c0_110] : memref<2240x256xbf16, #tpu.memory_space<vmem>>, vector<64x256xbf16>
    %cst_111 = arith.constant dense<0.000000e+00> : vector<8x256xf32>
    %170 = tpu.matmul %168, %169, %cst_111 {dimension_numbers = #tpu.dot_dimension_numbers<[1], [0], [0], [1], [0, 0, 1, 1], [], []>} : vector<8x64xbf16>, vector<64x256xbf16>, vector<8x256xf32> -> vector<8x256xf32>
    %171 = arith.addf %166, %170 : vector<8x256xf32>
    %c240 = arith.constant 240 : index
    %c0_112 = arith.constant 0 : index
    %172 = vector.load %arg14[%c240, %c0_112] : memref<512x64xf32, #tpu.memory_space<vmem>>, vector<8x64xf32>
    %173 = arith.truncf %172 : vector<8x64xf32> to vector<8x64xbf16>
    %c1024 = arith.constant 1024 : index
    %c0_113 = arith.constant 0 : index
    %174 = vector.load %arg7[%c1024, %c0_113] : memref<2240x256xbf16, #tpu.memory_space<vmem>>, vector<64x256xbf16>
    %cst_114 = arith.constant dense<0.000000e+00> : vector<8x256xf32>
    %175 = tpu.matmul %173, %174, %cst_114 {dimension_numbers = #tpu.dot_dimension_numbers<[1], [0], [0], [1], [0, 0, 1, 1], [], []>} : vector<8x64xbf16>, vector<64x256xbf16>, vector<8x256xf32> -> vector<8x256xf32>
    %176 = arith.addf %171, %175 : vector<8x256xf32>
    %c248 = arith.constant 248 : index
    %c0_115 = arith.constant 0 : index
    %177 = vector.load %arg14[%c248, %c0_115] : memref<512x64xf32, #tpu.memory_space<vmem>>, vector<8x64xf32>
    %178 = arith.truncf %177 : vector<8x64xf32> to vector<8x64xbf16>
    %c1088 = arith.constant 1088 : index
    %c0_116 = arith.constant 0 : index
    %179 = vector.load %arg7[%c1088, %c0_116] : memref<2240x256xbf16, #tpu.memory_space<vmem>>, vector<64x256xbf16>
    %cst_117 = arith.constant dense<0.000000e+00> : vector<8x256xf32>
    %180 = tpu.matmul %178, %179, %cst_117 {dimension_numbers = #tpu.dot_dimension_numbers<[1], [0], [0], [1], [0, 0, 1, 1], [], []>} : vector<8x64xbf16>, vector<64x256xbf16>, vector<8x256xf32> -> vector<8x256xf32>
    %181 = arith.addf %176, %180 : vector<8x256xf32>
    %c256_118 = arith.constant 256 : index
    %c0_119 = arith.constant 0 : index
    %182 = vector.load %arg14[%c256_118, %c0_119] : memref<512x64xf32, #tpu.memory_space<vmem>>, vector<8x64xf32>
    %183 = arith.truncf %182 : vector<8x64xf32> to vector<8x64xbf16>
    %c1152 = arith.constant 1152 : index
    %c0_120 = arith.constant 0 : index
    %184 = vector.load %arg7[%c1152, %c0_120] : memref<2240x256xbf16, #tpu.memory_space<vmem>>, vector<64x256xbf16>
    %cst_121 = arith.constant dense<0.000000e+00> : vector<8x256xf32>
    %185 = tpu.matmul %183, %184, %cst_121 {dimension_numbers = #tpu.dot_dimension_numbers<[1], [0], [0], [1], [0, 0, 1, 1], [], []>} : vector<8x64xbf16>, vector<64x256xbf16>, vector<8x256xf32> -> vector<8x256xf32>
    %186 = arith.addf %181, %185 : vector<8x256xf32>
    %c264 = arith.constant 264 : index
    %c0_122 = arith.constant 0 : index
    %187 = vector.load %arg14[%c264, %c0_122] : memref<512x64xf32, #tpu.memory_space<vmem>>, vector<8x64xf32>
    %188 = arith.truncf %187 : vector<8x64xf32> to vector<8x64xbf16>
    %c1216 = arith.constant 1216 : index
    %c0_123 = arith.constant 0 : index
    %189 = vector.load %arg7[%c1216, %c0_123] : memref<2240x256xbf16, #tpu.memory_space<vmem>>, vector<64x256xbf16>
    %cst_124 = arith.constant dense<0.000000e+00> : vector<8x256xf32>
    %190 = tpu.matmul %188, %189, %cst_124 {dimension_numbers = #tpu.dot_dimension_numbers<[1], [0], [0], [1], [0, 0, 1, 1], [], []>} : vector<8x64xbf16>, vector<64x256xbf16>, vector<8x256xf32> -> vector<8x256xf32>
    %191 = arith.addf %186, %190 : vector<8x256xf32>
    %c288 = arith.constant 288 : index
    %c0_125 = arith.constant 0 : index
    %192 = vector.load %arg14[%c288, %c0_125] : memref<512x64xf32, #tpu.memory_space<vmem>>, vector<8x64xf32>
    %193 = arith.truncf %192 : vector<8x64xf32> to vector<8x64xbf16>
    %c1280 = arith.constant 1280 : index
    %c0_126 = arith.constant 0 : index
    %194 = vector.load %arg7[%c1280, %c0_126] : memref<2240x256xbf16, #tpu.memory_space<vmem>>, vector<64x256xbf16>
    %cst_127 = arith.constant dense<0.000000e+00> : vector<8x256xf32>
    %195 = tpu.matmul %193, %194, %cst_127 {dimension_numbers = #tpu.dot_dimension_numbers<[1], [0], [0], [1], [0, 0, 1, 1], [], []>} : vector<8x64xbf16>, vector<64x256xbf16>, vector<8x256xf32> -> vector<8x256xf32>
    %196 = arith.addf %191, %195 : vector<8x256xf32>
    %c296 = arith.constant 296 : index
    %c0_128 = arith.constant 0 : index
    %197 = vector.load %arg14[%c296, %c0_128] : memref<512x64xf32, #tpu.memory_space<vmem>>, vector<8x64xf32>
    %198 = arith.truncf %197 : vector<8x64xf32> to vector<8x64xbf16>
    %c1344 = arith.constant 1344 : index
    %c0_129 = arith.constant 0 : index
    %199 = vector.load %arg7[%c1344, %c0_129] : memref<2240x256xbf16, #tpu.memory_space<vmem>>, vector<64x256xbf16>
    %cst_130 = arith.constant dense<0.000000e+00> : vector<8x256xf32>
    %200 = tpu.matmul %198, %199, %cst_130 {dimension_numbers = #tpu.dot_dimension_numbers<[1], [0], [0], [1], [0, 0, 1, 1], [], []>} : vector<8x64xbf16>, vector<64x256xbf16>, vector<8x256xf32> -> vector<8x256xf32>
    %201 = arith.addf %196, %200 : vector<8x256xf32>
    %c304 = arith.constant 304 : index
    %c0_131 = arith.constant 0 : index
    %202 = vector.load %arg14[%c304, %c0_131] : memref<512x64xf32, #tpu.memory_space<vmem>>, vector<8x64xf32>
    %203 = arith.truncf %202 : vector<8x64xf32> to vector<8x64xbf16>
    %c1408 = arith.constant 1408 : index
    %c0_132 = arith.constant 0 : index
    %204 = vector.load %arg7[%c1408, %c0_132] : memref<2240x256xbf16, #tpu.memory_space<vmem>>, vector<64x256xbf16>
    %cst_133 = arith.constant dense<0.000000e+00> : vector<8x256xf32>
    %205 = tpu.matmul %203, %204, %cst_133 {dimension_numbers = #tpu.dot_dimension_numbers<[1], [0], [0], [1], [0, 0, 1, 1], [], []>} : vector<8x64xbf16>, vector<64x256xbf16>, vector<8x256xf32> -> vector<8x256xf32>
    %206 = arith.addf %201, %205 : vector<8x256xf32>
    %c312 = arith.constant 312 : index
    %c0_134 = arith.constant 0 : index
    %207 = vector.load %arg14[%c312, %c0_134] : memref<512x64xf32, #tpu.memory_space<vmem>>, vector<8x64xf32>
    %208 = arith.truncf %207 : vector<8x64xf32> to vector<8x64xbf16>
    %c1472 = arith.constant 1472 : index
    %c0_135 = arith.constant 0 : index
    %209 = vector.load %arg7[%c1472, %c0_135] : memref<2240x256xbf16, #tpu.memory_space<vmem>>, vector<64x256xbf16>
    %cst_136 = arith.constant dense<0.000000e+00> : vector<8x256xf32>
    %210 = tpu.matmul %208, %209, %cst_136 {dimension_numbers = #tpu.dot_dimension_numbers<[1], [0], [0], [1], [0, 0, 1, 1], [], []>} : vector<8x64xbf16>, vector<64x256xbf16>, vector<8x256xf32> -> vector<8x256xf32>
    %211 = arith.addf %206, %210 : vector<8x256xf32>
    %c320_137 = arith.constant 320 : index
    %c0_138 = arith.constant 0 : index
    %212 = vector.load %arg14[%c320_137, %c0_138] : memref<512x64xf32, #tpu.memory_space<vmem>>, vector<8x64xf32>
    %213 = arith.truncf %212 : vector<8x64xf32> to vector<8x64xbf16>
    %c1536 = arith.constant 1536 : index
    %c0_139 = arith.constant 0 : index
    %214 = vector.load %arg7[%c1536, %c0_139] : memref<2240x256xbf16, #tpu.memory_space<vmem>>, vector<64x256xbf16>
    %cst_140 = arith.constant dense<0.000000e+00> : vector<8x256xf32>
    %215 = tpu.matmul %213, %214, %cst_140 {dimension_numbers = #tpu.dot_dimension_numbers<[1], [0], [0], [1], [0, 0, 1, 1], [], []>} : vector<8x64xbf16>, vector<64x256xbf16>, vector<8x256xf32> -> vector<8x256xf32>
    %216 = arith.addf %211, %215 : vector<8x256xf32>
    %c344 = arith.constant 344 : index
    %c0_141 = arith.constant 0 : index
    %217 = vector.load %arg14[%c344, %c0_141] : memref<512x64xf32, #tpu.memory_space<vmem>>, vector<8x64xf32>
    %218 = arith.truncf %217 : vector<8x64xf32> to vector<8x64xbf16>
    %c1600 = arith.constant 1600 : index
    %c0_142 = arith.constant 0 : index
    %219 = vector.load %arg7[%c1600, %c0_142] : memref<2240x256xbf16, #tpu.memory_space<vmem>>, vector<64x256xbf16>
    %cst_143 = arith.constant dense<0.000000e+00> : vector<8x256xf32>
    %220 = tpu.matmul %218, %219, %cst_143 {dimension_numbers = #tpu.dot_dimension_numbers<[1], [0], [0], [1], [0, 0, 1, 1], [], []>} : vector<8x64xbf16>, vector<64x256xbf16>, vector<8x256xf32> -> vector<8x256xf32>
    %221 = arith.addf %216, %220 : vector<8x256xf32>
    %c352 = arith.constant 352 : index
    %c0_144 = arith.constant 0 : index
    %222 = vector.load %arg14[%c352, %c0_144] : memref<512x64xf32, #tpu.memory_space<vmem>>, vector<8x64xf32>
    %223 = arith.truncf %222 : vector<8x64xf32> to vector<8x64xbf16>
    %c1664 = arith.constant 1664 : index
    %c0_145 = arith.constant 0 : index
    %224 = vector.load %arg7[%c1664, %c0_145] : memref<2240x256xbf16, #tpu.memory_space<vmem>>, vector<64x256xbf16>
    %cst_146 = arith.constant dense<0.000000e+00> : vector<8x256xf32>
    %225 = tpu.matmul %223, %224, %cst_146 {dimension_numbers = #tpu.dot_dimension_numbers<[1], [0], [0], [1], [0, 0, 1, 1], [], []>} : vector<8x64xbf16>, vector<64x256xbf16>, vector<8x256xf32> -> vector<8x256xf32>
    %226 = arith.addf %221, %225 : vector<8x256xf32>
    %c360 = arith.constant 360 : index
    %c0_147 = arith.constant 0 : index
    %227 = vector.load %arg14[%c360, %c0_147] : memref<512x64xf32, #tpu.memory_space<vmem>>, vector<8x64xf32>
    %228 = arith.truncf %227 : vector<8x64xf32> to vector<8x64xbf16>
    %c1728 = arith.constant 1728 : index
    %c0_148 = arith.constant 0 : index
    %229 = vector.load %arg7[%c1728, %c0_148] : memref<2240x256xbf16, #tpu.memory_space<vmem>>, vector<64x256xbf16>
    %cst_149 = arith.constant dense<0.000000e+00> : vector<8x256xf32>
    %230 = tpu.matmul %228, %229, %cst_149 {dimension_numbers = #tpu.dot_dimension_numbers<[1], [0], [0], [1], [0, 0, 1, 1], [], []>} : vector<8x64xbf16>, vector<64x256xbf16>, vector<8x256xf32> -> vector<8x256xf32>
    %231 = arith.addf %226, %230 : vector<8x256xf32>
    %c368 = arith.constant 368 : index
    %c0_150 = arith.constant 0 : index
    %232 = vector.load %arg14[%c368, %c0_150] : memref<512x64xf32, #tpu.memory_space<vmem>>, vector<8x64xf32>
    %233 = arith.truncf %232 : vector<8x64xf32> to vector<8x64xbf16>
    %c1792 = arith.constant 1792 : index
    %c0_151 = arith.constant 0 : index
    %234 = vector.load %arg7[%c1792, %c0_151] : memref<2240x256xbf16, #tpu.memory_space<vmem>>, vector<64x256xbf16>
    %cst_152 = arith.constant dense<0.000000e+00> : vector<8x256xf32>
    %235 = tpu.matmul %233, %234, %cst_152 {dimension_numbers = #tpu.dot_dimension_numbers<[1], [0], [0], [1], [0, 0, 1, 1], [], []>} : vector<8x64xbf16>, vector<64x256xbf16>, vector<8x256xf32> -> vector<8x256xf32>
    %236 = arith.addf %231, %235 : vector<8x256xf32>
    %c376 = arith.constant 376 : index
    %c0_153 = arith.constant 0 : index
    %237 = vector.load %arg14[%c376, %c0_153] : memref<512x64xf32, #tpu.memory_space<vmem>>, vector<8x64xf32>
    %238 = arith.truncf %237 : vector<8x64xf32> to vector<8x64xbf16>
    %c1856 = arith.constant 1856 : index
    %c0_154 = arith.constant 0 : index
    %239 = vector.load %arg7[%c1856, %c0_154] : memref<2240x256xbf16, #tpu.memory_space<vmem>>, vector<64x256xbf16>
    %cst_155 = arith.constant dense<0.000000e+00> : vector<8x256xf32>
    %240 = tpu.matmul %238, %239, %cst_155 {dimension_numbers = #tpu.dot_dimension_numbers<[1], [0], [0], [1], [0, 0, 1, 1], [], []>} : vector<8x64xbf16>, vector<64x256xbf16>, vector<8x256xf32> -> vector<8x256xf32>
    %241 = arith.addf %236, %240 : vector<8x256xf32>
    %c400 = arith.constant 400 : index
    %c0_156 = arith.constant 0 : index
    %242 = vector.load %arg14[%c400, %c0_156] : memref<512x64xf32, #tpu.memory_space<vmem>>, vector<8x64xf32>
    %243 = arith.truncf %242 : vector<8x64xf32> to vector<8x64xbf16>
    %c1920 = arith.constant 1920 : index
    %c0_157 = arith.constant 0 : index
    %244 = vector.load %arg7[%c1920, %c0_157] : memref<2240x256xbf16, #tpu.memory_space<vmem>>, vector<64x256xbf16>
    %cst_158 = arith.constant dense<0.000000e+00> : vector<8x256xf32>
    %245 = tpu.matmul %243, %244, %cst_158 {dimension_numbers = #tpu.dot_dimension_numbers<[1], [0], [0], [1], [0, 0, 1, 1], [], []>} : vector<8x64xbf16>, vector<64x256xbf16>, vector<8x256xf32> -> vector<8x256xf32>
    %246 = arith.addf %241, %245 : vector<8x256xf32>
    %c408 = arith.constant 408 : index
    %c0_159 = arith.constant 0 : index
    %247 = vector.load %arg14[%c408, %c0_159] : memref<512x64xf32, #tpu.memory_space<vmem>>, vector<8x64xf32>
    %248 = arith.truncf %247 : vector<8x64xf32> to vector<8x64xbf16>
    %c1984 = arith.constant 1984 : index
    %c0_160 = arith.constant 0 : index
    %249 = vector.load %arg7[%c1984, %c0_160] : memref<2240x256xbf16, #tpu.memory_space<vmem>>, vector<64x256xbf16>
    %cst_161 = arith.constant dense<0.000000e+00> : vector<8x256xf32>
    %250 = tpu.matmul %248, %249, %cst_161 {dimension_numbers = #tpu.dot_dimension_numbers<[1], [0], [0], [1], [0, 0, 1, 1], [], []>} : vector<8x64xbf16>, vector<64x256xbf16>, vector<8x256xf32> -> vector<8x256xf32>
    %251 = arith.addf %246, %250 : vector<8x256xf32>
    %c416 = arith.constant 416 : index
    %c0_162 = arith.constant 0 : index
    %252 = vector.load %arg14[%c416, %c0_162] : memref<512x64xf32, #tpu.memory_space<vmem>>, vector<8x64xf32>
    %253 = arith.truncf %252 : vector<8x64xf32> to vector<8x64xbf16>
    %c2048 = arith.constant 2048 : index
    %c0_163 = arith.constant 0 : index
    %254 = vector.load %arg7[%c2048, %c0_163] : memref<2240x256xbf16, #tpu.memory_space<vmem>>, vector<64x256xbf16>
    %cst_164 = arith.constant dense<0.000000e+00> : vector<8x256xf32>
    %255 = tpu.matmul %253, %254, %cst_164 {dimension_numbers = #tpu.dot_dimension_numbers<[1], [0], [0], [1], [0, 0, 1, 1], [], []>} : vector<8x64xbf16>, vector<64x256xbf16>, vector<8x256xf32> -> vector<8x256xf32>
    %256 = arith.addf %251, %255 : vector<8x256xf32>
    %c424 = arith.constant 424 : index
    %c0_165 = arith.constant 0 : index
    %257 = vector.load %arg14[%c424, %c0_165] : memref<512x64xf32, #tpu.memory_space<vmem>>, vector<8x64xf32>
    %258 = arith.truncf %257 : vector<8x64xf32> to vector<8x64xbf16>
    %c2112 = arith.constant 2112 : index
    %c0_166 = arith.constant 0 : index
    %259 = vector.load %arg7[%c2112, %c0_166] : memref<2240x256xbf16, #tpu.memory_space<vmem>>, vector<64x256xbf16>
    %cst_167 = arith.constant dense<0.000000e+00> : vector<8x256xf32>
    %260 = tpu.matmul %258, %259, %cst_167 {dimension_numbers = #tpu.dot_dimension_numbers<[1], [0], [0], [1], [0, 0, 1, 1], [], []>} : vector<8x64xbf16>, vector<64x256xbf16>, vector<8x256xf32> -> vector<8x256xf32>
    %261 = arith.addf %256, %260 : vector<8x256xf32>
    %c432 = arith.constant 432 : index
    %c0_168 = arith.constant 0 : index
    %262 = vector.load %arg14[%c432, %c0_168] : memref<512x64xf32, #tpu.memory_space<vmem>>, vector<8x64xf32>
    %263 = arith.truncf %262 : vector<8x64xf32> to vector<8x64xbf16>
    %c2176 = arith.constant 2176 : index
    %c0_169 = arith.constant 0 : index
    %264 = vector.load %arg7[%c2176, %c0_169] : memref<2240x256xbf16, #tpu.memory_space<vmem>>, vector<64x256xbf16>
    %cst_170 = arith.constant dense<0.000000e+00> : vector<8x256xf32>
    %265 = tpu.matmul %263, %264, %cst_170 {dimension_numbers = #tpu.dot_dimension_numbers<[1], [0], [0], [1], [0, 0, 1, 1], [], []>} : vector<8x64xbf16>, vector<64x256xbf16>, vector<8x256xf32> -> vector<8x256xf32>
    %266 = arith.addf %261, %265 : vector<8x256xf32>
    %cst_171 = arith.constant 0.000000e+00 : f32
    %267 = vector.broadcast %cst_171 : f32 to vector<8x256xf32>
    %268 = arith.maximumf %266, %267 : vector<8x256xf32>
    %269 = arith.truncf %268 : vector<8x256xf32> to vector<8x256xbf16>
    %c0_172 = arith.constant 0 : index
    %c0_173 = arith.constant 0 : index
    %270 = vector.load %arg10[%c0_172, %c0_173] : memref<256x128xbf16, #tpu.memory_space<vmem>>, vector<256x128xbf16>
    %cst_174 = arith.constant dense<0.000000e+00> : vector<8x128xf32>
    %271 = tpu.matmul %269, %270, %cst_174 {dimension_numbers = #tpu.dot_dimension_numbers<[1], [0], [0], [1], [0, 0, 1, 1], [], []>} : vector<8x256xbf16>, vector<256x128xbf16>, vector<8x128xf32> -> vector<8x128xf32>
    %c0_175 = arith.constant 0 : index
    %c0_176 = arith.constant 0 : index
    %272 = vector.load %arg11[%c0_175, %c0_176] : memref<1x128xf32, #tpu.memory_space<vmem>>, vector<1x128xf32>
    %273 = vector.broadcast %272 : vector<1x128xf32> to vector<8x128xf32>
    %274 = arith.addf %271, %273 : vector<8x128xf32>
    %c0_177 = arith.constant 0 : index
    %c0_178 = arith.constant 0 : index
    %275 = vector.load %arg12[%c0_177, %c0_178] : memref<8x128xf32, #tpu.memory_space<vmem>>, vector<8x128xf32>
    tpu.vector_store %arg12[%c0_177, %c0_178], %274 {strides = array<i32>} : memref<8x128xf32, #tpu.memory_space<vmem>>, vector<8x128xf32>,
    return
  }
  func.func @transform_0(%arg0: i32) -> (i32, i32) {
    %c0_i32 = arith.constant 0 : i32
    %c0_i32_0 = arith.constant 0 : i32
    return %arg0, %c0_i32 : i32, i32
  }
  func.func @transform_1(%arg0: i32) -> (i32, i32) {
    %c0_i32 = arith.constant 0 : i32
    %c0_i32_0 = arith.constant 0 : i32
    return %arg0, %c0_i32 : i32, i32
  }
  func.func @transform_2(%arg0: i32) -> (i32, i32) {
    %c0_i32 = arith.constant 0 : i32
    %c0_i32_0 = arith.constant 0 : i32
    %c0_i32_1 = arith.constant 0 : i32
    return %c0_i32, %c0_i32_0 : i32, i32
  }
  func.func @transform_3(%arg0: i32) -> (i32, i32) {
    %c0_i32 = arith.constant 0 : i32
    %c0_i32_0 = arith.constant 0 : i32
    %c0_i32_1 = arith.constant 0 : i32
    return %c0_i32, %c0_i32_0 : i32, i32
  }
  func.func @transform_4(%arg0: i32) -> (i32, i32) {
    %c0_i32 = arith.constant 0 : i32
    %c0_i32_0 = arith.constant 0 : i32
    %c0_i32_1 = arith.constant 0 : i32
    return %c0_i32, %c0_i32_0 : i32, i32
  }
  func.func @transform_5(%arg0: i32) -> (i32, i32) {
    %c0_i32 = arith.constant 0 : i32
    %c0_i32_0 = arith.constant 0 : i32
    %c0_i32_1 = arith.constant 0 : i32
    return %c0_i32, %c0_i32_0 : i32, i32
  }
  func.func @transform_6(%arg0: i32) -> (i32, i32) {
    %c0_i32 = arith.constant 0 : i32
    %c0_i32_0 = arith.constant 0 : i32
    %c0_i32_1 = arith.constant 0 : i32
    return %c0_i32, %c0_i32_0 : i32, i32
  }
  func.func @transform_7(%arg0: i32) -> (i32, i32) {
    %c0_i32 = arith.constant 0 : i32
    %c0_i32_0 = arith.constant 0 : i32
    %c0_i32_1 = arith.constant 0 : i32
    return %c0_i32, %c0_i32_0 : i32, i32
  }
  func.func @transform_8(%arg0: i32) -> (i32, i32) {
    %c0_i32 = arith.constant 0 : i32
    %c0_i32_0 = arith.constant 0 : i32
    %c0_i32_1 = arith.constant 0 : i32
    return %c0_i32, %c0_i32_0 : i32, i32
  }
  func.func @transform_9(%arg0: i32) -> (i32, i32) {
    %c0_i32 = arith.constant 0 : i32
    %c0_i32_0 = arith.constant 0 : i32
    %c0_i32_1 = arith.constant 0 : i32
    return %c0_i32, %c0_i32_0 : i32, i32
  }
  func.func @transform_10(%arg0: i32) -> (i32, i32) {
    %c0_i32 = arith.constant 0 : i32
    %c0_i32_0 = arith.constant 0 : i32
    %c0_i32_1 = arith.constant 0 : i32
    return %c0_i32, %c0_i32_0 : i32, i32
  }
  func.func @transform_11(%arg0: i32) -> (i32, i32) {
    %c0_i32 = arith.constant 0 : i32
    %c0_i32_0 = arith.constant 0 : i32
    return %arg0, %c0_i32 : i32, i32
  }
}

</mosaic_0001>

<bundles_post_ra>
// kernel: cnn_dqn_forward.1
= control target key start
LH: loop header
LB: loop body
LE: loop exit
PB: predicated region body
PF: predicated region fallthrough
CT: control target
= control target key end

     0   :  { %s13532_s29 = smov 8   ;;  %s13533_s19 = smov 16   ;;  %vm3722_vm0 = vcmask 261120   ;;  %vm4216_vm1 = vcmask 1043456   ;;  %vm3527_vm2 = vcmask 64512   ;;  %vm3592_vm3 = vcmask 130048   ;;  %s20272_s0 = inlined_call_operand.vmem [shape: f32[640,8], index: 0, kind: input, shape index: {}]   ;;  %s20273_s2 = inlined_call_operand.vmem [shape: bf16[72,32], index: 2, kind: input, shape index: {}]   ;;  %s20274_s3 = inlined_call_operand.vmem [shape: f32[1,32], index: 3, kind: input, shape index: {}]   ;;  %s20275_s4 = inlined_call_operand.vmem [shape: bf16[288,64], index: 4, kind: input, shape index: {}]   ;;  %s20276_s5 = inlined_call_operand.vmem [shape: f32[1,64], index: 5, kind: input, shape index: {}]   ;;  %s20277_s6 = inlined_call_operand.vmem [shape: bf16[2240,256], index: 6, kind: input, shape index: {}]   ;;  %s20278_s7 = inlined_call_operand.vmem [shape: f32[8,256], index: 7, kind: input, shape index: {}]   ;;  %s20279_s1 = inlined_call_operand.vmem [shape: f32[8,8], index: 1, kind: input, shape index: {}]   ;;  %s20280_s8 = inlined_call_operand.vmem [shape: f32[1,256], index: 8, kind: input, shape index: {}]   ;;  %s20281_s9 = inlined_call_operand.vmem [shape: bf16[256,128], index: 9, kind: input, shape index: {}]   ;;  %s20282_s10 = inlined_call_operand.vmem [shape: f32[1,128], index: 10, kind: input, shape index: {}]   ;;  %s20283_s11 = inlined_call_operand.vmem [shape: f32[8,128], index: 11, kind: output, shape index: {}]  }
   0x1   :  { %v13605_v0 = vld [vmem:[%s20272_s0 + $0x48] sm:$0xff]  ;;  %v13610_v1 = vld [vmem:[%s20272_s0 + $0x50] sm:$0xff]  ;;  %v13642_v9 = vld [vmem:[%s20272_s0 + $0x58] sm:$0xff]  ;;  %s13534_s21 = smov 24   ;;  %s13535_s14 = smov 32   ;;  %vm3657_vm4 = vcmask 195584  }
   0x2   :  { %v13615_v2 = vld [vmem:[%s20272_s0 + $0x28] sm:$0xff]  ;;  %v13619_v3 = vpack.i.bf16 %v13610_v1, %v13605_v0  ;;  %v13624_v4 = vld [vmem:[%s20272_s0 + $0x30] sm:$0xff]  ;;  %v13649_v10 = vld [vmem:[%s20272_s0 + $0x60] sm:$0xff]  ;;  %s13536_s17 = smov 40   ;;  %s13537_s18 = smov 64   ;;  %vm3787_vm5 = vcmask 326656  }
   0x3   :  { %v1833_v5 = vld [vmem:[%s20272_s0 + $0x8] sm:$0xff]  ;;  %v13632_v6 = vld [vmem:[%s20272_s0 + $0x10] sm:$0xff]  ;;  %v11519_v7 = vpack.i.bf16 %v13624_v4, %v13615_v2  ;;  %v13654_v11 = vld [vmem:[%s20272_s0 + $0x38] sm:$0xff]  ;;  %v13673_v15 = vpack.i.bf16 %v13649_v10, %v13642_v9  ;;  %s13541_s25 = smov 96   ;;  %vm3852_vm6 = vcmask 392192   ;;  %vm3917_vm7 = vcmask 457728  }
   0x4   :  { %20440 = vst [vmem:[#allocation4_spill] sm:$0xff] %v13619_v3  ;;  %v11509_v8 = vpack.i.bf16 %v13632_v6, %v1833_v5  ;;  %11530 = vrot.lane.b32.xlu2 %v13619_v3, %s13532_s29  ;;  %v13659_v12 = vld [vmem:[%s20272_s0 + $0x40] sm:$0xff]  ;;  %v13664_v13 = vld [vmem:[%s20272_s0 + $0x18] sm:$0xff]  ;;  %v13686_v18 = vld [vmem:[%s20272_s0 + $0x88] sm:$0xff]  ;;  %vm3982_vm8 = vcmask 523264   ;;  %vm4119_vm9 = vcmask 588800  }
   0x5   :  { %11520 = vrot.lane.b32.xlu1 %v11519_v7, %s13532_s29  ;;  %v13669_v14 = vld [vmem:[%s20272_s0 + $0x20] sm:$0xff]  ;;  %20441 = vst [vmem:[#allocation5_spill] sm:$0xff] %v13673_v15  ;;  %v13677_v16 = vpack.i.bf16 %v13659_v12, %v13654_v11  ;;  %v13694_v19 = vld [vmem:[%s20272_s0 + $0x90] sm:$0xff]  ;;  %v13699_v20 = vld [vmem:[%s20272_s0 + $0x78] sm:$0xff]  ;;  %vm5543_vm10 = vcmask 785408  }
   0x6   :  { %11510 = vrot.lane.b32.xlu0 %v11509_v8, %s13532_s29  ;;  %v11514_v17 = vpack.i.bf16 %v13669_v14, %v13664_v13  ;;  %v13704_v21 = vld [vmem:[%s20272_s0 + $0x80] sm:$0xff]  ;;  %v13709_v22 = vld [vmem:[%s20272_s0 + $0x68] sm:$0xff]  ;;  %v13714_v23 = vld [vmem:[%s20272_s0 + $0x70] sm:$0xff]  ;;  %v13718_v24 = vpack.i.bf16 %v13694_v19, %v13686_v18 }
   0x7   :  { %20442 = vst [vmem:[#allocation6_spill] sm:$0xff] %v13677_v16  ;;  %v13722_v25 = vpack.i.bf16 %v13704_v21, %v13699_v20  ;;  %v13726_v26 = vpack.i.bf16 %v13714_v23, %v13709_v22  ;;  %v13733_v27 = vld [vmem:[%s20272_s0 + $0xb8] sm:$0xff]  ;;  %v13742_v28 = vld [vmem:[%s20272_s0 + $0xc0] sm:$0xff]  ;;  %v13747_v29 = vld [vmem:[%s20272_s0 + $0xa8] sm:$0xff] }
   0x8   :  { %20443 = vst [vmem:[#allocation7_spill] sm:$0xff] %v13718_v24  ;;  %v13752_v30 = vld [vmem:[%s20272_s0 + $0xb0] sm:$0xff]  ;;  %v13757_v31 = vld [vmem:[%s20272_s0 + $0x98] sm:$0xff]  ;;  %v13762_v32 = vld [vmem:[%s20272_s0 + $0xa0] sm:$0xff]  ;;  %v13766_v33 = vpack.i.bf16 %v13742_v28, %v13733_v27 }
   0x9   :  { %20444 = vst [vmem:[#allocation8_spill] sm:$0xff] %v13722_v25  ;;  %v13770_v34 = vpack.i.bf16 %v13752_v30, %v13747_v29  ;;  %v13774_v35 = vpack.i.bf16 %v13762_v32, %v13757_v31  ;;  %v13781_v36 = vld [vmem:[%s20272_s0 + $0xe8] sm:$0xff]  ;;  %v13790_v37 = vld [vmem:[%s20272_s0 + $0xf0] sm:$0xff]  ;;  %v13795_v38 = vld [vmem:[%s20272_s0 + $0xd8] sm:$0xff] }
   0xa   :  { %20445 = vst [vmem:[#allocation9_spill] sm:$0xff] %v13726_v26  ;;  %v13800_v39 = vld [vmem:[%s20272_s0 + $0xe0] sm:$0xff]  ;;  %v13805_v40 = vld [vmem:[%s20272_s0 + $0xc8] sm:$0xff]  ;;  %v13810_v41 = vld [vmem:[%s20272_s0 + $0xd0] sm:$0xff]  ;;  %v13814_v42 = vpack.i.bf16 %v13790_v37, %v13781_v36 }
   0xb   :  { %20446 = vst [vmem:[#allocation10_spill] sm:$0xff] %v13766_v33  ;;  %v13818_v43 = vpack.i.bf16 %v13800_v39, %v13795_v38  ;;  %v13822_v44 = vpack.i.bf16 %v13810_v41, %v13805_v40  ;;  %v13829_v45 = vld [vmem:[%s20272_s0 + $0x118] sm:$0xff]  ;;  %v13838_v46 = vld [vmem:[%s20272_s0 + $0x120] sm:$0xff]  ;;  %v13843_v47 = vld [vmem:[%s20272_s0 + $0x108] sm:$0xff] }
   0xc   :  { %11535 = vrot.lane.b32.xlu2 %v13673_v15, %s13532_s29  ;;  %20447 = vst [vmem:[#allocation11_spill] sm:$0xff] %v13770_v34  ;;  %v13848_v48 = vld [vmem:[%s20272_s0 + $0x110] sm:$0xff]  ;;  %v13853_v49 = vld [vmem:[%s20272_s0 + $0xf8] sm:$0xff]  ;;  %v13858_v50 = vld [vmem:[%s20272_s0 + $0x100] sm:$0xff]  ;;  %v13862_v51 = vpack.i.bf16 %v13838_v46, %v13829_v45 }
   0xd   :  { %11525 = vrot.lane.b32.xlu1 %v13677_v16, %s13532_s29  ;;  %20448 = vst [vmem:[#allocation12_spill] sm:$0xff] %v13774_v35  ;;  %v13866_v52 = vpack.i.bf16 %v13848_v48, %v13843_v47  ;;  %v13870_v53 = vpack.i.bf16 %v13858_v50, %v13853_v49  ;;  %v13877_v54 = vld [vmem:[%s20272_s0 + $0x148] sm:$0xff]  ;;  %v13886_v55 = vld [vmem:[%s20272_s0 + $0x150] sm:$0xff]  ;;  %v13891_v56 = vld [vmem:[%s20272_s0 + $0x138] sm:$0xff] }
   0xe   :  { %11515 = vrot.lane.b32.xlu0 %v11514_v17, %s13532_s29  ;;  %20449 = vst [vmem:[#allocation13_spill] sm:$0xff] %v13814_v42  ;;  %v13896_v57 = vld [vmem:[%s20272_s0 + $0x140] sm:$0xff]  ;;  %v13901_v58 = vld [vmem:[%s20272_s0 + $0x128] sm:$0xff]  ;;  %v13906_v59 = vld [vmem:[%s20272_s0 + $0x130] sm:$0xff]  ;;  %v13910_v60 = vpack.i.bf16 %v13886_v55, %v13877_v54 }
   0xf   :  { %20450 = vst [vmem:[#allocation14_spill] sm:$0xff] %v13818_v43  ;;  %v13914_v61 = vpack.i.bf16 %v13896_v57, %v13891_v56  ;;  %v13918_v62 = vpack.i.bf16 %v13906_v59, %v13901_v58  ;;  %v13925_v63 = vld [vmem:[%s20272_s0 + $0x178] sm:$0xff]  ;;  %v13934_v5 = vld [vmem:[%s20272_s0 + $0x180] sm:$0xff]  ;;  %v13939_v7 = vld [vmem:[%s20272_s0 + $0x168] sm:$0xff] }
  0x10   :  { %20451 = vst [vmem:[#allocation15_spill] sm:$0xff] %v13822_v44  ;;  %v13944_v8 = vld [vmem:[%s20272_s0 + $0x170] sm:$0xff]  ;;  %v13949_v17 = vld [vmem:[%s20272_s0 + $0x158] sm:$0xff]  ;;  %v14078_v3 = vld [vmem:[%s20272_s0 + $0x200] sm:$0xff] }
  0x11   :  { %20452 = vst [vmem:[#allocation16_spill] sm:$0xff] %v13862_v51  ;;  %v14073_v16 = vld [vmem:[%s20272_s0 + $0x1f8] sm:$0xff] }
  0x12   :  { %20453 = vst [vmem:[#allocation17_spill] sm:$0xff] %v13866_v52 }
  0x13   :  { %20454 = vst [vmem:[#allocation18_spill] sm:$0xff] %v13870_v53 }
  0x14   :  { %11550 = vrot.lane.b32.xlu2 %v13718_v24, %s13532_s29  ;;  %20455 = vst [vmem:[#allocation19_spill] sm:$0xff] %v13910_v60  ;;  %v14021_v24 = vld [vmem:[%s20272_s0 + $0x1d8] sm:$0xff] }
  0x15   :  { %11545 = vrot.lane.b32.xlu1 %v13722_v25, %s13532_s29  ;;  %20456 = vst [vmem:[#allocation20_spill] sm:$0xff] %v13914_v61 }
  0x16   :  { %11540 = vrot.lane.b32.xlu0 %v13726_v26, %s13532_s29  ;;  %20457 = vst [vmem:[#allocation21_spill] sm:$0xff] %v13918_v62 }
  0x17   :  { %20464 = vst [vmem:[#allocation28_spill] sm:$0xff] %v14021_v24 }
  0x18   :  { %20469 = vst [vmem:[#allocation33_spill] sm:$0xff] %v14078_v3 }
  0x1c   :  { %11565 = vrot.lane.b32.xlu2 %v13766_v33, %s13532_s29 }
  0x1d   :  { %11560 = vrot.lane.b32.xlu1 %v13770_v34, %s13532_s29  ;;  %v14040_v34 = vld [vmem:[%s20272_s0 + $0x1d0] sm:$0xff] }
  0x1e   :  { %11555 = vrot.lane.b32.xlu0 %v13774_v35, %s13532_s29  ;;  %v14030_v35 = vld [vmem:[%s20272_s0 + $0x1e0] sm:$0xff]  ;;  %20465 = vst [vmem:[#allocation29_spill] sm:$0xff] %v14040_v34 }
  0x1f   :  { %v14054_v15 = vpack.i.bf16 %v14030_v35, %v14021_v24  ;;  %v14094_v24 = vpack.i.bf16 %v14078_v3, %v14073_v16  ;;  %v11674_v3 = vpack.i.bf16 %v13615_v2, %v13669_v14  ;;  %v14129_v2 = vpack.i.bf16 %v13642_v9, %v13610_v1 }
  0x20   :  { %v14149_v1 = vpack.i.bf16 %v13686_v18, %v13704_v21  ;;  %v14169_v14 = vpack.i.bf16 %v13733_v27, %v13752_v30  ;;  %v14185_v21 = vpack.i.bf16 %v13843_v47, %v13858_v50  ;;  %v14209_v30 = vpack.i.bf16 %v13891_v56, %v13906_v59 }
  0x21   :  { %20466 = vst [vmem:[#allocation30_spill] sm:$0xff] %v14054_v15  ;;  %v14265_v50 = vpack.i.bf16 %v13925_v63, %v13944_v8 }
  0x24   :  { %11580 = vrot.lane.b32.xlu2 %v13814_v42, %s13532_s29  ;;  %v13973_v42 = vld [vmem:[%s20272_s0 + $0x1a8] sm:$0xff] }
  0x25   :  { %11575 = vrot.lane.b32.xlu1 %v13818_v43, %s13532_s29 }
  0x26   :  { %11570 = vrot.lane.b32.xlu0 %v13822_v44, %s13532_s29 }
  0x2c   :  { %11595 = vrot.lane.b32.xlu2 %v13862_v51, %s13532_s29  ;;  %v13958_v51 = vpack.i.bf16 %v13934_v5, %v13925_v63 }
  0x2d   :  { %11590 = vrot.lane.b32.xlu1 %v13866_v52, %s13532_s29  ;;  %v13992_v52 = vld [vmem:[%s20272_s0 + $0x1a0] sm:$0xff] }
  0x2e   :  { %11585 = vrot.lane.b32.xlu0 %v13870_v53, %s13532_s29  ;;  %20458 = vst [vmem:[#allocation22_spill] sm:$0xff] %v13958_v51  ;;  %v13982_v53 = vld [vmem:[%s20272_s0 + $0x1b0] sm:$0xff]  ;;  %v14289_v59 = vpack.i.bf16 %v13973_v42, %v13992_v52 }
  0x2f   :  { %v14006_v33 = vpack.i.bf16 %v13982_v53, %v13973_v42 }
  0x31   :  { %20461 = vst [vmem:[#allocation25_spill] sm:$0xff] %v14006_v33 }
  0x34   :  { %11610 = vrot.lane.b32.xlu2 %v13910_v60, %s13532_s29  ;;  %v13954_v60 = vld [vmem:[%s20272_s0 + $0x160] sm:$0xff] }
  0x35   :  { %11605 = vrot.lane.b32.xlu1 %v13914_v61, %s13532_s29  ;;  %v13966_v61 = vpack.i.bf16 %v13954_v60, %v13949_v17 }
  0x36   :  { %11600 = vrot.lane.b32.xlu0 %v13918_v62, %s13532_s29  ;;  %v13962_v62 = vpack.i.bf16 %v13944_v8, %v13939_v7 }
  0x37   :  { %20460 = vst [vmem:[#allocation24_spill] sm:$0xff] %v13966_v61 }
  0x38   :  { %20459 = vst [vmem:[#allocation23_spill] sm:$0xff] %v13962_v62 }
  0x3c   :  { %11625 = vrot.lane.b32.xlu2 %v13958_v51, %s13532_s29  ;;  %v13987_v51 = vld [vmem:[%s20272_s0 + $0x198] sm:$0xff] }
  0x3d   :  { %11620 = vrot.lane.b32.xlu1 %v13962_v62, %s13532_s29  ;;  %v13997_v62 = vld [vmem:[%s20272_s0 + $0x188] sm:$0xff]  ;;  %v14010_v44 = vpack.i.bf16 %v13992_v52, %v13987_v51 }
  0x3e   :  { %11615 = vrot.lane.b32.xlu0 %v13966_v61, %s13532_s29  ;;  %v14002_v61 = vld [vmem:[%s20272_s0 + $0x190] sm:$0xff]  ;;  %v20490_v52 = vld [vmem:[#allocation29_spill] sm:$0xff] }
  0x3f   :  { %20462 = vst [vmem:[#allocation26_spill] sm:$0xff] %v14010_v44  ;;  %v14014_v43 = vpack.i.bf16 %v14002_v61, %v13997_v62 }
  0x41   :  { %20463 = vst [vmem:[#allocation27_spill] sm:$0xff] %v14014_v43 }
  0x44   :  { %11640 = vrot.lane.b32.xlu2 %v14006_v33, %s13532_s29  ;;  %v14035_v33 = vld [vmem:[%s20272_s0 + $0x1c8] sm:$0xff] }
  0x45   :  { %11635 = vrot.lane.b32.xlu1 %v14010_v44, %s13532_s29  ;;  %v14045_v44 = vld [vmem:[%s20272_s0 + $0x1b8] sm:$0xff]  ;;  %v14058_v26 = vpack.i.bf16 %v14040_v34, %v14035_v33 }
  0x46   :  { %11630 = vrot.lane.b32.xlu0 %v14014_v43, %s13532_s29  ;;  %v14050_v43 = vld [vmem:[%s20272_s0 + $0x1c0] sm:$0xff] }
  0x47   :  { %20467 = vst [vmem:[#allocation31_spill] sm:$0xff] %v14058_v26  ;;  %v14062_v25 = vpack.i.bf16 %v14050_v43, %v14045_v44  ;;  %v14281_v56 = vpack.i.bf16 %v14035_v33, %v14050_v43 }
  0x49   :  { %20468 = vst [vmem:[#allocation32_spill] sm:$0xff] %v14062_v25 }
  0x4c   :  { %11655 = vrot.lane.b32.xlu2 %v14054_v15, %s13532_s29  ;;  %v14083_v15 = vld [vmem:[%s20272_s0 + $0x1e8] sm:$0xff] }
  0x4d   :  { %11650 = vrot.lane.b32.xlu1 %v14058_v26, %s13532_s29  ;;  %v14088_v26 = vld [vmem:[%s20272_s0 + $0x1f0] sm:$0xff]  ;;  %v14309_v42 = vpack.i.bf16 %v14083_v15, %v14030_v35  ;;  %v20495_v35 = vld [vmem:[#allocation33_spill] sm:$0xff] }
  0x4e   :  { %11645 = vrot.lane.b32.xlu0 %v14062_v25, %s13532_s29  ;;  %v11669_v25 = vpack.i.bf16 %v13664_v13, %v13632_v6  ;;  %v14098_v34 = vpack.i.bf16 %v14088_v26, %v14083_v15  ;;  %v14107_v6 = vpack.i.bf16 %v13605_v0, %v13659_v12  ;;  %v11679_v13 = vpack.i.bf16 %v13654_v11, %v13624_v4  ;;  %v14326_v15 = vld [vmem:[%s20272_s0 + $0x208] sm:$0xff] }
  0x4f   :  { %v14125_v0 = vpack.i.bf16 %v13709_v22, %v13649_v10  ;;  %v14141_v4 = vpack.i.bf16 %v13747_v29, %v13762_v32  ;;  %v14145_v10 = vpack.i.bf16 %v13757_v31, %v13694_v19  ;;  %v14161_v11 = vpack.i.bf16 %v13795_v38, %v13810_v41 }
  0x50   :  { %20470 = vst [vmem:[#allocation34_spill] sm:$0xff] %v14098_v34  ;;  %v14165_v12 = vpack.i.bf16 %v13805_v40, %v13742_v28  ;;  %v14189_v22 = vpack.i.bf16 %v13853_v49, %v13790_v37  ;;  %v14213_v31 = vpack.i.bf16 %v13901_v58, %v13838_v46  ;;  %v14217_v32 = vpack.i.bf16 %v13829_v45, %v13848_v48 }
  0x51   :  { %v14237_v40 = vpack.i.bf16 %v13949_v17, %v13886_v55  ;;  %v14241_v41 = vpack.i.bf16 %v13877_v54, %v13896_v57  ;;  %v14257_v48 = vpack.i.bf16 %v13987_v51, %v14002_v61  ;;  %v14261_v49 = vpack.i.bf16 %v13997_v62, %v13934_v5  ;;  %v20496_v5 = vld [vmem:[#allocation4_spill] sm:$0xff] }
  0x52   :  { %v14285_v57 = vpack.i.bf16 %v14045_v44, %v13982_v53  ;;  %v14305_v44 = vpack.i.bf16 %v14073_v16, %v14088_v26  ;;  %v20491_v53 = vld [vmem:[#allocation28_spill] sm:$0xff]  ;;  %v14334_v63 = vpack.i.bf16 %v14326_v15, %v20495_v35  ;;  %v20502_v35 = vld [vmem:[#allocation5_spill] sm:$0xff] }
  0x53   :  { %v14313_v61 = vpack.i.bf16 %v20491_v53, %v20490_v52  ;;  %v20500_v52 = vld [vmem:[#allocation8_spill] sm:$0xff]  ;;  %v20501_v53 = vld [vmem:[#allocation9_spill] sm:$0xff] }
  0x54   :  { %11670 = vrot.lane.b32.xlu2 %v11669_v25, %s13533_s19 }
  0x55   :  { %11665 = vrot.lane.b32.xlu1 %v14094_v24, %s13532_s29 }
  0x56   :  { %11660 = vrot.lane.b32.xlu0 %v14098_v34, %s13532_s29  ;;  %v14121_v34 = vpack.i.bf16 %v13699_v20, %v13714_v23  ;;  %v14193_v23 = vpack.i.bf16 %v13781_v36, %v13800_v39  ;;  %v14233_v39 = vpack.i.bf16 %v13939_v7, %v13954_v60  ;;  %v20497_v7 = vld [vmem:[#allocation6_spill] sm:$0xff]  ;;  %s13539_s29 = smov 56  }
  0x5c   :  { %11685 = vrot.lane.b32.xlu2 %v14107_v6, %s13533_s19 }
  0x5d   :  { %11680 = vrot.lane.b32.xlu1 %v11679_v13, %s13533_s19 }
  0x5e   :  { %11675 = vrot.lane.b32.xlu0 %v11674_v3, %s13533_s19  ;;  %v14117_v25 = vpop.permute.xlu2 %11530 }
  0x5f   :  { %20471 = vst [vmem:[#allocation35_spill] sm:$0xff] %v14117_v25 }
  0x64   :  { %11700 = vrot.lane.b32.xlu2 %v14121_v34, %s13533_s19 }
  0x65   :  { %11695 = vrot.lane.b32.xlu1 %v14125_v0, %s13533_s19 }
  0x66   :  { %11690 = vrot.lane.b32.xlu0 %v14129_v2, %s13533_s19  ;;  %v14137_v3 = vpop.permute.xlu2 %11535 }
  0x67   :  { %20472 = vst [vmem:[#allocation36_spill] sm:$0xff] %v14137_v3 }
  0x6c   :  { %11715 = vrot.lane.b32.xlu2 %v14141_v4, %s13533_s19 }
  0x6d   :  { %11710 = vrot.lane.b32.xlu1 %v14145_v10, %s13533_s19 }
  0x6e   :  { %11705 = vrot.lane.b32.xlu0 %v14149_v1, %s13533_s19  ;;  %v14157_v9 = vpop.permute.xlu2 %11550 }
  0x6f   :  { %20473 = vst [vmem:[#allocation37_spill] sm:$0xff] %v14157_v9 }
  0x74   :  { %11730 = vrot.lane.b32.xlu2 %v14161_v11, %s13533_s19 }
  0x75   :  { %11725 = vrot.lane.b32.xlu1 %v14165_v12, %s13533_s19 }
  0x76   :  { %11720 = vrot.lane.b32.xlu0 %v14169_v14, %s13533_s19  ;;  %v14177_v18 = vpop.permute.xlu2 %11565 }
  0x77   :  { %20474 = vst [vmem:[#allocation38_spill] sm:$0xff] %v14177_v18  ;;  %v14179_v19 = vpop.permute.xlu1 %11520 }
  0x78   :  { %20475 = vst [vmem:[#allocation39_spill] sm:$0xff] %v14179_v19  ;;  %v14181_v20 = vpop.permute.xlu0 %11510 }
  0x7c   :  { %11745 = vrot.lane.b32.xlu2 %v14185_v21, %s13533_s19 }
  0x7d   :  { %11740 = vrot.lane.b32.xlu1 %v14189_v22, %s13533_s19 }
  0x7e   :  { %11735 = vrot.lane.b32.xlu0 %v14193_v23, %s13533_s19  ;;  %v14201_v27 = vpop.permute.xlu2 %11580 }
  0x7f   :  { %20476 = vst [vmem:[#allocation40_spill] sm:$0xff] %v14201_v27  ;;  %v14203_v28 = vpop.permute.xlu1 %11525 }
  0x80   :  { %20477 = vst [vmem:[#allocation41_spill] sm:$0xff] %v14203_v28  ;;  %v14205_v29 = vpop.permute.xlu0 %11515 }
  0x84   :  { %11760 = vrot.lane.b32.xlu2 %v14209_v30, %s13533_s19 }
  0x85   :  { %11755 = vrot.lane.b32.xlu1 %v14213_v31, %s13533_s19 }
  0x86   :  { %11750 = vrot.lane.b32.xlu0 %v14217_v32, %s13533_s19  ;;  %v14225_v36 = vpop.permute.xlu2 %11595 }
  0x87   :  { %20478 = vst [vmem:[#allocation42_spill] sm:$0xff] %v14225_v36  ;;  %v14227_v37 = vpop.permute.xlu1 %11545  ;;  %v20512_v36 = vld [vmem:[#allocation14_spill] sm:$0xff] }
  0x88   :  { %20479 = vst [vmem:[#allocation43_spill] sm:$0xff] %v14227_v37  ;;  %v14229_v38 = vpop.permute.xlu0 %11540 }
  0x89   :  { %20480 = vst [vmem:[#allocation44_spill] sm:$0xff] %v14229_v38  ;;  %v20532_v38 = vld [vmem:[#allocation19_spill] sm:$0xff] }
  0x8c   :  { %11775 = vrot.lane.b32.xlu2 %v14233_v39, %s13533_s19 }
  0x8d   :  { %11770 = vrot.lane.b32.xlu1 %v14237_v40, %s13533_s19 }
  0x8e   :  { %11765 = vrot.lane.b32.xlu0 %v14241_v41, %s13533_s19  ;;  %v14249_v45 = vpop.permute.xlu2 %11610 }
  0x8f   :  { %20481 = vst [vmem:[#allocation45_spill] sm:$0xff] %v14249_v45  ;;  %v14251_v46 = vpop.permute.xlu1 %11560 }
  0x90   :  { %20482 = vst [vmem:[#allocation46_spill] sm:$0xff] %v14251_v46  ;;  %v14253_v47 = vpop.permute.xlu0 %11555 }
  0x91   :  { %20483 = vst [vmem:[#allocation47_spill] sm:$0xff] %v14253_v47 }
  0x94   :  { %11790 = vrot.lane.b32.xlu2 %v14257_v48, %s13533_s19 }
  0x95   :  { %11785 = vrot.lane.b32.xlu1 %v14261_v49, %s13533_s19 }
  0x96   :  { %11780 = vrot.lane.b32.xlu0 %v14265_v50, %s13533_s19  ;;  %v14273_v54 = vpop.permute.xlu2 %11625 }
  0x97   :  { %20484 = vst [vmem:[#allocation48_spill] sm:$0xff] %v14273_v54  ;;  %v14275_v51 = vpop.permute.xlu1 %11575  ;;  %v20506_v54 = vld [vmem:[#allocation11_spill] sm:$0xff] }
  0x98   :  { %20485 = vst [vmem:[#allocation49_spill] sm:$0xff] %v14275_v51  ;;  %v14277_v55 = vpop.permute.xlu0 %11570  ;;  %v20518_v51 = vld [vmem:[#allocation17_spill] sm:$0xff] }
  0x99   :  { %20486 = vst [vmem:[#allocation50_spill] sm:$0xff] %v14277_v55 }
  0x9c   :  { %11805 = vrot.lane.b32.xlu2 %v14281_v56, %s13533_s19 }
  0x9d   :  { %11800 = vrot.lane.b32.xlu1 %v14285_v57, %s13533_s19 }
  0x9e   :  { %11795 = vrot.lane.b32.xlu0 %v14289_v59, %s13533_s19  ;;  %v14297_v60 = vpop.permute.xlu2 %11640 }
  0x9f   :  { %20487 = vst [vmem:[#allocation51_spill] sm:$0xff] %v14297_v60  ;;  %v14299_v33 = vpop.permute.xlu1 %11590 }
  0xa0   :  { %20488 = vst [vmem:[#allocation52_spill] sm:$0xff] %v14299_v33  ;;  %v14301_v43 = vpop.permute.xlu0 %11585 }
  0xa1   :  { %20489 = vst [vmem:[#allocation53_spill] sm:$0xff] %v14301_v43 }
  0xa4   :  { %11820 = vrot.lane.b32.xlu2 %v14305_v44, %s13533_s19 }
  0xa5   :  { %11815 = vrot.lane.b32.xlu1 %v14309_v42, %s13533_s19 }
  0xa6   :  { %11810 = vrot.lane.b32.xlu0 %v14313_v61, %s13533_s19  ;;  %v14321_v62 = vpop.permute.xlu2 %11655 }
  0xa7   :  { %20492 = vst [vmem:[#allocation29_spill] sm:$0xff] %v14321_v62  ;;  %v14328_v16 = vpop.permute.xlu1 %11605 }
  0xa8   :  { %20493 = vst [vmem:[#allocation28_spill] sm:$0xff] %v14328_v16  ;;  %v14330_v26 = vpop.permute.xlu0 %11600 }
  0xa9   :  { %20494 = vst [vmem:[#allocation54_spill] sm:$0xff] %v14330_v26 }
  0xac   :  { %11835 = vrot.lane.b32.xlu2 %v20496_v5, %s13534_s21 }
  0xad   :  { %11830 = vrot.lane.b32.xlu1 %v20497_v7, %s13534_s21 }
  0xae   :  { %11825 = vrot.lane.b32.xlu0 %v14334_v63, %s13533_s19  ;;  %v14342_v8 = vpop.permute.xlu2 %11670  ;;  %s13538_s19 = smov 48  }
  0xaf   :  { %v14344_v17 = vpop.permute.xlu1 %11620 }
  0xb0   :  { %20498 = vst [vmem:[#allocation33_spill] sm:$0xff] %v14344_v17  ;;  %v14346_v13 = vpop.permute.xlu0 %11615  ;;  %v20507_v17 = vld [vmem:[#allocation12_spill] sm:$0xff] }
  0xb1   :  { %20499 = vst [vmem:[#allocation4_spill] sm:$0xff] %v14346_v13  ;;  %v20508_v13 = vld [vmem:[#allocation7_spill] sm:$0xff] }
  0xb4   :  { %11850 = vrot.lane.b32.xlu2 %v20500_v52, %s13534_s21 }
  0xb5   :  { %11845 = vrot.lane.b32.xlu1 %v20501_v53, %s13534_s21 }
  0xb6   :  { %11840 = vrot.lane.b32.xlu0 %v20502_v35, %s13534_s21  ;;  %v14354_v62 = vpop.permute.xlu2 %11685 }
  0xb7   :  { %20503 = vst [vmem:[#allocation6_spill] sm:$0xff] %v14354_v62  ;;  %v14356_v7 = vpop.permute.xlu1 %11635 }
  0xb8   :  { %20504 = vst [vmem:[#allocation8_spill] sm:$0xff] %v14356_v7  ;;  %v14358_v60 = vpop.permute.xlu0 %11630  ;;  %v20513_v7 = vld [vmem:[#allocation15_spill] sm:$0xff] }
  0xb9   :  { %20505 = vst [vmem:[#allocation9_spill] sm:$0xff] %v14358_v60  ;;  %v20514_v60 = vld [vmem:[#allocation10_spill] sm:$0xff] }
  0xbc   :  { %11865 = vrot.lane.b32.xlu2 %v20506_v54, %s13534_s21 }
  0xbd   :  { %11860 = vrot.lane.b32.xlu1 %v20507_v17, %s13534_s21 }
  0xbe   :  { %11855 = vrot.lane.b32.xlu0 %v20508_v13, %s13534_s21  ;;  %v14366_v45 = vpop.permute.xlu2 %11700 }
  0xbf   :  { %20509 = vst [vmem:[#allocation5_spill] sm:$0xff] %v14366_v45  ;;  %v14368_v16 = vpop.permute.xlu1 %11650  ;;  %v20531_v45 = vld [vmem:[#allocation24_spill] sm:$0xff] }
  0xc0   :  { %20510 = vst [vmem:[#allocation11_spill] sm:$0xff] %v14368_v16  ;;  %v14370_v26 = vpop.permute.xlu0 %11645  ;;  %v20519_v16 = vld [vmem:[#allocation18_spill] sm:$0xff] }
  0xc1   :  { %20511 = vst [vmem:[#allocation12_spill] sm:$0xff] %v14370_v26  ;;  %v20520_v26 = vld [vmem:[#allocation13_spill] sm:$0xff] }
  0xc4   :  { %11880 = vrot.lane.b32.xlu2 %v20512_v36, %s13534_s21 }
  0xc5   :  { %11875 = vrot.lane.b32.xlu1 %v20513_v7, %s13534_s21 }
  0xc6   :  { %11870 = vrot.lane.b32.xlu0 %v20514_v60, %s13534_s21  ;;  %v14378_v33 = vpop.permute.xlu2 %11715 }
  0xc7   :  { %20515 = vst [vmem:[#allocation7_spill] sm:$0xff] %v14378_v33  ;;  %v14380_v43 = vpop.permute.xlu1 %11665  ;;  %v20524_v33 = vld [vmem:[#allocation20_spill] sm:$0xff] }
  0xc8   :  { %20516 = vst [vmem:[#allocation14_spill] sm:$0xff] %v14380_v43  ;;  %v14382_v27 = vpop.permute.xlu0 %11660  ;;  %v20525_v43 = vld [vmem:[#allocation21_spill] sm:$0xff] }
  0xc9   :  { %20517 = vst [vmem:[#allocation15_spill] sm:$0xff] %v14382_v27  ;;  %v20526_v27 = vld [vmem:[#allocation16_spill] sm:$0xff] }
  0xcc   :  { %11895 = vrot.lane.b32.xlu2 %v20518_v51, %s13534_s21 }
  0xcd   :  { %11890 = vrot.lane.b32.xlu1 %v20519_v16, %s13534_s21 }
  0xce   :  { %11885 = vrot.lane.b32.xlu0 %v20520_v26, %s13534_s21  ;;  %v14390_v55 = vpop.permute.xlu2 %11730 }
  0xcf   :  { %20521 = vst [vmem:[#allocation10_spill] sm:$0xff] %v14390_v55  ;;  %v14392_v18 = vpop.permute.xlu1 %11680  ;;  %v20530_v55 = vld [vmem:[#allocation23_spill] sm:$0xff] }
  0xd0   :  { %20522 = vst [vmem:[#allocation17_spill] sm:$0xff] %v14392_v18  ;;  %v14394_v46 = vpop.permute.xlu0 %11675 }
  0xd1   :  { %20523 = vst [vmem:[#allocation18_spill] sm:$0xff] %v14394_v46 }
  0xd4   :  { %11910 = vrot.lane.b32.xlu2 %v20524_v33, %s13534_s21 }
  0xd5   :  { %11905 = vrot.lane.b32.xlu1 %v20525_v43, %s13534_s21 }
  0xd6   :  { %11900 = vrot.lane.b32.xlu0 %v20526_v27, %s13534_s21  ;;  %v14402_v47 = vpop.permute.xlu2 %11745 }
  0xd7   :  { %20527 = vst [vmem:[#allocation13_spill] sm:$0xff] %v14402_v47  ;;  %v14404_v9 = vpop.permute.xlu1 %11695  ;;  %v20536_v47 = vld [vmem:[#allocation26_spill] sm:$0xff] }
  0xd8   :  { %20528 = vst [vmem:[#allocation20_spill] sm:$0xff] %v14404_v9  ;;  %v14406_v37 = vpop.permute.xlu0 %11690  ;;  %v20537_v9 = vld [vmem:[#allocation27_spill] sm:$0xff] }
  0xd9   :  { %20529 = vst [vmem:[#allocation21_spill] sm:$0xff] %v14406_v37  ;;  %v20538_v37 = vld [vmem:[#allocation22_spill] sm:$0xff] }
  0xdc   :  { %11925 = vrot.lane.b32.xlu2 %v20530_v55, %s13534_s21 }
  0xdd   :  { %11920 = vrot.lane.b32.xlu1 %v20531_v45, %s13534_s21 }
  0xde   :  { %11915 = vrot.lane.b32.xlu0 %v20532_v38, %s13534_s21  ;;  %v14414_v3 = vpop.permute.xlu2 %11760 }
  0xdf   :  { %20533 = vst [vmem:[#allocation16_spill] sm:$0xff] %v14414_v3  ;;  %v14416_v25 = vpop.permute.xlu1 %11710  ;;  %v20542_v3 = vld [vmem:[#allocation31_spill] sm:$0xff] }
  0xe0   :  { %20534 = vst [vmem:[#allocation23_spill] sm:$0xff] %v14416_v25  ;;  %v14418_v62 = vpop.permute.xlu0 %11705  ;;  %v20543_v25 = vld [vmem:[#allocation32_spill] sm:$0xff] }
  0xe1   :  { %20535 = vst [vmem:[#allocation24_spill] sm:$0xff] %v14418_v62 }
  0xe4   :  { %11940 = vrot.lane.b32.xlu2 %v20536_v47, %s13534_s21  ;;  %v20544_v47 = vld [vmem:[#allocation25_spill] sm:$0xff] }
  0xe5   :  { %11935 = vrot.lane.b32.xlu1 %v20537_v9, %s13534_s21 }
  0xe6   :  { %11930 = vrot.lane.b32.xlu0 %v20538_v37, %s13534_s21  ;;  %v14426_v28 = vpop.permute.xlu2 %11775 }
  0xe7   :  { %20539 = vst [vmem:[#allocation19_spill] sm:$0xff] %v14426_v28  ;;  %v14428_v18 = vpop.permute.xlu1 %11725  ;;  %v20548_v28 = vld [vmem:[#allocation34_spill] sm:$0xff] }
  0xe8   :  { %20540 = vst [vmem:[#allocation26_spill] sm:$0xff] %v14428_v18  ;;  %v14430_v19 = vpop.permute.xlu0 %11720 }
  0xe9   :  { %20541 = vst [vmem:[#allocation27_spill] sm:$0xff] %v14430_v19 }
  0xec   :  { %11955 = vrot.lane.b32.xlu2 %v20542_v3, %s13534_s21  ;;  %v20549_v3 = vld [vmem:[#allocation30_spill] sm:$0xff] }
  0xed   :  { %11950 = vrot.lane.b32.xlu1 %v20543_v25, %s13534_s21  ;;  %v14453_v25 = vld [vmem:[%s20272_s0 + $0x228] sm:$0xff] }
  0xee   :  { %11945 = vrot.lane.b32.xlu0 %v20544_v47, %s13534_s21  ;;  %v14438_v62 = vpop.permute.xlu2 %11790  ;;  %v14458_v47 = vld [vmem:[%s20272_s0 + $0x230] sm:$0xff] }
  0xef   :  { %20545 = vst [vmem:[#allocation22_spill] sm:$0xff] %v14438_v62  ;;  %v14440_v9 = vpop.permute.xlu1 %11740 }
  0xf0   :  { %20546 = vst [vmem:[#allocation31_spill] sm:$0xff] %v14440_v9  ;;  %v14442_v37 = vpop.permute.xlu0 %11735 }
  0xf1   :  { %20547 = vst [vmem:[#allocation32_spill] sm:$0xff] %v14442_v37 }
  0xf4   :  { %11970 = vrot.lane.b32.xlu2 %v14094_v24, %s13534_s21  ;;  %v14465_v24 = vld [vmem:[%s20272_s0 + $0x218] sm:$0xff] }
  0xf5   :  { %11965 = vrot.lane.b32.xlu1 %v20548_v28, %s13534_s21  ;;  %v14470_v28 = vld [vmem:[%s20272_s0 + $0x220] sm:$0xff] }
  0xf6   :  { %11960 = vrot.lane.b32.xlu0 %v20549_v3, %s13534_s21  ;;  %v14460_v62 = vpop.permute.xlu2 %11805  ;;  %v14475_v3 = vld [vmem:[%s20272_s0 + $0x210] sm:$0xff]  ;;  %v11979_v18 = vpack.i.bf16 %v14470_v28, %v14465_v24 }
  0xf7   :  { %20550 = vst [vmem:[#allocation25_spill] sm:$0xff] %v14460_v62  ;;  %v14477_v9 = vpop.permute.xlu1 %11755  ;;  %v11984_v62 = vpack.i.bf16 %v14458_v47, %v14453_v25  ;;  %v11974_v19 = vpack.i.bf16 %v14475_v3, %v14326_v15 }
  0xf8   :  { %20551 = vst [vmem:[#allocation34_spill] sm:$0xff] %v14477_v9  ;;  %v14479_v37 = vpop.permute.xlu0 %11750 }
  0xf9   :  { %20552 = vst [vmem:[#allocation30_spill] sm:$0xff] %v14479_v37 }
  0xfc   :  { %11985 = vrot.lane.b32.xlu2 %v11984_v62, %s13534_s21 }
  0xfd   :  { %11980 = vrot.lane.b32.xlu1 %v11979_v18, %s13534_s21 }
  0xfe   :  { %11975 = vrot.lane.b32.xlu0 %v11974_v19, %s13534_s21  ;;  %v14490_v46 = vpop.permute.xlu2 %11820 }
  0xff   :  { %20553 = vst [vmem:[#allocation55_spill] sm:$0xff] %v14490_v46  ;;  %v14492_v9 = vpop.permute.xlu1 %11770 }
 0x100   :  { %20554 = vst [vmem:[#allocation56_spill] sm:$0xff] %v14492_v9  ;;  %v14494_v37 = vpop.permute.xlu0 %11765 }
 0x101   :  { %20555 = vst [vmem:[#allocation57_spill] sm:$0xff] %v14494_v37 }
 0x104   :  { %12000 = vrot.lane.b32.xlu2 %v14125_v0, %s13535_s14 }
 0x105   :  { %11995 = vrot.lane.b32.xlu1 %v14129_v2, %s13535_s14 }
 0x106   :  { %11990 = vrot.lane.b32.xlu0 %v14107_v6, %s13535_s14  ;;  %v14502_v62 = vpop.permute.xlu2 %11835 }
 0x107   :  { %v14504_v18 = vpop.permute.xlu1 %11785 }
 0x108   :  { %20556 = vst [vmem:[#allocation58_spill] sm:$0xff] %v14504_v18  ;;  %v14506_v19 = vpop.permute.xlu0 %11780 }
 0x109   :  { %20557 = vst [vmem:[#allocation59_spill] sm:$0xff] %v14506_v19 }
 0x10c   :  { %12015 = vrot.lane.b32.xlu2 %v14145_v10, %s13535_s14 }
 0x10d   :  { %12010 = vrot.lane.b32.xlu1 %v14149_v1, %s13535_s14 }
 0x10e   :  { %12005 = vrot.lane.b32.xlu0 %v14121_v34, %s13535_s14  ;;  %v14514_v0 = vpop.permute.xlu2 %11850 }
 0x10f   :  { %v14516_v2 = vpop.permute.xlu1 %11800 }
 0x110   :  { %20558 = vst [vmem:[#allocation60_spill] sm:$0xff] %v14516_v2  ;;  %v14518_v6 = vpop.permute.xlu0 %11795 }
 0x111   :  { %20559 = vst [vmem:[#allocation61_spill] sm:$0xff] %v14518_v6 }
 0x114   :  { %12030 = vrot.lane.b32.xlu2 %v14165_v12, %s13535_s14 }
 0x115   :  { %12025 = vrot.lane.b32.xlu1 %v14169_v14, %s13535_s14 }
 0x116   :  { %12020 = vrot.lane.b32.xlu0 %v14141_v4, %s13535_s14  ;;  %v14526_v15 = vpop.permute.xlu2 %11865 }
 0x117   :  { %v14528_v46 = vpop.permute.xlu1 %11815 }
 0x118   :  { %20560 = vst [vmem:[#allocation62_spill] sm:$0xff] %v14528_v46  ;;  %v14530_v18 = vpop.permute.xlu0 %11810 }
 0x119   :  { %20561 = vst [vmem:[#allocation63_spill] sm:$0xff] %v14530_v18 }
 0x11c   :  { %12045 = vrot.lane.b32.xlu2 %v14189_v22, %s13535_s14 }
 0x11d   :  { %12040 = vrot.lane.b32.xlu1 %v14193_v23, %s13535_s14 }
 0x11e   :  { %12035 = vrot.lane.b32.xlu0 %v14161_v11, %s13535_s14  ;;  %v14538_v2 = vpop.permute.xlu2 %11880 }
 0x11f   :  { %v14540_v6 = vpop.permute.xlu1 %11830 }
 0x120   :  { %v14542_v19 = vpop.permute.xlu0 %11825 }
 0x121   :  { %20562 = vst [vmem:[#allocation64_spill] sm:$0xff] %v14542_v19 }
 0x124   :  { %12060 = vrot.lane.b32.xlu2 %v14213_v31, %s13535_s14 }
 0x125   :  { %12055 = vrot.lane.b32.xlu1 %v14217_v32, %s13535_s14 }
 0x126   :  { %12050 = vrot.lane.b32.xlu0 %v14185_v21, %s13535_s14  ;;  %v14550_v46 = vpop.permute.xlu2 %11895 }
 0x127   :  { %20563 = vst [vmem:[#allocation65_spill] sm:$0xff] %v14550_v46  ;;  %v14552_v18 = vpop.permute.xlu1 %11845  ;;  %v20608_v46 = vld [vmem:[#allocation18_spill] sm:$0xff] }
 0x128   :  { %v14554_v9 = vpop.permute.xlu0 %11840 }
 0x12c   :  { %12075 = vrot.lane.b32.xlu2 %v14237_v40, %s13535_s14 }
 0x12d   :  { %12070 = vrot.lane.b32.xlu1 %v14241_v41, %s13535_s14 }
 0x12e   :  { %12065 = vrot.lane.b32.xlu0 %v14209_v30, %s13535_s14  ;;  %v14562_v31 = vpop.permute.xlu2 %11910 }
 0x12f   :  { %20564 = vst [vmem:[#allocation66_spill] sm:$0xff] %v14562_v31  ;;  %v14564_v19 = vpop.permute.xlu1 %11860 }
 0x130   :  { %v14566_v37 = vpop.permute.xlu0 %11855 }
 0x134   :  { %12090 = vrot.lane.b32.xlu2 %v14261_v49, %s13535_s14 }
 0x135   :  { %12085 = vrot.lane.b32.xlu1 %v14265_v50, %s13535_s14 }
 0x136   :  { %12080 = vrot.lane.b32.xlu0 %v14233_v39, %s13535_s14  ;;  %v14574_v40 = vpop.permute.xlu2 %11925 }
 0x137   :  { %20565 = vst [vmem:[#allocation67_spill] sm:$0xff] %v14574_v40  ;;  %v14576_v41 = vpop.permute.xlu1 %11875 }
 0x138   :  { %v14578_v30 = vpop.permute.xlu0 %11870 }
 0x13c   :  { %12105 = vrot.lane.b32.xlu2 %v14285_v57, %s13535_s14 }
 0x13d   :  { %12100 = vrot.lane.b32.xlu1 %v14289_v59, %s13535_s14 }
 0x13e   :  { %12095 = vrot.lane.b32.xlu0 %v14257_v48, %s13535_s14  ;;  %v14586_v49 = vpop.permute.xlu2 %11940 }
 0x13f   :  { %20566 = vst [vmem:[#allocation68_spill] sm:$0xff] %v14586_v49  ;;  %v14588_v50 = vpop.permute.xlu1 %11890  ;;  %v12134_v49 = vpack.i.bf16 %v14465_v24, %v14475_v3  ;;  %v12139_v3 = vpack.i.bf16 %v14453_v25, %v14470_v28 }
 0x140   :  { %v14590_v39 = vpop.permute.xlu0 %11885 }
 0x144   :  { %12120 = vrot.lane.b32.xlu2 %v14309_v42, %s13535_s14 }
 0x145   :  { %12115 = vrot.lane.b32.xlu1 %v14313_v61, %s13535_s14 }
 0x146   :  { %12110 = vrot.lane.b32.xlu0 %v14281_v56, %s13535_s14  ;;  %v14598_v57 = vpop.permute.xlu2 %11955  ;;  %v1903_v56 = vld [vmem:[%s20272_s0 + $0x238] sm:$0xff] }
 0x147   :  { %20567 = vst [vmem:[#allocation69_spill] sm:$0xff] %v14598_v57  ;;  %v14600_v59 = vpop.permute.xlu1 %11905  ;;  %v12144_v24 = vpack.i.bf16 %v1903_v56, %v14458_v47 }
 0x148   :  { %20568 = vst [vmem:[#allocation70_spill] sm:$0xff] %v14600_v59  ;;  %v14602_v48 = vpop.permute.xlu0 %11900  ;;  %v11832_v59 = vunpack.i.l.bf16 %v14540_v6 }
 0x149   :  { %20569 = vst [vmem:[#allocation71_spill] sm:$0xff] %v14602_v48 }
 0x14c   :  { %12135 = vrot.lane.b32.xlu2 %v12134_v49, %s13535_s14 }
 0x14d   :  { %12130 = vrot.lane.b32.xlu1 %v14334_v63, %s13535_s14 }
 0x14e   :  { %12125 = vrot.lane.b32.xlu0 %v14305_v44, %s13535_s14  ;;  %v14611_v42 = vpop.permute.xlu2 %11970 }
 0x14f   :  { %20570 = vst [vmem:[#allocation72_spill] sm:$0xff] %v14611_v42  ;;  %v14616_v61 = vpop.permute.xlu1 %11920 }
 0x150   :  { %20571 = vst [vmem:[#allocation73_spill] sm:$0xff] %v14616_v61  ;;  %v14618_v57 = vpop.permute.xlu0 %11915  ;;  %v11512_v61 = vunpack.i.l.bf16 %v14181_v20 }
 0x151   :  { %20572 = vst [vmem:[#allocation74_spill] sm:$0xff] %v14618_v57 }
 0x154   :  { %12150 = vrot.lane.b32.xlu2 %v20496_v5, %s13536_s17 }
 0x155   :  { %12145 = vrot.lane.b32.xlu1 %v12144_v24, %s13535_s14 }
 0x156   :  { %12140 = vrot.lane.b32.xlu0 %v12139_v3, %s13535_s14  ;;  %v14627_v44 = vpop.permute.xlu2 %11985 }
 0x157   :  { %20573 = vst [vmem:[#allocation75_spill] sm:$0xff] %v14627_v44  ;;  %v14629_v63 = vpop.permute.xlu1 %11935 }
 0x158   :  { %20574 = vst [vmem:[#allocation76_spill] sm:$0xff] %v14629_v63  ;;  %v14631_v49 = vpop.permute.xlu0 %11930 }
 0x159   :  { %20575 = vst [vmem:[#allocation77_spill] sm:$0xff] %v14631_v49  ;;  %v11181_v49 = vld [vmem:[%s20273_s2] sm:$0xff] }
 0x15c   :  { %12165 = vrot.lane.b32.xlu2 %v20500_v52, %s13536_s17 }
 0x15d   :  { %12160 = vrot.lane.b32.xlu1 %v20501_v53, %s13536_s17 }
 0x15e   :  { %12155 = vrot.lane.b32.xlu0 %v20502_v35, %s13536_s17  ;;  %v14639_v5 = vpop.permute.xlu2 %12000 }
 0x15f   :  { %v14641_v25 = vpop.permute.xlu1 %11950 }
 0x160   :  { %20576 = vst [vmem:[#allocation78_spill] sm:$0xff] %v14641_v25  ;;  %v14643_v47 = vpop.permute.xlu0 %11945 }
 0x161   :  { %20577 = vst [vmem:[#allocation79_spill] sm:$0xff] %v14643_v47 }
 0x164   :  { %12180 = vrot.lane.b32.xlu2 %v20506_v54, %s13536_s17 }
 0x165   :  { %12175 = vrot.lane.b32.xlu1 %v20507_v17, %s13536_s17 }
 0x166   :  { %12170 = vrot.lane.b32.xlu0 %v20508_v13, %s13536_s17  ;;  %v14651_v28 = vpop.permute.xlu2 %12015 }
 0x167   :  { %v14653_v53 = vpop.permute.xlu1 %11965 }
 0x168   :  { %20578 = vst [vmem:[#allocation80_spill] sm:$0xff] %v14653_v53  ;;  %v14655_v35 = vpop.permute.xlu0 %11960 }
 0x169   :  { %20579 = vst [vmem:[#allocation81_spill] sm:$0xff] %v14655_v35 }
 0x16c   :  { %12195 = vrot.lane.b32.xlu2 %v20512_v36, %s13536_s17 }
 0x16d   :  { %12190 = vrot.lane.b32.xlu1 %v20513_v7, %s13536_s17 }
 0x16e   :  { %12185 = vrot.lane.b32.xlu0 %v20514_v60, %s13536_s17  ;;  %v14663_v56 = vpop.permute.xlu2 %12030 }
 0x16f   :  { %v14665_v24 = vpop.permute.xlu1 %11980 }
 0x170   :  { %20580 = vst [vmem:[#allocation82_spill] sm:$0xff] %v14665_v24  ;;  %v14667_v3 = vpop.permute.xlu0 %11975 }
 0x171   :  { %20581 = vst [vmem:[#allocation83_spill] sm:$0xff] %v14667_v3 }
 0x174   :  { %12210 = vrot.lane.b32.xlu2 %v20518_v51, %s13536_s17 }
 0x175   :  { %12205 = vrot.lane.b32.xlu1 %v20519_v16, %s13536_s17 }
 0x176   :  { %12200 = vrot.lane.b32.xlu0 %v20520_v26, %s13536_s17  ;;  %v14675_v44 = vpop.permute.xlu2 %12045 }
 0x177   :  { %v14677_v42 = vpop.permute.xlu1 %11995 }
 0x178   :  { %v14679_v53 = vpop.permute.xlu0 %11990 }
 0x179   :  { %v11993_v48 = vunpack.i.h.bf16 %v14679_v53 }
 0x17c   :  { %12225 = vrot.lane.b32.xlu2 %v20524_v33, %s13536_s17 }
 0x17d   :  { %12220 = vrot.lane.b32.xlu1 %v20525_v43, %s13536_s17 }
 0x17e   :  { %12215 = vrot.lane.b32.xlu0 %v20526_v27, %s13536_s17  ;;  %v14687_v24 = vpop.permute.xlu2 %12060 }
 0x17f   :  { %20582 = vst [vmem:[#allocation84_spill] sm:$0xff] %v14687_v24  ;;  %v14689_v3 = vpop.permute.xlu1 %12010 }
 0x180   :  { %v14691_v35 = vpop.permute.xlu0 %12005 }
 0x184   :  { %12240 = vrot.lane.b32.xlu2 %v20530_v55, %s13536_s17 }
 0x185   :  { %12235 = vrot.lane.b32.xlu1 %v20531_v45, %s13536_s17 }
 0x186   :  { %12230 = vrot.lane.b32.xlu0 %v20532_v38, %s13536_s17  ;;  %v14699_v33 = vpop.permute.xlu2 %12075 }
 0x187   :  { %20583 = vst [vmem:[#allocation85_spill] sm:$0xff] %v14699_v33  ;;  %v14701_v43 = vpop.permute.xlu1 %12025 }
 0x188   :  { %v14703_v27 = vpop.permute.xlu0 %12020 }
 0x18c   :  { %12255 = vrot.lane.b32.xlu2 %v14149_v1, %s13537_s18 }
 0x18d   :  { %12250 = vrot.lane.b32.xlu1 %v20500_v52, %s13539_s29 }
 0x18e   :  { %12245 = vrot.lane.b32.xlu0 %v14121_v34, %s13538_s19  ;;  %v14715_v55 = vpop.permute.xlu2 %12090 }
 0x18f   :  { %v14711_v45 = vpop.permute.xlu1 %12040  ;;  %20584 = vst [vmem:[#allocation86_spill] sm:$0xff] %v14715_v55 }
 0x190   :  { %v14713_v38 = vpop.permute.xlu0 %12035 }
 0x194   :  { %12270 = vrot.lane.b32.xlu2 %v14145_v10, %s13537_s18 }
 0x195   :  { %12265 = vrot.lane.b32.xlu1 %v20508_v13, %s13539_s29 }
 0x196   :  { %12260 = vrot.lane.b32.xlu0 %v14149_v1, %s13538_s19  ;;  %v14727_v52 = vpop.permute.xlu2 %12105 }
 0x197   :  { %v14723_v34 = vpop.permute.xlu1 %12055  ;;  %20586 = vst [vmem:[#allocation88_spill] sm:$0xff] %v14727_v52 }
 0x198   :  { %20585 = vst [vmem:[#allocation87_spill] sm:$0xff] %v14723_v34  ;;  %v14725_v25 = vpop.permute.xlu0 %12050  ;;  %v11518_v34 = vunpack.i.h.bf16 %v14205_v29 }
 0x19c   :  { %12285 = vrot.lane.b32.xlu2 %v14141_v4, %s13537_s18 }
 0x19d   :  { %12280 = vrot.lane.b32.xlu1 %v20507_v17, %s13539_s29 }
 0x19e   :  { %12275 = vrot.lane.b32.xlu0 %v14145_v10, %s13538_s19  ;;  %v14739_v13 = vpop.permute.xlu2 %12120 }
 0x19f   :  { %v14735_v47 = vpop.permute.xlu1 %12070  ;;  %20589 = vst [vmem:[#allocation91_spill] sm:$0xff] %v14739_v13 }
 0x1a0   :  { %20587 = vst [vmem:[#allocation89_spill] sm:$0xff] %v14735_v47  ;;  %v14737_v1 = vpop.permute.xlu0 %12065  ;;  %v11672_v47 = vunpack.i.l.bf16 %v14342_v8 }
 0x1a1   :  { %20588 = vst [vmem:[#allocation90_spill] sm:$0xff] %v14737_v1  ;;  %v11673_v1 = vunpack.i.h.bf16 %v14342_v8 }
 0x1a4   :  { %12300 = vrot.lane.b32.xlu2 %v14169_v14, %s13537_s18 }
 0x1a5   :  { %12295 = vrot.lane.b32.xlu1 %v20506_v54, %s13539_s29 }
 0x1a6   :  { %12290 = vrot.lane.b32.xlu0 %v14141_v4, %s13538_s19  ;;  %v14757_v17 = vpop.permute.xlu2 %12135 }
 0x1a7   :  { %v14747_v52 = vpop.permute.xlu1 %12085  ;;  %20592 = vst [vmem:[#allocation94_spill] sm:$0xff] %v14757_v17 }
 0x1a8   :  { %20590 = vst [vmem:[#allocation92_spill] sm:$0xff] %v14747_v52  ;;  %v14749_v10 = vpop.permute.xlu0 %12080 }
 0x1a9   :  { %20591 = vst [vmem:[#allocation93_spill] sm:$0xff] %v14749_v10 }
 0x1ac   :  { %12315 = vrot.lane.b32.xlu2 %v14165_v12, %s13537_s18 }
 0x1ad   :  { %12310 = vrot.lane.b32.xlu1 %v20514_v60, %s13539_s29 }
 0x1ae   :  { %12305 = vrot.lane.b32.xlu0 %v14169_v14, %s13538_s19  ;;  %v14773_v60 = vpop.permute.xlu2 %12150 }
 0x1af   :  { %v14759_v13 = vpop.permute.xlu1 %12100 }
 0x1b0   :  { %20593 = vst [vmem:[#allocation95_spill] sm:$0xff] %v14759_v13  ;;  %v14761_v4 = vpop.permute.xlu0 %12095 }
 0x1b1   :  { %20594 = vst [vmem:[#allocation96_spill] sm:$0xff] %v14761_v4  ;;  %v13347_v4 = vld [vmem:[%s20272_s0 + $0x128] sm:$0xff] }
 0x1b4   :  { %12330 = vrot.lane.b32.xlu2 %v14161_v11, %s13537_s18 }
 0x1b5   :  { %12325 = vrot.lane.b32.xlu1 %v20513_v7, %s13539_s29 }
 0x1b6   :  { %12320 = vrot.lane.b32.xlu0 %v14165_v12, %s13538_s19  ;;  %v14785_v7 = vpop.permute.xlu2 %12165 }
 0x1b7   :  { %v14769_v54 = vpop.permute.xlu1 %12115 }
 0x1b8   :  { %20595 = vst [vmem:[#allocation97_spill] sm:$0xff] %v14769_v54  ;;  %v14771_v14 = vpop.permute.xlu0 %12110 }
 0x1b9   :  { %20596 = vst [vmem:[#allocation98_spill] sm:$0xff] %v14771_v14 }
 0x1bc   :  { %12345 = vrot.lane.b32.xlu2 %v14193_v23, %s13537_s18 }
 0x1bd   :  { %12340 = vrot.lane.b32.xlu1 %v20512_v36, %s13539_s29 }
 0x1be   :  { %12335 = vrot.lane.b32.xlu0 %v14161_v11, %s13538_s19  ;;  %v14797_v36 = vpop.permute.xlu2 %12180 }
 0x1bf   :  { %v14781_v17 = vpop.permute.xlu1 %12130 }
 0x1c0   :  { %20597 = vst [vmem:[#allocation99_spill] sm:$0xff] %v14781_v17  ;;  %v14783_v12 = vpop.permute.xlu0 %12125 }
 0x1c1   :  { %20598 = vst [vmem:[#allocation100_spill] sm:$0xff] %v14783_v12 }
 0x1c4   :  { %12360 = vrot.lane.b32.xlu2 %v14189_v22, %s13537_s18 }
 0x1c5   :  { %12355 = vrot.lane.b32.xlu1 %v20520_v26, %s13539_s29 }
 0x1c6   :  { %12350 = vrot.lane.b32.xlu0 %v14193_v23, %s13538_s19  ;;  %v4087_v23 = vld [vmem:[%s20273_s2 + $0x20] sm:$0xf] }
 0x1c7   :  { %v14793_v54 = vpop.permute.xlu1 %12145 }
 0x1c8   :  { %20599 = vst [vmem:[#allocation101_spill] sm:$0xff] %v14793_v54  ;;  %v14795_v11 = vpop.permute.xlu0 %12140 }
 0x1c9   :  { %20600 = vst [vmem:[#allocation102_spill] sm:$0xff] %v14795_v11  ;;  %v4109_v11 = vunpack.c.l.b16 %v4087_v23  ;;  %v13344_v23 = vld [vmem:[%s20272_s0 + $0x110] sm:$0xff] }
 0x1cb   :  { %v4114_v17 = vpack.c.b16 %v4109_v11, %v4109_v11 }
 0x1cc   :  { %12375 = vrot.lane.b32.xlu2 %v14185_v21, %s13537_s18 }
 0x1cd   :  { %12370 = vrot.lane.b32.xlu1 %v20519_v16, %s13539_s29  ;;  %v4218_v12 = vsel %vm4216_vm1, %v4114_v17, 0  ;;  %v14822_v16 = vpop.permute.xlu2 %12195 }
 0x1ce   :  { %12365 = vrot.lane.b32.xlu0 %v14189_v22, %s13538_s19  ;;  %v13540_v22 = vmov 0.0   ;;  %4223 = vmatpush.bf16.msra.mxu0 %v4218_v12  ;;  %v13343_v12 = vld [vmem:[%s20272_s0 + $0x118] sm:$0xff] }
 0x1cf   :  { %v14808_v26 = vpop.permute.xlu1 %12160  ;;  %4518 = vst.msk [vmem:[#allocation2 + $0x8] sm:$0xff] %vm3722_vm0, %v13540_v22  ;;  %v12394_v14 = vpack.i.bf16 %v13343_v12, %v13344_v23  ;;  %v13346_v23 = vld [vmem:[%s20272_s0 + $0x130] sm:$0xff] }
 0x1d0   :  { %v14810_v54 = vpop.permute.xlu0 %12155  ;;  %4519 = vst.msk [vmem:[#allocation2 + $0x10] sm:$0xff] %vm3722_vm0, %v13540_v22  ;;  %v12414_v55 = vpack.i.bf16 %v13346_v23, %v13347_v4 }
 0x1d1   :  { %4517 = vst.msk [vmem:[#allocation2] sm:$0xff] %vm3722_vm0, %v13540_v22 }
 0x1d2   :  { %4520 = vst.msk [vmem:[#allocation2 + $0x18] sm:$0xff] %vm3722_vm0, %v13540_v22 }
 0x1d3   :  { %4521 = vst.msk [vmem:[#allocation2 + $0x20] sm:$0xff] %vm3722_vm0, %v13540_v22 }
 0x1d4   :  { %12390 = vrot.lane.b32.xlu2 %v14217_v32, %s13537_s18  ;;  %v11184_v32 = vld [vmem:[%s20273_s2 + $0x18] sm:$0xff]  ;;  %4522 = vst.msk [vmem:[#allocation2 + $0x28] sm:$0xff] %vm3722_vm0, %v13540_v22 }
 0x1d5   :  { %12385 = vrot.lane.b32.xlu1 %v20518_v51, %s13539_s29  ;;  %4224 = vmatpush.bf16.msra.mxu0 %v11184_v32  ;;  %4523 = vst.msk [vmem:[#allocation2 + $0x30] sm:$0xff] %vm3722_vm0, %v13540_v22 }
 0x1d6   :  { %12380 = vrot.lane.b32.xlu0 %v14185_v21, %s13538_s19  ;;  %v13342_v21 = vld [vmem:[%s20272_s0 + $0x120] sm:$0xff]  ;;  %4524 = vst.msk [vmem:[#allocation2 + $0x38] sm:$0xff] %vm3722_vm0, %v13540_v22  ;;  %v4598_v33 = vld [vmem:[#allocation2 + $0x8] sm:$0xff] }
 0x1d7   :  { %v14829_v17 = vpop.permute.xlu1 %12175  ;;  %v12404_v51 = vpack.i.bf16 %v13901_v58, %v13342_v21  ;;  %v12399_v13 = vpack.i.bf16 %v13342_v21, %v13343_v12  ;;  %v11183_v58 = vld [vmem:[%s20273_s2 + $0x10] sm:$0xff]  ;;  %4525 = vst.msk [vmem:[#allocation2 + $0x240] sm:$0xff] %vm3722_vm0, %v13540_v22  ;;  %v12409_v63 = vpack.i.bf16 %v13347_v4, %v13342_v21 }
 0x1d8   :  { %v14831_v11 = vpop.permute.xlu0 %12170  ;;  %4526 = vst.msk [vmem:[#allocation2 + $0x248] sm:$0xff] %vm3722_vm0, %v13540_v22 }
 0x1d9   :  { %4225 = vmatpush.bf16.msra.mxu0 %v11183_v58  ;;  %4527 = vst.msk [vmem:[#allocation2 + $0x250] sm:$0xff] %vm3722_vm0, %v13540_v22  ;;  %v14974_v57 = vld [vmem:[#allocation2 + $0x18] sm:$0xff] }
 0x1da   :  { %4528 = vst.msk [vmem:[#allocation2 + $0x258] sm:$0xff] %vm3722_vm0, %v13540_v22 }
 0x1db   :  { %4529 = vst.msk [vmem:[#allocation2 + $0x260] sm:$0xff] %vm3722_vm0, %v13540_v22 }
 0x1dc   :  { %12405 = vrot.lane.b32.xlu2 %v12404_v51, %s13537_s18  ;;  %v14872_v51 = vpop.permute.xlu2 %12210  ;;  %4530 = vst.msk [vmem:[#allocation2 + $0x268] sm:$0xff] %vm3722_vm0, %v13540_v22 }
 0x1dd   :  { %12400 = vrot.lane.b32.xlu1 %v12399_v13, %s13539_s29  ;;  %20601 = vst [vmem:[#allocation103_spill] sm:$0xff] %v14872_v51  ;;  %v13345_v13 = vld [vmem:[%s20272_s0 + $0x138] sm:$0xff] }
 0x1de   :  { %12395 = vrot.lane.b32.xlu0 %v12394_v14, %s13538_s19  ;;  %v11182_v14 = vld [vmem:[%s20273_s2 + $0x8] sm:$0xff]  ;;  %v12419_v58 = vpack.i.bf16 %v13345_v13, %v13346_v23  ;;  %4531 = vst.msk [vmem:[#allocation2 + $0x270] sm:$0xff] %vm3722_vm0, %v13540_v22 }
 0x1df   :  { %v14863_v32 = vpop.permute.xlu1 %12190  ;;  %4226 = vmatpush.bf16.msra.mxu0 %v11182_v14  ;;  %4532 = vst.msk [vmem:[#allocation2 + $0x278] sm:$0xff] %vm3722_vm0, %v13540_v22 }
 0x1e0   :  { %v14865_v12 = vpop.permute.xlu0 %12185  ;;  %4533 = vst.msk [vmem:[#allocation2 + $0x40] sm:$0xff] %vm3722_vm0, %v13540_v22 }
 0x1e1   :  { %4534 = vst.msk [vmem:[#allocation2 + $0x48] sm:$0xff] %vm3722_vm0, %v13540_v22 }
 0x1e2   :  { %4535 = vst.msk [vmem:[#allocation2 + $0x50] sm:$0xff] %vm3722_vm0, %v13540_v22 }
 0x1e3   :  { %4227 = vmatpush.bf16.msra.mxu0 %v11181_v49  ;;  %4536 = vst.msk [vmem:[#allocation2 + $0x58] sm:$0xff] %vm3722_vm0, %v13540_v22 }
 0x1e4   :  { %12420 = vrot.lane.b32.xlu2 %v12419_v58, %s13537_s18  ;;  %4537 = vst.msk [vmem:[#allocation2 + $0x60] sm:$0xff] %vm3722_vm0, %v13540_v22  ;;  %v14919_v52 = vpop.permute.xlu2 %12225 }
 0x1e5   :  { %12415 = vrot.lane.b32.xlu1 %v12414_v55, %s13539_s29  ;;  %v13349_v55 = vld [vmem:[%s20272_s0 + $0x140] sm:$0xff]  ;;  %20602 = vst [vmem:[#allocation104_spill] sm:$0xff] %v14919_v52 }
 0x1e6   :  { %12410 = vrot.lane.b32.xlu0 %v12409_v63, %s13538_s19  ;;  %v13348_v63 = vld [vmem:[%s20272_s0 + $0x148] sm:$0xff]  ;;  %v12429_v23 = vpack.i.bf16 %v13349_v55, %v13345_v13  ;;  %4538 = vst.msk [vmem:[#allocation2 + $0x68] sm:$0xff] %vm3722_vm0, %v13540_v22 }
 0x1e7   :  { %v14903_v4 = vpop.permute.xlu1 %12205  ;;  %v12434_v14 = vpack.i.bf16 %v13348_v63, %v13349_v55  ;;  %4539 = vst.msk [vmem:[#allocation2 + $0x70] sm:$0xff] %vm3722_vm0, %v13540_v22  ;;  %v14948_v55 = vld [vmem:[%s20272_s0 + $0x158] sm:$0xff] }
 0x1e8   :  { %v14905_v21 = vpop.permute.xlu0 %12200  ;;  %4540 = vst.msk [vmem:[#allocation2 + $0x78] sm:$0xff] %vm3722_vm0, %v13540_v22 }
 0x1e9   :  { %4546 = vst.msk [vmem:[#allocation2 + $0xa8] sm:$0xff] %vm3722_vm0, %v13540_v22 }
 0x1ea   :  { %4547 = vst.msk [vmem:[#allocation2 + $0xb0] sm:$0xff] %vm3722_vm0, %v13540_v22 }
 0x1eb   :  { %4553 = vst.msk [vmem:[#allocation2 + $0xe0] sm:$0xff] %vm3722_vm0, %v13540_v22 }
 0x1ec   :  { %12435 = vrot.lane.b32.xlu2 %v12434_v14, %s13537_s18  ;;  %4554 = vst.msk [vmem:[#allocation2 + $0xe8] sm:$0xff] %vm3722_vm0, %v13540_v22  ;;  %v14959_v10 = vpop.permute.xlu2 %12240 }
 0x1ed   :  { %12430 = vrot.lane.b32.xlu1 %v12429_v23, %s13539_s29  ;;  %4560 = vst.msk [vmem:[#allocation2 + $0x118] sm:$0xff] %vm3722_vm0, %v13540_v22 }
 0x1ee   :  { %12425 = vrot.lane.b32.xlu0 %v12419_v58, %s13538_s19  ;;  %v13350_v58 = vld [vmem:[%s20272_s0 + $0x150] sm:$0xff]  ;;  %4561 = vst.msk [vmem:[#allocation2 + $0x120] sm:$0xff] %vm3722_vm0, %v13540_v22 }
 0x1ef   :  { %v14934_v49 = vpop.permute.xlu1 %12220  ;;  %v14951_v23 = vpack.i.bf16 %v14948_v55, %v13350_v58  ;;  %v12444_v40 = vpack.i.bf16 %v13350_v58, %v13348_v63  ;;  %4567 = vst.msk [vmem:[#allocation2 + $0x150] sm:$0xff] %vm3722_vm0, %v13540_v22  ;;  %v14969_v63 = vld [vmem:[#allocation2 + $0x38] sm:$0xff]  ;;  %v4605_v58 = vld [vmem:[#allocation2 + $0x40] sm:$0xff] }
 0x1f0   :  { %20603 = vst [vmem:[#allocation105_spill] sm:$0xff] %v14934_v49  ;;  %v14936_v13 = vpop.permute.xlu0 %12215  ;;  %v11833_v49 = vunpack.i.h.bf16 %v14540_v6  ;;  %v13352_v6 = vld [vmem:[%s20272_s0 + $0x8] sm:$0xff] }
 0x1f1   :  { %20604 = vst [vmem:[#allocation106_spill] sm:$0xff] %v14936_v13  ;;  %v12152_v13 = vunpack.i.l.bf16 %v14773_v60 }
 0x1f2   :  { %20605 = vst [vmem:[#allocation107_spill] sm:$0xff] %v14959_v10  ;;  %v4599_v10 = vld [vmem:[#allocation2 + $0x10] sm:$0xff] }
 0x1f3   :  { %4568 = vst.msk [vmem:[#allocation2 + $0x158] sm:$0xff] %vm3722_vm0, %v13540_v22  ;;  %v12454_v24 = vpack.i.bf16 %v4599_v10, %v4598_v33 }
 0x1f4   :  { %12450 = vrot.lane.b32.xlu2 %v14951_v23, %s13537_s18  ;;  %4574 = vst.msk [vmem:[#allocation2 + $0x188] sm:$0xff] %vm3722_vm0, %v13540_v22 }
 0x1f5   :  { %12445 = vrot.lane.b32.xlu1 %v12444_v40, %s13539_s29  ;;  %4575 = vst.msk [vmem:[#allocation2 + $0x190] sm:$0xff] %vm3722_vm0, %v13540_v22  ;;  %v1832_v40 = vld [vmem:[%s20272_s0] sm:$0xff] }
 0x1f6   :  { %12440 = vrot.lane.b32.xlu0 %v12434_v14, %s13538_s19  ;;  %v11513_v14 = vunpack.i.h.bf16 %v14181_v20  ;;  %4581 = vst.msk [vmem:[#allocation2 + $0x1c0] sm:$0xff] %vm3722_vm0, %v13540_v22  ;;  %v14992_v20 = vpack.i.bf16 %v4605_v58, %v14969_v63  ;;  %v3528_v8 = vsel %vm3527_vm2, %v1832_v40, %v11512_v61  ;;  %v12153_v40 = vunpack.i.h.bf16 %v14773_v60 }
 0x1f7   :  { %v14981_v31 = vpop.permute.xlu1 %12235  ;;  %4582 = vst.msk [vmem:[#allocation2 + $0x1c8] sm:$0xff] %vm3722_vm0, %v13540_v22  ;;  %v3593_v58 = vsel %vm3592_vm3, %v3528_v8, %v11672_v47 }
 0x1f8   :  { %20606 = vst [vmem:[#allocation108_spill] sm:$0xff] %v14981_v31  ;;  %v14983_v52 = vpop.permute.xlu0 %12230  ;;  %v11992_v31 = vunpack.i.l.bf16 %v14679_v53  ;;  %v3529_v33 = vsel %vm3527_vm2, %v13352_v6, %v11513_v14  ;;  %v3658_v53 = vsel %vm3657_vm4, %v3593_v58, %v11832_v59 }
 0x1f9   :  { %20607 = vst [vmem:[#allocation109_spill] sm:$0xff] %v14983_v52  ;;  %v12459_v52 = vpack.i.bf16 %v14974_v57, %v4599_v10  ;;  %v3594_v61 = vsel %vm3592_vm3, %v3529_v33, %v11673_v1  ;;  %v12256_v10 = vpop.permute.xlu2 %12255 }
 0x1fa   :  { %4588 = vst.msk [vmem:[#allocation2 + $0x1f8] sm:$0xff] %vm3722_vm0, %v13540_v22  ;;  %v3659_v14 = vsel %vm3657_vm4, %v3594_v61, %v11833_v49  ;;  %v3723_v47 = vsel %vm3722_vm0, %v3658_v53, %v11992_v31  ;;  %v12258_v49 = vunpack.i.h.bf16 %v12256_v10 }
 0x1fb   :  { %4589 = vst.msk [vmem:[#allocation2 + $0x200] sm:$0xff] %vm3722_vm0, %v13540_v22  ;;  %v3724_v59 = vsel %vm3722_vm0, %v3659_v14, %v11993_v48  ;;  %v3788_v1 = vsel %vm3787_vm5, %v3723_v47, %v12152_v13  ;;  %v13354_v48 = vld [vmem:[%s20272_s0 + $0x160] sm:$0xff] }
 0x1fc   :  { %4590 = vst.msk [vmem:[#allocation2 + $0x208] sm:$0xff] %vm3722_vm0, %v13540_v22  ;;  %12465 = vrot.lane.b32.xlu2 %v14992_v20, %s13541_s25  ;;  %v3789_v61 = vsel %vm3787_vm5, %v3724_v59, %v12153_v40  ;;  %v12474_v53 = vpack.i.bf16 %v13354_v48, %v14948_v55  ;;  %v11678_v59 = vunpack.i.h.bf16 %v20608_v46 }
 0x1fd   :  { %4591 = vst.msk [vmem:[#allocation2 + $0x210] sm:$0xff] %vm3722_vm0, %v13540_v22  ;;  %12460 = vrot.lane.b32.xlu1 %v12459_v52, %s13537_s18  ;;  %v15033_v52 = vld [vmem:[%s20272_s0 + $0x168] sm:$0xff] }
 0x1fe   :  { %12455 = vrot.lane.b32.xlu0 %v12454_v24, %s13535_s14  ;;  %4592 = vst.msk [vmem:[#allocation2 + $0x218] sm:$0xff] %vm3722_vm0, %v13540_v22  ;;  %v12257_v24 = vunpack.i.l.bf16 %v12256_v10  ;;  %v15039_v13 = vpack.i.bf16 %v15033_v52, %v13354_v48  ;;  %v11517_v10 = vunpack.i.l.bf16 %v14205_v29  ;;  %v11837_v29 = vunpack.i.l.bf16 %v14502_v62 }
 0x1ff   :  { %4593 = vst.msk [vmem:[#allocation2 + $0x220] sm:$0xff] %vm3722_vm0, %v13540_v22  ;;  %v12251_v60 = vpop.permute.xlu1 %12250 }
 0x200   :  { %4594 = vst.msk [vmem:[#allocation2 + $0x228] sm:$0xff] %vm3722_vm0, %v13540_v22  ;;  %v12246_v31 = vpop.permute.xlu0 %12245  ;;  %v12253_v33 = vunpack.i.h.bf16 %v12251_v60  ;;  %v12252_v58 = vunpack.i.l.bf16 %v12251_v60 }
 0x201   :  { %4595 = vst.msk [vmem:[#allocation2 + $0x230] sm:$0xff] %vm3722_vm0, %v13540_v22  ;;  %v12248_v8 = vunpack.i.h.bf16 %v12246_v31  ;;  %v12247_v6 = vunpack.i.l.bf16 %v12246_v31  ;;  %v11677_v31 = vunpack.i.l.bf16 %v20608_v46  ;;  %v13355_v46 = vld [vmem:[%s20272_s0 + $0x10] sm:$0xff] }
 0x202   :  { %4596 = vst.msk [vmem:[#allocation2 + $0x238] sm:$0xff] %vm3722_vm0, %v13540_v22 }
 0x203   :  { %v3853_v14 = vsel %vm3852_vm6, %v3788_v1, %v12247_v6  ;;  %v3854_v47 = vsel %vm3852_vm6, %v3789_v61, %v12248_v8  ;;  %v11838_v1 = vunpack.i.h.bf16 %v14502_v62  ;;  %v11997_v8 = vunpack.i.l.bf16 %v14677_v42  ;;  %v4601_v6 = vld [vmem:[#allocation2 + $0x20] sm:$0xff]  ;;  %v13356_v62 = vld [vmem:[%s20272_s0 + $0x18] sm:$0xff] }
 0x204   :  { %v3918_v60 = vsel %vm3917_vm7, %v3853_v14, %v12252_v58  ;;  %v3919_v40 = vsel %vm3917_vm7, %v3854_v47, %v12253_v33  ;;  %12480 = vrot.lane.b32.xlu2 %v15039_v13, %s13537_s18  ;;  %v15070_v33 = vld [vmem:[#allocation2 + $0x28] sm:$0xff]  ;;  %v12158_v61 = vunpack.i.h.bf16 %v14810_v54 }
 0x205   :  { %v3983_v22 = vsel %vm3982_vm8, %v3918_v60, %v12257_v24  ;;  %v3984_v55 = vsel %vm3982_vm8, %v3919_v40, %v12258_v49  ;;  %12475 = vrot.lane.b32.xlu1 %v12474_v53, %s13539_s29  ;;  %v3530_v49 = vsel %vm3527_vm2, %v13355_v46, %v11517_v10  ;;  %v11998_v24 = vunpack.i.h.bf16 %v14677_v42  ;;  %v4606_v14 = vld [vmem:[#allocation2 + $0x48] sm:$0xff]  ;;  %v15080_v42 = vld [vmem:[#allocation2 + $0x50] sm:$0xff] }
 0x206   :  { %12470 = vrot.lane.b32.xlu0 %v14951_v23, %s13538_s19  ;;  %v4047_v48 = vpack.c.bf16 %v3984_v55, %v3983_v22  ;;  %v3531_v23 = vsel %vm3527_vm2, %v13356_v62, %v11518_v34  ;;  %v3595_v58 = vsel %vm3592_vm3, %v3530_v49, %v11677_v31  ;;  %v12157_v53 = vunpack.i.l.bf16 %v14810_v54 }
 0x207   :  { %v3596_v47 = vsel %vm3592_vm3, %v3531_v23, %v11678_v59  ;;  %v12266_v22 = vpop.permute.xlu1 %12265  ;;  %v15084_v55 = vpack.i.bf16 %v15080_v42, %v4606_v14  ;;  %v3660_v34 = vsel %vm3657_vm4, %v3595_v58, %v11837_v29  ;;  %v12484_v54 = vpack.i.bf16 %v4601_v6, %v14974_v57  ;;  %v12271_v14 = vpop.permute.xlu2 %12270  ;;  %v13358_v58 = vld [vmem:[%s20272_s0 + $0x170] sm:$0xff] }
 0x208   :  { %v12261_v10 = vpop.permute.xlu0 %12260  ;;  %9789 = vmatmul.msk.bf16.vlgmr.msra.gmra.mxu0 %vm4119_vm9, %v4047_v48  ;;  %v3661_v31 = vsel %vm3657_vm4, %v3596_v47, %v11838_v1  ;;  %v12489_v46 = vpack.i.bf16 %v15070_v33, %v4601_v6  ;;  %v3725_v48 = vsel %vm3722_vm0, %v3660_v34, %v11997_v8  ;;  %v12268_v23 = vunpack.i.h.bf16 %v12266_v22  ;;  %v15105_v6 = vld [vmem:[%s20272_s0 + $0x178] sm:$0xff]  ;;  %v20610_v34 = vld [vmem:[#allocation17_spill] sm:$0xff] }
 0x209   :  { %v12263_v60 = vunpack.i.h.bf16 %v12261_v10  ;;  %v12262_v40 = vunpack.i.l.bf16 %v12261_v10  ;;  %v3726_v49 = vsel %vm3722_vm0, %v3661_v31, %v11998_v24  ;;  %v3790_v59 = vsel %vm3787_vm5, %v3725_v48, %v12157_v53 }
 0x20a   :  { %v3791_v62 = vsel %vm3787_vm5, %v3726_v49, %v12158_v61  ;;  %v12267_v10 = vunpack.i.l.bf16 %v12266_v22  ;;  %v12273_v57 = vunpack.i.h.bf16 %v12271_v14  ;;  %v12272_v1 = vunpack.i.l.bf16 %v12271_v14  ;;  %v13359_v14 = vld [vmem:[%s20272_s0 + $0x28] sm:$0xff] }
 0x20b   :  { %v3855_v51 = vsel %vm3852_vm6, %v3790_v59, %v12262_v40  ;;  %v3856_v29 = vsel %vm3852_vm6, %v3791_v62, %v12263_v60  ;;  %v15111_v61 = vpack.i.bf16 %v15105_v6, %v13358_v58  ;;  %v12504_v53 = vpack.i.bf16 %v13358_v58, %v15033_v52  ;;  %v20609_v60 = vld [vmem:[#allocation39_spill] sm:$0xff] }
 0x20c   :  { %12495 = vrot.lane.b32.xlu2 %v15084_v55, %s13541_s25  ;;  %v3920_v24 = vsel %vm3917_vm7, %v3855_v51, %v12267_v10  ;;  %v3921_v8 = vsel %vm3917_vm7, %v3856_v29, %v12268_v23  ;;  %v11523_v40 = vunpack.i.h.bf16 %v20609_v60  ;;  %v11522_v22 = vunpack.i.l.bf16 %v20609_v60  ;;  %v15129_v23 = vld [vmem:[#allocation2 + $0x70] sm:$0xff]  ;;  %v4612_v10 = vld [vmem:[#allocation2 + $0x78] sm:$0xff] }
 0x20d   :  { %12490 = vrot.lane.b32.xlu1 %v12489_v46, %s13537_s18  ;;  %v3985_v47 = vsel %vm3982_vm8, %v3920_v24, %v12272_v1  ;;  %v3986_v51 = vsel %vm3982_vm8, %v3921_v8, %v12273_v57  ;;  %v11683_v31 = vunpack.i.h.bf16 %v20610_v34  ;;  %v11843_v46 = vunpack.i.h.bf16 %v14554_v9 }
 0x20e   :  { %12485 = vrot.lane.b32.xlu0 %v12484_v54, %s13535_s14  ;;  %v11682_v54 = vunpack.i.l.bf16 %v20610_v34  ;;  %v11842_v48 = vunpack.i.l.bf16 %v14554_v9  ;;  %v4048_v49 = vpack.c.bf16 %v3986_v51, %v3985_v47  ;;  %v12003_v59 = vunpack.i.h.bf16 %v14639_v5 }
 0x20f   :  { %v12002_v62 = vunpack.i.l.bf16 %v14639_v5  ;;  %v3533_v9 = vsel %vm3527_vm2, %v13359_v14, %v11523_v40  ;;  %v12163_v57 = vunpack.i.h.bf16 %v14808_v26  ;;  %v12162_v1 = vunpack.i.l.bf16 %v14808_v26 }
 0x210   :  { %v12276_v52 = vpop.permute.xlu0 %12275  ;;  %v3598_v24 = vsel %vm3592_vm3, %v3533_v9, %v11683_v31  ;;  %v12519_v60 = vpack.i.bf16 %v4612_v10, %v15129_v23  ;;  %v12286_v31 = vpop.permute.xlu2 %12285 }
 0x211   :  { %v12278_v8 = vunpack.i.h.bf16 %v12276_v52  ;;  %v12277_v58 = vunpack.i.l.bf16 %v12276_v52  ;;  %v3663_v47 = vsel %vm3657_vm4, %v3598_v24, %v11843_v46  ;;  %v12288_v46 = vunpack.i.h.bf16 %v12286_v31  ;;  %v20612_v24 = vld [vmem:[#allocation6_spill] sm:$0xff] }
 0x214   :  { %12510 = vrot.lane.b32.xlu2 %v15111_v61, %s13537_s18 }
 0x215   :  { %12505 = vrot.lane.b32.xlu1 %v12504_v53, %s13539_s29  ;;  %v12281_v53 = vpop.permute.xlu1 %12280 }
 0x216   :  { %12500 = vrot.lane.b32.xlu0 %v15039_v13, %s13538_s19  ;;  %v13360_v13 = vld [vmem:[%s20272_s0 + $0x20] sm:$0xff] }
 0x217   :  { %v3532_v29 = vsel %vm3527_vm2, %v13360_v13, %v11522_v22  ;;  %v3728_v22 = vsel %vm3722_vm0, %v3663_v47, %v12003_v59  ;;  %v11847_v47 = vunpack.i.l.bf16 %v14552_v18 }
 0x218   :  { %9790 = vmatmul.msk.bf16.gmra.mxu0 %vm4119_vm9, %v4048_v49  ;;  %v3597_v5 = vsel %vm3592_vm3, %v3532_v29, %v11682_v54  ;;  %v3793_v34 = vsel %vm3787_vm5, %v3728_v22, %v12163_v57  ;;  %v12283_v54 = vunpack.i.h.bf16 %v12281_v53  ;;  %v12282_v49 = vunpack.i.l.bf16 %v12281_v53 }
 0x219   :  { %v3662_v51 = vsel %vm3657_vm4, %v3597_v5, %v11842_v48  ;;  %v3858_v14 = vsel %vm3852_vm6, %v3793_v34, %v12278_v8  ;;  %v12287_v48 = vunpack.i.l.bf16 %v12286_v31  ;;  %v11688_v8 = vunpack.i.h.bf16 %v20612_v24 }
 0x21a   :  { %v3727_v40 = vsel %vm3722_vm0, %v3662_v51, %v12002_v62  ;;  %v4603_v62 = vld [vmem:[#allocation2 + $0x30] sm:$0xff]  ;;  %v3923_v10 = vsel %vm3917_vm7, %v3858_v14, %v12283_v54  ;;  %v11848_v53 = vunpack.i.h.bf16 %v14552_v18  ;;  %v12291_v51 = vpop.permute.xlu0 %12290  ;;  %v12168_v34 = vunpack.i.h.bf16 %v14785_v7 }
 0x21b   :  { %v3792_v26 = vsel %vm3787_vm5, %v3727_v40, %v12162_v1  ;;  %v12529_v9 = vpack.i.bf16 %v4603_v62, %v15070_v33  ;;  %v12534_v13 = vpack.i.bf16 %v14969_v63, %v4603_v62  ;;  %v3988_v57 = vsel %vm3982_vm8, %v3923_v10, %v12288_v46  ;;  %v20611_v1 = vld [vmem:[#allocation41_spill] sm:$0xff]  ;;  %v13361_v40 = vld [vmem:[%s20272_s0 + $0x38] sm:$0xff]  ;;  %v13362_v18 = vld [vmem:[%s20272_s0 + $0x30] sm:$0xff] }
 0x21c   :  { %v3857_v52 = vsel %vm3852_vm6, %v3792_v26, %v12277_v58  ;;  %v11528_v5 = vunpack.i.h.bf16 %v20611_v1  ;;  %v11687_v58 = vunpack.i.l.bf16 %v20612_v24  ;;  %v12008_v33 = vunpack.i.h.bf16 %v14691_v35  ;;  %v15190_v62 = vld [vmem:[%s20272_s0 + $0x180] sm:$0xff] }
 0x21d   :  { %12520 = vrot.lane.b32.xlu1 %v12519_v60, %s13537_s18  ;;  %v3922_v59 = vsel %vm3917_vm7, %v3857_v52, %v12282_v49  ;;  %v12007_v60 = vunpack.i.l.bf16 %v14691_v35  ;;  %v12167_v54 = vunpack.i.l.bf16 %v14785_v7  ;;  %v12293_v31 = vunpack.i.h.bf16 %v12291_v51  ;;  %v12296_v14 = vpop.permute.xlu1 %12295 }
 0x21e   :  { %12515 = vrot.lane.b32.xlu0 %v15084_v55, %s13535_s14  ;;  %v3987_v29 = vsel %vm3982_vm8, %v3922_v59, %v12287_v48  ;;  %v11527_v55 = vunpack.i.l.bf16 %v20611_v1  ;;  %v3535_v22 = vsel %vm3527_vm2, %v13361_v40, %v11528_v5  ;;  %v12292_v52 = vunpack.i.l.bf16 %v12291_v51  ;;  %v12301_v1 = vpop.permute.xlu2 %12300 }
 0x21f   :  { %v4049_v63 = vpack.c.bf16 %v3988_v57, %v3987_v29  ;;  %v3600_v35 = vsel %vm3592_vm3, %v3535_v22, %v11688_v8  ;;  %v12549_v7 = vpack.i.bf16 %v15190_v62, %v15105_v6  ;;  %v12298_v29 = vunpack.i.h.bf16 %v12296_v14  ;;  %v15203_v8 = vld [vmem:[#allocation2 + $0x58] sm:$0xff]  ;;  %v20614_v22 = vld [vmem:[#allocation21_spill] sm:$0xff] }
 0x220   :  { %v3534_v26 = vsel %vm3527_vm2, %v13362_v18, %v11527_v55  ;;  %v3665_v48 = vsel %vm3657_vm4, %v3600_v35, %v11848_v53  ;;  %v12297_v57 = vunpack.i.l.bf16 %v12296_v14  ;;  %v12303_v6 = vunpack.i.h.bf16 %v12301_v1  ;;  %v13364_v14 = vld [vmem:[%s20272_s0 + $0x48] sm:$0xff] }
 0x221   :  { %v3599_v49 = vsel %vm3592_vm3, %v3534_v26, %v11687_v58  ;;  %v3730_v59 = vsel %vm3722_vm0, %v3665_v48, %v12008_v33  ;;  %v12302_v24 = vunpack.i.l.bf16 %v12301_v1  ;;  %v4609_v58 = vld [vmem:[#allocation2 + $0x60] sm:$0xff]  ;;  %v11693_v18 = vunpack.i.h.bf16 %v20614_v22 }
 0x222   :  { %v3664_v46 = vsel %vm3657_vm4, %v3599_v49, %v11847_v47  ;;  %v15208_v51 = vpack.i.bf16 %v4609_v58, %v15203_v8  ;;  %v11692_v26 = vunpack.i.l.bf16 %v20614_v22  ;;  %v12306_v35 = vpop.permute.xlu0 %12305  ;;  %v13365_v48 = vld [vmem:[%s20272_s0 + $0x40] sm:$0xff]  ;;  %v15250_v22 = vld [vmem:[%s20272_s0 + $0x188] sm:$0xff] }
 0x223   :  { %v3729_v10 = vsel %vm3722_vm0, %v3664_v46, %v12007_v60  ;;  %v20613_v60 = vld [vmem:[#allocation35_spill] sm:$0xff] }
 0x224   :  { %v11532_v40 = vunpack.i.l.bf16 %v20613_v60 }
 0x225   :  { %12535 = vrot.lane.b32.xlu1 %v12534_v13, %s13537_s18  ;;  %v3795_v13 = vsel %vm3787_vm5, %v3730_v59, %v12168_v34  ;;  %v11853_v34 = vunpack.i.h.bf16 %v14514_v0  ;;  %v12172_v59 = vunpack.i.l.bf16 %v14831_v11 }
 0x226   :  { %12530 = vrot.lane.b32.xlu0 %v12529_v9, %s13535_s14  ;;  %v3794_v9 = vsel %vm3787_vm5, %v3729_v10, %v12167_v54  ;;  %v3860_v55 = vsel %vm3852_vm6, %v3795_v13, %v12293_v31  ;;  %v11852_v54 = vunpack.i.l.bf16 %v14514_v0  ;;  %v12013_v31 = vunpack.i.h.bf16 %v14689_v3 }
 0x227   :  { %v3859_v5 = vsel %vm3852_vm6, %v3794_v9, %v12292_v52  ;;  %v3925_v47 = vsel %vm3917_vm7, %v3860_v55, %v12298_v29  ;;  %v12012_v52 = vunpack.i.l.bf16 %v14689_v3  ;;  %v3536_v0 = vsel %vm3527_vm2, %v13365_v48, %v11532_v40  ;;  %v12311_v29 = vpop.permute.xlu1 %12310 }
 0x228   :  { %9791 = vmatmul.msk.bf16.gmra.mxu0 %vm4119_vm9, %v4049_v63  ;;  %v3924_v53 = vsel %vm3917_vm7, %v3859_v5, %v12297_v57  ;;  %v3990_v33 = vsel %vm3982_vm8, %v3925_v47, %v12303_v6  ;;  %v3601_v10 = vsel %vm3592_vm3, %v3536_v0, %v11692_v26  ;;  %v12308_v9 = vunpack.i.h.bf16 %v12306_v35 }
 0x229   :  { %v3989_v63 = vsel %vm3982_vm8, %v3924_v53, %v12302_v24  ;;  %v12307_v13 = vunpack.i.l.bf16 %v12306_v35  ;;  %v3666_v57 = vsel %vm3657_vm4, %v3601_v10, %v11852_v54  ;;  %v12313_v24 = vunpack.i.h.bf16 %v12311_v29  ;;  %v12316_v53 = vpop.permute.xlu2 %12315  ;;  %v20615_v54 = vld [vmem:[#allocation36_spill] sm:$0xff]  ;;  %v13368_v10 = vld [vmem:[%s20272_s0 + $0x50] sm:$0xff] }
 0x22a   :  { %v4050_v49 = vpack.c.bf16 %v3990_v33, %v3989_v63  ;;  %v3731_v5 = vsel %vm3722_vm0, %v3666_v57, %v12012_v52  ;;  %v12312_v58 = vunpack.i.l.bf16 %v12311_v29  ;;  %v12318_v33 = vunpack.i.h.bf16 %v12316_v53  ;;  %v12321_v48 = vpop.permute.xlu0 %12320 }
 0x22b   :  { %v3796_v6 = vsel %vm3787_vm5, %v3731_v5, %v12172_v59  ;;  %v11537_v35 = vunpack.i.l.bf16 %v20615_v54  ;;  %v12018_v0 = vunpack.i.h.bf16 %v14651_v28  ;;  %v13367_v59 = vld [vmem:[%s20272_s0 + $0x58] sm:$0xff]  ;;  %v12323_v57 = vunpack.i.h.bf16 %v12321_v48 }
 0x22c   :  { %v3861_v47 = vsel %vm3852_vm6, %v3796_v6, %v12307_v13  ;;  %v12177_v13 = vunpack.i.l.bf16 %v14829_v17 }
 0x22d   :  { %12550 = vrot.lane.b32.xlu1 %v12549_v7, %s13539_s29  ;;  %v12173_v7 = vunpack.i.h.bf16 %v14831_v11 }
 0x22e   :  { %12545 = vrot.lane.b32.xlu0 %v15111_v61, %s13538_s19  ;;  %v11533_v61 = vunpack.i.h.bf16 %v20613_v60  ;;  %v12317_v60 = vunpack.i.l.bf16 %v12316_v53 }
 0x22f   :  { %v12326_v5 = vpop.permute.xlu1 %12325 }
 0x230   :  { %v3537_v46 = vsel %vm3527_vm2, %v13364_v14, %v11533_v61  ;;  %v3926_v61 = vsel %vm3917_vm7, %v3861_v47, %v12312_v58  ;;  %v11858_v14 = vunpack.i.h.bf16 %v14566_v37  ;;  %v12328_v53 = vunpack.i.h.bf16 %v12326_v5 }
 0x231   :  { %v3602_v3 = vsel %vm3592_vm3, %v3537_v46, %v11693_v18  ;;  %v12589_v18 = vpack.i.bf16 %v15250_v22, %v15190_v62  ;;  %v3991_v26 = vsel %vm3982_vm8, %v3926_v61, %v12317_v60  ;;  %v11857_v46 = vunpack.i.l.bf16 %v14566_v37 }
 0x232   :  { %v3667_v1 = vsel %vm3657_vm4, %v3602_v3, %v11853_v34  ;;  %v3538_v37 = vsel %vm3527_vm2, %v13368_v10, %v11537_v35  ;;  %v12327_v47 = vunpack.i.l.bf16 %v12326_v5 }
 0x233   :  { %v3732_v55 = vsel %vm3722_vm0, %v3667_v1, %v12013_v31  ;;  %v12322_v1 = vunpack.i.l.bf16 %v12321_v48  ;;  %v11862_v48 = vunpack.i.l.bf16 %v14564_v19 }
 0x234   :  { %v3797_v11 = vsel %vm3787_vm5, %v3732_v55, %v12173_v7  ;;  %v12017_v7 = vunpack.i.l.bf16 %v14651_v28 }
 0x235   :  { %v3862_v63 = vsel %vm3852_vm6, %v3797_v11, %v12308_v9  ;;  %v12178_v9 = vunpack.i.h.bf16 %v14829_v17 }
 0x236   :  { %12560 = vrot.lane.b32.xlu0 %v15208_v51, %s13535_s14  ;;  %v3927_v40 = vsel %vm3917_vm7, %v3862_v63, %v12313_v24  ;;  %v12331_v63 = vpop.permute.xlu2 %12330 }
 0x237   :  { %v3992_v34 = vsel %vm3982_vm8, %v3927_v40, %v12318_v33  ;;  %v12333_v61 = vunpack.i.h.bf16 %v12331_v63  ;;  %v12332_v40 = vunpack.i.l.bf16 %v12331_v63 }
 0x238   :  { %9792 = vmatmul.msk.bf16.gmra.mxu0 %vm4119_vm9, %v4050_v49  ;;  %v20616_v49 = vld [vmem:[#allocation20_spill] sm:$0xff]  ;;  %v4051_v62 = vpack.c.bf16 %v3992_v34, %v3991_v26 }
 0x239   :  { %v11698_v31 = vunpack.i.h.bf16 %v20616_v49  ;;  %v11697_v52 = vunpack.i.l.bf16 %v20616_v49 }
 0x23b   :  { %v3603_v29 = vsel %vm3592_vm3, %v3538_v37, %v11697_v52  ;;  %v13370_v37 = vld [vmem:[%s20272_s0 + $0x60] sm:$0xff] }
 0x23c   :  { %v3668_v6 = vsel %vm3657_vm4, %v3603_v29, %v11857_v46  ;;  %v11863_v46 = vunpack.i.h.bf16 %v14564_v19  ;;  %v12183_v19 = vunpack.i.h.bf16 %v14797_v36 }
 0x23d   :  { %v3733_v11 = vsel %vm3722_vm0, %v3668_v6, %v12017_v7  ;;  %v12023_v7 = vunpack.i.h.bf16 %v14703_v27 }
 0x23e   :  { %12575 = vrot.lane.b32.xlu0 %v14992_v20, %s13535_s14  ;;  %v11538_v20 = vunpack.i.h.bf16 %v20615_v54  ;;  %v3798_v58 = vsel %vm3787_vm5, %v3733_v11, %v12177_v13  ;;  %v12182_v13 = vunpack.i.l.bf16 %v14797_v36 }
 0x23f   :  { %v3863_v33 = vsel %vm3852_vm6, %v3798_v58, %v12322_v1  ;;  %v12341_v1 = vpop.permute.xlu1 %12340 }
 0x240   :  { %v3539_v3 = vsel %vm3527_vm2, %v13367_v59, %v11538_v20  ;;  %v20617_v20 = vld [vmem:[#allocation44_spill] sm:$0xff]  ;;  %v12022_v59 = vunpack.i.l.bf16 %v14703_v27  ;;  %v12343_v58 = vunpack.i.h.bf16 %v12341_v1 }
 0x241   :  { %v3604_v28 = vsel %vm3592_vm3, %v3539_v3, %v11698_v31  ;;  %v11543_v35 = vunpack.i.h.bf16 %v20617_v20  ;;  %v11542_v49 = vunpack.i.l.bf16 %v20617_v20  ;;  %v20618_v31 = vld [vmem:[#allocation5_spill] sm:$0xff] }
 0x242   :  { %v3669_v55 = vsel %vm3657_vm4, %v3604_v28, %v11858_v14  ;;  %v11703_v52 = vunpack.i.h.bf16 %v20618_v31  ;;  %v11702_v14 = vunpack.i.l.bf16 %v20618_v31  ;;  %v13369_v3 = vld [vmem:[%s20272_s0 + $0x68] sm:$0xff] }
 0x243   :  { %v3734_v24 = vsel %vm3722_vm0, %v3669_v55, %v12018_v0  ;;  %v3541_v10 = vsel %vm3527_vm2, %v13369_v3, %v11543_v35  ;;  %v20620_v35 = vld [vmem:[#allocation24_spill] sm:$0xff]  ;;  %v13372_v3 = vld [vmem:[%s20272_s0 + $0x70] sm:$0xff] }
 0x244   :  { %v3799_v17 = vsel %vm3787_vm5, %v3734_v24, %v12178_v9  ;;  %v3540_v9 = vsel %vm3527_vm2, %v13370_v37, %v11542_v49  ;;  %v3606_v28 = vsel %vm3592_vm3, %v3541_v10, %v11703_v52  ;;  %v11708_v49 = vunpack.i.h.bf16 %v20620_v35 }
 0x245   :  { %v3864_v60 = vsel %vm3852_vm6, %v3799_v17, %v12323_v57  ;;  %v3605_v27 = vsel %vm3592_vm3, %v3540_v9, %v11702_v14  ;;  %v3671_v55 = vsel %vm3657_vm4, %v3606_v28, %v11863_v46  ;;  %v12342_v17 = vunpack.i.l.bf16 %v12341_v1 }
 0x246   :  { %12590 = vrot.lane.b32.xlu0 %v12589_v18, %s13538_s19  ;;  %v3928_v18 = vsel %vm3917_vm7, %v3863_v33, %v12327_v47  ;;  %v3929_v26 = vsel %vm3917_vm7, %v3864_v60, %v12328_v53  ;;  %v3670_v5 = vsel %vm3657_vm4, %v3605_v27, %v11862_v48  ;;  %v3736_v11 = vsel %vm3722_vm0, %v3671_v55, %v12023_v7  ;;  %v12346_v53 = vpop.permute.xlu2 %12345  ;;  %v13371_v7 = vld [vmem:[%s20272_s0 + $0x78] sm:$0xff] }
 0x247   :  { %v3993_v34 = vsel %vm3982_vm8, %v3928_v18, %v12332_v40  ;;  %v3994_v54 = vsel %vm3982_vm8, %v3929_v26, %v12333_v61  ;;  %v3735_v6 = vsel %vm3722_vm0, %v3670_v5, %v12022_v59  ;;  %v3801_v36 = vsel %vm3787_vm5, %v3736_v11, %v12183_v19  ;;  %v12356_v27 = vpop.permute.xlu1 %12355 }
 0x248   :  { %9793 = vmatmul.msk.bf16.gmra.mxu0 %vm4119_vm9, %v4051_v62  ;;  %v12336_v62 = vpop.permute.xlu0 %12335  ;;  %v4052_v0 = vpack.c.bf16 %v3994_v54, %v3993_v34  ;;  %v3800_v24 = vsel %vm3787_vm5, %v3735_v6, %v12182_v13  ;;  %v12348_v33 = vunpack.i.h.bf16 %v12346_v53  ;;  %v12347_v60 = vunpack.i.l.bf16 %v12346_v53  ;;  %v20619_v34 = vld [vmem:[#allocation43_spill] sm:$0xff] }
 0x249   :  { %v12338_v29 = vunpack.i.h.bf16 %v12336_v62  ;;  %v12337_v57 = vunpack.i.l.bf16 %v12336_v62  ;;  %v11548_v54 = vunpack.i.h.bf16 %v20619_v34  ;;  %v11547_v20 = vunpack.i.l.bf16 %v20619_v34 }
 0x24a   :  { %v11707_v31 = vunpack.i.l.bf16 %v20620_v35  ;;  %v11868_v52 = vunpack.i.h.bf16 %v14526_v15  ;;  %v11867_v14 = vunpack.i.l.bf16 %v14526_v15  ;;  %v12028_v62 = vunpack.i.h.bf16 %v14701_v43 }
 0x24b   :  { %v3865_v47 = vsel %vm3852_vm6, %v3800_v24, %v12337_v57  ;;  %v3866_v63 = vsel %vm3852_vm6, %v3801_v36, %v12338_v29  ;;  %v3543_v59 = vsel %vm3527_vm2, %v13371_v7, %v11548_v54  ;;  %v3542_v10 = vsel %vm3527_vm2, %v13372_v3, %v11547_v20 }
 0x24c   :  { %v3930_v61 = vsel %vm3917_vm7, %v3865_v47, %v12342_v17  ;;  %v3931_v40 = vsel %vm3917_vm7, %v3866_v63, %v12343_v58  ;;  %v12188_v15 = vunpack.i.h.bf16 %v14865_v12  ;;  %v12187_v37 = vunpack.i.l.bf16 %v14865_v12 }
 0x24d   :  { %v3995_v18 = vsel %vm3982_vm8, %v3930_v61, %v12347_v60  ;;  %v3996_v26 = vsel %vm3982_vm8, %v3931_v40, %v12348_v33  ;;  %v3607_v9 = vsel %vm3592_vm3, %v3542_v10, %v11707_v31  ;;  %v12358_v55 = vunpack.i.h.bf16 %v12356_v27  ;;  %v20621_v60 = vld [vmem:[#allocation37_spill] sm:$0xff] }
 0x24e   :  { %v4053_v48 = vpack.c.bf16 %v3996_v26, %v3995_v18  ;;  %v3672_v28 = vsel %vm3657_vm4, %v3607_v9, %v11867_v14  ;;  %v12357_v6 = vunpack.i.l.bf16 %v12356_v27  ;;  %v12361_v11 = vpop.permute.xlu2 %12360  ;;  %v11553_v61 = vunpack.i.h.bf16 %v20621_v60  ;;  %v20622_v18 = vld [vmem:[#allocation23_spill] sm:$0xff]  ;;  %v13373_v14 = vld [vmem:[%s20272_s0 + $0x88] sm:$0xff] }
 0x24f   :  { %v12363_v58 = vunpack.i.h.bf16 %v12361_v11  ;;  %v12362_v17 = vunpack.i.l.bf16 %v12361_v11  ;;  %v11552_v40 = vunpack.i.l.bf16 %v20621_v60  ;;  %v11713_v26 = vunpack.i.h.bf16 %v20622_v18  ;;  %v12371_v10 = vpop.permute.xlu1 %12370 }
 0x250   :  { %v12351_v46 = vpop.permute.xlu0 %12350  ;;  %v11712_v34 = vunpack.i.l.bf16 %v20622_v18  ;;  %v11873_v54 = vunpack.i.h.bf16 %v14578_v30  ;;  %v11872_v20 = vunpack.i.l.bf16 %v14578_v30  ;;  %v12033_v31 = vunpack.i.h.bf16 %v14663_v56 }
 0x251   :  { %v12353_v19 = vunpack.i.h.bf16 %v12351_v46  ;;  %v12352_v13 = vunpack.i.l.bf16 %v12351_v46  ;;  %v3545_v46 = vsel %vm3527_vm2, %v13373_v14, %v11553_v61  ;;  %v12193_v30 = vunpack.i.h.bf16 %v14863_v32 }
 0x252   :  { %v12372_v27 = vunpack.i.l.bf16 %v12371_v10  ;;  %v11877_v60 = vunpack.i.l.bf16 %v14576_v41  ;;  %v12038_v18 = vunpack.i.h.bf16 %v14713_v38 }
 0x258   :  { %9794 = vmatmul.msk.bf16.gmra.mxu0 %vm4119_vm9, %v4052_v0  ;;  %v12027_v0 = vunpack.i.l.bf16 %v14701_v43  ;;  %v3608_v43 = vsel %vm3592_vm3, %v3543_v59, %v11708_v49  ;;  %v12366_v35 = vpop.permute.xlu0 %12365 }
 0x259   :  { %v3673_v29 = vsel %vm3657_vm4, %v3608_v43, %v11868_v52  ;;  %v12032_v52 = vunpack.i.l.bf16 %v14663_v56  ;;  %v3610_v56 = vsel %vm3592_vm3, %v3545_v46, %v11713_v26  ;;  %v12368_v59 = vunpack.i.h.bf16 %v12366_v35  ;;  %v12386_v46 = vpop.permute.xlu1 %12385 }
 0x25a   :  { %v3737_v57 = vsel %vm3722_vm0, %v3672_v28, %v12027_v0  ;;  %v3738_v1 = vsel %vm3722_vm0, %v3673_v29, %v12028_v62  ;;  %v12192_v0 = vunpack.i.l.bf16 %v14863_v32  ;;  %v12367_v3 = vunpack.i.l.bf16 %v12366_v35  ;;  %v12376_v28 = vpop.permute.xlu2 %12375 }
 0x25b   :  { %v3802_v5 = vsel %vm3787_vm5, %v3737_v57, %v12187_v37  ;;  %v3803_v12 = vsel %vm3787_vm5, %v3738_v1, %v12188_v15  ;;  %v3675_v15 = vsel %vm3657_vm4, %v3610_v56, %v11873_v54  ;;  %v12378_v1 = vunpack.i.h.bf16 %v12376_v28 }
 0x25c   :  { %v3867_v24 = vsel %vm3852_vm6, %v3802_v5, %v12352_v13  ;;  %v3868_v36 = vsel %vm3852_vm6, %v3803_v12, %v12353_v19  ;;  %v3740_v9 = vsel %vm3722_vm0, %v3675_v15, %v12033_v31  ;;  %v12373_v13 = vunpack.i.h.bf16 %v12371_v10 }
 0x25d   :  { %v3932_v53 = vsel %vm3917_vm7, %v3867_v24, %v12357_v6  ;;  %v3933_v47 = vsel %vm3917_vm7, %v3868_v36, %v12358_v55  ;;  %v3805_v32 = vsel %vm3787_vm5, %v3740_v9, %v12193_v30  ;;  %v12377_v5 = vunpack.i.l.bf16 %v12376_v28  ;;  %v20623_v24 = vld [vmem:[#allocation47_spill] sm:$0xff] }
 0x25e   :  { %v3997_v63 = vsel %vm3982_vm8, %v3932_v53, %v12362_v17  ;;  %v3998_v33 = vsel %vm3982_vm8, %v3933_v47, %v12363_v58  ;;  %v3870_v57 = vsel %vm3852_vm6, %v3805_v32, %v12368_v59  ;;  %v11558_v36 = vunpack.i.h.bf16 %v20623_v24  ;;  %v20624_v17 = vld [vmem:[#allocation7_spill] sm:$0xff] }
 0x25f   :  { %v4054_v49 = vpack.c.bf16 %v3998_v33, %v3997_v63  ;;  %v3935_v55 = vsel %vm3917_vm7, %v3870_v57, %v12373_v13  ;;  %v11557_v58 = vunpack.i.l.bf16 %v20623_v24  ;;  %v11718_v53 = vunpack.i.h.bf16 %v20624_v17  ;;  %v15420_v13 = vld [vmem:[#allocation2 + $0x68] sm:$0xff]  ;;  %v20625_v57 = vld [vmem:[#allocation46_spill] sm:$0xff] }
 0x260   :  { %v4000_v11 = vsel %vm3982_vm8, %v3935_v55, %v12378_v1  ;;  %v11717_v47 = vunpack.i.l.bf16 %v20624_v17  ;;  %v11878_v33 = vunpack.i.h.bf16 %v14576_v41  ;;  %v12381_v61 = vpop.permute.xlu0 %12380  ;;  %v12037_v26 = vunpack.i.l.bf16 %v14713_v38 }
 0x261   :  { %v12198_v41 = vunpack.i.h.bf16 %v14822_v16  ;;  %v12382_v14 = vunpack.i.l.bf16 %v12381_v61  ;;  %v12387_v59 = vunpack.i.l.bf16 %v12386_v46  ;;  %v11563_v1 = vunpack.i.h.bf16 %v20625_v57 }
 0x262   :  { %v11883_v24 = vunpack.i.h.bf16 %v14538_v2  ;;  %v12043_v17 = vunpack.i.h.bf16 %v14711_v45 }
 0x268   :  { %9795 = vmatmul.msk.bf16.gmra.mxu0 %vm4119_vm9, %v4053_v48  ;;  %v13374_v48 = vld [vmem:[%s20272_s0 + $0x80] sm:$0xff] }
 0x269   :  { %v3544_v62 = vsel %vm3527_vm2, %v13374_v48, %v11552_v40 }
 0x26a   :  { %v3609_v7 = vsel %vm3592_vm3, %v3544_v62, %v11712_v34  ;;  %v13375_v34 = vld [vmem:[%s20272_s0 + $0x98] sm:$0xff] }
 0x26b   :  { %v3674_v37 = vsel %vm3657_vm4, %v3609_v7, %v11872_v20  ;;  %v3547_v54 = vsel %vm3527_vm2, %v13375_v34, %v11558_v36  ;;  %v13376_v20 = vld [vmem:[%s20272_s0 + $0x90] sm:$0xff]  ;;  %v12388_v7 = vunpack.i.h.bf16 %v12386_v46  ;;  %v11882_v36 = vunpack.i.l.bf16 %v14538_v2  ;;  %v12401_v34 = vpop.permute.xlu1 %12400 }
 0x26c   :  { %v3739_v43 = vsel %vm3722_vm0, %v3674_v37, %v12032_v52  ;;  %v3546_v35 = vsel %vm3527_vm2, %v13376_v20, %v11557_v58  ;;  %v3612_v31 = vsel %vm3592_vm3, %v3547_v54, %v11718_v53  ;;  %v12383_v52 = vunpack.i.h.bf16 %v12381_v61 }
 0x26d   :  { %v3804_v19 = vsel %vm3787_vm5, %v3739_v43, %v12192_v0  ;;  %v3611_v38 = vsel %vm3592_vm3, %v3546_v35, %v11717_v47  ;;  %v3677_v62 = vsel %vm3657_vm4, %v3612_v31, %v11878_v33  ;;  %v12042_v53 = vunpack.i.l.bf16 %v14711_v45  ;;  %v13377_v47 = vld [vmem:[%s20272_s0 + $0xa8] sm:$0xff]  ;;  %v13378_v33 = vld [vmem:[%s20272_s0 + $0xa0] sm:$0xff] }
 0x26e   :  { %v3869_v29 = vsel %vm3852_vm6, %v3804_v19, %v12367_v3  ;;  %v3676_v48 = vsel %vm3657_vm4, %v3611_v38, %v11877_v60  ;;  %v3742_v0 = vsel %vm3722_vm0, %v3677_v62, %v12038_v18  ;;  %v12391_v3 = vpop.permute.xlu2 %12390  ;;  %v12203_v2 = vunpack.i.h.bf16 %v14905_v21 }
 0x26f   :  { %v3934_v12 = vsel %vm3917_vm7, %v3869_v29, %v12372_v27  ;;  %v3741_v30 = vsel %vm3722_vm0, %v3676_v48, %v12037_v26  ;;  %v12393_v43 = vunpack.i.h.bf16 %v12391_v3  ;;  %v12392_v9 = vunpack.i.l.bf16 %v12391_v3 }
 0x270   :  { %v3999_v6 = vsel %vm3982_vm8, %v3934_v12, %v12377_v5  ;;  %v12604_v27 = vpack.i.bf16 %v15129_v23, %v15420_v13  ;;  %v11562_v5 = vunpack.i.l.bf16 %v20625_v57  ;;  %v20626_v12 = vld [vmem:[#allocation27_spill] sm:$0xff]  ;;  %v12396_v23 = vpop.permute.xlu0 %12395  ;;  %v12202_v61 = vunpack.i.l.bf16 %v14905_v21 }
 0x271   :  { %v4055_v40 = vpack.c.bf16 %v4000_v11, %v3999_v6  ;;  %v11723_v55 = vunpack.i.h.bf16 %v20626_v12  ;;  %v11722_v6 = vunpack.i.l.bf16 %v20626_v12  ;;  %v12398_v18 = vunpack.i.h.bf16 %v12396_v23  ;;  %v13379_v57 = vld [vmem:[%s20272_s0 + $0xb8] sm:$0xff] }
 0x272   :  { %12605 = vrot.lane.b32.xlu0 %v12604_v27, %s13535_s14  ;;  %v3548_v60 = vsel %vm3527_vm2, %v13378_v33, %v11562_v5  ;;  %v12397_v26 = vunpack.i.l.bf16 %v12396_v23  ;;  %v12619_v35 = vpack.i.bf16 %v15203_v8, %v15080_v42  ;;  %v12403_v31 = vunpack.i.h.bf16 %v12401_v34  ;;  %v13380_v5 = vld [vmem:[%s20272_s0 + $0xb0] sm:$0xff] }
 0x278   :  { %9796 = vmatmul.msk.bf16.gmra.mxu0 %vm4119_vm9, %v4054_v49  ;;  %v12197_v49 = vunpack.i.l.bf16 %v14822_v16  ;;  %v3807_v16 = vsel %vm3787_vm5, %v3742_v0, %v12198_v41 }
 0x279   :  { %v3872_v15 = vsel %vm3852_vm6, %v3807_v16, %v12383_v52  ;;  %v12402_v52 = vunpack.i.l.bf16 %v12401_v34 }
 0x27a   :  { %v3806_v56 = vsel %vm3787_vm5, %v3741_v30, %v12197_v49  ;;  %v3937_v32 = vsel %vm3917_vm7, %v3872_v15, %v12388_v7  ;;  %12620 = vrot.lane.b32.xlu0 %v12619_v35, %s13537_s18  ;;  %v20627_v7 = vld [vmem:[#allocation38_spill] sm:$0xff] }
 0x27b   :  { %v3871_v10 = vsel %vm3852_vm6, %v3806_v56, %v12382_v14  ;;  %v4002_v29 = vsel %vm3982_vm8, %v3937_v32, %v12393_v43  ;;  %v12406_v14 = vpop.permute.xlu2 %12405  ;;  %v11567_v3 = vunpack.i.l.bf16 %v20627_v7  ;;  %v12411_v32 = vpop.permute.xlu0 %12410 }
 0x27c   :  { %v3936_v19 = vsel %vm3917_vm7, %v3871_v10, %v12387_v59  ;;  %v12408_v30 = vunpack.i.h.bf16 %v12406_v14  ;;  %v12407_v42 = vunpack.i.l.bf16 %v12406_v14  ;;  %v11568_v59 = vunpack.i.h.bf16 %v20627_v7  ;;  %v20628_v10 = vld [vmem:[#allocation26_spill] sm:$0xff] }
 0x27d   :  { %v4001_v28 = vsel %vm3982_vm8, %v3936_v19, %v12392_v9  ;;  %v11728_v15 = vunpack.i.h.bf16 %v20628_v10  ;;  %v11888_v9 = vunpack.i.h.bf16 %v14590_v39  ;;  %v11887_v19 = vunpack.i.l.bf16 %v14590_v39  ;;  %v20629_v14 = vld [vmem:[#allocation50_spill] sm:$0xff] }
 0x27e   :  { %v4056_v58 = vpack.c.bf16 %v4002_v29, %v4001_v28  ;;  %v12048_v28 = vunpack.i.h.bf16 %v14675_v44  ;;  %v12047_v29 = vunpack.i.l.bf16 %v14675_v44  ;;  %v3550_v12 = vsel %vm3527_vm2, %v13380_v5, %v11567_v3 }
 0x27f   :  { %v12208_v39 = vunpack.i.h.bf16 %v14903_v4  ;;  %v12053_v3 = vunpack.i.h.bf16 %v14725_v25 }
 0x285   :  { %v4229_v63 = vpop.f32.mrf.mxu0 }
 0x286   :  { %v3549_v63 = vsel %vm3527_vm2, %v13377_v47, %v11563_v1  ;;  %v3551_v1 = vsel %vm3527_vm2, %v13379_v57, %v11568_v59  ;;  %v11192_v59 = vld [vmem:[%s20275_s4 + $0x38] sm:$0xff] }
 0x287   :  { %v3614_v45 = vsel %vm3592_vm3, %v3549_v63, %v11723_v55  ;;  %v12207_v55 = vunpack.i.l.bf16 %v14903_v4  ;;  %v3616_v44 = vsel %vm3592_vm3, %v3551_v1, %v11728_v15  ;;  %v15494_v4 = vld [vmem:[%s20272_s0 + $0x1a0] sm:$0xff]  ;;  %6084 = vmatpush.bf16.msra.mxu1 %v11192_v59 }
 0x288   :  { %9797 = vmatmul.msk.bf16.gmra.mxu0 %vm4119_vm9, %v4055_v40  ;;  %v3613_v40 = vsel %vm3592_vm3, %v3548_v60, %v11722_v6  ;;  %v3679_v20 = vsel %vm3657_vm4, %v3614_v45, %v11883_v24  ;;  %v12412_v24 = vunpack.i.l.bf16 %v12411_v32  ;;  %v3681_v23 = vsel %vm3657_vm4, %v3616_v44, %v11888_v9  ;;  %v12421_v45 = vpop.permute.xlu2 %12420  ;;  %v13384_v9 = vld [vmem:[%s20272_s0 + $0xc0] sm:$0xff] }
 0x289   :  { %v3678_v54 = vsel %vm3657_vm4, %v3613_v40, %v11882_v36  ;;  %v3744_v21 = vsel %vm3722_vm0, %v3679_v20, %v12043_v17  ;;  %v12416_v36 = vpop.permute.xlu1 %12415  ;;  %v15489_v17 = vld [vmem:[%s20272_s0 + $0x1a8] sm:$0xff]  ;;  %v3746_v63 = vsel %vm3722_vm0, %v3681_v23, %v12048_v28  ;;  %v12423_v34 = vunpack.i.h.bf16 %v12421_v45 }
 0x28a   :  { %v3743_v41 = vsel %vm3722_vm0, %v3678_v54, %v12042_v53  ;;  %v3809_v38 = vsel %vm3787_vm5, %v3744_v21, %v12203_v2  ;;  %v12634_v53 = vpack.i.bf16 %v15489_v17, %v15494_v4  ;;  %v3811_v60 = vsel %vm3787_vm5, %v3746_v63, %v12208_v39  ;;  %v15509_v21 = vld [vmem:[#allocation2 + $0xb0] sm:$0xff] }
 0x28b   :  { %v3808_v49 = vsel %vm3787_vm5, %v3743_v41, %v12202_v61  ;;  %v3874_v48 = vsel %vm3852_vm6, %v3809_v38, %v12398_v18  ;;  %v12418_v2 = vunpack.i.h.bf16 %v12416_v36  ;;  %v12417_v61 = vunpack.i.l.bf16 %v12416_v36  ;;  %v15507_v41 = vld [vmem:[#allocation2 + $0xa8] sm:$0xff] }
 0x28c   :  { %v3873_v46 = vsel %vm3852_vm6, %v3808_v49, %v12397_v26  ;;  %v3939_v0 = vsel %vm3917_vm7, %v3874_v48, %v12403_v31  ;;  %12635 = vrot.lane.b32.xlu0 %v12634_v53, %s13537_s18  ;;  %v12422_v54 = vunpack.i.l.bf16 %v12421_v45  ;;  %v15513_v49 = vpack.i.bf16 %v15509_v21, %v15507_v41 }
 0x28d   :  { %v4231_v37 = vpop.f32.mrf.mxu0  ;;  %v3938_v8 = vsel %vm3917_vm7, %v3873_v46, %v12402_v52  ;;  %v4004_v16 = vsel %vm3982_vm8, %v3939_v0, %v12408_v30  ;;  %v11202_v52 = vld [vmem:[%s20275_s4 + $0x88] sm:$0xff]  ;;  %v11573_v46 = vunpack.i.h.bf16 %v20629_v14  ;;  %v11572_v48 = vunpack.i.l.bf16 %v20629_v14  ;;  %v20630_v30 = vld [vmem:[#allocation10_spill] sm:$0xff] }
 0x28e   :  { %v4003_v56 = vsel %vm3982_vm8, %v3938_v8, %v12407_v42  ;;  %v11727_v37 = vunpack.i.l.bf16 %v20628_v10  ;;  %v11733_v42 = vunpack.i.h.bf16 %v20630_v30  ;;  %v11732_v8 = vunpack.i.l.bf16 %v20630_v30  ;;  %6428 = vmatpush.bf16.msra.mxu3 %v11202_v52  ;;  %v20633_v52 = vld [vmem:[#allocation32_spill] sm:$0xff] }
 0x28f   :  { %v4057_v27 = vpack.c.bf16 %v4004_v16, %v4003_v56  ;;  %v11893_v56 = vunpack.i.h.bf16 %v14588_v50  ;;  %v11892_v16 = vunpack.i.l.bf16 %v14588_v50  ;;  %v12052_v10 = vunpack.i.l.bf16 %v14725_v25 }
 0x290   :  { %v3615_v6 = vsel %vm3592_vm3, %v3550_v12, %v11727_v37  ;;  %v11201_v37 = vld [vmem:[%s20275_s4 + $0x80] sm:$0xff]  ;;  %v12436_v28 = vpop.permute.xlu2 %12435  ;;  %v11737_v14 = vunpack.i.l.bf16 %v20633_v52 }
 0x291   :  { %v12431_v15 = vpop.permute.xlu1 %12430 }
 0x292   :  { %6429 = vmatpush.bf16.msra.mxu3 %v11201_v37  ;;  %v12433_v36 = vunpack.i.h.bf16 %v12431_v15  ;;  %v12432_v23 = vunpack.i.l.bf16 %v12431_v15  ;;  %v20636_v37 = vld [vmem:[#allocation106_spill] sm:$0xff] }
 0x294   :  { %12650 = vrot.lane.b32.xlu0 %v15513_v49, %s13541_s25 }
 0x295   :  { %v4234_v11 = vpop.f32.mrf.mxu0 }
 0x296   :  { %v12413_v11 = vunpack.i.h.bf16 %v12411_v32  ;;  %v20631_v32 = vld [vmem:[#allocation103_spill] sm:$0xff] }
 0x297   :  { %v12212_v25 = vunpack.i.l.bf16 %v20631_v32 }
 0x298   :  { %9798 = vmatmul.msk.bf16.gmra.mxu0 %vm4119_vm9, %v4056_v58  ;;  %v3680_v58 = vsel %vm3657_vm4, %v3615_v6, %v11887_v19  ;;  %v3876_v18 = vsel %vm3852_vm6, %v3811_v60, %v12413_v11  ;;  %v3552_v19 = vsel %vm3527_vm2, %v13384_v9, %v11572_v48  ;;  %v12438_v60 = vunpack.i.h.bf16 %v12436_v28  ;;  %v20634_v48 = vld [vmem:[#allocation65_spill] sm:$0xff] }
 0x299   :  { %v3745_v47 = vsel %vm3722_vm0, %v3680_v58, %v12047_v29  ;;  %v3941_v35 = vsel %vm3917_vm7, %v3876_v18, %v12418_v2  ;;  %v3617_v29 = vsel %vm3592_vm3, %v3552_v19, %v11732_v8  ;;  %v12437_v2 = vunpack.i.l.bf16 %v12436_v28  ;;  %v12446_v18 = vpop.permute.xlu1 %12445  ;;  %v20635_v8 = vld [vmem:[#allocation87_spill] sm:$0xff] }
 0x29a   :  { %v3810_v33 = vsel %vm3787_vm5, %v3745_v47, %v12207_v55  ;;  %v4006_v31 = vsel %vm3982_vm8, %v3941_v35, %v12423_v34  ;;  %v3682_v12 = vsel %vm3657_vm4, %v3617_v29, %v11892_v16  ;;  %v11191_v55 = vld [vmem:[%s20275_s4 + $0x30] sm:$0xff]  ;;  %v11189_v34 = vld [vmem:[%s20275_s4 + $0x20] sm:$0xff]  ;;  %v12058_v15 = vunpack.i.h.bf16 %v20635_v8 }
 0x29b   :  { %v3875_v40 = vsel %vm3852_vm6, %v3810_v33, %v12412_v24  ;;  %v3747_v44 = vsel %vm3722_vm0, %v3682_v12, %v12052_v10  ;;  %6085 = vmatpush.bf16.msra.mxu1 %v11191_v55  ;;  %v12218_v19 = vunpack.i.h.bf16 %v20636_v37  ;;  %v11187_v12 = vld [vmem:[%s20275_s4 + $0x10] sm:$0xff] }
 0x29c   :  { %v3940_v20 = vsel %vm3917_vm7, %v3875_v40, %v12417_v61  ;;  %v3812_v11 = vsel %vm3787_vm5, %v3747_v44, %v12212_v25  ;;  %12665 = vrot.lane.b32.xlu0 %v12634_v53, %s13538_s19  ;;  %v11190_v61 = vld [vmem:[%s20275_s4 + $0x28] sm:$0xff]  ;;  %v15571_v53 = vld [vmem:[%s20274_s3] ss:$0 sm:$0xff]  ;;  %v12447_v44 = vunpack.i.l.bf16 %v12446_v18 }
 0x29d   :  { %v4236_v62 = vpop.f32.mrf.mxu0  ;;  %v4005_v38 = vsel %vm3982_vm8, %v3940_v20, %v12422_v54  ;;  %v20632_v54 = vld [vmem:[#allocation49_spill] sm:$0xff] }
 0x29e   :  { %v12426_v62 = vpop.permute.xlu0 %12425  ;;  %v4058_v7 = vpack.c.bf16 %v4006_v31, %v4005_v38  ;;  %v11578_v20 = vunpack.i.h.bf16 %v20632_v54  ;;  %v11577_v35 = vunpack.i.l.bf16 %v20632_v54 }
 0x29f   :  { %v12428_v1 = vunpack.i.h.bf16 %v12426_v62  ;;  %v12427_v5 = vunpack.i.l.bf16 %v12426_v62  ;;  %6086 = vmatpush.bf16.msra.mxu1 %v11190_v61  ;;  %v11897_v62 = vunpack.i.l.bf16 %v20634_v48 }
 0x2a1   :  { %v3877_v58 = vsel %vm3852_vm6, %v3812_v11, %v12427_v5 }
 0x2a2   :  { %v3942_v45 = vsel %vm3917_vm7, %v3877_v58, %v12432_v23  ;;  %v20637_v58 = vld [vmem:[#allocation40_spill] sm:$0xff] }
 0x2a3   :  { %v4007_v38 = vsel %vm3982_vm8, %v3942_v45, %v12437_v2  ;;  %6087 = vmatpush.bf16.msra.mxu1 %v11189_v34  ;;  %v11582_v2 = vunpack.i.l.bf16 %v20637_v58 }
 0x2a5   :  { %v4239_v43 = vpop.f32.mrf.mxu0 }
 0x2a6   :  { %v13383_v43 = vld [vmem:[%s20272_s0 + $0xc8] sm:$0xff]  ;;  %v12441_v33 = vpop.permute.xlu0 %12440 }
 0x2a7   :  { %v3553_v50 = vsel %vm3527_vm2, %v13383_v43, %v11573_v46  ;;  %v11738_v46 = vunpack.i.h.bf16 %v20633_v52  ;;  %v12217_v43 = vunpack.i.l.bf16 %v20636_v37  ;;  %v13387_v52 = vld [vmem:[%s20272_s0 + $0xe8] sm:$0xff] }
 0x2a8   :  { %9799 = vmatmul.msk.bf16.gmra.mxu0 %vm4119_vm9, %v4057_v27  ;;  %v12213_v27 = vunpack.i.h.bf16 %v20631_v32  ;;  %v3618_v57 = vsel %vm3592_vm3, %v3553_v50, %v11733_v42  ;;  %v11898_v42 = vunpack.i.h.bf16 %v20634_v48  ;;  %v11188_v50 = vld [vmem:[%s20275_s4 + $0x18] sm:$0xff]  ;;  %v12442_v32 = vunpack.i.l.bf16 %v12441_v33 }
 0x2a9   :  { %v3683_v39 = vsel %vm3657_vm4, %v3618_v57, %v11893_v56  ;;  %v12443_v57 = vunpack.i.h.bf16 %v12441_v33  ;;  %6088 = vmatpush.bf16.msra.mxu1 %v11188_v50 }
 0x2aa   :  { %v3748_v6 = vsel %vm3722_vm0, %v3683_v39, %v12053_v3  ;;  %v13386_v3 = vld [vmem:[%s20272_s0 + $0xd0] sm:$0xff] }
 0x2ab   :  { %v3813_v24 = vsel %vm3787_vm5, %v3748_v6, %v12213_v27  ;;  %v3554_v10 = vsel %vm3527_vm2, %v13386_v3, %v11577_v35  ;;  %v12461_v6 = vpop.permute.xlu1 %12460  ;;  %v4597_v3 = vld [vmem:[#allocation2] sm:$0xff] }
 0x2ac   :  { %v3878_v47 = vsel %vm3852_vm6, %v3813_v24, %v12428_v1  ;;  %v3619_v9 = vsel %vm3592_vm3, %v3554_v10, %v11737_v14  ;;  %v12463_v35 = vunpack.i.h.bf16 %v12461_v6 }
 0x2ad   :  { %v4241_v26 = vpop.f32.mrf.mxu0  ;;  %v3943_v40 = vsel %vm3917_vm7, %v3878_v47, %v12433_v36  ;;  %v3684_v29 = vsel %vm3657_vm4, %v3619_v9, %v11897_v62  ;;  %v12448_v36 = vunpack.i.h.bf16 %v12446_v18  ;;  %v11583_v47 = vunpack.i.h.bf16 %v20637_v58  ;;  %6089 = vmatpush.bf16.msra.mxu1 %v11187_v12  ;;  %v20639_v9 = vld [vmem:[#allocation71_spill] sm:$0xff] }
 0x2ae   :  { %v15566_v26 = vpop.permute.xlu2 %12450  ;;  %v4008_v31 = vsel %vm3982_vm8, %v3943_v40, %v12438_v60  ;;  %v12456_v27 = vpop.permute.xlu0 %12455  ;;  %v11186_v60 = vld [vmem:[%s20275_s4 + $0x8] sm:$0xff] }
 0x2af   :  { %v4059_v16 = vpack.c.bf16 %v4008_v31, %v4007_v38  ;;  %v12453_v61 = vunpack.i.h.bf16 %v15566_v26  ;;  %v12452_v18 = vunpack.i.l.bf16 %v15566_v26  ;;  %v12458_v34 = vunpack.i.h.bf16 %v12456_v27  ;;  %v11185_v26 = vld [vmem:[%s20275_s4] sm:$0xff] }
 0x2b0   :  { %v12457_v54 = vunpack.i.l.bf16 %v12456_v27  ;;  %v12462_v38 = vunpack.i.l.bf16 %v12461_v6  ;;  %v3557_v14 = vsel %vm3527_vm2, %v13387_v52, %v11583_v47 }
 0x2b1   :  { %6090 = vmatpush.bf16.msra.mxu1 %v11186_v60 }
 0x2b2   :  { %v5415_v37 = vsel %vm3722_vm0, %v4597_v3, %v12457_v54 }
 0x2b5   :  { %v4244_v0 = vpop.f32.mrf.mxu0  ;;  %6091 = vmatpush.bf16.msra.mxu1 %v11185_v26 }
 0x2b6   :  { %v12057_v0 = vunpack.i.l.bf16 %v20635_v8  ;;  %v12466_v23 = vpop.permute.xlu2 %12465  ;;  %v20638_v8 = vld [vmem:[#allocation31_spill] sm:$0xff] }
 0x2b7   :  { %v12467_v48 = vunpack.i.l.bf16 %v12466_v23 }
 0x2b8   :  { %9800 = vmatmul.msk.bf16.gmra.mxu0 %vm4119_vm9, %v4058_v7  ;;  %v13385_v7 = vld [vmem:[%s20272_s0 + $0xd8] sm:$0xff]  ;;  %v3749_v5 = vsel %vm3722_vm0, %v3684_v29, %v12057_v0  ;;  %v11743_v0 = vunpack.i.h.bf16 %v20638_v8 }
 0x2b9   :  { %v3555_v59 = vsel %vm3527_vm2, %v13385_v7, %v11578_v20  ;;  %v3814_v55 = vsel %vm3787_vm5, %v3749_v5, %v12217_v43  ;;  %v13389_v7 = vld [vmem:[#allocation2 + $0x78] sm:$0xff]  ;;  %v13390_v43 = vld [vmem:[#allocation2 + $0x8] sm:$0xff] }
 0x2ba   :  { %v3620_v28 = vsel %vm3592_vm3, %v3555_v59, %v11738_v46  ;;  %v3879_v24 = vsel %vm3852_vm6, %v3814_v55, %v12442_v32  ;;  %v12468_v46 = vunpack.i.h.bf16 %v12466_v23  ;;  %v5416_v50 = vsel %vm3722_vm0, %v13390_v43, %v12458_v34  ;;  %v20641_v23 = vld [vmem:[#allocation105_spill] sm:$0xff]  ;;  %v15678_v43 = vld [vmem:[#allocation2 + $0x40] sm:$0xff] }
 0x2bb   :  { %v3685_v1 = vsel %vm3657_vm4, %v3620_v28, %v11898_v42  ;;  %v3944_v40 = vsel %vm3917_vm7, %v3879_v24, %v12447_v44  ;;  %v5479_v32 = vsel %vm3982_vm8, %v5415_v37, %v12462_v38  ;;  %v5480_v27 = vsel %vm3982_vm8, %v5416_v50, %v12463_v35  ;;  %v20640_v28 = vld [vmem:[#allocation84_spill] sm:$0xff]  ;;  %v15680_v50 = vld [vmem:[#allocation2 + $0x48] sm:$0xff] }
 0x2bc   :  { %v3750_v39 = vsel %vm3722_vm0, %v3685_v1, %v12058_v15  ;;  %v4009_v10 = vsel %vm3982_vm8, %v3944_v40, %v12452_v18  ;;  %v12063_v29 = vunpack.i.h.bf16 %v20640_v28  ;;  %v5544_v5 = vsel %vm5543_vm10, %v5479_v32, %v12467_v48 }
 0x2bd   :  { %v4246_v63 = vpop.f32.mrf.mxu0  ;;  %v3815_v11 = vsel %vm3787_vm5, %v3750_v39, %v12218_v19  ;;  %v11903_v19 = vunpack.i.h.bf16 %v20639_v9  ;;  %v5545_v12 = vsel %vm5543_vm10, %v5480_v27, %v12468_v46  ;;  %v12062_v39 = vunpack.i.l.bf16 %v20640_v28 }
 0x2be   :  { %v3880_v63 = vsel %vm3852_vm6, %v3815_v11, %v12443_v57  ;;  %v12476_v57 = vpop.permute.xlu1 %12475  ;;  %v12481_v55 = vpop.permute.xlu2 %12480  ;;  %v5744_v11 = vpack.c.bf16 %v5545_v12, %v5544_v5  ;;  %v3622_v24 = vsel %vm3592_vm3, %v3557_v14, %v11743_v0  ;;  %v12223_v58 = vunpack.i.h.bf16 %v20641_v23  ;;  %v13394_v12 = vld [vmem:[#allocation2 + $0x10] sm:$0xff] }
 0x2bf   :  { %v3945_v20 = vsel %vm3917_vm7, %v3880_v63, %v12448_v36  ;;  %v12222_v47 = vunpack.i.l.bf16 %v20641_v23  ;;  %v12478_v38 = vunpack.i.h.bf16 %v12476_v57 }
 0x2c0   :  { %v4010_v15 = vsel %vm3982_vm8, %v3945_v20, %v12453_v61  ;;  %6092 = vmatmul.bf16.vlgmr.msra.gmra.mxu1 %v5744_v11 }
 0x2c1   :  { %v4060_v6 = vpack.c.bf16 %v4010_v15, %v4009_v10 }
 0x2c5   :  { %v4249_v30 = vpop.f32.mrf.mxu0 }
 0x2c6   :  { %v4250_v56 = vadd.f32 %v15571_v53, %v4249_v30  ;;  %v13388_v30 = vld [vmem:[%s20272_s0 + $0xe0] sm:$0xff]  ;;  %v12491_v3 = vpop.permute.xlu1 %12490  ;;  %v12496_v37 = vpop.permute.xlu2 %12495 }
 0x2c7   :  { %v3556_v42 = vsel %vm3527_vm2, %v13388_v30, %v11582_v2  ;;  %v3687_v2 = vsel %vm3657_vm4, %v3622_v24, %v11903_v19  ;;  %v12483_v30 = vunpack.i.h.bf16 %v12481_v55  ;;  %v12493_v10 = vunpack.i.h.bf16 %v12491_v3  ;;  %v20643_v24 = vld [vmem:[#allocation13_spill] sm:$0xff] }
 0x2c8   :  { %v4397_v25 = vmax.f32 %v4250_v56, 0.0  ;;  %9801 = vmatmul.msk.bf16.gmra.mxu0 %vm4119_vm9, %v4059_v16  ;;  %v11742_v56 = vunpack.i.l.bf16 %v20638_v8  ;;  %v12471_v16 = vpop.permute.xlu0 %12470  ;;  %v3752_v18 = vsel %vm3722_vm0, %v3687_v2, %v12063_v29  ;;  %v12492_v15 = vunpack.i.l.bf16 %v12491_v3 }
 0x2c9   :  { %v12473_v63 = vunpack.i.h.bf16 %v12471_v16  ;;  %v3817_v35 = vsel %vm3787_vm5, %v3752_v18, %v12223_v58  ;;  %v12498_v19 = vunpack.i.h.bf16 %v12496_v37  ;;  %v12497_v32 = vunpack.i.l.bf16 %v12496_v37 }
 0x2ca   :  { %4541 = vst.msk [vmem:[#allocation2 + $0x80] sm:$0xff] %vm3722_vm0, %v4397_v25  ;;  %v11902_v25 = vunpack.i.l.bf16 %v20639_v9  ;;  %v3621_v36 = vsel %vm3592_vm3, %v3556_v42, %v11742_v56  ;;  %v12482_v42 = vunpack.i.l.bf16 %v12481_v55  ;;  %v12579_v9 = vpack.i.bf16 %v15680_v50, %v15678_v43  ;;  %v13395_v55 = vld [vmem:[#allocation2 + $0x18] sm:$0xff] }
 0x2cb   :  { %v3882_v14 = vsel %vm3852_vm6, %v3817_v35, %v12473_v63  ;;  %v20644_v63 = vld [vmem:[#allocation70_spill] sm:$0xff] }
 0x2cc   :  { %v3686_v61 = vsel %vm3657_vm4, %v3621_v36, %v11902_v25  ;;  %v3947_v56 = vsel %vm3917_vm7, %v3882_v14, %v12478_v38  ;;  %v15689_v25 = vld [vmem:[%s20272_s0 + $0x180] sm:$0xff]  ;;  %v11748_v36 = vunpack.i.h.bf16 %v20643_v24  ;;  %v20645_v38 = vld [vmem:[#allocation90_spill] sm:$0xff] }
 0x2cd   :  { %v4251_v33 = vpop.f32.mrf.mxu0  ;;  %v3751_v40 = vsel %vm3722_vm0, %v3686_v61, %v12062_v39  ;;  %v12554_v28 = vpack.i.bf16 %v15250_v22, %v15689_v25  ;;  %v4012_v5 = vsel %vm3982_vm8, %v3947_v56, %v12483_v30  ;;  %v20646_v14 = vld [vmem:[#allocation104_spill] sm:$0xff] }
 0x2ce   :  { %v4252_v45 = vadd.f32 %v15571_v53, %v4251_v33  ;;  %v12472_v33 = vunpack.i.l.bf16 %v12471_v16  ;;  %v3816_v20 = vsel %vm3787_vm5, %v3751_v40, %v12222_v47  ;;  %v11747_v47 = vunpack.i.l.bf16 %v20643_v24 }
 0x2d0   :  { %v4398_v31 = vmax.f32 %v4252_v45, 0.0  ;;  %v3881_v52 = vsel %vm3852_vm6, %v3816_v20, %v12472_v33  ;;  %v12486_v46 = vpop.permute.xlu0 %12485  ;;  %v11908_v33 = vunpack.i.h.bf16 %v20644_v63  ;;  %v13397_v20 = vld [vmem:[%s20272_s0 + $0xf0] sm:$0xff] }
 0x2d1   :  { %v4613_v62 = vld [vmem:[#allocation2 + $0x80] sm:$0xff]  ;;  %v12488_v16 = vunpack.i.h.bf16 %v12486_v46 }
 0x2d2   :  { %4542 = vst.msk [vmem:[#allocation2 + $0x88] sm:$0xff] %vm3722_vm0, %v4398_v31  ;;  %v15639_v59 = vpack.i.bf16 %v4613_v62, %v13389_v7  ;;  %v12477_v31 = vunpack.i.l.bf16 %v12476_v57  ;;  %v12487_v7 = vunpack.i.l.bf16 %v12486_v46  ;;  %v12228_v46 = vunpack.i.h.bf16 %v20646_v14 }
 0x2d4   :  { %12525 = vrot.lane.b32.xlu2 %v15639_v59, %s13541_s25  ;;  %v3946_v0 = vsel %vm3917_vm7, %v3881_v52, %v12477_v31  ;;  %v5417_v39 = vsel %vm3722_vm0, %v13394_v12, %v12487_v7  ;;  %v12068_v31 = vunpack.i.h.bf16 %v20645_v38  ;;  %v12067_v52 = vunpack.i.l.bf16 %v20645_v38 }
 0x2d5   :  { %v4254_v1 = vpop.f32.mrf.mxu0  ;;  %v5481_v23 = vsel %vm3982_vm8, %v5417_v39, %v12492_v15 }
 0x2d6   :  { %v4255_v44 = vadd.f32 %v15571_v53, %v4254_v1  ;;  %v4011_v1 = vsel %vm3982_vm8, %v3946_v0, %v12482_v42  ;;  %v5546_v2 = vsel %vm5543_vm10, %v5481_v23, %v12497_v32  ;;  %v11200_v23 = vld [vmem:[%s20275_s4 + $0x78] sm:$0xff] }
 0x2d7   :  { %6253 = vmatpush.bf16.msra.mxu2 %v11200_v23 }
 0x2d8   :  { %v4399_v60 = vmax.f32 %v4255_v44, 0.0  ;;  %9802 = vmatmul.msk.bf16.gmra.mxu0 %vm4119_vm9, %v4060_v6  ;;  %v5418_v44 = vsel %vm3722_vm0, %v13395_v55, %v12488_v16  ;;  %v13396_v6 = vld [vmem:[%s20272_s0 + $0xf8] sm:$0xff]  ;;  %v12501_v40 = vpop.permute.xlu0 %12500  ;;  %v12506_v16 = vpop.permute.xlu1 %12505 }
 0x2d9   :  { %v4614_v45 = vld [vmem:[#allocation2 + $0x88] sm:$0xff]  ;;  %v5482_v58 = vsel %vm3982_vm8, %v5418_v44, %v12493_v10  ;;  %v12503_v0 = vunpack.i.h.bf16 %v12501_v40  ;;  %v12502_v56 = vunpack.i.l.bf16 %v12501_v40  ;;  %v12507_v32 = vunpack.i.l.bf16 %v12506_v16 }
 0x2da   :  { %4543 = vst.msk [vmem:[#allocation2 + $0x90] sm:$0xff] %vm3722_vm0, %v4399_v60  ;;  %v12564_v34 = vpack.i.bf16 %v4614_v45, %v4613_v62  ;;  %v5746_v54 = vpack.c.bf16 %v4614_v45, %v4613_v62  ;;  %v20642_v62 = vld [vmem:[#allocation53_spill] sm:$0xff]  ;;  %v5547_v61 = vsel %vm5543_vm10, %v5482_v58, %v12498_v19  ;;  %v12508_v19 = vunpack.i.h.bf16 %v12506_v16 }
 0x2db   :  { %v11588_v26 = vunpack.i.h.bf16 %v20642_v62  ;;  %v11587_v29 = vunpack.i.l.bf16 %v20642_v62 }
 0x2dc   :  { %12565 = vrot.lane.b32.xlu1 %v12564_v34, %s13537_s18  ;;  %12540 = vrot.lane.b32.xlu2 %v15208_v51, %s13541_s25  ;;  %v4061_v34 = vpack.c.bf16 %v4012_v5, %v4011_v1 }
 0x2dd   :  { %9893 = vmatmul.msk.bf16.vlgmr.msra.gmra.mxu3 %vm3722_vm0, %v5746_v54  ;;  %v4256_v48 = vpop.f32.mrf.mxu0  ;;  %v3559_v11 = vsel %vm3527_vm2, %v13396_v6, %v11588_v26  ;;  %v5747_v54 = vpack.c.bf16 %v5547_v61, %v5546_v2  ;;  %v3558_v35 = vsel %vm3527_vm2, %v13397_v20, %v11587_v29  ;;  %v13398_v26 = vld [vmem:[%s20272_s0 + $0x190] sm:$0xff]  ;;  %v15769_v2 = vld [vmem:[%s20272_s0 + $0x1c8] sm:$0xff]  ;;  %v15774_v61 = vld [vmem:[%s20272_s0 + $0x1c0] sm:$0xff] }
 0x2de   :  { %v4257_v8 = vadd.f32 %v15571_v53, %v4256_v48  ;;  %v12227_v48 = vunpack.i.l.bf16 %v20646_v14  ;;  %v12694_v30 = vpack.i.bf16 %v13398_v26, %v15250_v22  ;;  %v3623_v42 = vsel %vm3592_vm3, %v3558_v35, %v11747_v47  ;;  %v15747_v6 = vld [vmem:[#allocation2 + $0x70] sm:$0xff]  ;;  %v11197_v35 = vld [vmem:[%s20275_s4 + $0x60] sm:$0xff] }
 0x2df   :  { %6097 = vmatmul.bf16.gmra.mxu1 %v5747_v54 }
 0x2e0   :  { %v4400_v51 = vmax.f32 %v4257_v8, 0.0  ;;  %v3624_v8 = vsel %vm3592_vm3, %v3559_v11, %v11748_v36  ;;  %v12584_v11 = vpack.i.bf16 %v15747_v6, %v15420_v13 }
 0x2e1   :  { %v15684_v27 = vld [vmem:[#allocation2 + $0x90] sm:$0xff]  ;;  %v3689_v10 = vsel %vm3657_vm4, %v3624_v8, %v11908_v33  ;;  %v11194_v8 = vld [vmem:[%s20275_s4 + $0x48] sm:$0xff] }
 0x2e2   :  { %4544 = vst.msk [vmem:[#allocation2 + $0x98] sm:$0xff] %vm3722_vm0, %v4400_v51  ;;  %v12679_v57 = vpack.i.bf16 %v15684_v27, %v4614_v45  ;;  %v11907_v45 = vunpack.i.l.bf16 %v20644_v63  ;;  %v3754_v22 = vsel %vm3722_vm0, %v3689_v10, %v12068_v31  ;;  %v11196_v31 = vld [vmem:[%s20275_s4 + $0x58] sm:$0xff] }
 0x2e4   :  { %12680 = vrot.lane.b32.xlu0 %v12679_v57, %s13535_s14  ;;  %12580 = vrot.lane.b32.xlu1 %v12579_v9, %s13537_s18  ;;  %v3688_v3 = vsel %vm3657_vm4, %v3623_v42, %v11907_v45  ;;  %v3819_v9 = vsel %vm3787_vm5, %v3754_v22, %v12228_v46  ;;  %v15778_v45 = vpack.i.bf16 %v15769_v2, %v15774_v61  ;;  %v11195_v46 = vld [vmem:[%s20275_s4 + $0x50] sm:$0xff] }
 0x2e5   :  { %12555 = vrot.lane.b32.xlu2 %v12554_v28, %s13537_s18  ;;  %v4259_v60 = vpop.f32.mrf.mxu0  ;;  %v3753_v37 = vsel %vm3722_vm0, %v3688_v3, %v12067_v52  ;;  %v12511_v28 = vpop.permute.xlu2 %12510  ;;  %v3884_v1 = vsel %vm3852_vm6, %v3819_v9, %v12503_v0  ;;  %v11193_v0 = vld [vmem:[%s20275_s4 + $0x40] sm:$0xff] }
 0x2e6   :  { %v4260_v18 = vadd.f32 %v15571_v53, %v4259_v60  ;;  %v3818_v51 = vsel %vm3787_vm5, %v3753_v37, %v12227_v48  ;;  %v12513_v12 = vunpack.i.h.bf16 %v12511_v28  ;;  %v12512_v39 = vunpack.i.l.bf16 %v12511_v28  ;;  %v11199_v60 = vld [vmem:[%s20275_s4 + $0x70] sm:$0xff] }
 0x2e7   :  { %v3883_v29 = vsel %vm3852_vm6, %v3818_v51, %v12502_v56  ;;  %v3949_v44 = vsel %vm3917_vm7, %v3884_v1, %v12508_v19  ;;  %6254 = vmatpush.bf16.msra.mxu2 %v11199_v60  ;;  %v12516_v56 = vpop.permute.xlu0 %12515  ;;  %v13405_v51 = vld [vmem:[%s20272_s0 + $0x178] sm:$0xff] }
 0x2e8   :  { %v4401_v62 = vmax.f32 %v4260_v18, 0.0  ;;  %9803 = vmatmul.msk.bf16.gmra.mxu0 %vm4119_vm9, %v4061_v34  ;;  %v3948_v55 = vsel %vm3917_vm7, %v3883_v29, %v12507_v32  ;;  %v11198_v18 = vld [vmem:[%s20275_s4 + $0x68] sm:$0xff]  ;;  %v12659_v9 = vpack.i.bf16 %v15689_v25, %v13405_v51 }
 0x2e9   :  { %v4616_v7 = vld [vmem:[#allocation2 + $0x98] sm:$0xff]  ;;  %v4013_v36 = vsel %vm3982_vm8, %v3948_v55, %v12512_v39 }
 0x2ea   :  { %4545 = vst.msk [vmem:[#allocation2 + $0xa0] sm:$0xff] %vm3722_vm0, %v4401_v62  ;;  %v5749_v15 = vpack.c.bf16 %v4616_v7, %v15684_v27  ;;  %v12609_v24 = vpack.i.bf16 %v4616_v7, %v15684_v27  ;;  %v13400_v27 = vld [vmem:[%s20272_s0 + $0x198] sm:$0xff]  ;;  %v15807_v62 = vld [vmem:[#allocation2 + $0x60] sm:$0xff] }
 0x2eb   :  { %v12624_v63 = vpack.i.bf16 %v13400_v27, %v13398_v26  ;;  %6255 = vmatpush.bf16.msra.mxu2 %v11198_v18  ;;  %v15812_v26 = vpack.i.bf16 %v15494_v4, %v13400_v27 }
 0x2ec   :  { %12695 = vrot.lane.b32.xlu0 %v12694_v30, %s13536_s17  ;;  %12595 = vrot.lane.b32.xlu1 %v12694_v30, %s13539_s29 }
 0x2ed   :  { %12570 = vrot.lane.b32.xlu2 %v12679_v57, %s13541_s25  ;;  %9894 = vmatmul.msk.bf16.gmra.mxu3 %vm3722_vm0, %v5749_v15  ;;  %v4261_v5 = vpop.f32.mrf.mxu0  ;;  %v4014_v57 = vsel %vm3982_vm8, %v3949_v44, %v12513_v12 }
 0x2ee   :  { %v4062_v47 = vpack.c.bf16 %v4014_v57, %v4013_v36  ;;  %v13406_v5 = vld [vmem:[%s20272_s0 + $0x1b8] sm:$0xff]  ;;  %v12517_v36 = vunpack.i.l.bf16 %v12516_v56  ;;  %v15874_v57 = vld [vmem:[%s20272_s0 + $0x1d0] sm:$0xff] }
 0x2ef   :  { %6256 = vmatpush.bf16.msra.mxu2 %v11197_v35  ;;  %v12531_v32 = vpop.permute.xlu0 %12530  ;;  %v15878_v23 = vpack.i.bf16 %v15874_v57, %v15769_v2 }
 0x2f0   :  { %v15890_v60 = vsel %vm3722_vm0, %v15678_v43, %v12517_v36 }
 0x2f1   :  { %v4617_v33 = vld [vmem:[#allocation2 + $0xa0] sm:$0xff] }
 0x2f2   :  { %v5752_v40 = vpack.c.bf16 %v15507_v41, %v4617_v33  ;;  %v15794_v38 = vpack.i.bf16 %v4617_v33, %v4616_v7  ;;  %v15830_v7 = vld [vmem:[%s20272_s0 + $0x1b0] sm:$0xff]  ;;  %v12644_v10 = vpack.i.bf16 %v15507_v41, %v4617_v33 }
 0x2f3   :  { %6257 = vmatpush.bf16.msra.mxu2 %v11196_v31  ;;  %v12669_v3 = vpack.i.bf16 %v15830_v7, %v15489_v17  ;;  %v12699_v12 = vpack.i.bf16 %v13406_v5, %v15830_v7  ;;  %v20647_v31 = vld [vmem:[#allocation52_spill] sm:$0xff] }
 0x2f4   :  { %12610 = vrot.lane.b32.xlu1 %v12609_v24, %s13537_s18  ;;  %12710 = vrot.lane.b32.xlu0 %v15778_v45, %s13537_s18  ;;  %v12518_v24 = vunpack.i.h.bf16 %v12516_v56 }
 0x2f5   :  { %12585 = vrot.lane.b32.xlu2 %v12584_v11, %s13541_s25  ;;  %v4264_v58 = vpop.f32.mrf.mxu0  ;;  %v15869_v11 = vpop.permute.xlu1 %12520 }
 0x2f6   :  { %v12522_v27 = vunpack.i.l.bf16 %v15869_v11 }
 0x2f7   :  { %6258 = vmatpush.bf16.msra.mxu2 %v11195_v46  ;;  %v15863_v55 = vpop.permute.xlu0 %12545 }
 0x2f8   :  { %9804 = vmatmul.msk.bf16.gmra.mxu0 %vm4119_vm9, %v4062_v47  ;;  %v12523_v47 = vunpack.i.h.bf16 %v15869_v11 }
 0x2fb   :  { %6259 = vmatpush.bf16.msra.mxu2 %v11194_v8 }
 0x2fc   :  { %12625 = vrot.lane.b32.xlu1 %v12624_v63, %s13538_s19 }
 0x2fd   :  { %12600 = vrot.lane.b32.xlu2 %v12624_v63, %s13537_s18  ;;  %9895 = vmatmul.msk.bf16.gmra.mxu3 %vm3722_vm0, %v5752_v40  ;;  %v4266_v34 = vpop.f32.mrf.mxu0  ;;  %v15894_v40 = vsel %vm3722_vm0, %v15680_v50, %v12518_v24  ;;  %v5616_v50 = vsel %vm3982_vm8, %v15890_v60, %v12522_v27  ;;  %v12536_v46 = vpop.permute.xlu1 %12535 }
 0x2fe   :  { %v4267_v54 = vadd.f32 %v15571_v53, %v4266_v34  ;;  %v5617_v34 = vsel %vm3982_vm8, %v15894_v40, %v12523_v47 }
 0x2ff   :  { %6260 = vmatpush.bf16.msra.mxu2 %v11193_v0  ;;  %v15903_v18 = vpop.permute.xlu0 %12560 }
 0x300   :  { %v4404_v20 = vmax.f32 %v4267_v54, 0.0  ;;  %v12533_v54 = vunpack.i.h.bf16 %v12531_v32 }
 0x302   :  { %4548 = vst.msk [vmem:[#allocation2 + $0xb8] sm:$0xff] %vm3722_vm0, %v4404_v20  ;;  %v12532_v20 = vunpack.i.l.bf16 %v12531_v32 }
 0x304   :  { %12640 = vrot.lane.b32.xlu1 %v15639_v59, %s13535_s14  ;;  %v12654_v59 = vpack.i.bf16 %v15420_v13, %v15807_v62 }
 0x305   :  { %12615 = vrot.lane.b32.xlu2 %v15794_v38, %s13541_s25  ;;  %v4269_v52 = vpop.f32.mrf.mxu0 }
 0x306   :  { %v4270_v14 = vadd.f32 %v15571_v53, %v4269_v52  ;;  %v11593_v52 = vunpack.i.h.bf16 %v20647_v31 }
 0x308   :  { %v4405_v48 = vmax.f32 %v4270_v14, 0.0  ;;  %v11592_v14 = vunpack.i.l.bf16 %v20647_v31  ;;  %v13412_v31 = vld [vmem:[%s20272_s0 + $0x1d8] sm:$0xff] }
 0x309   :  { %v4620_v30 = vld [vmem:[#allocation2 + $0xb8] sm:$0xff] }
 0x30a   :  { %4549 = vst.msk [vmem:[#allocation2 + $0xc0] sm:$0xff] %vm3722_vm0, %v4405_v48  ;;  %v5755_v42 = vpack.c.bf16 %v4620_v30, %v15509_v21  ;;  %v12684_v41 = vpack.i.bf16 %v4620_v30, %v15509_v21  ;;  %v20648_v48 = vld [vmem:[#allocation30_spill] sm:$0xff] }
 0x30b   :  { %v11752_v32 = vunpack.i.l.bf16 %v20648_v48 }
 0x30c   :  { %12655 = vrot.lane.b32.xlu1 %v12654_v59, %s13537_s18  ;;  %v11753_v59 = vunpack.i.h.bf16 %v20648_v48 }
 0x30d   :  { %12630 = vrot.lane.b32.xlu2 %v15812_v26, %s13539_s29  ;;  %9896 = vmatmul.msk.bf16.gmra.mxu3 %vm3722_vm0, %v5755_v42  ;;  %v4271_v13 = vpop.f32.mrf.mxu0 }
 0x30e   :  { %v4272_v4 = vadd.f32 %v15571_v53, %v4271_v13  ;;  %v12538_v13 = vunpack.i.h.bf16 %v12536_v46 }
 0x310   :  { %v4406_v16 = vmax.f32 %v4272_v4, 0.0  ;;  %v12537_v4 = vunpack.i.l.bf16 %v12536_v46 }
 0x311   :  { %v15843_v17 = vld [vmem:[#allocation2 + $0xc0] sm:$0xff] }
 0x312   :  { %4550 = vst.msk [vmem:[#allocation2 + $0xc8] sm:$0xff] %vm3722_vm0, %v4406_v16  ;;  %v15886_v33 = vpack.i.bf16 %v15843_v17, %v4620_v30  ;;  %v15921_v30 = vpack.i.bf16 %v15774_v61, %v13406_v5  ;;  %v13408_v16 = vld [vmem:[#allocation2 + $0x20] sm:$0xff]  ;;  %v15950_v5 = vld [vmem:[#allocation2 + $0xe8] sm:$0xff] }
 0x314   :  { %12670 = vrot.lane.b32.xlu1 %v12669_v3, %s13539_s29  ;;  %v5419_v3 = vsel %vm3722_vm0, %v13408_v16, %v12532_v20 }
 0x315   :  { %12645 = vrot.lane.b32.xlu2 %v12644_v10, %s13537_s18  ;;  %v4274_v15 = vpop.f32.mrf.mxu0  ;;  %v13409_v10 = vld [vmem:[#allocation2 + $0x28] sm:$0xff] }
 0x316   :  { %v4275_v37 = vadd.f32 %v15571_v53, %v4274_v15  ;;  %v5420_v61 = vsel %vm3722_vm0, %v13409_v10, %v12533_v54  ;;  %v13410_v15 = vld [vmem:[%s20272_s0 + $0x108] sm:$0xff]  ;;  %v15957_v54 = vpop.permute.xlu0 %12575 }
 0x318   :  { %v4407_v22 = vmax.f32 %v4275_v37, 0.0  ;;  %v3561_v37 = vsel %vm3527_vm2, %v13410_v15, %v11593_v52  ;;  %v12769_v52 = vpack.i.bf16 %v13412_v31, %v15874_v57 }
 0x319   :  { %v15845_v19 = vld [vmem:[#allocation2 + $0xc8] sm:$0xff] }
 0x31a   :  { %4551 = vst.msk [vmem:[#allocation2 + $0xd0] sm:$0xff] %vm3722_vm0, %v4407_v22  ;;  %v5758_v28 = vpack.c.bf16 %v15845_v19, %v15843_v17  ;;  %v13411_v22 = vld [vmem:[%s20272_s0 + $0x100] sm:$0xff] }
 0x31b   :  { %v3560_v51 = vsel %vm3527_vm2, %v13411_v22, %v11592_v14  ;;  %v15963_v14 = vld [vmem:[#allocation2 + $0xe0] sm:$0xff] }
 0x31c   :  { %12685 = vrot.lane.b32.xlu1 %v12684_v41, %s13537_s18  ;;  %v20649_v41 = vld [vmem:[#allocation66_spill] sm:$0xff]  ;;  %v5764_v48 = vpack.c.bf16 %v15950_v5, %v15963_v14 }
 0x31d   :  { %12660 = vrot.lane.b32.xlu2 %v12659_v9, %s13536_s17  ;;  %9897 = vmatmul.msk.bf16.gmra.mxu3 %vm3722_vm0, %v5758_v28  ;;  %v4276_v29 = vpop.f32.mrf.mxu0  ;;  %v3626_v9 = vsel %vm3592_vm3, %v3561_v37, %v11753_v59  ;;  %v11913_v28 = vunpack.i.h.bf16 %v20649_v41 }
 0x31e   :  { %v4277_v25 = vadd.f32 %v15571_v53, %v4276_v29 }
 0x31f   :  { %v3691_v16 = vsel %vm3657_vm4, %v3626_v9, %v11913_v28 }
 0x320   :  { %v4408_v1 = vmax.f32 %v4277_v25, 0.0  ;;  %v11912_v25 = vunpack.i.l.bf16 %v20649_v41 }
 0x321   :  { %v4623_v21 = vld [vmem:[#allocation2 + $0xd0] sm:$0xff] }
 0x322   :  { %4552 = vst.msk [vmem:[#allocation2 + $0xd8] sm:$0xff] %vm3722_vm0, %v4408_v1  ;;  %v15861_v39 = vpack.i.bf16 %v4623_v21, %v15845_v19 }
 0x324   :  { %12725 = vrot.lane.b32.xlu0 %v15861_v39, %s13541_s25  ;;  %12700 = vrot.lane.b32.xlu1 %v12699_v12, %s13538_s19 }
 0x325   :  { %12675 = vrot.lane.b32.xlu2 %v12699_v12, %s13537_s18  ;;  %v4279_v44 = vpop.f32.mrf.mxu0  ;;  %v5483_v12 = vsel %vm3982_vm8, %v5419_v3, %v12537_v4  ;;  %v12547_v4 = vunpack.i.l.bf16 %v15863_v55  ;;  %v12719_v3 = vpack.i.bf16 %v15845_v19, %v15843_v17 }
 0x326   :  { %v20650_v44 = vld [vmem:[#allocation89_spill] sm:$0xff] }
 0x327   :  { %v12073_v24 = vunpack.i.h.bf16 %v20650_v44  ;;  %v12072_v36 = vunpack.i.l.bf16 %v20650_v44 }
 0x329   :  { %v15880_v58 = vld [vmem:[#allocation2 + $0xd8] sm:$0xff] }
 0x32a   :  { %v5761_v63 = vpack.c.bf16 %v15880_v58, %v4623_v21  ;;  %v12754_v0 = vpack.i.bf16 %v15880_v58, %v4623_v21  ;;  %v5484_v21 = vsel %vm3982_vm8, %v5420_v61, %v12538_v13  ;;  %v12548_v13 = vunpack.i.h.bf16 %v15863_v55 }
 0x32b   :  { %v3756_v61 = vsel %vm3722_vm0, %v3691_v16, %v12073_v24  ;;  %v15998_v44 = vpack.i.bf16 %v15963_v14, %v15880_v58  ;;  %v16013_v58 = vld [vmem:[%s20272_s0 + $0x1e0] sm:$0xff] }
 0x32c   :  { %12740 = vrot.lane.b32.xlu0 %v15878_v23, %s13539_s29  ;;  %12715 = vrot.lane.b32.xlu1 %v15794_v38, %s13535_s14 }
 0x32d   :  { %12690 = vrot.lane.b32.xlu2 %v15886_v33, %s13541_s25  ;;  %9898 = vmatmul.msk.bf16.gmra.mxu3 %vm3722_vm0, %v5761_v63  ;;  %v4281_v2 = vpop.f32.mrf.mxu0 }
 0x32e   :  { %v15905_v43 = vpop.permute.xlu2 %12525 }
 0x32f   :  { %v12528_v35 = vunpack.i.h.bf16 %v15905_v43  ;;  %v12527_v38 = vunpack.i.l.bf16 %v15905_v43 }
 0x331   :  { %v5680_v42 = vsel %vm5543_vm10, %v5616_v50, %v12527_v38  ;;  %v5681_v8 = vsel %vm5543_vm10, %v5617_v34, %v12528_v35  ;;  %v20651_v50 = vld [vmem:[#allocation109_spill] sm:$0xff] }
 0x332   :  { %v5745_v56 = vpack.c.bf16 %v5681_v8, %v5680_v42  ;;  %v12233_v34 = vunpack.i.h.bf16 %v20651_v50  ;;  %v12232_v46 = vunpack.i.l.bf16 %v20651_v50  ;;  %v3625_v8 = vsel %vm3592_vm3, %v3560_v51, %v11752_v32 }
 0x334   :  { %12755 = vrot.lane.b32.xlu0 %v12754_v0, %s13537_s18  ;;  %12730 = vrot.lane.b32.xlu1 %v15812_v26, %s13536_s17  ;;  %v12551_v0 = vpop.permute.xlu1 %12550  ;;  %v3821_v15 = vsel %vm3787_vm5, %v3756_v61, %v12233_v34 }
 0x335   :  { %12705 = vrot.lane.b32.xlu2 %v15921_v30, %s13539_s29  ;;  %6261 = vmatmul.bf16.vlgmr.msra.gmra.mxu2 %v5745_v56  ;;  %v4284_v29 = vpop.f32.mrf.mxu0  ;;  %v3690_v56 = vsel %vm3657_vm4, %v3625_v8, %v11912_v25  ;;  %v12553_v37 = vunpack.i.h.bf16 %v12551_v0  ;;  %v12552_v22 = vunpack.i.l.bf16 %v12551_v0  ;;  %v3886_v19 = vsel %vm3852_vm6, %v3821_v15, %v12548_v13  ;;  %v20653_v8 = vld [vmem:[#allocation34_spill] sm:$0xff] }
 0x336   :  { %v4285_v26 = vadd.f32 %v15571_v53, %v4284_v29  ;;  %v12541_v1 = vpop.permute.xlu2 %12540  ;;  %v3755_v10 = vsel %vm3722_vm0, %v3690_v56, %v12072_v36  ;;  %v11758_v13 = vunpack.i.h.bf16 %v20653_v8  ;;  %v13415_v56 = vld [vmem:[#allocation2 + $0x58] sm:$0xff]  ;;  %v16059_v15 = vld [vmem:[%s20272_s0 + $0x1f0] sm:$0xff] }
 0x337   :  { %v12543_v63 = vunpack.i.h.bf16 %v12541_v1  ;;  %v12542_v2 = vunpack.i.l.bf16 %v12541_v1  ;;  %v3820_v55 = vsel %vm3787_vm5, %v3755_v10, %v12232_v46  ;;  %v15991_v1 = vpop.permute.xlu0 %12590 }
 0x338   :  { %v4411_v20 = vmax.f32 %v4285_v26, 0.0  ;;  %v3885_v17 = vsel %vm3852_vm6, %v3820_v55, %v12547_v4  ;;  %v3951_v26 = vsel %vm3917_vm7, %v3886_v19, %v12553_v37  ;;  %v16054_v55 = vld [vmem:[%s20272_s0 + $0x1f8] sm:$0xff]  ;;  %v12789_v19 = vpack.i.bf16 %v15950_v5, %v15963_v14 }
 0x339   :  { %v5548_v59 = vsel %vm5543_vm10, %v5483_v12, %v12542_v2  ;;  %v5549_v42 = vsel %vm5543_vm10, %v5484_v21, %v12543_v63  ;;  %v3950_v25 = vsel %vm3917_vm7, %v3885_v17, %v12552_v22  ;;  %v16063_v37 = vpack.i.bf16 %v16054_v55, %v16059_v15 }
 0x33a   :  { %4555 = vst.msk [vmem:[#allocation2 + $0xf0] sm:$0xff] %vm3722_vm0, %v4411_v20  ;;  %v5750_v57 = vpack.c.bf16 %v5549_v42, %v5548_v59  ;;  %v12578_v14 = vunpack.i.h.bf16 %v15957_v54 }
 0x33c   :  { %12770 = vrot.lane.b32.xlu0 %v12769_v52, %s13538_s19  ;;  %12745 = vrot.lane.b32.xlu1 %v12769_v52, %s13537_s18  ;;  %v12562_v52 = vunpack.i.l.bf16 %v15903_v18 }
 0x33d   :  { %12720 = vrot.lane.b32.xlu2 %v12719_v3, %s13537_s18  ;;  %9899 = vmatmul.msk.bf16.gmra.mxu3 %vm3722_vm0, %v5764_v48  ;;  %v4286_v51 = vpop.f32.mrf.mxu0  ;;  %v11757_v3 = vunpack.i.l.bf16 %v20653_v8 }
 0x33e   :  { %v4287_v9 = vadd.f32 %v15571_v53, %v4286_v51  ;;  %6102 = vmatmul.bf16.gmra.mxu1 %v5750_v57 }
 0x33f   :  { %v12556_v32 = vpop.permute.xlu2 %12555  ;;  %v16024_v46 = vpop.permute.xlu0 %12605 }
 0x340   :  { %v4412_v41 = vmax.f32 %v4287_v9, 0.0  ;;  %v12558_v28 = vunpack.i.h.bf16 %v12556_v32  ;;  %v12557_v29 = vunpack.i.l.bf16 %v12556_v32  ;;  %v12577_v9 = vunpack.i.l.bf16 %v15957_v54  ;;  %v13418_v32 = vld [vmem:[%s20272_s0 + $0x1a8] sm:$0xff]  ;;  %v13420_v54 = vld [vmem:[%s20272_s0 + $0x110] sm:$0xff] }
 0x341   :  { %v16018_v34 = vld [vmem:[#allocation2 + $0xf0] sm:$0xff] }
 0x342   :  { %4556 = vst.msk [vmem:[#allocation2 + $0xf8] sm:$0xff] %vm3722_vm0, %v4412_v41  ;;  %v4016_v12 = vsel %vm3982_vm8, %v3951_v26, %v12558_v28  ;;  %v4015_v21 = vsel %vm3982_vm8, %v3950_v25, %v12557_v29  ;;  %v12764_v41 = vpack.i.bf16 %v15830_v7, %v13418_v32  ;;  %v13419_v26 = vld [vmem:[%s20272_s0 + $0x118] sm:$0xff] }
 0x343   :  { %v4063_v24 = vpack.c.bf16 %v4016_v12, %v4015_v21 }
 0x344   :  { %12785 = vrot.lane.b32.xlu0 %v15886_v33, %s13535_s14  ;;  %12760 = vrot.lane.b32.xlu1 %v15998_v44, %s13541_s25  ;;  %v16016_v33 = vpack.i.bf16 %v16013_v58, %v13412_v31  ;;  %v20652_v31 = vld [vmem:[#allocation42_spill] sm:$0xff] }
 0x345   :  { %12735 = vrot.lane.b32.xlu2 %v15778_v45, %s13538_s19  ;;  %9805 = vmatmul.msk.bf16.gmra.mxu0 %vm4119_vm9, %v4063_v24  ;;  %v4289_v36 = vpop.f32.mrf.mxu0  ;;  %v12563_v45 = vunpack.i.h.bf16 %v15903_v18  ;;  %v11598_v59 = vunpack.i.h.bf16 %v20652_v31  ;;  %v11597_v42 = vunpack.i.l.bf16 %v20652_v31 }
 0x346   :  { %v4290_v63 = vadd.f32 %v15571_v53, %v4289_v36 }
 0x347   :  { %v16008_v2 = vpop.permute.xlu2 %12570  ;;  %v16046_v16 = vsel %vm3722_vm0, %v13415_v56, %v12563_v45  ;;  %v3563_v12 = vsel %vm3527_vm2, %v13419_v26, %v11598_v59  ;;  %v3562_v24 = vsel %vm3527_vm2, %v13420_v54, %v11597_v42  ;;  %v20654_v45 = vld [vmem:[#allocation74_spill] sm:$0xff]  ;;  %v12592_v26 = vunpack.i.l.bf16 %v15991_v1 }
 0x348   :  { %v4413_v50 = vmax.f32 %v4290_v63, 0.0  ;;  %v12573_v22 = vunpack.i.h.bf16 %v16008_v2  ;;  %v12572_v51 = vunpack.i.l.bf16 %v16008_v2  ;;  %v3628_v36 = vsel %vm3592_vm3, %v3563_v12, %v11758_v13  ;;  %v16099_v63 = vpop.permute.xlu0 %12620  ;;  %v13421_v59 = vld [vmem:[#allocation2 + $0x30] sm:$0xff] }
 0x349   :  { %v16020_v20 = vld [vmem:[#allocation2 + $0xf8] sm:$0xff]  ;;  %v5421_v42 = vsel %vm3722_vm0, %v13421_v59, %v12577_v9 }
 0x34a   :  { %4557 = vst.msk [vmem:[#allocation2 + $0x100] sm:$0xff] %vm3722_vm0, %v4413_v50  ;;  %v5767_v48 = vpack.c.bf16 %v16020_v20, %v16018_v34  ;;  %v3627_v50 = vsel %vm3592_vm3, %v3562_v24, %v11757_v3  ;;  %v20655_v3 = vld [vmem:[#allocation85_spill] sm:$0xff] }
 0x34c   :  { %12800 = vrot.lane.b32.xlu0 %v15921_v30, %s13536_s17  ;;  %12775 = vrot.lane.b32.xlu1 %v16016_v33, %s13539_s29  ;;  %v13414_v30 = vld [vmem:[#allocation2 + $0x50] sm:$0xff] }
 0x34d   :  { %12750 = vrot.lane.b32.xlu2 %v15513_v49, %s13535_s14  ;;  %9900 = vmatmul.msk.bf16.gmra.mxu3 %vm3722_vm0, %v5767_v48  ;;  %v4291_v18 = vpop.f32.mrf.mxu0  ;;  %v16043_v57 = vsel %vm3722_vm0, %v13414_v30, %v12562_v52  ;;  %v11918_v52 = vunpack.i.h.bf16 %v20654_v45  ;;  %v11917_v48 = vunpack.i.l.bf16 %v20654_v45  ;;  %v13422_v30 = vld [vmem:[#allocation2 + $0x38] sm:$0xff] }
 0x34e   :  { %v4292_v4 = vadd.f32 %v15571_v53, %v4291_v18  ;;  %v16040_v0 = vpop.permute.xlu1 %12565  ;;  %v5422_v56 = vsel %vm3722_vm0, %v13422_v30, %v12578_v14 }
 0x34f   :  { %v12568_v49 = vunpack.i.h.bf16 %v16040_v0  ;;  %v12567_v10 = vunpack.i.l.bf16 %v16040_v0  ;;  %v12586_v61 = vpop.permute.xlu2 %12585  ;;  %v3692_v59 = vsel %vm3657_vm4, %v3627_v50, %v11917_v48  ;;  %v3693_v30 = vsel %vm3657_vm4, %v3628_v36, %v11918_v52 }
 0x350   :  { %v4414_v17 = vmax.f32 %v4292_v4, 0.0  ;;  %v12588_v18 = vunpack.i.h.bf16 %v12586_v61  ;;  %v12587_v8 = vunpack.i.l.bf16 %v12586_v61 }
 0x351   :  { %v5618_v28 = vsel %vm3982_vm8, %v16043_v57, %v12567_v10  ;;  %v5619_v29 = vsel %vm3982_vm8, %v16046_v16, %v12568_v49 }
 0x352   :  { %4558 = vst.msk [vmem:[#allocation2 + $0x108] sm:$0xff] %vm3722_vm0, %v4414_v17  ;;  %v5682_v25 = vsel %vm5543_vm10, %v5618_v28, %v12572_v51  ;;  %v5683_v7 = vsel %vm5543_vm10, %v5619_v29, %v12573_v22  ;;  %v12078_v17 = vunpack.i.h.bf16 %v20655_v3  ;;  %v16113_v29 = vld [vmem:[#allocation2 + $0x100] sm:$0xff] }
 0x353   :  { %v5748_v21 = vpack.c.bf16 %v5683_v7, %v5682_v25  ;;  %v20656_v25 = vld [vmem:[#allocation108_spill] sm:$0xff]  ;;  %v16132_v24 = vpack.i.bf16 %v16113_v29, %v16020_v20 }
 0x354   :  { %12815 = vrot.lane.b32.xlu0 %v16063_v37, %s13537_s18  ;;  %12790 = vrot.lane.b32.xlu1 %v12789_v19, %s13537_s18  ;;  %v12077_v19 = vunpack.i.l.bf16 %v20655_v3  ;;  %v12238_v7 = vunpack.i.h.bf16 %v20656_v25  ;;  %v12237_v9 = vunpack.i.l.bf16 %v20656_v25  ;;  %v12608_v3 = vunpack.i.h.bf16 %v16024_v46 }
 0x355   :  { %12765 = vrot.lane.b32.xlu2 %v12764_v41, %s13536_s17  ;;  %v4294_v31 = vpop.f32.mrf.mxu0  ;;  %6266 = vmatmul.bf16.gmra.mxu2 %v5748_v21  ;;  %v3758_v48 = vsel %vm3722_vm0, %v3693_v30, %v12078_v17 }
 0x356   :  { %v4295_v13 = vadd.f32 %v15571_v53, %v4294_v31  ;;  %v12581_v4 = vpop.permute.xlu1 %12580  ;;  %v16120_v53 = vld [vmem:[%s20272_s0 + $0x1e8] sm:$0xff]  ;;  %v3823_v36 = vsel %vm3787_vm5, %v3758_v48, %v12238_v7  ;;  %v16164_v7 = vld [vmem:[%s20272_s0 + $0x200] sm:$0xff] }
 0x357   :  { %v12583_v32 = vunpack.i.h.bf16 %v12581_v4  ;;  %v12582_v28 = vunpack.i.l.bf16 %v12581_v4  ;;  %v12601_v41 = vpop.permute.xlu2 %12600  ;;  %v12804_v14 = vpack.i.bf16 %v16120_v53, %v16013_v58  ;;  %v13427_v48 = vld [vmem:[%s20272_s0 + $0x120] sm:$0xff] }
 0x358   :  { %v4415_v61 = vmax.f32 %v4295_v13, 0.0  ;;  %v12593_v13 = vunpack.i.h.bf16 %v15991_v1 }
 0x359   :  { %v16125_v12 = vld [vmem:[#allocation2 + $0x108] sm:$0xff]  ;;  %v5485_v21 = vsel %vm3982_vm8, %v5421_v42, %v12582_v28  ;;  %v5486_v54 = vsel %vm3982_vm8, %v5422_v56, %v12583_v32  ;;  %v12607_v42 = vunpack.i.l.bf16 %v16024_v46  ;;  %v3757_v56 = vsel %vm3722_vm0, %v3692_v59, %v12077_v19  ;;  %v16144_v32 = vpop.permute.xlu0 %12635 }
 0x35a   :  { %4559 = vst.msk [vmem:[#allocation2 + $0x110] sm:$0xff] %vm3722_vm0, %v4415_v61  ;;  %v5770_v45 = vpack.c.bf16 %v16125_v12, %v16113_v29  ;;  %v5550_v31 = vsel %vm5543_vm10, %v5485_v21, %v12587_v8  ;;  %v5551_v58 = vsel %vm5543_vm10, %v5486_v54, %v12588_v18  ;;  %v20657_v18 = vld [vmem:[#allocation54_spill] sm:$0xff]  ;;  %v3822_v8 = vsel %vm3787_vm5, %v3757_v56, %v12237_v9 }
 0x35b   :  { %v5753_v4 = vpack.c.bf16 %v5551_v58, %v5550_v31  ;;  %v11603_v50 = vunpack.i.h.bf16 %v20657_v18  ;;  %v11602_v1 = vunpack.i.l.bf16 %v20657_v18  ;;  %v3887_v52 = vsel %vm3852_vm6, %v3822_v8, %v12592_v26 }
 0x35c   :  { %12830 = vrot.lane.b32.xlu0 %v16132_v24, %s13541_s25  ;;  %12805 = vrot.lane.b32.xlu1 %v12804_v14, %s13538_s19  ;;  %v12603_v19 = vunpack.i.h.bf16 %v12601_v41  ;;  %v12602_v28 = vunpack.i.l.bf16 %v12601_v41  ;;  %v3888_v61 = vsel %vm3852_vm6, %v3823_v36, %v12593_v13  ;;  %v5427_v17 = vsel %vm3722_vm0, %v15807_v62, %v12607_v42 }
 0x35d   :  { %12780 = vrot.lane.b32.xlu2 %v12804_v14, %s13537_s18  ;;  %9901 = vmatmul.msk.bf16.gmra.mxu3 %vm3722_vm0, %v5770_v45  ;;  %v4296_v46 = vpop.f32.mrf.mxu0  ;;  %v13424_v14 = vld [vmem:[#allocation2 + $0x68] sm:$0xff]  ;;  %v16168_v41 = vpack.i.bf16 %v16164_v7, %v16054_v55  ;;  %v12623_v26 = vunpack.i.h.bf16 %v16099_v63  ;;  %v12622_v62 = vunpack.i.l.bf16 %v16099_v63  ;;  %v5491_v30 = vsel %vm3982_vm8, %v5427_v17, %v12522_v27 }
 0x35e   :  { %6107 = vmatmul.bf16.gmra.mxu1 %v5753_v4  ;;  %v12596_v25 = vpop.permute.xlu1 %12595  ;;  %v5428_v45 = vsel %vm3722_vm0, %v13424_v14, %v12608_v3  ;;  %v16181_v55 = vpack.i.bf16 %v16018_v34, %v15950_v5  ;;  %v13426_v5 = vld [vmem:[%s20272_s0 + $0x128] sm:$0xff]  ;;  %v3564_v8 = vsel %vm3527_vm2, %v13427_v48, %v11602_v1  ;;  %v20658_v46 = vld [vmem:[#allocation16_spill] sm:$0xff] }
 0x35f   :  { %v12598_v21 = vunpack.i.h.bf16 %v12596_v25  ;;  %v12597_v9 = vunpack.i.l.bf16 %v12596_v25  ;;  %v12616_v54 = vpop.permute.xlu2 %12615  ;;  %v5492_v63 = vsel %vm3982_vm8, %v5428_v45, %v12523_v47  ;;  %v3565_v11 = vsel %vm3527_vm2, %v13426_v5, %v11603_v50 }
 0x360   :  { %v12618_v31 = vunpack.i.h.bf16 %v12616_v54  ;;  %v12617_v58 = vunpack.i.l.bf16 %v12616_v54  ;;  %v5487_v18 = vsel %vm3982_vm8, %v15890_v60, %v12622_v62  ;;  %v11763_v50 = vunpack.i.h.bf16 %v20658_v46  ;;  %v20660_v54 = vld [vmem:[#allocation93_spill] sm:$0xff] }
 0x361   :  { %v3953_v59 = vsel %vm3917_vm7, %v3888_v61, %v12598_v21  ;;  %v3952_v13 = vsel %vm3917_vm7, %v3887_v52, %v12597_v9  ;;  %v11762_v36 = vunpack.i.l.bf16 %v20658_v46  ;;  %v16213_v52 = vpop.permute.xlu0 %12650  ;;  %v5488_v60 = vsel %vm3982_vm8, %v15894_v40, %v12623_v26 }
 0x362   :  { %v4017_v42 = vsel %vm3982_vm8, %v3952_v13, %v12602_v28  ;;  %v4018_v4 = vsel %vm3982_vm8, %v3953_v59, %v12603_v19  ;;  %v16187_v3 = vsel %vm5543_vm10, %v5491_v30, %v12617_v58  ;;  %v16194_v27 = vsel %vm5543_vm10, %v5492_v63, %v12618_v31  ;;  %v20659_v28 = vld [vmem:[#allocation73_spill] sm:$0xff]  ;;  %v16225_v59 = vld [vmem:[#allocation2 + $0x110] sm:$0xff]  ;;  %v16227_v13 = vld [vmem:[#allocation2 + $0x118] sm:$0xff] }
 0x363   :  { %v4064_v56 = vpack.c.bf16 %v4018_v4, %v4017_v42  ;;  %v11923_v25 = vunpack.i.h.bf16 %v20659_v28  ;;  %v11922_v61 = vunpack.i.l.bf16 %v20659_v28  ;;  %v12083_v14 = vunpack.i.h.bf16 %v20660_v54 }
 0x364   :  { %12845 = vrot.lane.b32.xlu0 %v16168_v41, %s13539_s29  ;;  %12820 = vrot.lane.b32.xlu1 %v15861_v39, %s13535_s14  ;;  %v5762_v39 = vpack.c.bf16 %v16194_v27, %v16187_v3  ;;  %v12082_v62 = vunpack.i.l.bf16 %v20660_v54  ;;  %v5552_v40 = vsel %vm5543_vm10, %v5487_v18, %v12527_v38  ;;  %v16234_v26 = vpack.i.bf16 %v16059_v15, %v16120_v53 }
 0x365   :  { %12795 = vrot.lane.b32.xlu2 %v16181_v55, %s13541_s25  ;;  %v4299_v47 = vpop.f32.mrf.mxu0  ;;  %9806 = vmatmul.msk.bf16.gmra.mxu0 %vm4119_vm9, %v4064_v56  ;;  %v5553_v42 = vsel %vm5543_vm10, %v5488_v60, %v12528_v35  ;;  %v20661_v56 = vld [vmem:[#allocation107_spill] sm:$0xff]  ;;  %v12859_v38 = vpack.i.bf16 %v16125_v12, %v16113_v29  ;;  %v3629_v43 = vsel %vm3592_vm3, %v3564_v8, %v11762_v36  ;;  %v12638_v60 = vunpack.i.h.bf16 %v16144_v32 }
 0x366   :  { %v16215_v19 = vpop.permute.xlu1 %12610  ;;  %v12242_v63 = vunpack.i.l.bf16 %v20661_v56  ;;  %v3630_v35 = vsel %vm3592_vm3, %v3565_v11, %v11763_v50  ;;  %v3694_v47 = vsel %vm3657_vm4, %v3629_v43, %v11922_v61  ;;  %v12243_v18 = vunpack.i.h.bf16 %v20661_v56  ;;  %v16269_v50 = vld [vmem:[%s20274_s3] ss:$0 sm:$0xff] }
 0x367   :  { %v12613_v21 = vunpack.i.h.bf16 %v16215_v19  ;;  %v12612_v9 = vunpack.i.l.bf16 %v16215_v19  ;;  %v12631_v1 = vpop.permute.xlu2 %12630  ;;  %v5756_v29 = vpack.c.bf16 %v5553_v42, %v5552_v40  ;;  %v12637_v28 = vunpack.i.l.bf16 %v16144_v32  ;;  %v16282_v40 = vld [vmem:[%s20272_s0 + $0x208] sm:$0xff]  ;;  %v9953_v32 = vld [vmem:[%s20277_s6 + $0x30] sm:$0xf] }
 0x368   :  { %v12633_v8 = vunpack.i.h.bf16 %v12631_v1  ;;  %v12632_v46 = vunpack.i.l.bf16 %v12631_v1  ;;  %v12874_v42 = vpack.i.bf16 %v16282_v40, %v16164_v7  ;;  %v12824_v7 = vpack.i.bf16 %v16020_v20, %v16018_v34  ;;  %v20663_v20 = vld [vmem:[#allocation57_spill] sm:$0xff] }
 0x369   :  { %v5620_v4 = vsel %vm3982_vm8, %v5427_v17, %v12612_v9  ;;  %v5621_v30 = vsel %vm3982_vm8, %v5428_v45, %v12613_v21  ;;  %v5773_v17 = vpack.c.bf16 %v16227_v13, %v16225_v59  ;;  %v3695_v45 = vsel %vm3657_vm4, %v3630_v35, %v11923_v25  ;;  %v20666_v19 = vld [vmem:[#allocation45_spill] sm:$0xff] }
 0x36a   :  { %v5684_v15 = vsel %vm5543_vm10, %v5620_v4, %v12617_v58  ;;  %v5685_v53 = vsel %vm5543_vm10, %v5621_v30, %v12618_v31  ;;  %v3759_v31 = vsel %vm3722_vm0, %v3694_v47, %v12082_v62  ;;  %v3760_v58 = vsel %vm3722_vm0, %v3695_v45, %v12083_v14  ;;  %v16277_v14 = vpop.permute.xlu0 %12665  ;;  %v11210_v4 = vld [vmem:[%s20277_s6 + $0x34] sm:$0xf0] }
 0x36b   :  { %v5751_v5 = vpack.c.bf16 %v5685_v53, %v5684_v15  ;;  %v3824_v48 = vsel %vm3787_vm5, %v3759_v31, %v12242_v63  ;;  %v3825_v1 = vsel %vm3787_vm5, %v3760_v58, %v12243_v18  ;;  %v9954_v63 = vor.u32 %v11210_v4, %v9953_v32 }
 0x36c   :  { %12860 = vrot.lane.b32.xlu0 %v12859_v38, %s13537_s18  ;;  %12835 = vrot.lane.b32.xlu1 %v15878_v23, %s13536_s17  ;;  %v12652_v31 = vunpack.i.l.bf16 %v16213_v52 }
 0x36d   :  { %12810 = vrot.lane.b32.xlu2 %v16234_v26, %s13539_s29  ;;  %9902 = vmatmul.msk.bf16.gmra.mxu3 %vm3722_vm0, %v5773_v17  ;;  %v4301_v11 = vpop.f32.mrf.mxu0 }
 0x36e   :  { %v4302_v23 = vadd.f32 %v16269_v50, %v4301_v11  ;;  %6112 = vmatmul.bf16.gmra.mxu1 %v5756_v29  ;;  %6271 = vmatmul.bf16.gmra.mxu2 %v5751_v5  ;;  %v12626_v36 = vpop.permute.xlu1 %12625  ;;  %v20662_v5 = vld [vmem:[#allocation28_spill] sm:$0xff]  ;;  %v11768_v29 = vunpack.i.h.bf16 %v20663_v20 }
 0x36f   :  { %v12628_v25 = vunpack.i.h.bf16 %v12626_v36  ;;  %v12627_v61 = vunpack.i.l.bf16 %v12626_v36  ;;  %v16274_v54 = vpop.permute.xlu2 %12645  ;;  %6828 = vmatpush.bf16.msrb.mxu0 %v9954_v63  ;;  %v11608_v47 = vunpack.i.h.bf16 %v20662_v5  ;;  %v11607_v45 = vunpack.i.l.bf16 %v20662_v5 }
 0x370   :  { %v4418_v62 = vmax.f32 %v4302_v23, 0.0  ;;  %v12653_v23 = vunpack.i.h.bf16 %v16213_v52  ;;  %v12647_v36 = vunpack.i.l.bf16 %v16274_v54  ;;  %v16328_v52 = vpack.i.bf16 %v16225_v59, %v16125_v12  ;;  %v13432_v12 = vld [vmem:[%s20272_s0 + $0x130] sm:$0xff] }
 0x371   :  { %v3890_v30 = vsel %vm3852_vm6, %v3825_v1, %v12628_v25  ;;  %v3889_v56 = vsel %vm3852_vm6, %v3824_v48, %v12627_v61  ;;  %v13430_v25 = vld [vmem:[#allocation2 + $0x78] sm:$0xff]  ;;  %v3566_v63 = vsel %vm3527_vm2, %v13432_v12, %v11607_v45  ;;  %v11209_v12 = vld [vmem:[%s20277_s6 + $0x34] sm:$0xf] }
 0x372   :  { %4562 = vst.msk [vmem:[#allocation2 + $0x128] sm:$0xff] %vm3722_vm0, %v4418_v62  ;;  %v3954_v38 = vsel %vm3917_vm7, %v3889_v56, %v12632_v46  ;;  %v3955_v15 = vsel %vm3917_vm7, %v3890_v30, %v12633_v8  ;;  %v16312_v8 = vld [vmem:[#allocation2 + $0x120] sm:$0xff]  ;;  %v11767_v46 = vunpack.i.l.bf16 %v20663_v20  ;;  %v13431_v30 = vld [vmem:[%s20272_s0 + $0x138] sm:$0xff] }
 0x373   :  { %v4019_v53 = vsel %vm3982_vm8, %v3954_v38, %v12637_v28  ;;  %v4020_v43 = vsel %vm3982_vm8, %v3955_v15, %v12638_v60  ;;  %v12648_v28 = vunpack.i.h.bf16 %v16274_v54  ;;  %v3567_v56 = vsel %vm3527_vm2, %v13431_v30, %v11608_v47  ;;  %v20665_v20 = vld [vmem:[#allocation92_spill] sm:$0xff] }
 0x374   :  { %12875 = vrot.lane.b32.xlu0 %v12874_v42, %s13538_s19  ;;  %12850 = vrot.lane.b32.xlu1 %v12874_v42, %s13537_s18  ;;  %v4065_v35 = vpack.c.bf16 %v4020_v43, %v4019_v53  ;;  %v16323_v42 = vpop.permute.xlu0 %12680  ;;  %v3632_v53 = vsel %vm3592_vm3, %v3567_v56, %v11768_v29  ;;  %v3631_v43 = vsel %vm3592_vm3, %v3566_v63, %v11767_v46  ;;  %v12088_v29 = vunpack.i.h.bf16 %v20665_v20  ;;  %v9955_v63 = vld [vmem:[%s20277_s6 + $0x38] sm:$0xf0] }
 0x375   :  { %12825 = vrot.lane.b32.xlu2 %v12824_v7, %s13537_s18  ;;  %v4304_v17 = vpop.f32.mrf.mxu0  ;;  %v6721_v7 = vld [vmem:[%s20278_s7 + $0x8] sm:$0xff] }
 0x376   :  { %v4305_v18 = vadd.f32 %v16269_v50, %v4304_v17  ;;  %v12641_v34 = vpop.permute.xlu1 %12640  ;;  %9807 = vmatmul.msk.bf16.gmra.mxu0 %vm4119_vm9, %v4065_v35  ;;  %v20664_v35 = vld [vmem:[#allocation67_spill] sm:$0xff] }
 0x377   :  { %v12643_v58 = vunpack.i.h.bf16 %v12641_v34  ;;  %v12642_v11 = vunpack.i.l.bf16 %v12641_v34  ;;  %v16310_v48 = vpop.permute.xlu2 %12660  ;;  %v11928_v17 = vunpack.i.h.bf16 %v20664_v35  ;;  %v11927_v47 = vunpack.i.l.bf16 %v20664_v35 }
 0x378   :  { %v4419_v60 = vmax.f32 %v4305_v18, 0.0 }
 0x379   :  { %v5430_v61 = vsel %vm3722_vm0, %v13430_v25, %v12643_v58  ;;  %v5429_v1 = vsel %vm3722_vm0, %v15747_v6, %v12642_v11  ;;  %v16321_v62 = vld [vmem:[#allocation2 + $0x128] sm:$0xff]  ;;  %v6720_v6 = vld [vmem:[%s20278_s7] sm:$0xff]  ;;  %v6431_v25 = vpop.f32.mrf.mxu3 }
 0x37a   :  { %4563 = vst.msk [vmem:[#allocation2 + $0x130] sm:$0xff] %vm3722_vm0, %v4419_v60  ;;  %v5776_v32 = vpack.c.bf16 %v16321_v62, %v16312_v8  ;;  %v5622_v4 = vsel %vm3982_vm8, %v5429_v1, %v12647_v36  ;;  %v5623_v38 = vsel %vm3982_vm8, %v5430_v61, %v12648_v28  ;;  %6746 = vmatpush.msrb.mxu3 %v6720_v6  ;;  %v12087_v60 = vunpack.i.l.bf16 %v20665_v20 }
 0x37b   :  { %v5686_v15 = vsel %vm5543_vm10, %v5622_v4, %v12652_v31  ;;  %v5687_v5 = vsel %vm5543_vm10, %v5623_v38, %v12653_v23  ;;  %v5493_v34 = vsel %vm3982_vm8, %v5429_v1, %v12567_v10  ;;  %v12663_v4 = vunpack.i.h.bf16 %v16310_v48 }
 0x37c   :  { %12890 = vrot.lane.b32.xlu0 %v16181_v55, %s13535_s14  ;;  %12865 = vrot.lane.b32.xlu1 %v16328_v52, %s13541_s25  ;;  %v5754_v18 = vpack.c.bf16 %v5687_v5, %v5686_v15  ;;  %v5494_v55 = vsel %vm3982_vm8, %v5430_v61, %v12568_v49  ;;  %v16374_v46 = vsel %vm5543_vm10, %v5493_v34, %v12652_v31  ;;  %v12683_v61 = vunpack.i.h.bf16 %v16323_v42  ;;  %v16386_v31 = vld [vmem:[%s20272_s0 + $0x210] sm:$0xff] }
 0x37d   :  { %12840 = vrot.lane.b32.xlu2 %v16063_v37, %s13538_s19  ;;  %9903 = vmatmul.msk.bf16.gmra.mxu3 %vm3722_vm0, %v5776_v32  ;;  %v4306_v45 = vpop.f32.mrf.mxu0  ;;  %v16377_v37 = vsel %vm5543_vm10, %v5494_v55, %v12653_v23  ;;  %v12879_v23 = vpack.i.bf16 %v16386_v31, %v16282_v40  ;;  %v12662_v6 = vunpack.i.l.bf16 %v16310_v48  ;;  %v12682_v40 = vunpack.i.l.bf16 %v16323_v42 }
 0x37e   :  { %v4307_v58 = vadd.f32 %v16269_v50, %v4306_v45  ;;  %v12656_v11 = vpop.permute.xlu1 %12655  ;;  %6766 = vmatpush.msra.mxu3 %v6721_v7  ;;  %6276 = vmatmul.bf16.gmra.mxu2 %v5754_v18  ;;  %v5765_v49 = vpack.c.bf16 %v16377_v37, %v16374_v46  ;;  %v3696_v38 = vsel %vm3657_vm4, %v3631_v43, %v11927_v47  ;;  %v12668_v5 = vunpack.i.h.bf16 %v16277_v14  ;;  %v16416_v18 = vpop.permute.xlu0 %12695  ;;  %v13435_v43 = vld [vmem:[#allocation2 + $0x80] sm:$0xff] }
 0x37f   :  { %v12658_v10 = vunpack.i.h.bf16 %v12656_v11  ;;  %v12657_v1 = vunpack.i.l.bf16 %v12656_v11  ;;  %v12676_v0 = vpop.permute.xlu2 %12675  ;;  %v3697_v15 = vsel %vm3657_vm4, %v3632_v53, %v11928_v17  ;;  %v3761_v35 = vsel %vm3722_vm0, %v3696_v38, %v12087_v60 }
 0x380   :  { %v4420_v32 = vmax.f32 %v4307_v58, 0.0  ;;  %v3762_v42 = vsel %vm3722_vm0, %v3697_v15, %v12088_v29  ;;  %v12667_v45 = vunpack.i.l.bf16 %v16277_v14  ;;  %v5431_v14 = vsel %vm3722_vm0, %v13435_v43, %v12682_v40  ;;  %v16430_v29 = vld [vmem:[%s20272_s0 + $0x228] sm:$0xff]  ;;  %v20667_v15 = vld [vmem:[#allocation56_spill] sm:$0xff] }
 0x381   :  { %v5489_v30 = vsel %vm3982_vm8, %v16043_v57, %v12657_v1  ;;  %v5490_v56 = vsel %vm3982_vm8, %v16046_v16, %v12658_v10  ;;  %v9958_v16 = vor.u32 %v11209_v12, %v9955_v63  ;;  %v3827_v2 = vsel %vm3787_vm5, %v3762_v42, %v12663_v4 }
 0x382   :  { %4564 = vst.msk [vmem:[#allocation2 + $0x138] sm:$0xff] %vm3722_vm0, %v4420_v32  ;;  %v5554_v48 = vsel %vm5543_vm10, %v5489_v30, %v12572_v51  ;;  %v5555_v57 = vsel %vm5543_vm10, %v5490_v56, %v12573_v22  ;;  %v3826_v22 = vsel %vm3787_vm5, %v3761_v35, %v12662_v6  ;;  %v13434_v51 = vld [vmem:[#allocation2 + $0x88] sm:$0xff]  ;;  %v12678_v17 = vunpack.i.h.bf16 %v12676_v0 }
 0x383   :  { %v5759_v7 = vpack.c.bf16 %v5555_v57, %v5554_v48  ;;  %v5432_v53 = vsel %vm3722_vm0, %v13434_v51, %v12683_v61  ;;  %v12677_v47 = vunpack.i.l.bf16 %v12676_v0  ;;  %6841 = vmatpush.bf16.msrb.mxu1 %v9958_v16  ;;  %v12894_v11 = vpack.i.bf16 %v16227_v13, %v16225_v59  ;;  %v6433_v0 = vpop.f32.mrf.mxu3  ;;  %v16491_v51 = vld [vmem:[%s20272_s0 + $0x218] sm:$0xff] }
 0x384   :  { %12905 = vrot.lane.b32.xlu0 %v16234_v26, %s13536_s17  ;;  %12880 = vrot.lane.b32.xlu1 %v12879_v23, %s13539_s29  ;;  %v3891_v60 = vsel %vm3852_vm6, %v3826_v22, %v12667_v45  ;;  %v3892_v25 = vsel %vm3852_vm6, %v3827_v2, %v12668_v5  ;;  %v16447_v23 = vld [vmem:[#allocation2 + $0x130] sm:$0xff]  ;;  %v5495_v6 = vsel %vm3982_vm8, %v5431_v14, %v12612_v9  ;;  %v11612_v38 = vunpack.i.l.bf16 %v20666_v19 }
 0x385   :  { %12855 = vrot.lane.b32.xlu2 %v15998_v44, %s13535_s14  ;;  %6117 = vmatmul.bf16.gmra.mxu1 %v5759_v7  ;;  %v16435_v44 = vld [vmem:[%s20272_s0 + $0x220] sm:$0xff]  ;;  %v5496_v12 = vsel %vm3982_vm8, %v5432_v53, %v12613_v21  ;;  %v11613_v21 = vunpack.i.h.bf16 %v20666_v19  ;;  %v11773_v7 = vunpack.i.h.bf16 %v20667_v15  ;;  %v11772_v45 = vunpack.i.l.bf16 %v20667_v15 }
 0x386   :  { %v12671_v34 = vpop.permute.xlu1 %12670  ;;  %v16439_v58 = vpack.i.bf16 %v16430_v29, %v16435_v44  ;;  %v16470_v9 = vpop.permute.xlu0 %12710  ;;  %v12909_v43 = vpack.i.bf16 %v16491_v51, %v16386_v31 }
 0x387   :  { %v12673_v26 = vunpack.i.h.bf16 %v12671_v34  ;;  %v12672_v55 = vunpack.i.l.bf16 %v12671_v34  ;;  %v12691_v20 = vpop.permute.xlu2 %12690  ;;  %v12712_v15 = vunpack.i.l.bf16 %v16470_v9 }
 0x388   :  { %v12693_v10 = vunpack.i.h.bf16 %v12691_v20  ;;  %v12692_v1 = vunpack.i.l.bf16 %v12691_v20  ;;  %v16505_v20 = vpack.i.bf16 %v16447_v23, %v16321_v62 }
 0x389   :  { %v3956_v61 = vsel %vm3917_vm7, %v3891_v60, %v12672_v55  ;;  %v3957_v32 = vsel %vm3917_vm7, %v3892_v25, %v12673_v26  ;;  %v16449_v4 = vld [vmem:[#allocation2 + $0x138] sm:$0xff]  ;;  %v13439_v60 = vld [vmem:[%s20272_s0 + $0x148] sm:$0xff] }
 0x38a   :  { %v5779_v59 = vpack.c.bf16 %v16449_v4, %v16447_v23  ;;  %v4021_v30 = vsel %vm3982_vm8, %v3956_v61, %v12677_v47  ;;  %v4022_v56 = vsel %vm3982_vm8, %v3957_v32, %v12678_v17  ;;  %v16462_v40 = vsel %vm5543_vm10, %v5495_v6, %v12692_v1  ;;  %v20669_v17 = vld [vmem:[#allocation86_spill] sm:$0xff] }
 0x38b   :  { %v4066_v63 = vpack.c.bf16 %v4022_v56, %v4021_v30  ;;  %v16465_v48 = vsel %vm5543_vm10, %v5496_v12, %v12693_v10  ;;  %v12093_v47 = vunpack.i.h.bf16 %v20669_v17  ;;  %v12092_v55 = vunpack.i.l.bf16 %v20669_v17  ;;  %v6436_v0 = vpop.f32.mrf.mxu3 }
 0x38c   :  { %12920 = vrot.lane.b32.xlu0 %v16439_v58, %s13537_s18  ;;  %12895 = vrot.lane.b32.xlu1 %v12894_v11, %s13537_s18  ;;  %v5768_v57 = vpack.c.bf16 %v16465_v48, %v16462_v40  ;;  %v12697_v6 = vunpack.i.l.bf16 %v16416_v18 }
 0x38d   :  { %12870 = vrot.lane.b32.xlu2 %v16016_v33, %s13536_s17  ;;  %9904 = vmatmul.msk.bf16.gmra.mxu3 %vm3722_vm0, %v5779_v59  ;;  %v20668_v33 = vld [vmem:[#allocation77_spill] sm:$0xff] }
 0x38e   :  { %9808 = vmatmul.msk.bf16.gmra.mxu0 %vm4119_vm9, %v4066_v63  ;;  %v16479_v16 = vpop.permute.xlu1 %12685  ;;  %v11933_v2 = vunpack.i.h.bf16 %v20668_v33  ;;  %v11932_v22 = vunpack.i.l.bf16 %v20668_v33 }
 0x38f   :  { %v12688_v35 = vunpack.i.h.bf16 %v16479_v16  ;;  %v12687_v42 = vunpack.i.l.bf16 %v16479_v16  ;;  %v12706_v5 = vpop.permute.xlu2 %12705 }
 0x390   :  { %v12707_v63 = vunpack.i.l.bf16 %v12706_v5 }
 0x391   :  { %v5624_v34 = vsel %vm3982_vm8, %v5431_v14, %v12687_v42  ;;  %v5625_v26 = vsel %vm3982_vm8, %v5432_v53, %v12688_v35  ;;  %v3569_v14 = vsel %vm3527_vm2, %v13439_v60, %v11613_v21  ;;  %v13440_v53 = vld [vmem:[%s20272_s0 + $0x140] sm:$0xff] }
 0x392   :  { %v5688_v11 = vsel %vm5543_vm10, %v5624_v34, %v12692_v1  ;;  %v5689_v31 = vsel %vm5543_vm10, %v5625_v26, %v12693_v10  ;;  %v3568_v25 = vsel %vm3527_vm2, %v13440_v53, %v11612_v38  ;;  %v3634_v32 = vsel %vm3592_vm3, %v3569_v14, %v11773_v7 }
 0x393   :  { %v5757_v61 = vpack.c.bf16 %v5689_v31, %v5688_v11  ;;  %v3633_v1 = vsel %vm3592_vm3, %v3568_v25, %v11772_v45  ;;  %v12698_v10 = vunpack.i.h.bf16 %v16416_v18  ;;  %v3699_v59 = vsel %vm3657_vm4, %v3634_v32, %v11933_v2  ;;  %v6438_v26 = vpop.f32.mrf.mxu3  ;;  %v20671_v31 = vld [vmem:[#allocation19_spill] sm:$0xff] }
 0x394   :  { %12935 = vrot.lane.b32.xlu0 %v16505_v20, %s13541_s25  ;;  %12910 = vrot.lane.b32.xlu1 %v12909_v43, %s13538_s19  ;;  %v3698_v30 = vsel %vm3657_vm4, %v3633_v1, %v11932_v22  ;;  %v3764_v12 = vsel %vm3722_vm0, %v3699_v59, %v12093_v47  ;;  %v12708_v18 = vunpack.i.h.bf16 %v12706_v5  ;;  %v12713_v38 = vunpack.i.h.bf16 %v16470_v9  ;;  %v10055_v1 = vld [vmem:[%s20277_s6 + $0xf0] sm:$0xf] }
 0x395   :  { %12885 = vrot.lane.b32.xlu2 %v12909_v43, %s13537_s18  ;;  %6122 = vmatmul.bf16.gmra.mxu1 %v5762_v39  ;;  %v3763_v56 = vsel %vm3722_vm0, %v3698_v30, %v12092_v55  ;;  %v3829_v3 = vsel %vm3787_vm5, %v3764_v12, %v12698_v10  ;;  %v16541_v39 = vld [vmem:[%s20272_s0 + $0x230] sm:$0xff]  ;;  %v16549_v22 = vpack.i.bf16 %v16312_v8, %v16227_v13  ;;  %v20670_v13 = vld [vmem:[#allocation4_spill] sm:$0xff]  ;;  %v11778_v60 = vunpack.i.h.bf16 %v20671_v31  ;;  %v11234_v10 = vld [vmem:[%s20277_s6 + $0xf4] sm:$0xf0] }
 0x396   :  { %6281 = vmatmul.bf16.gmra.mxu2 %v5757_v61  ;;  %v12726_v19 = vpop.permute.xlu0 %12725  ;;  %v12701_v21 = vpop.permute.xlu1 %12700  ;;  %v3828_v27 = vsel %vm3787_vm5, %v3763_v56, %v12697_v6  ;;  %v12949_v5 = vpack.i.bf16 %v16541_v39, %v16430_v29  ;;  %v11618_v55 = vunpack.i.h.bf16 %v20670_v13  ;;  %v11617_v11 = vunpack.i.l.bf16 %v20670_v13 }
 0x397   :  { %v12703_v7 = vunpack.i.h.bf16 %v12701_v21  ;;  %v12702_v45 = vunpack.i.l.bf16 %v12701_v21  ;;  %v16534_v33 = vpop.permute.xlu2 %12720  ;;  %v11777_v14 = vunpack.i.l.bf16 %v20671_v31  ;;  %v12914_v32 = vpack.i.bf16 %v16435_v44, %v16491_v51  ;;  %v13443_v51 = vld [vmem:[#allocation2 + $0x90] sm:$0xff] }
 0x398   :  { %v12723_v6 = vunpack.i.h.bf16 %v16534_v33  ;;  %v12722_v59 = vunpack.i.l.bf16 %v16534_v33  ;;  %v12964_v30 = vpack.i.bf16 %v16449_v4, %v16447_v23  ;;  %v10056_v56 = vor.u32 %v11234_v10, %v10055_v1 }
 0x399   :  { %v3894_v2 = vsel %vm3852_vm6, %v3829_v3, %v12703_v7  ;;  %v3893_v9 = vsel %vm3852_vm6, %v3828_v27, %v12702_v45  ;;  %v12728_v12 = vunpack.i.h.bf16 %v12726_v19  ;;  %v6093_v7 = vpop.f32.mrf.mxu1 }
 0x39a   :  { %v3958_v43 = vsel %vm3917_vm7, %v3893_v9, %v12707_v63  ;;  %v3959_v17 = vsel %vm3917_vm7, %v3894_v2, %v12708_v18  ;;  %v12727_v18 = vunpack.i.l.bf16 %v12726_v19  ;;  %v13442_v63 = vld [vmem:[#allocation2 + $0x98] sm:$0xff]  ;;  %7071 = vmatpush.bf16.msrb.mxu2 %v10056_v56  ;;  %v20672_v2 = vld [vmem:[#allocation76_spill] sm:$0xff] }
 0x39b   :  { %v4023_v47 = vsel %vm3982_vm8, %v3958_v43, %v12712_v15  ;;  %v4024_v34 = vsel %vm3982_vm8, %v3959_v17, %v12713_v38  ;;  %v11938_v9 = vunpack.i.h.bf16 %v20672_v2  ;;  %v11937_v43 = vunpack.i.l.bf16 %v20672_v2  ;;  %v6441_v37 = vpop.f32.mrf.mxu3 }
 0x39c   :  { %12950 = vrot.lane.b32.xlu0 %v12949_v5, %s13539_s29  ;;  %12925 = vrot.lane.b32.xlu1 %v16132_v24, %s13535_s14  ;;  %v4067_v29 = vpack.c.bf16 %v4024_v34, %v4023_v47  ;;  %v13444_v34 = vld [vmem:[%s20272_s0 + $0x158] sm:$0xff]  ;;  %v13448_v37 = vld [vmem:[%s20272_s0 + $0x160] sm:$0xff] }
 0x39d   :  { %12900 = vrot.lane.b32.xlu2 %v16549_v22, %s13541_s25 }
 0x39e   :  { %v16564_v53 = vpop.permute.xlu0 %12740  ;;  %v12716_v25 = vpop.permute.xlu1 %12715  ;;  %9809 = vmatmul.msk.bf16.gmra.mxu0 %vm4119_vm9, %v4067_v29  ;;  %v13445_v29 = vld [vmem:[%s20272_s0 + $0x150] sm:$0xff] }
 0x39f   :  { %v12718_v0 = vunpack.i.h.bf16 %v12716_v25  ;;  %v12717_v24 = vunpack.i.l.bf16 %v12716_v25  ;;  %v16567_v61 = vpop.permute.xlu2 %12735  ;;  %v3570_v26 = vsel %vm3527_vm2, %v13445_v29, %v11617_v11  ;;  %v13446_v11 = vld [vmem:[%s20272_s0 + $0x238] sm:$0xff] }
 0x3a0   :  { %v3635_v25 = vsel %vm3592_vm3, %v3570_v26, %v11777_v14  ;;  %v12954_v1 = vpack.i.bf16 %v13446_v11, %v16541_v39  ;;  %v13449_v11 = vld [vmem:[#allocation2 + $0xa8] sm:$0xff] }
 0x3a1   :  { %v5434_v44 = vsel %vm3722_vm0, %v13442_v63, %v12718_v0  ;;  %v5433_v21 = vsel %vm3722_vm0, %v13443_v51, %v12717_v24  ;;  %v12743_v63 = vunpack.i.h.bf16 %v16564_v53  ;;  %v6095_v39 = vpop.f32.mrf.mxu1 }
 0x3a2   :  { %v5626_v38 = vsel %vm3982_vm8, %v5433_v21, %v12722_v59  ;;  %v5627_v15 = vsel %vm3982_vm8, %v5434_v44, %v12723_v6  ;;  %v5497_v23 = vsel %vm3982_vm8, %v5433_v21, %v12647_v36  ;;  %v5498_v19 = vsel %vm3982_vm8, %v5434_v44, %v12648_v28  ;;  %v20673_v28 = vld [vmem:[#allocation96_spill] sm:$0xff] }
 0x3a3   :  { %v5690_v45 = vsel %vm5543_vm10, %v5626_v38, %v12727_v18  ;;  %v5691_v3 = vsel %vm5543_vm10, %v5627_v15, %v12728_v12  ;;  %v16598_v27 = vsel %vm5543_vm10, %v5497_v23, %v12727_v18  ;;  %v16601_v5 = vsel %vm5543_vm10, %v5498_v19, %v12728_v12 }
 0x3a4   :  { %12965 = vrot.lane.b32.xlu0 %v12964_v30, %s13537_s18  ;;  %12940 = vrot.lane.b32.xlu1 %v16168_v41, %s13536_s17  ;;  %v5760_v54 = vpack.c.bf16 %v5691_v3, %v5690_v45  ;;  %v5771_v36 = vpack.c.bf16 %v16601_v5, %v16598_v27  ;;  %v12098_v17 = vunpack.i.h.bf16 %v20673_v28  ;;  %v12097_v47 = vunpack.i.l.bf16 %v20673_v28  ;;  %v20679_v27 = vld [vmem:[#allocation58_spill] sm:$0xff] }
 0x3a5   :  { %12915 = vrot.lane.b32.xlu2 %v12914_v32, %s13539_s29  ;;  %6127 = vmatmul.bf16.gmra.mxu1 %v5765_v49  ;;  %v3571_v41 = vsel %vm3527_vm2, %v13444_v34, %v11618_v55  ;;  %v3700_v55 = vsel %vm3657_vm4, %v3635_v25, %v11937_v43  ;;  %v12737_v30 = vunpack.i.l.bf16 %v16567_v61  ;;  %v12929_v18 = vpack.i.bf16 %v16321_v62, %v16312_v8  ;;  %v20675_v62 = vld [vmem:[#allocation59_spill] sm:$0xff]  ;;  %v6443_v43 = vpop.f32.mrf.mxu3  ;;  %v20676_v34 = vld [vmem:[#allocation68_spill] sm:$0xff] }
 0x3a6   :  { %v16624_v13 = vpop.permute.xlu0 %12755  ;;  %v12731_v31 = vpop.permute.xlu1 %12730  ;;  %6286 = vmatmul.bf16.gmra.mxu2 %v5760_v54  ;;  %v3636_v46 = vsel %vm3592_vm3, %v3571_v41, %v11778_v60  ;;  %v3765_v10 = vsel %vm3722_vm0, %v3700_v55, %v12097_v47  ;;  %v12738_v60 = vunpack.i.h.bf16 %v16567_v61  ;;  %v12742_v44 = vunpack.i.l.bf16 %v16564_v53  ;;  %v20674_v61 = vld [vmem:[#allocation33_spill] sm:$0xff] }
 0x3a7   :  { %v12733_v49 = vunpack.i.h.bf16 %v12731_v31  ;;  %v12732_v0 = vunpack.i.l.bf16 %v12731_v31  ;;  %v12751_v24 = vpop.permute.xlu2 %12750  ;;  %v3701_v32 = vsel %vm3657_vm4, %v3636_v46, %v11938_v9  ;;  %v11623_v38 = vunpack.i.h.bf16 %v20674_v61  ;;  %v13447_v31 = vld [vmem:[%s20272_s0 + $0x168] sm:$0xff]  ;;  %v16667_v46 = vld [vmem:[%s20276_s5] ss:$0 sm:$0xff] }
 0x3a8   :  { %v3766_v14 = vsel %vm3722_vm0, %v3701_v32, %v12098_v17  ;;  %v11622_v8 = vunpack.i.l.bf16 %v20674_v61  ;;  %v11783_v19 = vunpack.i.h.bf16 %v20675_v62  ;;  %v11782_v3 = vunpack.i.l.bf16 %v20675_v62 }
 0x3a9   :  { %v3831_v56 = vsel %vm3787_vm5, %v3766_v14, %v12733_v49  ;;  %v3830_v12 = vsel %vm3787_vm5, %v3765_v10, %v12732_v0  ;;  %v12753_v54 = vunpack.i.h.bf16 %v12751_v24  ;;  %v12752_v28 = vunpack.i.l.bf16 %v12751_v24  ;;  %v13450_v10 = vld [vmem:[#allocation2 + $0xa0] sm:$0xff]  ;;  %v6098_v39 = vpop.f32.mrf.mxu1 }
 0x3aa   :  { %v3895_v51 = vsel %vm3852_vm6, %v3830_v12, %v12737_v30  ;;  %v3896_v21 = vsel %vm3852_vm6, %v3831_v56, %v12738_v60  ;;  %v11943_v41 = vunpack.i.h.bf16 %v20676_v34  ;;  %v11942_v29 = vunpack.i.l.bf16 %v20676_v34  ;;  %v20677_v56 = vld [vmem:[#allocation95_spill] sm:$0xff] }
 0x3ab   :  { %v3960_v2 = vsel %vm3917_vm7, %v3895_v51, %v12742_v44  ;;  %v3961_v9 = vsel %vm3917_vm7, %v3896_v21, %v12743_v63  ;;  %v3573_v25 = vsel %vm3527_vm2, %v13447_v31, %v11623_v38  ;;  %v3572_v49 = vsel %vm3527_vm2, %v13448_v37, %v11622_v8 }
 0x3ac   :  { %12955 = vrot.lane.b32.xlu1 %v12954_v1, %s13537_s18  ;;  %v3638_v0 = vsel %vm3592_vm3, %v3573_v25, %v11783_v19  ;;  %v12758_v24 = vunpack.i.h.bf16 %v16624_v13  ;;  %v12757_v55 = vunpack.i.l.bf16 %v16624_v13  ;;  %v3637_v32 = vsel %vm3592_vm3, %v3572_v49, %v11782_v3  ;;  %v13452_v25 = vld [vmem:[#allocation2 + $0xb8] sm:$0xff] }
 0x3ad   :  { %12930 = vrot.lane.b32.xlu2 %v12929_v18, %s13537_s18  ;;  %v5436_v1 = vsel %vm3722_vm0, %v13449_v11, %v12753_v54  ;;  %v5435_v14 = vsel %vm3722_vm0, %v13450_v10, %v12752_v28  ;;  %v3702_v60 = vsel %vm3657_vm4, %v3637_v32, %v11942_v29  ;;  %v3703_v30 = vsel %vm3657_vm4, %v3638_v0, %v11943_v41 }
 0x3ae   :  { %v16649_v15 = vpop.permute.xlu0 %12770  ;;  %v12746_v23 = vpop.permute.xlu1 %12745  ;;  %v12103_v12 = vunpack.i.h.bf16 %v20677_v56  ;;  %v12102_v18 = vunpack.i.l.bf16 %v20677_v56  ;;  %v5629_v40 = vsel %vm3982_vm8, %v5436_v1, %v12758_v24  ;;  %v5499_v48 = vsel %vm3982_vm8, %v5435_v14, %v12687_v42 }
 0x3af   :  { %v12748_v7 = vunpack.i.h.bf16 %v12746_v23  ;;  %v12747_v53 = vunpack.i.l.bf16 %v12746_v23  ;;  %v12766_v45 = vpop.permute.xlu2 %12765  ;;  %v12773_v43 = vunpack.i.h.bf16 %v16649_v15  ;;  %v12772_v54 = vunpack.i.l.bf16 %v16649_v15 }
 0x3b0   :  { %v12768_v23 = vunpack.i.h.bf16 %v12766_v45  ;;  %v12767_v8 = vunpack.i.l.bf16 %v12766_v45  ;;  %v3768_v45 = vsel %vm3722_vm0, %v3703_v30, %v12103_v12  ;;  %v11788_v5 = vunpack.i.h.bf16 %v20679_v27 }
 0x3b1   :  { %v4025_v17 = vsel %vm3982_vm8, %v3960_v2, %v12747_v53  ;;  %v4026_v47 = vsel %vm3982_vm8, %v3961_v9, %v12748_v7  ;;  %v6446_v2 = vpop.f32.mrf.mxu3 }
 0x3b2   :  { %v4068_v26 = vpack.c.bf16 %v4026_v47, %v4025_v17  ;;  %v3833_v28 = vsel %vm3787_vm5, %v3768_v45, %v12768_v23  ;;  %v13451_v47 = vld [vmem:[#allocation2 + $0xb0] sm:$0xff] }
 0x3b3   :  { %v3898_v11 = vsel %vm3852_vm6, %v3833_v28, %v12773_v43  ;;  %v20681_v43 = vld [vmem:[#allocation88_spill] sm:$0xff] }
 0x3b4   :  { %9810 = vmatmul.msk.bf16.gmra.mxu0 %vm4119_vm9, %v4068_v26  ;;  %v12107_v28 = vunpack.i.l.bf16 %v20681_v43 }
 0x3b5   :  { %12945 = vrot.lane.b32.xlu2 %v16439_v58, %s13538_s19  ;;  %6132 = vmatmul.bf16.gmra.mxu1 %v5768_v57  ;;  %v5628_v58 = vsel %vm3982_vm8, %v5435_v14, %v12757_v55  ;;  %v5500_v57 = vsel %vm3982_vm8, %v5436_v1, %v12688_v35  ;;  %v3767_v35 = vsel %vm3722_vm0, %v3702_v60, %v12102_v18  ;;  %v6100_v14 = vpop.f32.mrf.mxu1 }
 0x3b6   :  { %v12786_v63 = vpop.permute.xlu0 %12785  ;;  %v12761_v44 = vpop.permute.xlu1 %12760  ;;  %v3832_v17 = vsel %vm3787_vm5, %v3767_v35, %v12767_v8 }
 0x3b7   :  { %v12763_v51 = vunpack.i.h.bf16 %v12761_v44  ;;  %v12762_v21 = vunpack.i.l.bf16 %v12761_v44  ;;  %v12781_v61 = vpop.permute.xlu2 %12780  ;;  %v12787_v19 = vunpack.i.l.bf16 %v12786_v63  ;;  %v12788_v9 = vunpack.i.h.bf16 %v12786_v63 }
 0x3b8   :  { %v6262_v38 = vpop.f32.mrf.mxu2  ;;  %v12783_v41 = vunpack.i.h.bf16 %v12781_v61  ;;  %v12782_v29 = vunpack.i.l.bf16 %v12781_v61  ;;  %v3897_v32 = vsel %vm3852_vm6, %v3832_v17, %v12772_v54  ;;  %v12108_v54 = vunpack.i.h.bf16 %v20681_v43 }
 0x3b9   :  { %v5692_v62 = vsel %vm5543_vm10, %v5628_v58, %v12762_v21  ;;  %v5693_v7 = vsel %vm5543_vm10, %v5629_v40, %v12763_v51  ;;  %v16704_v53 = vsel %vm5543_vm10, %v5499_v48, %v12762_v21  ;;  %v16707_v3 = vsel %vm5543_vm10, %v5500_v57, %v12763_v51  ;;  %v20678_v38 = vld [vmem:[#allocation48_spill] sm:$0xff]  ;;  %v6448_v40 = vpop.f32.mrf.mxu3 }
 0x3ba   :  { %v5763_v42 = vpack.c.bf16 %v5693_v7, %v5692_v62  ;;  %v5774_v16 = vpack.c.bf16 %v16707_v3, %v16704_v53  ;;  %v5437_v34 = vsel %vm3722_vm0, %v13451_v47, %v12787_v19  ;;  %v5438_v37 = vsel %vm3722_vm0, %v13452_v25, %v12788_v9  ;;  %v20680_v7 = vld [vmem:[#allocation79_spill] sm:$0xff] }
 0x3bb   :  { %v5501_v56 = vsel %vm3982_vm8, %v5437_v34, %v12722_v59  ;;  %v5502_v44 = vsel %vm3982_vm8, %v5438_v37, %v12723_v6  ;;  %v11628_v59 = vunpack.i.h.bf16 %v20678_v38  ;;  %v11627_v57 = vunpack.i.l.bf16 %v20678_v38 }
 0x3bc   :  { %6291 = vmatmul.bf16.gmra.mxu2 %v5763_v42  ;;  %v11948_v2 = vunpack.i.h.bf16 %v20680_v7  ;;  %v11947_v9 = vunpack.i.l.bf16 %v20680_v7  ;;  %v20683_v7 = vld [vmem:[#allocation22_spill] sm:$0xff] }
 0x3bd   :  { %12960 = vrot.lane.b32.xlu2 %v16328_v52, %s13535_s14  ;;  %v6103_v42 = vpop.f32.mrf.mxu1 }
 0x3be   :  { %v16720_v26 = vpop.permute.xlu0 %12800  ;;  %v12776_v31 = vpop.permute.xlu1 %12775 }
 0x3bf   :  { %v12778_v15 = vunpack.i.h.bf16 %v12776_v31  ;;  %v12777_v49 = vunpack.i.l.bf16 %v12776_v31  ;;  %v12796_v0 = vpop.permute.xlu2 %12795 }
 0x3c0   :  { %v12798_v52 = vunpack.i.h.bf16 %v12796_v0  ;;  %v12797_v1 = vunpack.i.l.bf16 %v12796_v0  ;;  %v6264_v10 = vpop.f32.mrf.mxu2  ;;  %v12802_v0 = vunpack.i.l.bf16 %v16720_v26 }
 0x3c1   :  { %v3962_v60 = vsel %vm3917_vm7, %v3897_v32, %v12777_v49  ;;  %v3963_v30 = vsel %vm3917_vm7, %v3898_v11, %v12778_v15  ;;  %v12803_v49 = vunpack.i.h.bf16 %v16720_v26  ;;  %v16792_v26 = vpop.f32.mrf.mxu3 }
 0x3c2   :  { %v4309_v12 = vpop.f32.mrf.mxu0  ;;  %v4027_v18 = vsel %vm3982_vm8, %v3962_v60, %v12782_v29  ;;  %v4028_v63 = vsel %vm3982_vm8, %v3963_v30, %v12783_v41  ;;  %v16737_v21 = vsel %vm5543_vm10, %v5501_v56, %v12797_v1  ;;  %v16740_v61 = vsel %vm5543_vm10, %v5502_v44, %v12798_v52  ;;  %v13454_v29 = vld [vmem:[%s20272_s0 + $0x170] sm:$0xff] }
 0x3c3   :  { %v4310_v39 = vadd.f32 %v16269_v50, %v4309_v12  ;;  %v4069_v51 = vpack.c.bf16 %v4028_v63, %v4027_v18  ;;  %v5777_v58 = vpack.c.bf16 %v16740_v61, %v16737_v21  ;;  %v3574_v31 = vsel %vm3527_vm2, %v13454_v29, %v11627_v57 }
 0x3c5   :  { %v4421_v48 = vmax.f32 %v4310_v39, 0.0  ;;  %12975 = vrot.lane.b32.xlu2 %v16549_v22, %s13535_s14  ;;  %9811 = vmatmul.msk.bf16.gmra.mxu0 %vm4119_vm9, %v4069_v51  ;;  %v13453_v22 = vld [vmem:[%s20272_s0 + $0x178] sm:$0xff]  ;;  %v6105_v57 = vpop.f32.mrf.mxu1 }
 0x3c6   :  { %6137 = vmatmul.bf16.gmra.mxu1 %v5771_v36  ;;  %v12816_v33 = vpop.permute.xlu0 %12815  ;;  %v16751_v6 = vpop.permute.xlu1 %12790  ;;  %v3575_v19 = vsel %vm3527_vm2, %v13453_v22, %v11628_v59  ;;  %v11787_v36 = vunpack.i.l.bf16 %v20679_v27  ;;  %v16808_v27 = vld [vmem:[#allocation2 + $0x150] sm:$0xff] }
 0x3c7   :  { %4565 = vst.msk [vmem:[#allocation2 + $0x140] sm:$0xff] %vm3722_vm0, %v4421_v48  ;;  %v12793_v23 = vunpack.i.h.bf16 %v16751_v6  ;;  %v12792_v8 = vunpack.i.l.bf16 %v16751_v6  ;;  %v12811_v62 = vpop.permute.xlu2 %12810  ;;  %v12818_v12 = vunpack.i.h.bf16 %v12816_v33  ;;  %v12817_v18 = vunpack.i.l.bf16 %v12816_v33 }
 0x3c8   :  { %v3639_v15 = vsel %vm3592_vm3, %v3574_v31, %v11787_v36  ;;  %v12813_v10 = vunpack.i.h.bf16 %v12811_v62  ;;  %v12812_v14 = vunpack.i.l.bf16 %v12811_v62  ;;  %v13455_v31 = vld [vmem:[#allocation2 + $0xc8] sm:$0xff] }
 0x3c9   :  { %v5630_v35 = vsel %vm3982_vm8, %v5437_v34, %v12792_v8  ;;  %v5631_v45 = vsel %vm3982_vm8, %v5438_v37, %v12793_v23  ;;  %v3640_v37 = vsel %vm3592_vm3, %v3575_v19, %v11788_v5  ;;  %v3704_v11 = vsel %vm3657_vm4, %v3639_v15, %v11947_v9 }
 0x3ca   :  { %v4311_v17 = vpop.f32.mrf.mxu0  ;;  %v5694_v47 = vsel %vm5543_vm10, %v5630_v35, %v12797_v1  ;;  %v5695_v41 = vsel %vm5543_vm10, %v5631_v45, %v12798_v52  ;;  %v3705_v32 = vsel %vm3657_vm4, %v3640_v37, %v11948_v2  ;;  %v11793_v2 = vunpack.i.h.bf16 %v20683_v7 }
 0x3cb   :  { %v4312_v34 = vadd.f32 %v16269_v50, %v4311_v17  ;;  %v5766_v25 = vpack.c.bf16 %v5695_v41, %v5694_v47  ;;  %v3769_v50 = vsel %vm3722_vm0, %v3704_v11, %v12107_v28  ;;  %v3770_v1 = vsel %vm3722_vm0, %v3705_v32, %v12108_v54 }
 0x3cc   :  { %v3835_v39 = vsel %vm3787_vm5, %v3770_v1, %v12803_v49  ;;  %v3834_v51 = vsel %vm3787_vm5, %v3769_v50, %v12802_v0  ;;  %v11792_v49 = vunpack.i.l.bf16 %v20683_v7  ;;  %v20684_v0 = vld [vmem:[#allocation78_spill] sm:$0xff] }
 0x3cd   :  { %v4422_v52 = vmax.f32 %v4312_v34, 0.0  ;;  %12990 = vrot.lane.b32.xlu2 %v16505_v20, %s13535_s14  ;;  %6296 = vmatmul.bf16.gmra.mxu2 %v5766_v25  ;;  %v13456_v25 = vld [vmem:[#allocation2 + $0xc0] sm:$0xff]  ;;  %v11952_v32 = vunpack.i.l.bf16 %v20684_v0 }
 0x3ce   :  { %v16790_v60 = vpop.permute.xlu0 %12830  ;;  %v12806_v30 = vpop.permute.xlu1 %12805  ;;  %v4637_v56 = vld [vmem:[#allocation2 + $0x140] sm:$0xff] }
 0x3cf   :  { %4566 = vst.msk [vmem:[#allocation2 + $0x148] sm:$0xff] %vm3722_vm0, %v4422_v52  ;;  %v12808_v63 = vunpack.i.h.bf16 %v12806_v30  ;;  %v12807_v44 = vunpack.i.l.bf16 %v12806_v30  ;;  %v16795_v20 = vpop.permute.xlu2 %12825  ;;  %v12969_v38 = vpack.i.bf16 %v4637_v56, %v16449_v4  ;;  %v20682_v4 = vld [vmem:[#allocation9_spill] sm:$0xff]  ;;  %v12833_v45 = vunpack.i.h.bf16 %v16790_v60 }
 0x3d0   :  { %v11633_v5 = vunpack.i.h.bf16 %v20682_v4  ;;  %v11632_v36 = vunpack.i.l.bf16 %v20682_v4  ;;  %v12832_v43 = vunpack.i.l.bf16 %v16790_v60  ;;  %v12828_v47 = vunpack.i.h.bf16 %v16795_v20 }
 0x3d1   :  { %v3900_v59 = vsel %vm3852_vm6, %v3835_v39, %v12808_v63  ;;  %v3899_v40 = vsel %vm3852_vm6, %v3834_v51, %v12807_v44  ;;  %12970 = vrot.lane.b32.xlu1 %v12969_v38, %s13541_s25  ;;  %v12827_v41 = vunpack.i.l.bf16 %v16795_v20  ;;  %v11953_v30 = vunpack.i.h.bf16 %v20684_v0  ;;  %v13457_v63 = vld [vmem:[%s20272_s0 + $0x188] sm:$0xff]  ;;  %v13458_v39 = vld [vmem:[%s20272_s0 + $0x180] sm:$0xff] }
 0x3d2   :  { %v3964_v48 = vsel %vm3917_vm7, %v3899_v40, %v12812_v14  ;;  %v3965_v33 = vsel %vm3917_vm7, %v3900_v59, %v12813_v10  ;;  %v16851_v14 = vld [vmem:[#allocation2 + $0x158] sm:$0xff]  ;;  %v3577_v44 = vsel %vm3527_vm2, %v13457_v63, %v11633_v5  ;;  %v3576_v51 = vsel %vm3527_vm2, %v13458_v39, %v11632_v36 }
 0x3d3   :  { %v4029_v62 = vsel %vm3982_vm8, %v3964_v48, %v12817_v18  ;;  %v4030_v22 = vsel %vm3982_vm8, %v3965_v33, %v12818_v12  ;;  %v3641_v59 = vsel %vm3592_vm3, %v3576_v51, %v11792_v49  ;;  %v3642_v40 = vsel %vm3592_vm3, %v3577_v44, %v11793_v2 }
 0x3d4   :  { %v4070_v19 = vpack.c.bf16 %v4030_v22, %v4029_v62  ;;  %v12994_v57 = vpack.i.bf16 %v16851_v14, %v16808_v27  ;;  %v3706_v62 = vsel %vm3657_vm4, %v3641_v59, %v11952_v32  ;;  %v3707_v5 = vsel %vm3657_vm4, %v3642_v40, %v11953_v30  ;;  %v20686_v32 = vld [vmem:[#allocation8_spill] sm:$0xff]  ;;  %v20687_v30 = vld [vmem:[#allocation61_spill] sm:$0xff]  ;;  %v13460_v59 = vld [vmem:[%s20272_s0 + $0x190] sm:$0xff] }
 0x3d5   :  { %13005 = vrot.lane.b32.xlu2 %v12969_v38, %s13535_s14  ;;  %v11797_v44 = vunpack.i.l.bf16 %v20687_v30 }
 0x3d6   :  { %6142 = vmatmul.bf16.gmra.mxu1 %v5774_v16  ;;  %v16816_v9 = vpop.permute.xlu0 %12845  ;;  %v12821_v42 = vpop.permute.xlu1 %12820  ;;  %9812 = vmatmul.msk.bf16.gmra.mxu0 %vm4119_vm9, %v4070_v19  ;;  %v4638_v35 = vld [vmem:[#allocation2 + $0x148] sm:$0xff] }
 0x3d7   :  { %v12823_v54 = vunpack.i.h.bf16 %v12821_v42  ;;  %v12822_v28 = vunpack.i.l.bf16 %v12821_v42  ;;  %v12841_v17 = vpop.permute.xlu2 %12840  ;;  %v12979_v29 = vpack.i.bf16 %v4638_v35, %v4637_v56  ;;  %v12984_v53 = vpack.i.bf16 %v16808_v27, %v4638_v35  ;;  %v16824_v16 = vpop.f32.mrf.mxu3 }
 0x3d8   :  { %v6267_v3 = vpop.f32.mrf.mxu2  ;;  %v5782_v15 = vpack.c.bf16 %v4638_v35, %v4637_v56  ;;  %v20685_v56 = vld [vmem:[#allocation98_spill] sm:$0xff]  ;;  %v12843_v2 = vunpack.i.h.bf16 %v12841_v17  ;;  %v12842_v35 = vunpack.i.l.bf16 %v12841_v17 }
 0x3d9   :  { %v16827_v34 = vsel %vm3722_vm0, %v13455_v31, %v12823_v54  ;;  %v16830_v37 = vsel %vm3722_vm0, %v13456_v25, %v12822_v28  ;;  %12980 = vrot.lane.b32.xlu0 %v12979_v29, %s13537_s18  ;;  %12985 = vrot.lane.b32.xlu1 %v12984_v53, %s13541_s25  ;;  %v12112_v12 = vunpack.i.l.bf16 %v20685_v56  ;;  %v12113_v38 = vunpack.i.h.bf16 %v20685_v56 }
 0x3da   :  { %v5632_v11 = vsel %vm3982_vm8, %v16830_v37, %v12827_v41  ;;  %v5633_v52 = vsel %vm3982_vm8, %v16827_v34, %v12828_v47  ;;  %9905 = vmatmul.msk.bf16.gmra.mxu3 %vm3722_vm0, %v5782_v15  ;;  %v12848_v3 = vunpack.i.h.bf16 %v16816_v9  ;;  %v12847_v31 = vunpack.i.l.bf16 %v16816_v9 }
 0x3db   :  { %v6108_v50 = vpop.f32.mrf.mxu1  ;;  %v5696_v1 = vsel %vm5543_vm10, %v5632_v11, %v12832_v43  ;;  %v5697_v10 = vsel %vm5543_vm10, %v5633_v52, %v12833_v45  ;;  %v3771_v36 = vsel %vm3722_vm0, %v3706_v62, %v12112_v12  ;;  %v3772_v42 = vsel %vm3722_vm0, %v3707_v5, %v12113_v38  ;;  %v13462_v5 = vld [vmem:[#allocation2 + $0xd0] sm:$0xff] }
 0x3dc   :  { %v5769_v18 = vpack.c.bf16 %v5697_v10, %v5696_v1  ;;  %v11638_v11 = vunpack.i.h.bf16 %v20686_v32  ;;  %v5785_v9 = vpack.c.bf16 %v16851_v14, %v16808_v27  ;;  %v11637_v10 = vunpack.i.l.bf16 %v20686_v32  ;;  %v13459_v27 = vld [vmem:[%s20272_s0 + $0x198] sm:$0xff] }
 0x3dd   :  { %13020 = vrot.lane.b32.xlu2 %v12984_v53, %s13535_s14  ;;  %v11798_v56 = vunpack.i.h.bf16 %v20687_v30 }
 0x3de   :  { %v16867_v48 = vpop.permute.xlu0 %12860  ;;  %v12836_v33 = vpop.permute.xlu1 %12835  ;;  %6301 = vmatmul.bf16.gmra.mxu2 %v5769_v18  ;;  %v3579_v38 = vsel %vm3527_vm2, %v13459_v27, %v11638_v11  ;;  %v3578_v40 = vsel %vm3527_vm2, %v13460_v59, %v11637_v10 }
 0x3df   :  { %v12838_v22 = vunpack.i.h.bf16 %v12836_v33  ;;  %v12837_v19 = vunpack.i.l.bf16 %v12836_v33  ;;  %v12856_v4 = vpop.permute.xlu2 %12855  ;;  %v16878_v53 = vpop.f32.mrf.mxu3  ;;  %v3644_v33 = vsel %vm3592_vm3, %v3579_v38, %v11798_v56  ;;  %v12862_v62 = vunpack.i.l.bf16 %v16867_v48 }
 0x3e0   :  { %v6269_v7 = vpop.f32.mrf.mxu2  ;;  %v12858_v61 = vunpack.i.h.bf16 %v12856_v4 }
 0x3e1   :  { %v3837_v54 = vsel %vm3787_vm5, %v3772_v42, %v12838_v22  ;;  %v3836_v28 = vsel %vm3787_vm5, %v3771_v36, %v12837_v19  ;;  %12995 = vrot.lane.b32.xlu0 %v12994_v57, %s13537_s18  ;;  %v12863_v57 = vunpack.i.h.bf16 %v16867_v48  ;;  %v13461_v19 = vld [vmem:[#allocation2 + $0xd8] sm:$0xff]  ;;  %v5503_v7 = vsel %vm3982_vm8, %v16830_v37, %v12757_v55 }
 0x3e2   :  { %v4314_v29 = vpop.f32.mrf.mxu0  ;;  %v3901_v25 = vsel %vm3852_vm6, %v3836_v28, %v12842_v35  ;;  %v3902_v15 = vsel %vm3852_vm6, %v3837_v54, %v12843_v2  ;;  %v5504_v42 = vsel %vm3982_vm8, %v16827_v34, %v12758_v24  ;;  %v3643_v2 = vsel %vm3592_vm3, %v3578_v40, %v11797_v44  ;;  %v20688_v35 = vld [vmem:[#allocation69_spill] sm:$0xff]  ;;  %v16980_v44 = vld [vmem:[%s20274_s3] ss:$0 sm:$0xff] }
 0x3e3   :  { %v6110_v49 = vpop.f32.mrf.mxu1  ;;  %v3966_v12 = vsel %vm3917_vm7, %v3901_v25, %v12847_v31  ;;  %v3967_v21 = vsel %vm3917_vm7, %v3902_v15, %v12848_v3  ;;  %v11958_v54 = vunpack.i.h.bf16 %v20688_v35  ;;  %v11957_v28 = vunpack.i.l.bf16 %v20688_v35  ;;  %v20689_v29 = vld [vmem:[#allocation97_spill] sm:$0xff] }
 0x3e4   :  { %v12118_v3 = vunpack.i.h.bf16 %v20689_v29  ;;  %v12117_v25 = vunpack.i.l.bf16 %v20689_v29  ;;  %v5569_v32 = vsel %vm5543_vm10, %v5504_v42, %v12833_v45  ;;  %v9945_v45 = vld [vmem:[%s20277_s6 + $0x20] sm:$0xf] }
 0x3e5   :  { %v3708_v30 = vsel %vm3657_vm4, %v3643_v2, %v11957_v28 }
 0x3e6   :  { %6147 = vmatmul.bf16.gmra.mxu1 %v5777_v58  ;;  %v16887_v17 = vpop.permute.xlu0 %12875  ;;  %v12851_v0 = vpop.permute.xlu1 %12850  ;;  %v12857_v58 = vunpack.i.l.bf16 %v12856_v4  ;;  %v16917_v4 = vsel %vm3722_vm0, %v13461_v19, %v12858_v61  ;;  %v3773_v56 = vsel %vm3722_vm0, %v3708_v30, %v12117_v25  ;;  %v20691_v30 = vld [vmem:[#allocation60_spill] sm:$0xff] }
 0x3e7   :  { %v12853_v52 = vunpack.i.h.bf16 %v12851_v0  ;;  %v12852_v50 = vunpack.i.l.bf16 %v12851_v0  ;;  %v16890_v1 = vpop.permute.xlu2 %12870  ;;  %v16914_v22 = vpop.f32.mrf.mxu3  ;;  %v5635_v49 = vsel %vm3982_vm8, %v16917_v4, %v12863_v57  ;;  %v5568_v0 = vsel %vm5543_vm10, %v5503_v7, %v12832_v43  ;;  %v20690_v7 = vld [vmem:[#allocation51_spill] sm:$0xff] }
 0x3e8   :  { %v16920_v36 = vsel %vm3722_vm0, %v13462_v5, %v12857_v58  ;;  %v12873_v11 = vunpack.i.h.bf16 %v16890_v1  ;;  %v3709_v43 = vsel %vm3657_vm4, %v3644_v33, %v11958_v54  ;;  %v5780_v61 = vpack.c.bf16 %v5569_v32, %v5568_v0 }
 0x3e9   :  { %v4031_v18 = vsel %vm3982_vm8, %v3966_v12, %v12852_v50  ;;  %v4032_v63 = vsel %vm3982_vm8, %v3967_v21, %v12853_v52  ;;  %v5634_v34 = vsel %vm3982_vm8, %v16920_v36, %v12862_v62  ;;  %v12872_v52 = vunpack.i.l.bf16 %v16890_v1  ;;  %v11208_v1 = vld [vmem:[%s20277_s6 + $0x24] sm:$0xf0] }
 0x3ea   :  { %v4071_v39 = vpack.c.bf16 %v4032_v63, %v4031_v18  ;;  %v4316_v51 = vpop.f32.mrf.mxu0  ;;  %9906 = vmatmul.msk.bf16.gmra.mxu3 %vm3722_vm0, %v5785_v9  ;;  %v3774_v12 = vsel %vm3722_vm0, %v3709_v43, %v12118_v3  ;;  %v9946_v58 = vor.u32 %v11208_v1, %v9945_v45  ;;  %v12878_v18 = vunpack.i.h.bf16 %v16887_v17  ;;  %v20692_v1 = vld [vmem:[#allocation81_spill] sm:$0xff] }
 0x3eb   :  { %v16939_v37 = vpop.f32.mrf.mxu1  ;;  %v12877_v63 = vunpack.i.l.bf16 %v16887_v17  ;;  %v3839_v51 = vsel %vm3787_vm5, %v3774_v12, %v12873_v11  ;;  %v3838_v27 = vsel %vm3787_vm5, %v3773_v56, %v12872_v52  ;;  %v11643_v42 = vunpack.i.h.bf16 %v20690_v7 }
 0x3ec   :  { %9813 = vmatmul.msk.bf16.gmra.mxu0 %vm4119_vm9, %v4071_v39  ;;  %v3904_v35 = vsel %vm3852_vm6, %v3839_v51, %v12878_v18  ;;  %v11642_v0 = vunpack.i.l.bf16 %v20690_v7  ;;  %v11803_v43 = vunpack.i.h.bf16 %v20691_v30  ;;  %v11802_v45 = vunpack.i.l.bf16 %v20691_v30  ;;  %v13465_v18 = vld [vmem:[#allocation2 + $0xe8] sm:$0xff] }
 0x3ed   :  { %6829 = vmatpush.bf16.msrb.mxu0 %v9946_v58  ;;  %v3903_v2 = vsel %vm3852_vm6, %v3838_v27, %v12877_v63  ;;  %v11963_v56 = vunpack.i.h.bf16 %v20692_v1  ;;  %v11962_v12 = vunpack.i.l.bf16 %v20692_v1  ;;  %v5506_v58 = vsel %vm3982_vm8, %v16917_v4, %v12793_v23 }
 0x3ee   :  { %v16934_v31 = vpop.permute.xlu1 %12865  ;;  %v16941_v24 = vpop.permute.xlu0 %12890 }
 0x3ef   :  { %v12868_v15 = vunpack.i.h.bf16 %v16934_v31  ;;  %v12867_v55 = vunpack.i.l.bf16 %v16934_v31  ;;  %v12886_v13 = vpop.permute.xlu2 %12885  ;;  %v16985_v19 = vpop.f32.mrf.mxu3  ;;  %v12893_v32 = vunpack.i.h.bf16 %v16941_v24  ;;  %v12892_v11 = vunpack.i.l.bf16 %v16941_v24 }
 0x3f0   :  { %v12888_v38 = vunpack.i.h.bf16 %v12886_v13  ;;  %v12887_v59 = vunpack.i.l.bf16 %v12886_v13 }
 0x3f1   :  { %v6272_v50 = vpop.f32.mrf.mxu2  ;;  %v5698_v9 = vsel %vm5543_vm10, %v5634_v34, %v12867_v55  ;;  %v5699_v10 = vsel %vm5543_vm10, %v5635_v49, %v12868_v15  ;;  %v17025_v63 = vsel %vm3722_vm0, %v13465_v18, %v12893_v32  ;;  %v5571_v4 = vsel %vm5543_vm10, %v5506_v58, %v12868_v15  ;;  %v9947_v18 = vld [vmem:[%s20277_s6 + $0x28] sm:$0xf0] }
 0x3f2   :  { %v5772_v60 = vpack.c.bf16 %v5699_v10, %v5698_v9  ;;  %v13464_v9 = vld [vmem:[%s20272_s0 + $0x1a8] sm:$0xff] }
 0x3f3   :  { %v4319_v21 = vpop.f32.mrf.mxu0  ;;  %v16995_v25 = vpop.f32.mrf.mxu1  ;;  %v3581_v10 = vsel %vm3527_vm2, %v13464_v9, %v11643_v42 }
 0x3f4   :  { %v4320_v39 = vadd.f32 %v16980_v44, %v4319_v21  ;;  %6306 = vmatmul.bf16.gmra.mxu2 %v5772_v60 }
 0x3f6   :  { %v4425_v40 = vmax.f32 %v4320_v39, 0.0  ;;  %6152 = vmatmul.bf16.gmra.mxu1 %v5780_v61  ;;  %v12881_v33 = vpop.permute.xlu1 %12880  ;;  %v16997_v13 = vpop.permute.xlu0 %12905  ;;  %v5505_v61 = vsel %vm3982_vm8, %v16920_v36, %v12792_v8  ;;  %v13466_v39 = vld [vmem:[#allocation2 + $0xe0] sm:$0xff] }
 0x3f7   :  { %v12883_v17 = vunpack.i.h.bf16 %v12881_v33  ;;  %v12882_v5 = vunpack.i.l.bf16 %v12881_v33  ;;  %v16993_v29 = vpop.permute.xlu2 %12900  ;;  %v17028_v51 = vsel %vm3722_vm0, %v13466_v39, %v12892_v11  ;;  %v5570_v23 = vsel %vm5543_vm10, %v5505_v61, %v12867_v55  ;;  %v6463_v36 = vpop.f32.mrf.mxu3  ;;  %v20693_v55 = vld [vmem:[#allocation91_spill] sm:$0xff] }
 0x3f8   :  { %4569 = vst.msk [vmem:[#allocation2 + $0x160] sm:$0xff] %vm3722_vm0, %v4425_v40  ;;  %v12902_v8 = vunpack.i.l.bf16 %v16993_v29  ;;  %v12122_v31 = vunpack.i.l.bf16 %v20693_v55  ;;  %v12907_v32 = vunpack.i.l.bf16 %v16997_v13 }
 0x3f9   :  { %v3968_v54 = vsel %vm3917_vm7, %v3903_v2, %v12882_v5  ;;  %v3969_v28 = vsel %vm3917_vm7, %v3904_v35, %v12883_v17  ;;  %v6274_v3 = vpop.f32.mrf.mxu2  ;;  %v12123_v5 = vunpack.i.h.bf16 %v20693_v55  ;;  %v13467_v2 = vld [vmem:[%s20272_s0 + $0x1a0] sm:$0xff] }
 0x3fa   :  { %v4033_v34 = vsel %vm3982_vm8, %v3968_v54, %v12887_v59  ;;  %v4034_v49 = vsel %vm3982_vm8, %v3969_v28, %v12888_v38  ;;  %v12903_v59 = vunpack.i.h.bf16 %v16993_v29  ;;  %v3580_v35 = vsel %vm3527_vm2, %v13467_v2, %v11642_v0 }
 0x3fb   :  { %v4321_v52 = vpop.f32.mrf.mxu0  ;;  %v4072_v50 = vpack.c.bf16 %v4034_v49, %v4033_v34  ;;  %v12908_v54 = vunpack.i.h.bf16 %v16997_v13  ;;  %v3646_v34 = vsel %vm3592_vm3, %v3581_v10, %v11803_v43  ;;  %v3645_v49 = vsel %vm3592_vm3, %v3580_v35, %v11802_v45 }
 0x3fc   :  { %v4322_v60 = vadd.f32 %v16980_v44, %v4321_v52  ;;  %v5783_v52 = vpack.c.bf16 %v5571_v4, %v5570_v23  ;;  %v3710_v0 = vsel %vm3657_vm4, %v3645_v49, %v11962_v12  ;;  %v11207_v12 = vld [vmem:[%s20277_s6 + $0x24] sm:$0xf] }
 0x3fd   :  { %9814 = vmatmul.msk.bf16.gmra.mxu0 %vm4119_vm9, %v4072_v50  ;;  %v3711_v50 = vsel %vm3657_vm4, %v3646_v34, %v11963_v56  ;;  %v3775_v9 = vsel %vm3722_vm0, %v3710_v0, %v12122_v31  ;;  %v9950_v36 = vor.u32 %v11207_v12, %v9947_v18  ;;  %v5507_v0 = vsel %vm3982_vm8, %v17028_v51, %v12827_v41 }
 0x3fe   :  { %v4426_v24 = vmax.f32 %v4322_v60, 0.0  ;;  %v17014_v21 = vpop.permute.xlu1 %12895  ;;  %v12921_v11 = vpop.permute.xlu0 %12920  ;;  %v3776_v30 = vsel %vm3722_vm0, %v3711_v50, %v12123_v5  ;;  %v3840_v13 = vsel %vm3787_vm5, %v3775_v9, %v12907_v32 }
 0x3ff   :  { %v12898_v27 = vunpack.i.h.bf16 %v17014_v21  ;;  %v12897_v38 = vunpack.i.l.bf16 %v17014_v21  ;;  %v4641_v6 = vld [vmem:[#allocation2 + $0x160] sm:$0xff]  ;;  %v12916_v28 = vpop.permute.xlu2 %12915  ;;  %v3841_v10 = vsel %vm3787_vm5, %v3776_v30, %v12908_v54  ;;  %v12922_v61 = vunpack.i.l.bf16 %v12921_v11  ;;  %6842 = vmatpush.bf16.msrb.mxu1 %v9950_v36 }
 0x400   :  { %4570 = vst.msk [vmem:[#allocation2 + $0x168] sm:$0xff] %vm3722_vm0, %v4426_v24  ;;  %v13034_v40 = vpack.i.bf16 %v4641_v6, %v16851_v14  ;;  %v12918_v60 = vunpack.i.h.bf16 %v12916_v28  ;;  %v12917_v43 = vunpack.i.l.bf16 %v12916_v28  ;;  %v12923_v24 = vunpack.i.h.bf16 %v12921_v11  ;;  %v20694_v54 = vld [vmem:[#allocation12_spill] sm:$0xff]  ;;  %v20695_v11 = vld [vmem:[#allocation25_spill] sm:$0xff] }
 0x401   :  { %v5636_v33 = vsel %vm3982_vm8, %v17028_v51, %v12897_v38  ;;  %v5637_v17 = vsel %vm3982_vm8, %v17025_v63, %v12898_v27  ;;  %v6277_v15 = vpop.f32.mrf.mxu2  ;;  %v11648_v28 = vunpack.i.h.bf16 %v20694_v54  ;;  %v11807_v20 = vunpack.i.l.bf16 %v20695_v11 }
 0x402   :  { %v17052_v7 = vpop.f32.mrf.mxu1  ;;  %v5700_v14 = vsel %vm5543_vm10, %v5636_v33, %v12902_v8  ;;  %v5701_v42 = vsel %vm5543_vm10, %v5637_v17, %v12903_v59  ;;  %13035 = vrot.lane.b32.xlu2 %v13034_v40, %s13535_s14  ;;  %13000 = vrot.lane.b32.xlu1 %v13034_v40, %s13541_s25  ;;  %v6466_v15 = vpop.f32.mrf.mxu3 }
 0x403   :  { %v5775_v3 = vpack.c.bf16 %v5701_v42, %v5700_v14  ;;  %v13471_v15 = vld [vmem:[%s20272_s0 + $0x1b8] sm:$0xff] }
 0x405   :  { %6311 = vmatmul.bf16.gmra.mxu2 %v5775_v3  ;;  %v11647_v3 = vunpack.i.l.bf16 %v20694_v54 }
 0x406   :  { %6157 = vmatmul.bf16.gmra.mxu1 %v5783_v52  ;;  %v12911_v1 = vpop.permute.xlu1 %12910  ;;  %v17101_v34 = vpop.permute.xlu0 %12935  ;;  %v11808_v52 = vunpack.i.h.bf16 %v20695_v11 }
 0x407   :  { %v12913_v45 = vunpack.i.h.bf16 %v12911_v1  ;;  %v12912_v58 = vunpack.i.l.bf16 %v12911_v1  ;;  %v17076_v56 = vld [vmem:[#allocation2 + $0x168] sm:$0xff]  ;;  %v17097_v2 = vpop.permute.xlu2 %12930  ;;  %v5572_v1 = vsel %vm5543_vm10, %v5507_v0, %v12902_v8 }
 0x408   :  { %v13009_v23 = vpack.i.bf16 %v17076_v56, %v4641_v6  ;;  %v5788_v4 = vpack.c.bf16 %v17076_v56, %v4641_v6  ;;  %v12933_v9 = vunpack.i.h.bf16 %v17097_v2 }
 0x409   :  { %v3906_v39 = vsel %vm3852_vm6, %v3841_v10, %v12913_v45  ;;  %v3905_v40 = vsel %vm3852_vm6, %v3840_v13, %v12912_v58  ;;  %v6279_v17 = vpop.f32.mrf.mxu2  ;;  %v12938_v10 = vunpack.i.h.bf16 %v17101_v34  ;;  %v13468_v45 = vld [vmem:[#allocation2 + $0xf8] sm:$0xff] }
 0x40a   :  { %v3971_v33 = vsel %vm3917_vm7, %v3906_v39, %v12918_v60  ;;  %v17089_v55 = vpop.f32.mrf.mxu1  ;;  %v3970_v5 = vsel %vm3917_vm7, %v3905_v40, %v12917_v43  ;;  %13010 = vrot.lane.b32.xlu0 %v13009_v23, %s13537_s18  ;;  %9907 = vmatmul.msk.bf16.gmra.mxu3 %vm3722_vm0, %v5788_v4  ;;  %v5508_v60 = vsel %vm3982_vm8, %v17025_v63, %v12828_v47  ;;  %v12932_v43 = vunpack.i.l.bf16 %v17097_v2  ;;  %v13469_v63 = vld [vmem:[#allocation2 + $0xf0] sm:$0xff]  ;;  %v20697_v39 = vld [vmem:[#allocation100_spill] sm:$0xff] }
 0x40b   :  { %v4324_v31 = vpop.f32.mrf.mxu0  ;;  %v4035_v6 = vsel %vm3982_vm8, %v3970_v5, %v12922_v61  ;;  %v4036_v42 = vsel %vm3982_vm8, %v3971_v33, %v12923_v24  ;;  %v5573_v51 = vsel %vm5543_vm10, %v5508_v60, %v12903_v59  ;;  %v12937_v47 = vunpack.i.l.bf16 %v17101_v34  ;;  %v20696_v61 = vld [vmem:[#allocation80_spill] sm:$0xff]  ;;  %v13470_v33 = vld [vmem:[%s20272_s0 + $0x1b0] sm:$0xff] }
 0x40c   :  { %v4325_v14 = vadd.f32 %v16980_v44, %v4324_v31  ;;  %v4073_v35 = vpack.c.bf16 %v4036_v42, %v4035_v6  ;;  %v11968_v58 = vunpack.i.h.bf16 %v20696_v61  ;;  %v11967_v29 = vunpack.i.l.bf16 %v20696_v61  ;;  %v17158_v42 = vpop.f32.mrf.mxu3  ;;  %v17217_v34 = vld [vmem:[%s20276_s5] ss:$0 sm:$0xff] }
 0x40d   :  { %v12127_v23 = vunpack.i.l.bf16 %v20697_v39  ;;  %v5786_v36 = vpack.c.bf16 %v5573_v51, %v5572_v1  ;;  %v3582_v17 = vsel %vm3527_vm2, %v13470_v33, %v11647_v3  ;;  %v12128_v5 = vunpack.i.h.bf16 %v20697_v39 }
 0x40e   :  { %v4427_v49 = vmax.f32 %v4325_v14, 0.0  ;;  %v12926_v32 = vpop.permute.xlu1 %12925  ;;  %9815 = vmatmul.msk.bf16.gmra.mxu0 %vm4119_vm9, %v4073_v35  ;;  %v3583_v14 = vsel %vm3527_vm2, %v13471_v15, %v11648_v28  ;;  %v3647_v6 = vsel %vm3592_vm3, %v3582_v17, %v11807_v20  ;;  %v6116_v15 = vadd.f32 %v16667_v46, %v16995_v25 }
 0x40f   :  { %v12928_v50 = vunpack.i.h.bf16 %v12926_v32  ;;  %v12927_v30 = vunpack.i.l.bf16 %v12926_v32  ;;  %v3712_v3 = vsel %vm3657_vm4, %v3647_v6, %v11967_v29  ;;  %v12946_v28 = vpop.permute.xlu2 %12945 }
 0x410   :  { %4571 = vst.msk [vmem:[#allocation2 + $0x170] sm:$0xff] %vm3722_vm0, %v4427_v49  ;;  %v3648_v49 = vsel %vm3592_vm3, %v3583_v14, %v11808_v52  ;;  %v6114_v52 = vadd.f32 %v16667_v46, %v16939_v37  ;;  %v12947_v51 = vunpack.i.l.bf16 %v12946_v28 }
 0x411   :  { %v17121_v41 = vsel %vm3722_vm0, %v13468_v45, %v12928_v50  ;;  %v5445_v13 = vsel %vm3722_vm0, %v13469_v63, %v12927_v30  ;;  %v3713_v0 = vsel %vm3657_vm4, %v3648_v49, %v11968_v58  ;;  %v3777_v30 = vsel %vm3722_vm0, %v3712_v3, %v12127_v23  ;;  %v12951_v63 = vpop.permute.xlu0 %12950  ;;  %v10047_v58 = vld [vmem:[%s20277_s6 + $0xe0] sm:$0xf] }
 0x412   :  { %v17129_v8 = vpop.f32.mrf.mxu1  ;;  %v5639_v24 = vsel %vm3982_vm8, %v17121_v41, %v12933_v9  ;;  %v5638_v59 = vsel %vm3982_vm8, %v5445_v13, %v12932_v43  ;;  %v3778_v1 = vsel %vm3722_vm0, %v3713_v0, %v12128_v5  ;;  %v12948_v45 = vunpack.i.h.bf16 %v12946_v28 }
 0x413   :  { %v4326_v12 = vpop.f32.mrf.mxu0  ;;  %v5703_v18 = vsel %vm5543_vm10, %v5639_v24, %v12938_v10  ;;  %v5702_v40 = vsel %vm5543_vm10, %v5638_v59, %v12937_v47  ;;  %v12953_v59 = vunpack.i.h.bf16 %v12951_v63  ;;  %v5509_v5 = vsel %vm3982_vm8, %v5445_v13, %v12862_v62 }
 0x414   :  { %v4327_v4 = vadd.f32 %v16980_v44, %v4326_v12  ;;  %v5778_v31 = vpack.c.bf16 %v5703_v18, %v5702_v40  ;;  %v12952_v18 = vunpack.i.l.bf16 %v12951_v63  ;;  %v5574_v49 = vsel %vm5543_vm10, %v5509_v5, %v12937_v47  ;;  %v17228_v63 = vld [vmem:[#allocation2 + $0x190] sm:$0xff] }
 0x416   :  { %v4428_v35 = vmax.f32 %v4327_v4, 0.0  ;;  %6162 = vmatmul.bf16.gmra.mxu1 %v5786_v36  ;;  %v12941_v54 = vpop.permute.xlu1 %12940  ;;  %6316 = vmatmul.bf16.gmra.mxu2 %v5778_v31  ;;  %v5510_v31 = vsel %vm3982_vm8, %v17121_v41, %v12863_v57 }
 0x417   :  { %v12943_v32 = vunpack.i.h.bf16 %v12941_v54  ;;  %v12942_v11 = vunpack.i.l.bf16 %v12941_v54  ;;  %v4643_v50 = vld [vmem:[#allocation2 + $0x170] sm:$0xff]  ;;  %v5575_v3 = vsel %vm5543_vm10, %v5510_v31, %v12938_v10  ;;  %v6119_v10 = vadd.f32 %v17217_v34, %v17052_v7 }
 0x418   :  { %4572 = vst.msk [vmem:[#allocation2 + $0x178] sm:$0xff] %vm3722_vm0, %v4428_v35  ;;  %v13049_v60 = vpack.i.bf16 %v4643_v50, %v17076_v56  ;;  %v11232_v56 = vld [vmem:[%s20277_s6 + $0xe4] sm:$0xf0]  ;;  %v6124_v31 = vadd.f32 %v17217_v34, %v17129_v8 }
 0x419   :  { %v6282_v20 = vpop.f32.mrf.mxu2  ;;  %v3843_v24 = vsel %vm3787_vm5, %v3778_v1, %v12943_v32  ;;  %v3842_v61 = vsel %vm3787_vm5, %v3777_v30, %v12942_v11  ;;  %v10048_v23 = vor.u32 %v11232_v56, %v10047_v58  ;;  %v5789_v30 = vpack.c.bf16 %v5575_v3, %v5574_v49 }
 0x41a   :  { %13050 = vrot.lane.b32.xlu2 %v13049_v60, %s13535_s14  ;;  %v6283_v29 = vadd.f32 %v6282_v20, %v6114_v52  ;;  %13015 = vrot.lane.b32.xlu1 %v13049_v60, %s13541_s25  ;;  %v6125_v37 = vpop.f32.mrf.mxu1  ;;  %v3907_v4 = vsel %vm3852_vm6, %v3842_v61, %v12947_v51  ;;  %v3908_v36 = vsel %vm3852_vm6, %v3843_v24, %v12948_v45  ;;  %v4646_v60 = vld [vmem:[#allocation2 + $0x188] sm:$0xff] }
 0x41b   :  { %v4329_v12 = vpop.f32.mrf.mxu0  ;;  %7072 = vmatpush.bf16.msrb.mxu2 %v10048_v23  ;;  %v3972_v62 = vsel %vm3917_vm7, %v3907_v4, %v12952_v18  ;;  %v3973_v48 = vsel %vm3917_vm7, %v3908_v36, %v12953_v59  ;;  %v13079_v61 = vpack.i.bf16 %v17228_v63, %v4646_v60  ;;  %v6121_v56 = vadd.f32 %v17217_v34, %v17089_v55  ;;  %v12961_v4 = vpop.permute.xlu2 %12960 }
 0x41c   :  { %v4330_v39 = vadd.f32 %v16980_v44, %v4329_v12  ;;  %v6452_v40 = vadd.f32 %v16792_v26, %v6283_v29  ;;  %v17194_v26 = vpop.f32.mrf.mxu3 }
 0x41e   :  { %v4429_v33 = vmax.f32 %v4330_v39, 0.0  ;;  %v12956_v17 = vpop.permute.xlu1 %12955  ;;  %v6599_v14 = vmax.f32 %v6452_v40, 0.0 }
 0x41f   :  { %v12958_v6 = vunpack.i.h.bf16 %v12956_v17  ;;  %v12957_v35 = vunpack.i.l.bf16 %v12956_v17  ;;  %v17192_v54 = vld [vmem:[#allocation2 + $0x178] sm:$0xff]  ;;  %v12962_v17 = vunpack.i.l.bf16 %v12961_v4 }
 0x420   :  { %4573 = vst.msk [vmem:[#allocation2 + $0x180] sm:$0xff] %vm3722_vm0, %v4429_v33  ;;  %v13024_v13 = vpack.i.bf16 %v17192_v54, %v4643_v50  ;;  %v5791_v57 = vpack.c.bf16 %v17192_v54, %v4643_v50  ;;  %v12963_v33 = vunpack.i.h.bf16 %v12961_v4 }
 0x421   :  { %6663 = vst.msk [vmem:[#allocation3 + $0x40] sm:$0xff] %vm3982_vm8, %v6599_v14  ;;  %v4037_v46 = vsel %vm3982_vm8, %v3972_v62, %v12957_v35  ;;  %v4038_v25 = vsel %vm3982_vm8, %v3973_v48, %v12958_v6  ;;  %v6284_v41 = vpop.f32.mrf.mxu2  ;;  %v13473_v14 = vld [vmem:[#allocation2 + $0x108] sm:$0xff]  ;;  %v13474_v35 = vld [vmem:[#allocation2 + $0x100] sm:$0xff] }
 0x422   :  { %v4074_v32 = vpack.c.bf16 %v4038_v25, %v4037_v46  ;;  %v6285_v11 = vadd.f32 %v6284_v41, %v6116_v15  ;;  %13025 = vrot.lane.b32.xlu0 %v13024_v13, %s13537_s18  ;;  %9908 = vmatmul.msk.bf16.gmra.mxu3 %vm3722_vm0, %v5791_v57  ;;  %v6128_v28 = vpop.f32.mrf.mxu1  ;;  %v5448_v6 = vsel %vm3722_vm0, %v13473_v14, %v12963_v33 }
 0x423   :  { %v4331_v50 = vpop.f32.mrf.mxu0  ;;  %v5447_v62 = vsel %vm3722_vm0, %v13474_v35, %v12962_v17 }
 0x424   :  { %v6454_v0 = vadd.f32 %v16824_v16, %v6285_v11  ;;  %9816 = vmatmul.msk.bf16.gmra.mxu0 %vm4119_vm9, %v4074_v32  ;;  %v17223_v51 = vpop.f32.mrf.mxu3  ;;  %v5511_v3 = vsel %vm3982_vm8, %v5447_v62, %v12897_v38  ;;  %v5512_v32 = vsel %vm3982_vm8, %v5448_v6, %v12898_v27  ;;  %v12976_v11 = vpop.permute.xlu2 %12975 }
 0x426   :  { %v6600_v1 = vmax.f32 %v6454_v0, 0.0  ;;  %6167 = vmatmul.bf16.gmra.mxu1 %v5789_v30 }
 0x427   :  { %v4645_v47 = vld [vmem:[#allocation2 + $0x180] sm:$0xff] }
 0x428   :  { %6664 = vst.msk [vmem:[#allocation3 + $0x48] sm:$0xff] %vm3982_vm8, %v6600_v1  ;;  %v13064_v16 = vpack.i.bf16 %v4645_v47, %v17192_v54  ;;  %v13039_v52 = vpack.i.bf16 %v4646_v60, %v4645_v47  ;;  %v5794_v12 = vpack.c.bf16 %v4646_v60, %v4645_v47 }
 0x429   :  { %v6287_v45 = vpop.f32.mrf.mxu2 }
 0x42a   :  { %v6288_v20 = vadd.f32 %v6287_v45, %v6119_v10  ;;  %13065 = vrot.lane.b32.xlu2 %v13064_v16, %s13535_s14  ;;  %13040 = vrot.lane.b32.xlu0 %v13039_v52, %s13537_s18  ;;  %v17232_v58 = vpop.f32.mrf.mxu1  ;;  %v12978_v45 = vunpack.i.h.bf16 %v12976_v11 }
 0x42b   :  { %13030 = vrot.lane.b32.xlu1 %v13064_v16, %s13541_s25 }
 0x42c   :  { %v6457_v24 = vadd.f32 %v16878_v53, %v6288_v20  ;;  %v17240_v53 = vpop.f32.mrf.mxu3  ;;  %v12977_v20 = vunpack.i.l.bf16 %v12976_v11  ;;  %v6131_v11 = vadd.f32 %v17217_v34, %v17232_v58 }
 0x42e   :  { %v6601_v7 = vmax.f32 %v6457_v24, 0.0 }
 0x430   :  { %6665 = vst.msk [vmem:[#allocation3 + $0x50] sm:$0xff] %vm3982_vm8, %v6601_v7 }
 0x431   :  { %v4334_v29 = vpop.f32.mrf.mxu0  ;;  %v6289_v37 = vpop.f32.mrf.mxu2 }
 0x432   :  { %v6290_v59 = vadd.f32 %v6289_v37, %v6121_v56  ;;  %13080 = vrot.lane.b32.xlu2 %v13079_v61, %s13535_s14  ;;  %9909 = vmatmul.msk.bf16.gmra.mxu3 %vm3722_vm0, %v5794_v12  ;;  %v17244_v55 = vpop.f32.mrf.mxu1  ;;  %v13475_v29 = vld [vmem:[#allocation2 + $0x118] sm:$0xff]  ;;  %v13476_v12 = vld [vmem:[#allocation2 + $0x110] sm:$0xff] }
 0x433   :  { %13045 = vrot.lane.b32.xlu1 %v13079_v61, %s13541_s25  ;;  %v5450_v37 = vsel %vm3722_vm0, %v13475_v29, %v12978_v45 }
 0x434   :  { %v6459_v18 = vadd.f32 %v16914_v22, %v6290_v59  ;;  %v17247_v5 = vpop.f32.mrf.mxu3  ;;  %v17252_v22 = vpop.permute.xlu0 %12965  ;;  %v5449_v59 = vsel %vm3722_vm0, %v13476_v12, %v12977_v20  ;;  %v5514_v14 = vsel %vm3982_vm8, %v5450_v37, %v12933_v9 }
 0x435   :  { %v12968_v13 = vunpack.i.h.bf16 %v17252_v22  ;;  %v12967_v57 = vunpack.i.l.bf16 %v17252_v22 }
 0x436   :  { %v6602_v39 = vmax.f32 %v6459_v18, 0.0 }
 0x437   :  { %v5641_v38 = vsel %vm3982_vm8, %v5448_v6, %v12968_v13 }
 0x438   :  { %6666 = vst.msk [vmem:[#allocation3 + $0x58] sm:$0xff] %vm3982_vm8, %v6602_v39 }
 0x439   :  { %v4336_v23 = vpop.f32.mrf.mxu0 }
 0x43a   :  { %v4337_v36 = vadd.f32 %v16980_v44, %v4336_v23  ;;  %v17258_v25 = vpop.f32.mrf.mxu1 }
 0x43b   :  { %v6136_v29 = vadd.f32 %v17217_v34, %v17258_v25  ;;  %v12991_v25 = vpop.permute.xlu2 %12990 }
 0x43c   :  { %v4432_v40 = vmax.f32 %v4337_v36, 0.0  ;;  %v6481_v52 = vpop.f32.mrf.mxu3 }
 0x43d   :  { %v6134_v52 = vadd.f32 %v17217_v34, %v17244_v55 }
 0x43e   :  { %4576 = vst.msk [vmem:[#allocation2 + $0x198] sm:$0xff] %vm3722_vm0, %v4432_v40 }
 0x43f   :  { %v6292_v15 = vpop.f32.mrf.mxu2 }
 0x440   :  { %v6293_v48 = vadd.f32 %v6292_v15, %v6124_v31  ;;  %v5513_v15 = vsel %vm3982_vm8, %v5449_v59, %v12932_v43 }
 0x442   :  { %v4339_v46 = vpop.f32.mrf.mxu0  ;;  %v6462_v41 = vadd.f32 %v16985_v19, %v6293_v48  ;;  %v5640_v19 = vsel %vm3982_vm8, %v5447_v62, %v12967_v57 }
 0x443   :  { %v4340_v8 = vadd.f32 %v16980_v44, %v4339_v46  ;;  %v12971_v49 = vpop.permute.xlu1 %12970  ;;  %v17289_v23 = vpop.f32.mrf.mxu1 }
 0x444   :  { %v6603_v50 = vmax.f32 %v6462_v41, 0.0  ;;  %v12973_v30 = vunpack.i.h.bf16 %v12971_v49  ;;  %v12972_v28 = vunpack.i.l.bf16 %v12971_v49  ;;  %v6483_v41 = vpop.f32.mrf.mxu3 }
 0x445   :  { %v4433_v0 = vmax.f32 %v4340_v8, 0.0  ;;  %v4648_v60 = vld [vmem:[#allocation2 + $0x198] sm:$0xff]  ;;  %v13477_v41 = vld [vmem:[#allocation2 + $0x120] sm:$0xff] }
 0x446   :  { %v13054_v1 = vpack.i.bf16 %v4648_v60, %v17228_v63  ;;  %v5797_v21 = vpack.c.bf16 %v4648_v60, %v17228_v63  ;;  %6667 = vst.msk [vmem:[#allocation3 + $0x60] sm:$0xff] %vm3982_vm8, %v6603_v50  ;;  %v5576_v27 = vsel %vm5543_vm10, %v5511_v3, %v12972_v28  ;;  %v5577_v47 = vsel %vm5543_vm10, %v5512_v32, %v12973_v30 }
 0x447   :  { %v5704_v10 = vsel %vm5543_vm10, %v5640_v19, %v12972_v28  ;;  %v5705_v16 = vsel %vm5543_vm10, %v5641_v38, %v12973_v30  ;;  %4577 = vst.msk [vmem:[#allocation2 + $0x1a0] sm:$0xff] %vm3722_vm0, %v4433_v0  ;;  %v6294_v24 = vpop.f32.mrf.mxu2  ;;  %v5792_v7 = vpack.c.bf16 %v5577_v47, %v5576_v27 }
 0x448   :  { %13055 = vrot.lane.b32.xlu0 %v13054_v1, %s13537_s18  ;;  %v5781_v63 = vpack.c.bf16 %v5705_v16, %v5704_v10  ;;  %9910 = vmatmul.msk.bf16.gmra.mxu3 %vm3722_vm0, %v5797_v21 }
 0x449   :  { %6172 = vmatmul.bf16.gmra.mxu1 %v5792_v7 }
 0x44a   :  { %6321 = vmatmul.bf16.gmra.mxu2 %v5781_v63  ;;  %v4341_v61 = vpop.f32.mrf.mxu0  ;;  %v4653_v63 = vld [vmem:[#allocation2 + $0x1c0] sm:$0xff] }
 0x44b   :  { %v4342_v56 = vadd.f32 %v16980_v44, %v4341_v61  ;;  %v17287_v18 = vpop.permute.xlu0 %12980  ;;  %v12986_v39 = vpop.permute.xlu1 %12985 }
 0x44c   :  { %v12983_v36 = vunpack.i.h.bf16 %v17287_v18  ;;  %v12982_v40 = vunpack.i.l.bf16 %v17287_v18  ;;  %v12988_v33 = vunpack.i.h.bf16 %v12986_v39  ;;  %v12987_v17 = vunpack.i.l.bf16 %v12986_v39  ;;  %v17315_v50 = vpop.f32.mrf.mxu1  ;;  %v17321_v58 = vpop.f32.mrf.mxu3 }
 0x44d   :  { %v4434_v4 = vmax.f32 %v4342_v56, 0.0 }
 0x44e   :  { %v4649_v31 = vld [vmem:[#allocation2 + $0x1a0] sm:$0xff]  ;;  %v5578_v62 = vsel %vm5543_vm10, %v5513_v15, %v12987_v17  ;;  %v5579_v48 = vsel %vm5543_vm10, %v5514_v14, %v12988_v33  ;;  %v5643_v8 = vsel %vm3982_vm8, %v5450_v37, %v12983_v36  ;;  %v5642_v2 = vsel %vm3982_vm8, %v5449_v59, %v12982_v40 }
 0x44f   :  { %4578 = vst.msk [vmem:[#allocation2 + $0x1a8] sm:$0xff] %vm3722_vm0, %v4434_v4  ;;  %v13094_v35 = vpack.i.bf16 %v4649_v31, %v4648_v60  ;;  %v5795_v46 = vpack.c.bf16 %v5579_v48, %v5578_v62  ;;  %v5706_v49 = vsel %vm5543_vm10, %v5642_v2, %v12987_v17  ;;  %v5707_v3 = vsel %vm5543_vm10, %v5643_v8, %v12988_v33  ;;  %v17340_v17 = vld [vmem:[#allocation2 + $0x1c8] sm:$0xff] }
 0x450   :  { %v6297_v6 = vpop.f32.mrf.mxu2  ;;  %v5784_v28 = vpack.c.bf16 %v5707_v3, %v5706_v49  ;;  %v12993_v62 = vunpack.i.h.bf16 %v12991_v25 }
 0x451   :  { %13095 = vrot.lane.b32.xlu2 %v13094_v35, %s13535_s14  ;;  %13060 = vrot.lane.b32.xlu1 %v13094_v35, %s13541_s25  ;;  %v13099_v6 = vpack.i.bf16 %v17340_v17, %v4653_v63  ;;  %v12992_v35 = vunpack.i.l.bf16 %v12991_v25 }
 0x453   :  { %v4344_v9 = vpop.f32.mrf.mxu0  ;;  %v17346_v48 = vpop.permute.xlu0 %12995  ;;  %v5451_v8 = vsel %vm3722_vm0, %v13477_v41, %v12992_v35 }
 0x454   :  { %v4345_v43 = vadd.f32 %v16980_v44, %v4344_v9  ;;  %v6143_v45 = vpop.f32.mrf.mxu1  ;;  %v17331_v61 = vpop.f32.mrf.mxu3  ;;  %v12998_v2 = vunpack.i.h.bf16 %v17346_v48  ;;  %v13478_v9 = vld [vmem:[#allocation2 + $0x128] sm:$0xff] }
 0x456   :  { %v4435_v32 = vmax.f32 %v4345_v43, 0.0  ;;  %v4650_v0 = vld [vmem:[#allocation2 + $0x1a8] sm:$0xff]  ;;  %v5452_v43 = vsel %vm3722_vm0, %v13478_v9, %v12993_v62 }
 0x457   :  { %v13069_v60 = vpack.i.bf16 %v4650_v0, %v4649_v31  ;;  %v5800_v1 = vpack.c.bf16 %v4650_v0, %v4649_v31 }
 0x458   :  { %4579 = vst.msk [vmem:[#allocation2 + $0x1b0] sm:$0xff] %vm3722_vm0, %v4435_v32  ;;  %v6299_v30 = vpop.f32.mrf.mxu2  ;;  %v6139_v32 = vadd.f32 %v17217_v34, %v17289_v23  ;;  %v5806_v23 = vpack.c.bf16 %v17340_v17, %v4653_v63 }
 0x459   :  { %v6300_v19 = vadd.f32 %v6299_v30, %v6131_v11  ;;  %6177 = vmatmul.bf16.gmra.mxu1 %v5795_v46  ;;  %13070 = vrot.lane.b32.xlu0 %v13069_v60, %s13537_s18  ;;  %v5515_v30 = vsel %vm3982_vm8, %v5451_v8, %v12967_v57  ;;  %v11206_v57 = vld [vmem:[%s20277_s6 + $0x14] sm:$0xf0] }
 0x45a   :  { %6326 = vmatmul.bf16.gmra.mxu2 %v5784_v28  ;;  %9911 = vmatmul.msk.bf16.gmra.mxu3 %vm3722_vm0, %v5800_v1  ;;  %v5645_v28 = vsel %vm3982_vm8, %v5452_v43, %v12998_v2 }
 0x45b   :  { %v6469_v38 = vadd.f32 %v17158_v42, %v6300_v19  ;;  %v4346_v21 = vpop.f32.mrf.mxu0  ;;  %v5516_v19 = vsel %vm3982_vm8, %v5452_v43, %v12968_v13 }
 0x45c   :  { %v4347_v27 = vadd.f32 %v16980_v44, %v4346_v21 }
 0x45d   :  { %v6606_v47 = vmax.f32 %v6469_v38, 0.0  ;;  %v17343_v15 = vpop.f32.mrf.mxu3  ;;  %v9937_v38 = vld [vmem:[%s20277_s6 + $0x10] sm:$0xf] }
 0x45e   :  { %v4436_v10 = vmax.f32 %v4347_v27, 0.0 }
 0x45f   :  { %6670 = vst.msk [vmem:[#allocation3 + $0x78] sm:$0xff] %vm3982_vm8, %v6606_v47  ;;  %v4651_v16 = vld [vmem:[#allocation2 + $0x1b0] sm:$0xff] }
 0x460   :  { %4580 = vst.msk [vmem:[#allocation2 + $0x1b8] sm:$0xff] %vm3722_vm0, %v4436_v10  ;;  %v13109_v42 = vpack.i.bf16 %v4651_v16, %v4650_v0 }
 0x461   :  { %v6302_v20 = vpop.f32.mrf.mxu2 }
 0x462   :  { %v6303_v24 = vadd.f32 %v6302_v20, %v6134_v52  ;;  %13110 = vrot.lane.b32.xlu2 %v13109_v42, %s13535_s14  ;;  %13075 = vrot.lane.b32.xlu1 %v13109_v42, %s13541_s25  ;;  %v9938_v52 = vor.u32 %v11206_v57, %v9937_v38 }
 0x464   :  { %v6472_v7 = vadd.f32 %v17194_v26, %v6303_v24  ;;  %v6145_v26 = vpop.f32.mrf.mxu1  ;;  %6830 = vmatpush.bf16.msrb.mxu0 %v9938_v52 }
 0x465   :  { %v17377_v21 = vpop.f32.mrf.mxu3 }
 0x466   :  { %v6607_v56 = vmax.f32 %v6472_v7, 0.0 }
 0x467   :  { %v4652_v55 = vld [vmem:[#allocation2 + $0x1b8] sm:$0xff] }
 0x468   :  { %6671 = vst.msk [vmem:[#allocation3 + $0x80] sm:$0xff] %vm3982_vm8, %v6607_v56  ;;  %v13124_v37 = vpack.i.bf16 %v4653_v63, %v4652_v55  ;;  %v13084_v12 = vpack.i.bf16 %v4652_v55, %v4651_v16  ;;  %v5803_v59 = vpack.c.bf16 %v4652_v55, %v4651_v16  ;;  %v6141_v56 = vadd.f32 %v17217_v34, %v17315_v50 }
 0x469   :  { %v4349_v39 = vpop.f32.mrf.mxu0  ;;  %v6304_v4 = vpop.f32.mrf.mxu2 }
 0x46a   :  { %v6305_v33 = vadd.f32 %v6304_v4, %v6136_v29  ;;  %13125 = vrot.lane.b32.xlu2 %v13124_v37, %s13535_s14  ;;  %13085 = vrot.lane.b32.xlu0 %v13084_v12, %s13537_s18  ;;  %v11205_v12 = vld [vmem:[%s20277_s6 + $0x14] sm:$0xf] }
 0x46b   :  { %13090 = vrot.lane.b32.xlu1 %v13124_v37, %s13541_s25  ;;  %9912 = vmatmul.msk.bf16.gmra.mxu3 %vm3722_vm0, %v5803_v59  ;;  %v9939_v59 = vld [vmem:[%s20277_s6 + $0x18] sm:$0xf0] }
 0x46c   :  { %v6474_v31 = vadd.f32 %v17223_v51, %v6305_v33  ;;  %v12997_v51 = vunpack.i.l.bf16 %v17346_v48  ;;  %v17354_v49 = vpop.f32.mrf.mxu1  ;;  %v9942_v4 = vor.u32 %v11205_v12, %v9939_v59  ;;  %v13484_v48 = vld [vmem:[%s20272_s0 + $0x208] sm:$0xff] }
 0x46d   :  { %v17392_v55 = vpop.f32.mrf.mxu3 }
 0x46e   :  { %v6608_v14 = vmax.f32 %v6474_v31, 0.0  ;;  %v5644_v60 = vsel %vm3982_vm8, %v5451_v8, %v12997_v51  ;;  %6843 = vmatpush.bf16.msrb.mxu1 %v9942_v4  ;;  %v13006_v31 = vpop.permute.xlu2 %13005 }
 0x46f   :  { %v13007_v41 = vunpack.i.l.bf16 %v13006_v31 }
 0x470   :  { %6672 = vst.msk [vmem:[#allocation3 + $0x88] sm:$0xff] %vm3982_vm8, %v6608_v14 }
 0x471   :  { %v4351_v46 = vpop.f32.mrf.mxu0 }
 0x472   :  { %13100 = vrot.lane.b32.xlu0 %v13099_v6, %s13537_s18  ;;  %v13008_v46 = vunpack.i.h.bf16 %v13006_v31 }
 0x474   :  { %v13001_v3 = vpop.permute.xlu1 %13000  ;;  %v17389_v29 = vpop.f32.mrf.mxu1 }
 0x475   :  { %v13003_v11 = vunpack.i.h.bf16 %v13001_v3  ;;  %v13002_v0 = vunpack.i.l.bf16 %v13001_v3 }
 0x477   :  { %v6307_v1 = vpop.f32.mrf.mxu2  ;;  %v5580_v47 = vsel %vm5543_vm10, %v5515_v30, %v13002_v0  ;;  %v5581_v10 = vsel %vm5543_vm10, %v5516_v19, %v13003_v11  ;;  %v5708_v22 = vsel %vm5543_vm10, %v5644_v60, %v13002_v0  ;;  %v5709_v16 = vsel %vm5543_vm10, %v5645_v28, %v13003_v11  ;;  %v13480_v11 = vld [vmem:[#allocation2 + $0x130] sm:$0xff] }
 0x478   :  { %v6308_v27 = vadd.f32 %v6307_v1, %v6139_v32  ;;  %v5798_v13 = vpack.c.bf16 %v5581_v10, %v5580_v47  ;;  %v5787_v20 = vpack.c.bf16 %v5709_v16, %v5708_v22  ;;  %v5453_v0 = vsel %vm3722_vm0, %v13480_v11, %v13007_v41  ;;  %v13483_v41 = vld [vmem:[#allocation2 + $0x140] sm:$0xff] }
 0x479   :  { %v5517_v1 = vsel %vm3982_vm8, %v5453_v0, %v12982_v40 }
 0x47a   :  { %v6477_v42 = vadd.f32 %v17240_v53, %v6308_v27  ;;  %v4354_v45 = vpop.f32.mrf.mxu0  ;;  %6182 = vmatmul.bf16.gmra.mxu1 %v5798_v13  ;;  %6331 = vmatmul.bf16.gmra.mxu2 %v5787_v20 }
 0x47b   :  { %v4355_v24 = vadd.f32 %v16980_v44, %v4354_v45  ;;  %9913 = vmatmul.msk.bf16.gmra.mxu3 %vm3722_vm0, %v5806_v23 }
 0x47c   :  { %v6609_v7 = vmax.f32 %v6477_v42, 0.0  ;;  %v17404_v35 = vpop.permute.xlu0 %13010  ;;  %v17407_v8 = vpop.f32.mrf.mxu1 }
 0x47d   :  { %v4439_v63 = vmax.f32 %v4355_v24, 0.0  ;;  %v13013_v9 = vunpack.i.h.bf16 %v17404_v35  ;;  %v13012_v43 = vunpack.i.l.bf16 %v17404_v35  ;;  %v13021_v24 = vpop.permute.xlu2 %13020 }
 0x47e   :  { %6673 = vst.msk [vmem:[#allocation3 + $0x90] sm:$0xff] %vm3982_vm8, %v6609_v7  ;;  %v13481_v7 = vld [vmem:[%s20274_s3] ss:$0 sm:$0xff]  ;;  %v13023_v12 = vunpack.i.h.bf16 %v13021_v24 }
 0x47f   :  { %4583 = vst.msk [vmem:[#allocation2 + $0x1d0] sm:$0xff] %vm3722_vm0, %v4439_v63  ;;  %v6309_v53 = vpop.f32.mrf.mxu2  ;;  %v5646_v57 = vsel %vm3982_vm8, %v5453_v0, %v13012_v43 }
 0x480   :  { %v6310_v37 = vadd.f32 %v6309_v53, %v6141_v56  ;;  %v10039_v56 = vld [vmem:[%s20277_s6 + $0xd0] sm:$0xf]  ;;  %v11230_v53 = vld [vmem:[%s20277_s6 + $0xd4] sm:$0xf0] }
 0x481   :  { %v10040_v4 = vor.u32 %v11230_v53, %v10039_v56 }
 0x482   :  { %v4356_v39 = vpop.f32.mrf.mxu0  ;;  %v6479_v50 = vadd.f32 %v17247_v5, %v6310_v37  ;;  %v6498_v5 = vpop.f32.mrf.mxu3 }
 0x483   :  { %v4357_v33 = vadd.f32 %v16980_v44, %v4356_v39  ;;  %7073 = vmatpush.bf16.msrb.mxu2 %v10040_v4 }
 0x484   :  { %v6610_v26 = vmax.f32 %v6479_v50, 0.0  ;;  %v17434_v42 = vpop.f32.mrf.mxu1  ;;  %v13022_v50 = vunpack.i.l.bf16 %v13021_v24 }
 0x485   :  { %v4440_v25 = vmax.f32 %v4357_v33, 0.0  ;;  %v6149_v33 = vadd.f32 %v17217_v34, %v17354_v49 }
 0x486   :  { %v4655_v14 = vld [vmem:[#allocation2 + $0x1d0] sm:$0xff]  ;;  %6674 = vst.msk [vmem:[#allocation3 + $0x98] sm:$0xff] %vm3982_vm8, %v6610_v26  ;;  %v5455_v49 = vsel %vm3722_vm0, %v13483_v41, %v13022_v50  ;;  %v13486_v41 = vld [vmem:[#allocation2 + $0x158] sm:$0xff] }
 0x487   :  { %v13139_v6 = vpack.i.bf16 %v4655_v14, %v17340_v17  ;;  %4584 = vst.msk [vmem:[#allocation2 + $0x1d8] sm:$0xff] %vm3722_vm0, %v4440_v25  ;;  %v13479_v17 = vld [vmem:[#allocation2 + $0x138] sm:$0xff] }
 0x488   :  { %v6312_v62 = vpop.f32.mrf.mxu2  ;;  %v5454_v32 = vsel %vm3722_vm0, %v13479_v17, %v13008_v46 }
 0x489   :  { %13140 = vrot.lane.b32.xlu2 %v13139_v6, %s13535_s14  ;;  %13105 = vrot.lane.b32.xlu1 %v13139_v6, %s13541_s25  ;;  %v5518_v60 = vsel %vm3982_vm8, %v5454_v32, %v12983_v36  ;;  %v5647_v38 = vsel %vm3982_vm8, %v5454_v32, %v13013_v9  ;;  %v13482_v62 = vld [vmem:[#allocation2 + $0x148] sm:$0xff]  ;;  %v5519_v32 = vsel %vm3982_vm8, %v5455_v49, %v12997_v51 }
 0x48a   :  { %v5456_v46 = vsel %vm3722_vm0, %v13482_v62, %v13023_v12 }
 0x48b   :  { %v4359_v3 = vpop.f32.mrf.mxu0  ;;  %v5520_v17 = vsel %vm3982_vm8, %v5456_v46, %v12998_v2  ;;  %v13485_v2 = vld [vmem:[%s20272_s0 + $0x210] sm:$0xff] }
 0x48c   :  { %v4360_v30 = vadd.f32 %v16980_v44, %v4359_v3  ;;  %v13016_v28 = vpop.permute.xlu1 %13015  ;;  %v17464_v11 = vpop.f32.mrf.mxu1  ;;  %v13169_v51 = vpack.i.bf16 %v13485_v2, %v13484_v48 }
 0x48d   :  { %v13018_v19 = vunpack.i.h.bf16 %v13016_v28  ;;  %v13017_v23 = vunpack.i.l.bf16 %v13016_v28  ;;  %v6501_v45 = vpop.f32.mrf.mxu3 }
 0x48e   :  { %v4441_v44 = vmax.f32 %v4360_v30, 0.0  ;;  %v4656_v27 = vld [vmem:[#allocation2 + $0x1d8] sm:$0xff]  ;;  %v1905_v45 = vld [vmem:[%s20272_s0 + $0x248] sm:$0xff] }
 0x48f   :  { %v13114_v10 = vpack.i.bf16 %v4656_v27, %v4655_v14  ;;  %v5582_v36 = vsel %vm5543_vm10, %v5517_v1, %v13017_v23  ;;  %v5583_v18 = vsel %vm5543_vm10, %v5518_v60, %v13018_v19  ;;  %v5710_v40 = vsel %vm5543_vm10, %v5646_v57, %v13017_v23 }
 0x490   :  { %v6314_v47 = vpop.f32.mrf.mxu2  ;;  %4585 = vst.msk [vmem:[#allocation2 + $0x1e0] sm:$0xff] %vm3722_vm0, %v4441_v44  ;;  %v5801_v22 = vpack.c.bf16 %v5583_v18, %v5582_v36  ;;  %v5711_v13 = vsel %vm5543_vm10, %v5647_v38, %v13018_v19  ;;  %v5809_v16 = vpack.c.bf16 %v4656_v27, %v4655_v14  ;;  %v6151_v60 = vadd.f32 %v17217_v34, %v17389_v29 }
 0x491   :  { %13115 = vrot.lane.b32.xlu0 %v13114_v10, %s13537_s18  ;;  %v5790_v52 = vpack.c.bf16 %v5711_v13, %v5710_v40 }
 0x492   :  { %6187 = vmatmul.bf16.gmra.mxu1 %v5801_v22  ;;  %9914 = vmatmul.msk.bf16.gmra.mxu3 %vm3722_vm0, %v5809_v16 }
 0x493   :  { %6336 = vmatmul.bf16.gmra.mxu2 %v5790_v52  ;;  %v4361_v20 = vpop.f32.mrf.mxu0  ;;  %v17492_v52 = vld [vmem:[%s20272_s0 + $0x240] sm:$0xff] }
 0x494   :  { %v4362_v63 = vadd.f32 %v13481_v7, %v4361_v20  ;;  %v17446_v59 = vpop.permute.xlu0 %13025  ;;  %v13036_v20 = vpop.permute.xlu2 %13035  ;;  %v17505_v53 = vpack.i.bf16 %v1905_v45, %v17492_v52 }
 0x495   :  { %v13027_v31 = vunpack.i.l.bf16 %v17446_v59  ;;  %v13028_v6 = vunpack.i.h.bf16 %v17446_v59  ;;  %v17466_v0 = vpop.f32.mrf.mxu3  ;;  %v13037_v12 = vunpack.i.l.bf16 %v13036_v20 }
 0x496   :  { %v4442_v37 = vmax.f32 %v4362_v63, 0.0 }
 0x497   :  { %v4657_v39 = vld [vmem:[#allocation2 + $0x1e0] sm:$0xff]  ;;  %v5649_v19 = vsel %vm3982_vm8, %v5456_v46, %v13028_v6  ;;  %v4660_v46 = vld [vmem:[#allocation2 + $0x1f8] sm:$0xff] }
 0x498   :  { %4586 = vst.msk [vmem:[#allocation2 + $0x1e8] sm:$0xff] %vm3722_vm0, %v4442_v37  ;;  %v13154_v26 = vpack.i.bf16 %v4657_v39, %v4656_v27  ;;  %v13038_v37 = vunpack.i.h.bf16 %v13036_v20 }
 0x499   :  { %v6317_v25 = vpop.f32.mrf.mxu2 }
 0x49a   :  { %v6318_v14 = vadd.f32 %v6317_v25, %v6149_v33  ;;  %13155 = vrot.lane.b32.xlu2 %v13154_v26, %s13535_s14  ;;  %13120 = vrot.lane.b32.xlu1 %v13154_v26, %s13541_s25  ;;  %v17510_v26 = vld [vmem:[#allocation2 + $0x218] sm:$0xff]  ;;  %v17512_v25 = vld [vmem:[#allocation2 + $0x220] sm:$0xff] }
 0x49c   :  { %v6487_v5 = vadd.f32 %v17321_v58, %v6318_v14  ;;  %v5648_v58 = vsel %vm3982_vm8, %v5455_v49, %v13027_v31  ;;  %v17502_v63 = vpop.permute.xlu0 %13040  ;;  %v5458_v49 = vsel %vm3722_vm0, %v13486_v41, %v13038_v37 }
 0x49d   :  { %v13031_v3 = vpop.permute.xlu1 %13030  ;;  %v13042_v33 = vunpack.i.l.bf16 %v17502_v63 }
 0x49e   :  { %v13033_v30 = vunpack.i.h.bf16 %v13031_v3  ;;  %v13032_v28 = vunpack.i.l.bf16 %v13031_v3  ;;  %v6613_v1 = vmax.f32 %v6487_v5, 0.0  ;;  %v13487_v5 = vld [vmem:[#allocation2 + $0x150] sm:$0xff] }
 0x49f   :  { %v4658_v23 = vld [vmem:[#allocation2 + $0x1e8] sm:$0xff]  ;;  %v5457_v3 = vsel %vm3722_vm0, %v13487_v5, %v13037_v12  ;;  %v17592_v5 = vld [vmem:[%s20272_s0 + $0x258] sm:$0xff] }
 0x4a0   :  { %v5584_v29 = vsel %vm5543_vm10, %v5519_v32, %v13032_v28  ;;  %v5585_v38 = vsel %vm5543_vm10, %v5520_v17, %v13033_v30  ;;  %v5712_v57 = vsel %vm5543_vm10, %v5648_v58, %v13032_v28  ;;  %6677 = vst.msk [vmem:[#allocation3 + $0xb0] sm:$0xff] %vm3982_vm8, %v6613_v1  ;;  %v13129_v27 = vpack.i.bf16 %v4658_v23, %v4657_v39 }
 0x4a1   :  { %v4364_v44 = vpop.f32.mrf.mxu0  ;;  %v5804_v47 = vpack.c.bf16 %v5585_v38, %v5584_v29  ;;  %v5713_v10 = vsel %vm5543_vm10, %v5649_v19, %v13033_v30  ;;  %v5812_v36 = vpack.c.bf16 %v4658_v23, %v4657_v39  ;;  %v6319_v40 = vpop.f32.mrf.mxu2  ;;  %v5522_v17 = vsel %vm3982_vm8, %v5458_v49, %v13013_v9  ;;  %v4661_v19 = vld [vmem:[#allocation2 + $0x200] sm:$0xff]  ;;  %v4662_v29 = vld [vmem:[#allocation2 + $0x208] sm:$0xff] }
 0x4a2   :  { %v4365_v18 = vadd.f32 %v13481_v7, %v4364_v44  ;;  %v5793_v22 = vpack.c.bf16 %v5713_v10, %v5712_v57  ;;  %v6320_v13 = vadd.f32 %v6319_v40, %v6151_v60  ;;  %13170 = vrot.lane.b32.xlu2 %v13169_v51, %s13536_s17  ;;  %13130 = vrot.lane.b32.xlu0 %v13129_v27, %s13537_s18  ;;  %v6160_v39 = vpop.f32.mrf.mxu1  ;;  %v1906_v10 = vld [vmem:[%s20272_s0 + $0x250] sm:$0xff] }
 0x4a3   :  { %6192 = vmatmul.bf16.gmra.mxu1 %v5804_v47  ;;  %9915 = vmatmul.msk.bf16.gmra.mxu3 %vm3722_vm0, %v5812_v36  ;;  %v5521_v32 = vsel %vm3982_vm8, %v5457_v3, %v13012_v43  ;;  %v17526_v28 = vpack.i.bf16 %v17512_v25, %v17510_v26  ;;  %v5650_v58 = vsel %vm3982_vm8, %v5457_v3, %v13042_v33  ;;  %v17558_v40 = vld [vmem:[#allocation2 + $0x210] sm:$0xff]  ;;  %v13490_v3 = vld [vmem:[#allocation2 + $0x168] sm:$0xff] }
 0x4a4   :  { %v4443_v16 = vmax.f32 %v4365_v18, 0.0  ;;  %6341 = vmatmul.bf16.gmra.mxu2 %v5793_v22  ;;  %v6489_v24 = vadd.f32 %v17331_v61, %v6320_v13  ;;  %v13043_v61 = vunpack.i.h.bf16 %v17502_v63  ;;  %v13159_v27 = vpack.i.bf16 %v4662_v29, %v4661_v19  ;;  %v17566_v13 = vld [vmem:[%s20272_s0 + $0x230] sm:$0xff] }
 0x4a5   :  { %v17500_v7 = vpop.f32.mrf.mxu3  ;;  %v13046_v4 = vpop.permute.xlu1 %13045  ;;  %v17547_v47 = vpack.i.bf16 %v4661_v19, %v4660_v46  ;;  %v13214_v36 = vpack.i.bf16 %v1906_v10, %v1905_v45  ;;  %v13164_v20 = vpack.i.bf16 %v17558_v40, %v4662_v29 }
 0x4a6   :  { %4587 = vst.msk [vmem:[#allocation2 + $0x1f0] sm:$0xff] %vm3722_vm0, %v4443_v16  ;;  %v6614_v56 = vmax.f32 %v6489_v24, 0.0  ;;  %v13048_v14 = vunpack.i.h.bf16 %v13046_v4  ;;  %v13047_v62 = vunpack.i.l.bf16 %v13046_v4  ;;  %v5651_v60 = vsel %vm3982_vm8, %v5458_v49, %v13043_v61  ;;  %v13489_v16 = vld [vmem:[%s20272_s0 + $0x238] sm:$0xff]  ;;  %v17573_v24 = vld [vmem:[#allocation2 + $0x228] sm:$0xff] }
 0x4a7   :  { %v13174_v45 = vpack.i.bf16 %v13489_v16, %v17566_v13  ;;  %v13229_v37 = vpack.i.bf16 %v17573_v24, %v17512_v25  ;;  %v17587_v49 = vpack.i.bf16 %v17492_v52, %v13489_v16  ;;  %v13194_v16 = vpack.i.bf16 %v17510_v26, %v17558_v40 }
 0x4a8   :  { %6678 = vst.msk [vmem:[#allocation3 + $0xb8] sm:$0xff] %vm3982_vm8, %v6614_v56  ;;  %v5586_v35 = vsel %vm5543_vm10, %v5521_v32, %v13047_v62  ;;  %v5587_v43 = vsel %vm5543_vm10, %v5522_v17, %v13048_v14  ;;  %v5714_v2 = vsel %vm5543_vm10, %v5650_v58, %v13047_v62  ;;  %v5715_v51 = vsel %vm5543_vm10, %v5651_v60, %v13048_v14  ;;  %v13051_v56 = vpop.permute.xlu2 %13050  ;;  %v13491_v32 = vld [vmem:[#allocation2 + $0x160] sm:$0xff] }
 0x4a9   :  { %v4366_v50 = vpop.f32.mrf.mxu0  ;;  %v5796_v57 = vpack.c.bf16 %v5715_v51, %v5714_v2  ;;  %v13053_v39 = vunpack.i.h.bf16 %v13051_v56  ;;  %v13052_v4 = vunpack.i.l.bf16 %v13051_v56 }
 0x4aa   :  { %13185 = vrot.lane.b32.xlu2 %v17505_v53, %s13537_s18  ;;  %v6163_v38 = vpop.f32.mrf.mxu1  ;;  %v5818_v50 = vpack.c.bf16 %v4662_v29, %v4661_v19  ;;  %v13244_v19 = vpack.i.bf16 %v17592_v5, %v1906_v10 }
 0x4ab   :  { %v5460_v17 = vsel %vm3722_vm0, %v13490_v3, %v13053_v39 }
 0x4ac   :  { %v5524_v52 = vsel %vm3982_vm8, %v5460_v17, %v13028_v6 }
 0x4ad   :  { %v4659_v30 = vld [vmem:[#allocation2 + $0x1f0] sm:$0xff]  ;;  %v17536_v9 = vpop.f32.mrf.mxu3 }
 0x4ae   :  { %v13144_v1 = vpack.i.bf16 %v4660_v46, %v4659_v30  ;;  %v17534_v48 = vpack.i.bf16 %v4659_v30, %v4658_v23  ;;  %v5807_v23 = vpack.c.bf16 %v5587_v43, %v5586_v35  ;;  %v5815_v44 = vpack.c.bf16 %v4660_v46, %v4659_v30 }
 0x4af   :  { %v5459_v30 = vsel %vm3722_vm0, %v13491_v32, %v13052_v4 }
 0x4b0   :  { %13145 = vrot.lane.b32.xlu0 %v13144_v1, %s13537_s18  ;;  %13135 = vrot.lane.b32.xlu1 %v17534_v48, %s13541_s25  ;;  %v5523_v1 = vsel %vm3982_vm8, %v5459_v30, %v13027_v31 }
 0x4b2   :  { %13200 = vrot.lane.b32.xlu2 %v17526_v28, %s13541_s25  ;;  %v17561_v22 = vpop.f32.mrf.mxu1 }
 0x4b3   :  { %6197 = vmatmul.bf16.gmra.mxu1 %v5807_v23  ;;  %9916 = vmatmul.msk.bf16.gmra.mxu3 %vm3722_vm0, %v5815_v44  ;;  %v13066_v44 = vpop.permute.xlu2 %13065 }
 0x4b4   :  { %6346 = vmatmul.bf16.gmra.mxu2 %v5796_v57  ;;  %v6154_v57 = vadd.f32 %v17217_v34, %v17407_v8  ;;  %v13068_v56 = vunpack.i.h.bf16 %v13066_v44  ;;  %v13067_v8 = vunpack.i.l.bf16 %v13066_v44  ;;  %v6159_v44 = vadd.f32 %v17217_v34, %v17464_v11 }
 0x4b5   :  { %v17556_v18 = vpop.f32.mrf.mxu3 }
 0x4b8   :  { %13160 = vrot.lane.b32.xlu0 %v13159_v27, %s13537_s18  ;;  %13150 = vrot.lane.b32.xlu1 %v17547_v47, %s13541_s25  ;;  %v13493_v27 = vld [vmem:[%s20272_s0 + $0x220] sm:$0xff] }
 0x4ba   :  { %13215 = vrot.lane.b32.xlu2 %v13214_v36, %s13539_s29  ;;  %v17577_v12 = vpop.permute.xlu0 %13055  ;;  %v17603_v35 = vpop.f32.mrf.mxu1 }
 0x4bb   :  { %v13057_v14 = vunpack.i.l.bf16 %v17577_v12  ;;  %v13058_v46 = vunpack.i.h.bf16 %v17577_v12  ;;  %v13498_v12 = vld [vmem:[%s20272_s0 + $0x228] sm:$0xff] }
 0x4bd   :  { %v17582_v62 = vpop.f32.mrf.mxu3  ;;  %v5652_v43 = vsel %vm3982_vm8, %v5459_v30, %v13057_v14  ;;  %v5653_v6 = vsel %vm3982_vm8, %v5460_v17, %v13058_v46  ;;  %v5462_v17 = vsel %vm3722_vm0, %v17192_v54, %v13068_v56  ;;  %v6156_v30 = vadd.f32 %v17217_v34, %v17434_v42 }
 0x4c0   :  { %13175 = vrot.lane.b32.xlu0 %v13174_v45, %s13538_s19  ;;  %13165 = vrot.lane.b32.xlu1 %v13164_v20, %s13541_s25 }
 0x4c2   :  { %13230 = vrot.lane.b32.xlu2 %v13229_v37, %s13537_s18  ;;  %v17633_v39 = vpop.f32.mrf.mxu1 }
 0x4c3   :  { %v13061_v41 = vpop.permute.xlu1 %13060  ;;  %9917 = vmatmul.msk.bf16.gmra.mxu3 %vm3722_vm0, %v5818_v50  ;;  %v5821_v50 = vpack.c.bf16 %v17510_v26, %v17558_v40  ;;  %v5526_v26 = vsel %vm3982_vm8, %v5462_v17, %v13043_v61 }
 0x4c4   :  { %v13063_v60 = vunpack.i.h.bf16 %v13061_v41  ;;  %v13062_v58 = vunpack.i.l.bf16 %v13061_v41 }
 0x4c6   :  { %v5588_v2 = vsel %vm5543_vm10, %v5523_v1, %v13062_v58  ;;  %v5589_v51 = vsel %vm5543_vm10, %v5524_v52, %v13063_v60  ;;  %v5716_v31 = vsel %vm5543_vm10, %v5652_v43, %v13062_v58  ;;  %v5717_v29 = vsel %vm5543_vm10, %v5653_v6, %v13063_v60  ;;  %v13494_v60 = vld [vmem:[#allocation2 + $0x170] sm:$0xff] }
 0x4c7   :  { %v5810_v59 = vpack.c.bf16 %v5589_v51, %v5588_v2  ;;  %v5799_v38 = vpack.c.bf16 %v5717_v29, %v5716_v31 }
 0x4c8   :  { %13190 = vrot.lane.b32.xlu0 %v17534_v48, %s13535_s14  ;;  %13180 = vrot.lane.b32.xlu1 %v17587_v49, %s13539_s29  ;;  %v13492_v48 = vld [vmem:[%s20272_s0 + $0x218] sm:$0xff] }
 0x4c9   :  { %6202 = vmatmul.bf16.gmra.mxu1 %v5810_v59  ;;  %6351 = vmatmul.bf16.gmra.mxu2 %v5799_v38  ;;  %v13204_v10 = vpack.i.bf16 %v13493_v27, %v13492_v48  ;;  %v17672_v38 = vld [vmem:[#allocation2 + $0x230] sm:$0xff] }
 0x4ca   :  { %13245 = vrot.lane.b32.xlu2 %v13244_v19, %s13538_s19  ;;  %v17666_v6 = vpop.f32.mrf.mxu1 }
 0x4cb   :  { %v6516_v23 = vpop.f32.mrf.mxu3  ;;  %v17631_v37 = vpop.permute.xlu0 %13070 }
 0x4cc   :  { %v13073_v41 = vunpack.i.h.bf16 %v17631_v37  ;;  %v13072_v3 = vunpack.i.l.bf16 %v17631_v37  ;;  %v4670_v37 = vld [vmem:[#allocation2 + $0x248] sm:$0xff] }
 0x4cd   :  { %v6322_v36 = vpop.f32.mrf.mxu2 }
 0x4ce   :  { %v6323_v45 = vadd.f32 %v6322_v36, %v6154_v57  ;;  %v5655_v1 = vsel %vm3982_vm8, %v5462_v17, %v13073_v41  ;;  %v13081_v57 = vpop.permute.xlu2 %13080  ;;  %v1908_v17 = vld [vmem:[%s20272_s0 + $0x260] sm:$0xff] }
 0x4cf   :  { %v13083_v48 = vunpack.i.h.bf16 %v13081_v57 }
 0x4d0   :  { %13205 = vrot.lane.b32.xlu0 %v13204_v10, %s13536_s17  ;;  %v6492_v4 = vadd.f32 %v17343_v15, %v6323_v45  ;;  %13195 = vrot.lane.b32.xlu1 %v13194_v16, %s13537_s18  ;;  %v5461_v15 = vsel %vm3722_vm0, %v13494_v60, %v13067_v8  ;;  %v13082_v16 = vunpack.i.l.bf16 %v13081_v57  ;;  %v13497_v60 = vld [vmem:[#allocation2 + $0x180] sm:$0xff] }
 0x4d1   :  { %v5525_v52 = vsel %vm3982_vm8, %v5461_v15, %v13042_v33  ;;  %v5654_v61 = vsel %vm3982_vm8, %v5461_v15, %v13072_v3 }
 0x4d2   :  { %v6615_v32 = vmax.f32 %v6492_v4, 0.0  ;;  %13260 = vrot.lane.b32.xlu2 %v13164_v20, %s13535_s14  ;;  %v5463_v15 = vsel %vm3722_vm0, %v13497_v60, %v13082_v16 }
 0x4d3   :  { %v6518_v40 = vpop.f32.mrf.mxu3  ;;  %9918 = vmatmul.msk.bf16.gmra.mxu3 %vm3722_vm0, %v5821_v50  ;;  %v5824_v50 = vpack.c.bf16 %v17573_v24, %v17512_v25  ;;  %v5527_v25 = vsel %vm3982_vm8, %v5463_v15, %v13057_v14  ;;  %v13239_v14 = vpack.i.bf16 %v17566_v13, %v13498_v12  ;;  %v1909_v13 = vld [vmem:[%s20272_s0 + $0x268] sm:$0xff] }
 0x4d4   :  { %v13076_v58 = vpop.permute.xlu1 %13075  ;;  %6679 = vst.msk [vmem:[#allocation3 + $0xc0] sm:$0xff] %vm3982_vm8, %v6615_v32  ;;  %v13249_v40 = vpack.i.bf16 %v1908_v17, %v17592_v5 }
 0x4d5   :  { %v6324_v54 = vpop.f32.mrf.mxu2  ;;  %v13078_v20 = vunpack.i.h.bf16 %v13076_v58  ;;  %v13077_v42 = vunpack.i.l.bf16 %v13076_v58 }
 0x4d6   :  { %v6325_v43 = vadd.f32 %v6324_v54, %v6156_v30  ;;  %v17705_v30 = vld [vmem:[%s20276_s5] ss:$0 sm:$0xff]  ;;  %v13096_v57 = vpop.permute.xlu2 %13095 }
 0x4d7   :  { %v5590_v63 = vsel %vm5543_vm10, %v5525_v52, %v13077_v42  ;;  %v5591_v33 = vsel %vm5543_vm10, %v5526_v26, %v13078_v20  ;;  %v5718_v2 = vsel %vm5543_vm10, %v5654_v61, %v13077_v42  ;;  %v5719_v51 = vsel %vm5543_vm10, %v5655_v1, %v13078_v20  ;;  %v4668_v1 = vld [vmem:[#allocation2 + $0x238] sm:$0xff] }
 0x4d8   :  { %v6494_v59 = vadd.f32 %v17377_v21, %v6325_v43  ;;  %13220 = vrot.lane.b32.xlu0 %v13244_v19, %s13537_s18  ;;  %v5813_v31 = vpack.c.bf16 %v5591_v33, %v5590_v63  ;;  %v5802_v29 = vpack.c.bf16 %v5719_v51, %v5718_v2  ;;  %13210 = vrot.lane.b32.xlu1 %v17505_v53, %s13538_s19 }
 0x4d9   :  { %v17681_v21 = vpack.i.bf16 %v17672_v38, %v17573_v24  ;;  %v13264_v63 = vpack.i.bf16 %v4668_v1, %v17672_v38  ;;  %v13254_v33 = vpack.i.bf16 %v1909_v13, %v1908_v17  ;;  %v5827_v51 = vpack.c.bf16 %v4668_v1, %v17672_v38 }
 0x4da   :  { %v6616_v23 = vmax.f32 %v6494_v59, 0.0  ;;  %6207 = vmatmul.bf16.gmra.mxu1 %v5813_v31  ;;  %13275 = vrot.lane.b32.xlu2 %v17587_v49, %s13536_s17  ;;  %v13495_v49 = vld [vmem:[#allocation2 + $0x188] sm:$0xff]  ;;  %v9929_v59 = vld [vmem:[%s20277_s6] sm:$0xf]  ;;  %v13097_v38 = vunpack.i.l.bf16 %v13096_v57 }
 0x4db   :  { %6356 = vmatmul.bf16.gmra.mxu2 %v5802_v29  ;;  %v5464_v45 = vsel %vm3722_vm0, %v13495_v49, %v13083_v48  ;;  %v11204_v31 = vld [vmem:[%s20277_s6 + $0x4] sm:$0xf0]  ;;  %v4669_v29 = vld [vmem:[#allocation2 + $0x240] sm:$0xff] }
 0x4dc   :  { %6680 = vst.msk [vmem:[#allocation3 + $0xc8] sm:$0xff] %vm3982_vm8, %v6616_v23  ;;  %v17683_v19 = vpop.permute.xlu0 %13085  ;;  %v9930_v23 = vor.u32 %v11204_v31, %v9929_v59 }
 0x4dd   :  { %v6327_v53 = vpop.f32.mrf.mxu2  ;;  %v13091_v10 = vpop.permute.xlu1 %13090  ;;  %v13088_v11 = vunpack.i.h.bf16 %v17683_v19  ;;  %v13087_v56 = vunpack.i.l.bf16 %v17683_v19 }
 0x4de   :  { %v6328_v27 = vadd.f32 %v6327_v53, %v6159_v44  ;;  %v17685_v36 = vpop.f32.mrf.mxu3  ;;  %v13093_v8 = vunpack.i.h.bf16 %v13091_v10  ;;  %v13092_v4 = vunpack.i.l.bf16 %v13091_v10  ;;  %6831 = vmatpush.bf16.msrb.mxu0 %v9930_v23  ;;  %v17751_v44 = vpack.i.bf16 %v4669_v29, %v4668_v1 }
 0x4df   :  { %v5657_v24 = vsel %vm3982_vm8, %v5464_v45, %v13088_v11  ;;  %v5656_v26 = vsel %vm3982_vm8, %v5463_v15, %v13087_v56  ;;  %v13098_v53 = vunpack.i.h.bf16 %v13096_v57  ;;  %v5830_v1 = vpack.c.bf16 %v4670_v37, %v4669_v29 }
 0x4e0   :  { %v6497_v34 = vadd.f32 %v17392_v55, %v6328_v27  ;;  %13235 = vrot.lane.b32.xlu0 %v17681_v21, %s13541_s25  ;;  %13225 = vrot.lane.b32.xlu1 %v17547_v47, %s13535_s14  ;;  %v17700_v55 = vpop.f32.mrf.mxu1  ;;  %v5528_v47 = vsel %vm3982_vm8, %v5464_v45, %v13058_v46  ;;  %v5592_v46 = vsel %vm5543_vm10, %v5527_v25, %v13092_v4  ;;  %v1910_v45 = vld [vmem:[%s20272_s0 + $0x270] sm:$0xff]  ;;  %v13111_v25 = vpop.permute.xlu2 %13110 }
 0x4e1   :  { %v5593_v52 = vsel %vm5543_vm10, %v5528_v47, %v13093_v8  ;;  %v5720_v20 = vsel %vm5543_vm10, %v5656_v26, %v13092_v4  ;;  %v5721_v42 = vsel %vm5543_vm10, %v5657_v24, %v13093_v8  ;;  %v13499_v8 = vld [vmem:[#allocation2 + $0x198] sm:$0xff]  ;;  %v13113_v57 = vunpack.i.h.bf16 %v13111_v25 }
 0x4e2   :  { %v6617_v32 = vmax.f32 %v6497_v34, 0.0  ;;  %v5816_v5 = vpack.c.bf16 %v5593_v52, %v5592_v46  ;;  %v5805_v61 = vpack.c.bf16 %v5721_v42, %v5720_v20  ;;  %v1911_v34 = vld [vmem:[%s20272_s0 + $0x278] sm:$0xff]  ;;  %v5466_v4 = vsel %vm3722_vm0, %v13499_v8, %v13098_v53 }
 0x4e3   :  { %9919 = vmatmul.msk.bf16.gmra.mxu3 %vm3722_vm0, %v5824_v50  ;;  %v13289_v17 = vpack.i.bf16 %v1911_v34, %v1910_v45  ;;  %v5530_v24 = vsel %vm3982_vm8, %v5466_v4, %v13073_v41 }
 0x4e4   :  { %6681 = vst.msk [vmem:[#allocation3 + $0xd0] sm:$0xff] %vm3982_vm8, %v6617_v32  ;;  %v17753_v27 = vpop.permute.xlu0 %13100  ;;  %v13500_v32 = vld [vmem:[#allocation2 + $0x190] sm:$0xff] }
 0x4e5   :  { %v6329_v58 = vpop.f32.mrf.mxu2  ;;  %v13103_v10 = vunpack.i.h.bf16 %v17753_v27  ;;  %v13102_v16 = vunpack.i.l.bf16 %v17753_v27  ;;  %v5465_v60 = vsel %vm3722_vm0, %v13500_v32, %v13097_v38  ;;  %13290 = vrot.lane.b32.xlu2 %v13289_v17, %s13537_s18  ;;  %v13501_v32 = vld [vmem:[#allocation2 + $0x1a8] sm:$0xff] }
 0x4e6   :  { %v17729_v54 = vpop.f32.mrf.mxu3  ;;  %v5529_v26 = vsel %vm3982_vm8, %v5465_v60, %v13072_v3 }
 0x4e7   :  { %v5659_v58 = vsel %vm3982_vm8, %v5466_v4, %v13103_v10  ;;  %v5658_v12 = vsel %vm3982_vm8, %v5465_v60, %v13102_v16  ;;  %v5468_v60 = vsel %vm3722_vm0, %v13501_v32, %v13113_v57  ;;  %v6171_v57 = vadd.f32 %v17705_v30, %v17633_v39 }
 0x4e8   :  { %13250 = vrot.lane.b32.xlu0 %v13249_v40, %s13539_s29  ;;  %13240 = vrot.lane.b32.xlu1 %v13239_v14, %s13536_s17  ;;  %v6178_v43 = vpop.f32.mrf.mxu1  ;;  %v13284_v40 = vpack.i.bf16 %v1910_v45, %v1909_v13  ;;  %v13299_v13 = vpack.i.bf16 %v4670_v37, %v4669_v29  ;;  %v4671_v29 = vld [vmem:[#allocation2 + $0x250] sm:$0xff] }
 0x4e9   :  { %v6166_v43 = vadd.f32 %v17705_v30, %v17561_v22  ;;  %v13304_v38 = vpack.i.bf16 %v4671_v29, %v4670_v37 }
 0x4ea   :  { %6212 = vmatmul.bf16.gmra.mxu1 %v5816_v5 }
 0x4eb   :  { %6361 = vmatmul.bf16.gmra.mxu2 %v5805_v61 }
 0x4ed   :  { %13305 = vrot.lane.b32.xlu2 %v13304_v38, %s13541_s25 }
 0x4ee   :  { %v17739_v2 = vpop.f32.mrf.mxu3 }
 0x4f0   :  { %13265 = vrot.lane.b32.xlu0 %v13264_v63, %s13537_s18  ;;  %13255 = vrot.lane.b32.xlu1 %v13254_v33, %s13537_s18  ;;  %v6180_v48 = vpop.f32.mrf.mxu1  ;;  %v11203_v63 = vld [vmem:[%s20277_s6 + $0x4] sm:$0xf] }
 0x4f1   :  { %v13112_v48 = vunpack.i.l.bf16 %v13111_v25 }
 0x4f3   :  { %9920 = vmatmul.msk.bf16.gmra.mxu3 %vm3722_vm0, %v5827_v51 }
 0x4f6   :  { %v17760_v49 = vpop.f32.mrf.mxu3 }
 0x4f8   :  { %13280 = vrot.lane.b32.xlu0 %v13254_v33, %s13538_s19  ;;  %13270 = vrot.lane.b32.xlu1 %v17751_v44, %s13541_s25  ;;  %v17783_v14 = vpop.f32.mrf.mxu1  ;;  %v17803_v33 = vpop.permute.xlu2 %13125 }
 0x4f9   :  { %v13128_v38 = vunpack.i.h.bf16 %v17803_v33 }
 0x4fb   :  { %v13106_v50 = vpop.permute.xlu1 %13105 }
 0x4fc   :  { %v13108_v15 = vunpack.i.h.bf16 %v13106_v50  ;;  %v13107_v47 = vunpack.i.l.bf16 %v13106_v50  ;;  %v4672_v50 = vld [vmem:[#allocation2 + $0x258] sm:$0xff] }
 0x4fd   :  { %v6332_v52 = vpop.f32.mrf.mxu2  ;;  %v13314_v17 = vpack.i.bf16 %v4672_v50, %v4671_v29 }
 0x4fe   :  { %v5594_v46 = vsel %vm5543_vm10, %v5529_v26, %v13107_v47  ;;  %v5595_v41 = vsel %vm5543_vm10, %v5530_v24, %v13108_v15  ;;  %v5722_v20 = vsel %vm5543_vm10, %v5658_v12, %v13107_v47  ;;  %v5723_v42 = vsel %vm5543_vm10, %v5659_v58, %v13108_v15  ;;  %v17792_v61 = vpop.f32.mrf.mxu3  ;;  %v13502_v15 = vld [vmem:[#allocation2 + $0x1a0] sm:$0xff] }
 0x4ff   :  { %v5819_v3 = vpack.c.bf16 %v5595_v41, %v5594_v46  ;;  %v5808_v5 = vpack.c.bf16 %v5723_v42, %v5722_v20  ;;  %v5467_v47 = vsel %vm3722_vm0, %v13502_v15, %v13112_v48  ;;  %v5532_v24 = vsel %vm3982_vm8, %v5468_v60, %v13088_v11  ;;  %v4673_v20 = vld [vmem:[#allocation2 + $0x260] sm:$0xff]  ;;  %v17840_v42 = vld [vmem:[#allocation2 + $0x268] sm:$0xff] }
 0x500   :  { %13295 = vrot.lane.b32.xlu0 %v17526_v28, %s13535_s14  ;;  %13285 = vrot.lane.b32.xlu1 %v13284_v40, %s13539_s29  ;;  %v9931_v28 = vld [vmem:[%s20277_s6 + $0x8] sm:$0xf0]  ;;  %v17805_v59 = vpop.f32.mrf.mxu1  ;;  %v5531_v26 = vsel %vm3982_vm8, %v5467_v47, %v13087_v56  ;;  %v17825_v40 = vpop.permute.xlu2 %13140  ;;  %v10031_v48 = vld [vmem:[%s20277_s6 + $0xc0] sm:$0xf]  ;;  %v5836_v32 = vpack.c.bf16 %v17840_v42, %v4673_v20 }
 0x501   :  { %6217 = vmatmul.bf16.gmra.mxu1 %v5819_v3  ;;  %6366 = vmatmul.bf16.gmra.mxu2 %v5808_v5  ;;  %v9934_v22 = vor.u32 %v11203_v63, %v9931_v28  ;;  %v5833_v3 = vpack.c.bf16 %v4672_v50, %v4671_v29  ;;  %v13329_v5 = vpack.i.bf16 %v17840_v42, %v4673_v20 }
 0x503   :  { %9921 = vmatmul.msk.bf16.gmra.mxu3 %vm3722_vm0, %v5830_v1  ;;  %v17807_v31 = vpop.permute.xlu0 %13115  ;;  %6844 = vmatpush.bf16.msrb.mxu1 %v9934_v22  ;;  %v13319_v22 = vpack.i.bf16 %v4673_v20, %v4672_v50 }
 0x504   :  { %v13118_v45 = vunpack.i.h.bf16 %v17807_v31  ;;  %v13117_v34 = vunpack.i.l.bf16 %v17807_v31 }
 0x505   :  { %v6334_v51 = vpop.f32.mrf.mxu2  ;;  %13320 = vrot.lane.b32.xlu2 %v13319_v22, %s13541_s25 }
 0x506   :  { %v6335_v23 = vadd.f32 %v6334_v51, %v6166_v43  ;;  %v6533_v4 = vpop.f32.mrf.mxu3  ;;  %v5661_v58 = vsel %vm3982_vm8, %v5468_v60, %v13118_v45  ;;  %v5660_v12 = vsel %vm3982_vm8, %v5467_v47, %v13117_v34 }
 0x508   :  { %13310 = vrot.lane.b32.xlu0 %v17681_v21, %s13535_s14  ;;  %13300 = vrot.lane.b32.xlu1 %v13299_v13, %s13537_s18  ;;  %v6504_v53 = vadd.f32 %v17466_v0, %v6335_v23  ;;  %v6169_v13 = vadd.f32 %v17705_v30, %v17603_v35  ;;  %v17848_v43 = vpop.permute.xlu2 %13155 }
 0x50a   :  { %v6620_v8 = vmax.f32 %v6504_v53, 0.0  ;;  %v11228_v53 = vld [vmem:[%s20277_s6 + $0xc4] sm:$0xf0] }
 0x50b   :  { %v10032_v4 = vor.u32 %v11228_v53, %v10031_v48  ;;  %v20698_v53 = vld [vmem:[#allocation11_spill] sm:$0xff] }
 0x50c   :  { %v13121_v21 = vpop.permute.xlu1 %13120  ;;  %6684 = vst.msk [vmem:[#allocation3 + $0xe8] sm:$0xff] %vm3982_vm8, %v6620_v8 }
 0x50d   :  { %v13123_v0 = vunpack.i.h.bf16 %v13121_v21  ;;  %v13122_v25 = vunpack.i.l.bf16 %v13121_v21  ;;  %7074 = vmatpush.bf16.msrb.mxu2 %v10032_v4  ;;  %v4676_v4 = vld [vmem:[#allocation2 + $0x278] sm:$0xff] }
 0x50f   :  { %v17833_v46 = vpop.f32.mrf.mxu1  ;;  %v5596_v41 = vsel %vm5543_vm10, %v5531_v26, %v13122_v25  ;;  %v5597_v11 = vsel %vm5543_vm10, %v5532_v24, %v13123_v0  ;;  %v5724_v19 = vsel %vm5543_vm10, %v5660_v12, %v13122_v25  ;;  %v5725_v56 = vsel %vm5543_vm10, %v5661_v58, %v13123_v0  ;;  %v13503_v0 = vld [vmem:[#allocation2 + $0x1b8] sm:$0xff]  ;;  %v13504_v24 = vld [vmem:[#allocation2 + $0x1b0] sm:$0xff] }
 0x510   :  { %v5822_v37 = vpack.c.bf16 %v5597_v11, %v5596_v41  ;;  %v5811_v52 = vpack.c.bf16 %v5725_v56, %v5724_v19  ;;  %13315 = vrot.lane.b32.xlu1 %v13314_v17, %s13537_s18  ;;  %13325 = vrot.lane.b32.xlu0 %v17751_v44, %s13535_s14  ;;  %v17870_v39 = vpop.permute.xlu2 %13170  ;;  %v5470_v25 = vsel %vm3722_vm0, %v13503_v0, %v13128_v38  ;;  %v11653_v38 = vunpack.i.h.bf16 %v20698_v53 }
 0x511   :  { %v5534_v41 = vsel %vm3982_vm8, %v5470_v25, %v13103_v10 }
 0x512   :  { %6222 = vmatmul.bf16.gmra.mxu1 %v5822_v37  ;;  %6371 = vmatmul.bf16.gmra.mxu2 %v5811_v52  ;;  %v6174_v52 = vadd.f32 %v17705_v30, %v17666_v6 }
 0x513   :  { %9922 = vmatmul.msk.bf16.gmra.mxu3 %vm3722_vm0, %v5833_v3 }
 0x514   :  { %v17853_v23 = vpop.permute.xlu0 %13130 }
 0x515   :  { %v6536_v1 = vpop.f32.mrf.mxu3  ;;  %v13132_v21 = vunpack.i.l.bf16 %v17853_v23  ;;  %v13133_v60 = vunpack.i.h.bf16 %v17853_v23  ;;  %v11215_v23 = vld [vmem:[%s20277_s6 + $0x64] sm:$0xf] }
 0x516   :  { %v6337_v63 = vpop.f32.mrf.mxu2 }
 0x517   :  { %v17850_v28 = vpop.f32.mrf.mxu1  ;;  %v6338_v51 = vadd.f32 %v6337_v63, %v6169_v13  ;;  %v5663_v27 = vsel %vm3982_vm8, %v5470_v25, %v13133_v60  ;;  %v4675_v63 = vld [vmem:[#allocation2 + $0x270] sm:$0xff] }
 0x518   :  { %13330 = vrot.lane.b32.xlu1 %v13329_v5, %s13537_s18 }
 0x519   :  { %v6507_v44 = vadd.f32 %v17500_v7, %v6338_v51  ;;  %v13127_v7 = vunpack.i.l.bf16 %v17803_v33 }
 0x51b   :  { %v6621_v29 = vmax.f32 %v6507_v44, 0.0  ;;  %v5469_v26 = vsel %vm3722_vm0, %v13504_v24, %v13127_v7  ;;  %v13334_v44 = vpack.i.bf16 %v4675_v63, %v17840_v42  ;;  %v13143_v7 = vunpack.i.h.bf16 %v17825_v40 }
 0x51c   :  { %v5533_v11 = vsel %vm3982_vm8, %v5469_v26, %v13102_v16  ;;  %v5662_v19 = vsel %vm3982_vm8, %v5469_v26, %v13132_v21  ;;  %v13506_v26 = vld [vmem:[#allocation2 + $0x1c8] sm:$0xff] }
 0x51d   :  { %v17859_v35 = vpop.f32.mrf.mxu3  ;;  %6685 = vst.msk [vmem:[#allocation3 + $0xf0] sm:$0xff] %vm3982_vm8, %v6621_v29  ;;  %13335 = vrot.lane.b32.xlu2 %v13334_v44, %s13541_s25 }
 0x51e   :  { %v6339_v8 = vpop.f32.mrf.mxu2 }
 0x51f   :  { %v6340_v50 = vadd.f32 %v6339_v8, %v6171_v57  ;;  %v17908_v57 = vpop.permute.xlu2 %13185  ;;  %v13142_v8 = vunpack.i.l.bf16 %v17825_v40  ;;  %v13505_v40 = vld [vmem:[%s20272_s0 + $0x1c8] sm:$0xff] }
 0x520   :  { %v17873_v17 = vpop.f32.mrf.mxu1 }
 0x521   :  { %v6509_v15 = vadd.f32 %v17536_v9, %v6340_v50 }
 0x522   :  { %v17878_v47 = vpop.permute.xlu0 %13145  ;;  %v13136_v33 = vpop.permute.xlu1 %13135 }
 0x523   :  { %v13138_v58 = vunpack.i.h.bf16 %v13136_v33  ;;  %v13137_v12 = vunpack.i.l.bf16 %v13136_v33  ;;  %v6622_v9 = vmax.f32 %v6509_v15, 0.0  ;;  %9923 = vmatmul.msk.bf16.gmra.mxu3 %vm3722_vm0, %v5836_v32  ;;  %v11652_v15 = vunpack.i.l.bf16 %v20698_v53 }
 0x524   :  { %v13148_v33 = vunpack.i.h.bf16 %v17878_v47  ;;  %v13147_v0 = vunpack.i.l.bf16 %v17878_v47 }
 0x525   :  { %v5598_v56 = vsel %vm5543_vm10, %v5533_v11, %v13137_v12  ;;  %v5599_v37 = vsel %vm5543_vm10, %v5534_v41, %v13138_v58  ;;  %6686 = vst.msk [vmem:[#allocation3 + $0xf8] sm:$0xff] %vm3982_vm8, %v6622_v9  ;;  %v5726_v16 = vsel %vm5543_vm10, %v5662_v19, %v13137_v12  ;;  %v5727_v20 = vsel %vm5543_vm10, %v5663_v27, %v13138_v58  ;;  %v13507_v12 = vld [vmem:[#allocation2 + $0x1c0] sm:$0xff]  ;;  %v20699_v9 = vld [vmem:[#allocation63_spill] sm:$0xff] }
 0x526   :  { %v5825_v10 = vpack.c.bf16 %v5599_v37, %v5598_v56  ;;  %v17902_v1 = vpop.f32.mrf.mxu3  ;;  %v5814_v13 = vpack.c.bf16 %v5727_v20, %v5726_v16  ;;  %v5472_v58 = vsel %vm3722_vm0, %v13506_v26, %v13143_v7  ;;  %v5471_v41 = vsel %vm3722_vm0, %v13507_v12, %v13142_v8 }
 0x527   :  { %v6342_v3 = vpop.f32.mrf.mxu2  ;;  %v5839_v11 = vpack.c.bf16 %v4676_v4, %v4675_v63  ;;  %v11812_v19 = vunpack.i.l.bf16 %v20699_v9  ;;  %v5536_v56 = vsel %vm3982_vm8, %v5472_v58, %v13118_v45  ;;  %v5535_v37 = vsel %vm3982_vm8, %v5471_v41, %v13117_v34  ;;  %v13508_v45 = vld [vmem:[%s20272_s0 + $0x1c0] sm:$0xff]  ;;  %v17959_v8 = vpop.permute.xlu2 %13200 }
 0x528   :  { %v6343_v5 = vadd.f32 %v6342_v3, %v6174_v52  ;;  %6227 = vmatmul.bf16.gmra.mxu1 %v5825_v10  ;;  %6376 = vmatmul.bf16.gmra.mxu2 %v5814_v13  ;;  %v6195_v29 = vpop.f32.mrf.mxu1  ;;  %v11813_v16 = vunpack.i.h.bf16 %v20699_v9  ;;  %v20700_v3 = vld [vmem:[#allocation72_spill] sm:$0xff]  ;;  %v3584_v31 = vsel %vm3527_vm2, %v13508_v45, %v11652_v15  ;;  %v5664_v34 = vsel %vm3982_vm8, %v5471_v41, %v13147_v0 }
 0x529   :  { %v11972_v20 = vunpack.i.l.bf16 %v20700_v3  ;;  %v13173_v15 = vunpack.i.h.bf16 %v17870_v39  ;;  %v13187_v9 = vunpack.i.l.bf16 %v17908_v57 }
 0x52a   :  { %v6512_v6 = vadd.f32 %v17556_v18, %v6343_v5  ;;  %v17905_v51 = vpop.permute.xlu0 %13160  ;;  %v13151_v22 = vpop.permute.xlu1 %13150  ;;  %v6176_v18 = vadd.f32 %v17705_v30, %v17700_v55  ;;  %v3585_v55 = vsel %vm3527_vm2, %v13505_v40, %v11653_v38  ;;  %v3649_v38 = vsel %vm3592_vm3, %v3584_v31, %v11812_v19 }
 0x52b   :  { %v13153_v50 = vunpack.i.h.bf16 %v13151_v22  ;;  %v13152_v42 = vunpack.i.l.bf16 %v13151_v22  ;;  %v20701_v22 = vld [vmem:[#allocation99_spill] sm:$0xff]  ;;  %v3650_v4 = vsel %vm3592_vm3, %v3585_v55, %v11813_v16  ;;  %v13188_v55 = vunpack.i.h.bf16 %v17908_v57 }
 0x52c   :  { %v6623_v48 = vmax.f32 %v6512_v6, 0.0  ;;  %v11973_v6 = vunpack.i.h.bf16 %v20700_v3  ;;  %v12132_v44 = vunpack.i.l.bf16 %v20701_v22  ;;  %v12133_v7 = vunpack.i.h.bf16 %v20701_v22 }
 0x52d   :  { %v5600_v5 = vsel %vm5543_vm10, %v5535_v37, %v13152_v42  ;;  %v5601_v13 = vsel %vm5543_vm10, %v5536_v56, %v13153_v50 }
 0x52e   :  { %6687 = vst.msk [vmem:[#allocation3 + $0x100] sm:$0xff] %vm3982_vm8, %v6623_v48  ;;  %v17920_v24 = vpop.f32.mrf.mxu3  ;;  %v5728_v48 = vsel %vm5543_vm10, %v5664_v34, %v13152_v42  ;;  %v3715_v12 = vsel %vm3657_vm4, %v3650_v4, %v11973_v6  ;;  %v20703_v4 = vld [vmem:[#allocation62_spill] sm:$0xff] }
 0x52f   :  { %v6344_v32 = vpop.f32.mrf.mxu2 }
 0x530   :  { %v6345_v25 = vadd.f32 %v6344_v32, %v6176_v18  ;;  %v6198_v29 = vpop.f32.mrf.mxu1  ;;  %v5828_v18 = vpack.c.bf16 %v5601_v13, %v5600_v5  ;;  %v3714_v32 = vsel %vm3657_vm4, %v3649_v38, %v11972_v20  ;;  %v13158_v20 = vunpack.i.h.bf16 %v17848_v43 }
 0x531   :  { %v3779_v41 = vsel %vm3722_vm0, %v3714_v32, %v12132_v44  ;;  %v13157_v5 = vunpack.i.l.bf16 %v17848_v43  ;;  %v11217_v43 = vld [vmem:[%s20277_s6 + $0x74] sm:$0xf]  ;;  %v9989_v44 = vld [vmem:[%s20277_s6 + $0x78] sm:$0xf0]  ;;  %v20702_v29 = vld [vmem:[#allocation29_spill] sm:$0xff]  ;;  %v13163_v38 = vunpack.i.h.bf16 %v17905_v51  ;;  %v11818_v32 = vunpack.i.h.bf16 %v20703_v4 }
 0x532   :  { %v6514_v52 = vadd.f32 %v17582_v62, %v6345_v25  ;;  %v13176_v27 = vpop.permute.xlu0 %13175  ;;  %v17936_v10 = vpop.permute.xlu1 %13165  ;;  %v5665_v62 = vsel %vm3982_vm8, %v5472_v58, %v13148_v33  ;;  %v13172_v25 = vunpack.i.l.bf16 %v17870_v39 }
 0x533   :  { %9924 = vmatmul.msk.bf16.gmra.mxu3 %vm3722_vm0, %v5839_v11  ;;  %v5729_v53 = vsel %vm5543_vm10, %v5665_v62, %v13153_v50  ;;  %v13178_v40 = vunpack.i.h.bf16 %v13176_v27  ;;  %v13177_v50 = vunpack.i.l.bf16 %v13176_v27  ;;  %v3780_v11 = vsel %vm3722_vm0, %v3715_v12, %v12133_v7 }
 0x534   :  { %v6624_v63 = vmax.f32 %v6514_v52, 0.0  ;;  %v5817_v58 = vpack.c.bf16 %v5729_v53, %v5728_v48  ;;  %v3845_v56 = vsel %vm3787_vm5, %v3780_v11, %v13173_v15  ;;  %v3844_v37 = vsel %vm3787_vm5, %v3779_v41, %v13172_v25  ;;  %v17996_v53 = vpop.permute.xlu2 %13215  ;;  %v13509_v15 = vld [vmem:[#allocation2 + $0x1d8] sm:$0xff]  ;;  %v18018_v41 = vld [vmem:[%s20279_s1] sm:$0xff] }
 0x535   :  { %v3910_v16 = vsel %vm3852_vm6, %v3845_v56, %v13178_v40  ;;  %v3909_v3 = vsel %vm3852_vm6, %v3844_v37, %v13177_v50  ;;  %v13168_v62 = vunpack.i.h.bf16 %v17936_v10  ;;  %v13167_v34 = vunpack.i.l.bf16 %v17936_v10 }
 0x536   :  { %6688 = vst.msk [vmem:[#allocation3 + $0x108] sm:$0xff] %vm3982_vm8, %v6624_v63  ;;  %v17966_v26 = vpop.f32.mrf.mxu3  ;;  %v11658_v48 = vunpack.i.h.bf16 %v20702_v29  ;;  %v13162_v10 = vunpack.i.l.bf16 %v17905_v51  ;;  %v5474_v25 = vsel %vm3722_vm0, %v13509_v15, %v13158_v20  ;;  %v9992_v11 = vor.u32 %v11217_v43, %v9989_v44 }
 0x537   :  { %v6347_v42 = vpop.f32.mrf.mxu2  ;;  %v5538_v50 = vsel %vm3982_vm8, %v5474_v25, %v13133_v60 }
 0x538   :  { %6232 = vmatmul.bf16.gmra.mxu1 %v5828_v18  ;;  %6381 = vmatmul.bf16.gmra.mxu2 %v5817_v58  ;;  %v17987_v63 = vpop.f32.mrf.mxu1  ;;  %v11657_v18 = vunpack.i.l.bf16 %v20702_v29  ;;  %v13510_v42 = vld [vmem:[#allocation2 + $0x1d0] sm:$0xff]  ;;  %v5603_v37 = vsel %vm5543_vm10, %v5538_v50, %v13168_v62 }
 0x539   :  { %v5473_v40 = vsel %vm3722_vm0, %v13510_v42, %v13157_v5  ;;  %v20705_v5 = vld [vmem:[#allocation94_spill] sm:$0xff] }
 0x53a   :  { %v17973_v19 = vpop.permute.xlu0 %13190  ;;  %v13181_v39 = vpop.permute.xlu1 %13180  ;;  %v5537_v58 = vsel %vm3982_vm8, %v5473_v40, %v13132_v21  ;;  %v9981_v21 = vld [vmem:[%s20277_s6 + $0x68] sm:$0xf0] }
 0x53b   :  { %v13183_v52 = vunpack.i.h.bf16 %v13181_v39  ;;  %v13182_v27 = vunpack.i.l.bf16 %v13181_v39  ;;  %v5602_v60 = vsel %vm5543_vm10, %v5537_v58, %v13167_v34  ;;  %v9984_v43 = vor.u32 %v11215_v23, %v9981_v21 }
 0x53c   :  { %v5831_v44 = vpack.c.bf16 %v5603_v37, %v5602_v60  ;;  %v13193_v50 = vunpack.i.h.bf16 %v17973_v19  ;;  %v18074_v23 = vpop.permute.xlu2 %13230  ;;  %v13202_v37 = vunpack.i.l.bf16 %v17959_v8 }
 0x53d   :  { %v3975_v57 = vsel %vm3917_vm7, %v3910_v16, %v13183_v52  ;;  %v3974_v13 = vsel %vm3917_vm7, %v3909_v3, %v13182_v27  ;;  %v5667_v27 = vsel %vm3982_vm8, %v5474_v25, %v13163_v38  ;;  %v5666_v16 = vsel %vm3982_vm8, %v5473_v40, %v13162_v10  ;;  %v13511_v3 = vld [vmem:[%s20272_s0 + $0x1d8] sm:$0xff] }
 0x53e   :  { %v4039_v45 = vsel %vm3982_vm8, %v3974_v13, %v13187_v9  ;;  %v4040_v31 = vsel %vm3982_vm8, %v3975_v57, %v13188_v55  ;;  %v18000_v7 = vpop.f32.mrf.mxu3  ;;  %v11817_v55 = vunpack.i.l.bf16 %v20703_v4  ;;  %v20704_v9 = vld [vmem:[#allocation83_spill] sm:$0xff]  ;;  %v3587_v20 = vsel %vm3527_vm2, %v13511_v3, %v11658_v48 }
 0x53f   :  { %v6349_v6 = vpop.f32.mrf.mxu2  ;;  %v4075_v22 = vpack.c.bf16 %v4040_v31, %v4039_v45  ;;  %v11978_v39 = vunpack.i.h.bf16 %v20704_v9  ;;  %v11977_v52 = vunpack.i.l.bf16 %v20704_v9  ;;  %v12137_v57 = vunpack.i.l.bf16 %v20705_v5  ;;  %v13512_v31 = vld [vmem:[%s20272_s0 + $0x1d0] sm:$0xff] }
 0x540   :  { %v5730_v13 = vsel %vm5543_vm10, %v5666_v16, %v13167_v34  ;;  %v5731_v45 = vsel %vm5543_vm10, %v5667_v27, %v13168_v62  ;;  %v3586_v6 = vsel %vm3527_vm2, %v13512_v31, %v11657_v18  ;;  %v3652_v29 = vsel %vm3592_vm3, %v3587_v20, %v11818_v32  ;;  %v11213_v62 = vld [vmem:[%s20277_s6 + $0x54] sm:$0xf]  ;;  %v9973_v18 = vld [vmem:[%s20277_s6 + $0x58] sm:$0xf0]  ;;  %v13513_v27 = vld [vmem:[#allocation2 + $0x1e0] sm:$0xff] }
 0x541   :  { %9817 = vmatmul.msk.bf16.gmra.mxu0 %vm4119_vm9, %v4075_v22  ;;  %v12138_v22 = vunpack.i.h.bf16 %v20705_v5  ;;  %v3651_v48 = vsel %vm3592_vm3, %v3586_v6, %v11817_v55  ;;  %v13192_v4 = vunpack.i.l.bf16 %v17973_v19  ;;  %v3717_v15 = vsel %vm3657_vm4, %v3652_v29, %v11978_v39  ;;  %v11211_v19 = vld [vmem:[%s20277_s6 + $0x44] sm:$0xf]  ;;  %v10057_v31 = vld [vmem:[%s20277_s6 + $0xf8] sm:$0xf0]  ;;  %v13514_v6 = vld [vmem:[#allocation2 + $0x1e8] sm:$0xff] }
 0x542   :  { %v18013_v12 = vpop.permute.xlu0 %13205  ;;  %v18022_v56 = vpop.permute.xlu1 %13195  ;;  %v3716_v25 = vsel %vm3657_vm4, %v3651_v48, %v11977_v52  ;;  %v5820_v32 = vpack.c.bf16 %v5731_v45, %v5730_v13  ;;  %v6184_v9 = vadd.f32 %v17705_v30, %v17783_v14  ;;  %v13203_v39 = vunpack.i.h.bf16 %v17959_v8  ;;  %v11233_v45 = vld [vmem:[%s20277_s6 + $0xf4] sm:$0xf]  ;;  %v13515_v8 = vld [vmem:[%s20272_s0 + $0x1e8] sm:$0xff] }
 0x543   :  { %9925 = vmatmul.msk.f32.vlgmr.msrb.gmra.mxu3 %vm3527_vm2, %v18018_v41  ;;  %v3781_v40 = vsel %vm3722_vm0, %v3716_v25, %v12137_v57  ;;  %v13208_v58 = vunpack.i.h.bf16 %v18013_v12  ;;  %v3782_v55 = vsel %vm3722_vm0, %v3717_v15, %v12138_v22  ;;  %v9976_v60 = vor.u32 %v11213_v62, %v9973_v18 }
 0x544   :  { %6922 = vmatpush.bf16.msrb.mxu3 %v9992_v11  ;;  %v13207_v11 = vunpack.i.l.bf16 %v18013_v12  ;;  %v9965_v12 = vld [vmem:[%s20277_s6 + $0x48] sm:$0xf0]  ;;  %v13218_v14 = vunpack.i.h.bf16 %v17996_v53  ;;  %v13217_v52 = vunpack.i.l.bf16 %v17996_v53  ;;  %v5475_v16 = vsel %vm3722_vm0, %v13513_v27, %v13192_v4 }
 0x545   :  { %v5476_v22 = vsel %vm3722_vm0, %v13514_v6, %v13193_v50  ;;  %v3847_v53 = vsel %vm3787_vm5, %v3782_v55, %v13208_v58  ;;  %v13198_v29 = vunpack.i.h.bf16 %v18022_v56  ;;  %v13197_v48 = vunpack.i.l.bf16 %v18022_v56  ;;  %v11231_v55 = vld [vmem:[%s20277_s6 + $0xe4] sm:$0xf] }
 0x546   :  { %v18056_v34 = vpop.f32.mrf.mxu1  ;;  %v6551_v42 = vpop.f32.mrf.mxu3 }
 0x548   :  { %6237 = vmatmul.bf16.gmra.mxu1 %v5831_v44  ;;  %6923 = vmatpush.bf16.msrb.mxu3 %v9984_v43  ;;  %v3846_v43 = vsel %vm3787_vm5, %v3781_v40, %v13207_v11  ;;  %v9968_v44 = vor.u32 %v11211_v19, %v9965_v12  ;;  %v10060_v40 = vor.u32 %v11233_v45, %v10057_v31  ;;  %v10041_v45 = vld [vmem:[%s20277_s6 + $0xd8] sm:$0xf0] }
 0x549   :  { %6386 = vmatmul.bf16.gmra.mxu2 %v5820_v32  ;;  %v6852_v32 = vld [vmem:[#allocation3 + $0x48] sm:$0xff]  ;;  %v20707_v31 = vld [vmem:[#allocation55_spill] sm:$0xff] }
 0x54a   :  { %v13221_v21 = vpop.permute.xlu0 %13220  ;;  %v13211_v3 = vpop.permute.xlu1 %13210  ;;  %v11823_v6 = vunpack.i.h.bf16 %v20707_v31 }
 0x54b   :  { %v13223_v20 = vunpack.i.h.bf16 %v13221_v21  ;;  %v13222_v5 = vunpack.i.l.bf16 %v13221_v21  ;;  %v13213_v57 = vunpack.i.h.bf16 %v13211_v3  ;;  %v13212_v13 = vunpack.i.l.bf16 %v13211_v3  ;;  %9926 = vmatmul.msk.f32.vlgmr.msra.gmra.mxu3 %vm3527_vm2, %v18018_v41  ;;  %v10049_v21 = vld [vmem:[%s20277_s6 + $0xe8] sm:$0xf0] }
 0x54c   :  { %6924 = vmatpush.bf16.msrb.mxu3 %v9976_v60  ;;  %v6352_v25 = vpop.f32.mrf.mxu2  ;;  %v5539_v41 = vsel %vm3982_vm8, %v5475_v16, %v13147_v0  ;;  %v5540_v60 = vsel %vm3982_vm8, %v5476_v22, %v13148_v33  ;;  %v5669_v0 = vsel %vm3982_vm8, %v5476_v22, %v13198_v29  ;;  %v10052_v47 = vor.u32 %v11231_v55, %v10049_v21 }
 0x54d   :  { %v3912_v4 = vsel %vm3852_vm6, %v3847_v53, %v13213_v57  ;;  %v3911_v62 = vsel %vm3852_vm6, %v3846_v43, %v13212_v13  ;;  %v6353_v50 = vadd.f32 %v6352_v25, %v6184_v9  ;;  %v5668_v9 = vsel %vm3982_vm8, %v5475_v16, %v13197_v48  ;;  %v20706_v16 = vld [vmem:[#allocation15_spill] sm:$0xff]  ;;  %v11229_v13 = vld [vmem:[%s20277_s6 + $0xd4] sm:$0xf] }
 0x54e   :  { %v3977_v18 = vsel %vm3917_vm7, %v3912_v4, %v13218_v14  ;;  %v3976_v15 = vsel %vm3917_vm7, %v3911_v62, %v13217_v52  ;;  %v18103_v42 = vpop.f32.mrf.mxu1  ;;  %v6553_v56 = vpop.f32.mrf.mxu3  ;;  %v18124_v52 = vpack.c.bf16 %v6852_v32, %v6852_v32  ;;  %v5604_v33 = vsel %vm5543_vm10, %v5539_v41, %v13202_v37 }
 0x54f   :  { %v4041_v58 = vsel %vm3982_vm8, %v3976_v15, %v13222_v5  ;;  %v4042_v11 = vsel %vm3982_vm8, %v3977_v18, %v13223_v20  ;;  %v6522_v12 = vadd.f32 %v17685_v36, %v6353_v50  ;;  %v5605_v3 = vsel %vm5543_vm10, %v5540_v60, %v13203_v39  ;;  %v18135_v5 = vpop.permute.xlu2 %13245  ;;  %v20709_v18 = vld [vmem:[#allocation102_spill] sm:$0xff] }
 0x550   :  { %v4076_v19 = vpack.c.bf16 %v4042_v11, %v4041_v58  ;;  %6925 = vmatpush.bf16.msrb.mxu3 %v9968_v44  ;;  %v11663_v20 = vunpack.i.h.bf16 %v20706_v16  ;;  %v11662_v36 = vunpack.i.l.bf16 %v20706_v16  ;;  %v11822_v22 = vunpack.i.l.bf16 %v20707_v31  ;;  %v20708_v44 = vld [vmem:[#allocation82_spill] sm:$0xff]  ;;  %v11227_v58 = vld [vmem:[%s20277_s6 + $0xc4] sm:$0xf]  ;;  %v10033_v11 = vld [vmem:[%s20277_s6 + $0xc8] sm:$0xf0] }
 0x551   :  { %v6627_v57 = vmax.f32 %v6522_v12, 0.0  ;;  %v5732_v53 = vsel %vm5543_vm10, %v5668_v9, %v13202_v37  ;;  %v5733_v43 = vsel %vm5543_vm10, %v5669_v0, %v13203_v39  ;;  %v11983_v29 = vunpack.i.h.bf16 %v20708_v44  ;;  %v11249_v9 = vld [vmem:[%s20277_s6 + $0x174] sm:$0xf]  ;;  %v10125_v12 = vld [vmem:[%s20277_s6 + $0x178] sm:$0xf0] }
 0x552   :  { %v18122_v14 = vpop.permute.xlu0 %13235  ;;  %v18126_v27 = vpop.permute.xlu1 %13225  ;;  %9818 = vmatmul.msk.bf16.gmra.mxu0 %vm4119_vm9, %v4076_v19  ;;  %v11982_v48 = vunpack.i.l.bf16 %v20708_v44  ;;  %v6186_v4 = vadd.f32 %v17705_v30, %v17805_v59  ;;  %v5834_v62 = vpack.c.bf16 %v5605_v3, %v5604_v33  ;;  %v12143_v15 = vunpack.i.h.bf16 %v20709_v18  ;;  %v13516_v59 = vld [vmem:[%s20272_s0 + $0x1e0] sm:$0xff] }
 0x553   :  { %9994 = vmatmul.msk.bf16.vlgmr.msrb.gmra.mxu3 %vm3982_vm8, %v18124_v52  ;;  %6691 = vst.msk [vmem:[#allocation3 + $0x120] sm:$0xff] %vm3982_vm8, %v6627_v57  ;;  %v12142_v25 = vunpack.i.l.bf16 %v20709_v18  ;;  %v10044_v37 = vor.u32 %v11229_v13, %v10041_v45  ;;  %v3589_v39 = vsel %vm3527_vm2, %v13515_v8, %v11663_v20  ;;  %v5823_v56 = vpack.c.bf16 %v5733_v43, %v5732_v53  ;;  %v10023_v57 = vld [vmem:[%s20277_s6 + $0xb8] sm:$0xf0]  ;;  %v13518_v18 = vld [vmem:[#allocation2 + $0x1f0] sm:$0xff] }
 0x554   :  { %7084 = vmatpush.bf16.msra.mxu3 %v10060_v40  ;;  %v6354_v32 = vpop.f32.mrf.mxu2  ;;  %v3588_v40 = vsel %vm3527_vm2, %v13516_v59, %v11662_v36  ;;  %v3654_v21 = vsel %vm3592_vm3, %v3589_v39, %v11823_v6  ;;  %v13228_v60 = vunpack.i.h.bf16 %v18126_v27  ;;  %v13227_v19 = vunpack.i.l.bf16 %v18126_v27  ;;  %v11225_v36 = vld [vmem:[%s20277_s6 + $0xb4] sm:$0xf] }
 0x555   :  { %v6355_v41 = vadd.f32 %v6354_v32, %v6186_v4  ;;  %v3653_v55 = vsel %vm3592_vm3, %v3588_v40, %v11822_v22  ;;  %v3719_v16 = vsel %vm3657_vm4, %v3654_v21, %v11983_v29  ;;  %v10036_v6 = vor.u32 %v11227_v58, %v10033_v11  ;;  %v13517_v4 = vld [vmem:[#allocation2 + $0x1f8] sm:$0xff]  ;;  %v10117_v32 = vld [vmem:[%s20277_s6 + $0x168] sm:$0xf0]  ;;  %v11223_v40 = vld [vmem:[%s20277_s6 + $0xa4] sm:$0xf] }
 0x556   :  { %v18166_v50 = vpop.f32.mrf.mxu3  ;;  %v3718_v3 = vsel %vm3657_vm4, %v3653_v55, %v11982_v48  ;;  %v3784_v45 = vsel %vm3722_vm0, %v3719_v16, %v12143_v15  ;;  %v10026_v22 = vor.u32 %v11225_v36, %v10023_v57  ;;  %v10128_v44 = vor.u32 %v11249_v9, %v10125_v12  ;;  %v11247_v15 = vld [vmem:[%s20277_s6 + $0x164] sm:$0xf]  ;;  %v7014_v58 = vld [vmem:[#allocation3 + $0x58] sm:$0xff]  ;;  %v11245_v9 = vld [vmem:[%s20277_s6 + $0x154] sm:$0xf] }
 0x557   :  { %v18178_v0 = vpop.f32.mrf.mxu1  ;;  %v6524_v20 = vadd.f32 %v17729_v54, %v6355_v41  ;;  %v3783_v13 = vsel %vm3722_vm0, %v3718_v3, %v12142_v25  ;;  %v13233_v29 = vunpack.i.h.bf16 %v18074_v23  ;;  %v13232_v48 = vunpack.i.l.bf16 %v18074_v23  ;;  %v18214_v39 = vpop.permute.xlu2 %13260  ;;  %v10015_v41 = vld [vmem:[%s20277_s6 + $0xa8] sm:$0xf0]  ;;  %v10109_v12 = vld [vmem:[%s20277_s6 + $0x158] sm:$0xf0]  ;;  %v11221_v3 = vld [vmem:[%s20277_s6 + $0x94] sm:$0xf] }
 0x558   :  { %7085 = vmatpush.bf16.msra.mxu3 %v10052_v47  ;;  %6242 = vmatmul.bf16.gmra.mxu1 %v5834_v62  ;;  %v20710_v47 = vld [vmem:[#allocation14_spill] sm:$0xff]  ;;  %v5478_v62 = vsel %vm3722_vm0, %v13517_v4, %v13228_v60  ;;  %v5477_v25 = vsel %vm3722_vm0, %v13518_v18, %v13227_v19  ;;  %v13248_v23 = vunpack.i.h.bf16 %v18135_v5  ;;  %v13247_v8 = vunpack.i.l.bf16 %v18135_v5 }
 0x559   :  { %v11668_v33 = vunpack.i.h.bf16 %v20710_v47  ;;  %6391 = vmatmul.bf16.gmra.mxu2 %v5823_v56  ;;  %v6628_v54 = vmax.f32 %v6524_v20, 0.0  ;;  %7003 = vmatpush.bf16.msra.mxu1 %v10026_v22  ;;  %v13238_v59 = vunpack.i.h.bf16 %v18122_v14  ;;  %v10018_v11 = vor.u32 %v11223_v40, %v10015_v41  ;;  %v10007_v20 = vld [vmem:[%s20277_s6 + $0x98] sm:$0xf0] }
 0x55a   :  { %v18190_v27 = vpop.permute.xlu0 %13250  ;;  %v13241_v31 = vpop.permute.xlu1 %13240  ;;  %v10120_v60 = vor.u32 %v11247_v15, %v10117_v32  ;;  %v5541_v19 = vsel %vm3982_vm8, %v5477_v25, %v13162_v10  ;;  %v5670_v51 = vsel %vm3982_vm8, %v5477_v25, %v13232_v48  ;;  %v10101_v32 = vld [vmem:[%s20277_s6 + $0x148] sm:$0xf0] }
 0x55b   :  { %v13243_v53 = vunpack.i.h.bf16 %v13241_v31  ;;  %v13242_v43 = vunpack.i.l.bf16 %v13241_v31  ;;  %6692 = vst.msk [vmem:[#allocation3 + $0x128] sm:$0xff] %vm3982_vm8, %v6628_v54  ;;  %v13253_v16 = vunpack.i.h.bf16 %v18190_v27  ;;  %v13252_v10 = vunpack.i.l.bf16 %v18190_v27 }
 0x55c   :  { %7086 = vmatpush.bf16.msra.mxu3 %v10044_v37  ;;  %v6189_v37 = vadd.f32 %v17705_v30, %v17833_v46  ;;  %v13237_v30 = vunpack.i.l.bf16 %v18122_v14  ;;  %v5542_v14 = vsel %vm3982_vm8, %v5478_v62, %v13163_v38  ;;  %v5671_v38 = vsel %vm3982_vm8, %v5478_v62, %v13233_v29 }
 0x55d   :  { %v3849_v46 = vsel %vm3787_vm5, %v3784_v45, %v13243_v53  ;;  %v3848_v5 = vsel %vm3787_vm5, %v3783_v13, %v13242_v43  ;;  %7004 = vmatpush.bf16.msra.mxu1 %v10018_v11  ;;  %v10010_v45 = vor.u32 %v11221_v3, %v10007_v20  ;;  %v18256_v27 = vpack.c.bf16 %v7014_v58, %v7014_v58 }
 0x55e   :  { %v6357_v56 = vpop.f32.mrf.mxu2  ;;  %v18227_v21 = vpop.f32.mrf.mxu3  ;;  %v3914_v36 = vsel %vm3852_vm6, %v3849_v46, %v13248_v23  ;;  %v3913_v57 = vsel %vm3852_vm6, %v3848_v5, %v13247_v8  ;;  %v5606_v22 = vsel %vm5543_vm10, %v5541_v19, %v13237_v30  ;;  %v5607_v54 = vsel %vm5543_vm10, %v5542_v14, %v13238_v59  ;;  %v10193_v23 = vld [vmem:[%s20277_s6 + $0x1f8] sm:$0xf0]  ;;  %v18284_v8 = vld [vmem:[%s20276_s5] ss:$0 sm:$0xff]  ;;  %v11219_v46 = vld [vmem:[%s20277_s6 + $0x84] sm:$0xf] }
 0x55f   :  { %v6358_v55 = vadd.f32 %v6357_v56, %v6189_v37  ;;  %v18254_v31 = vpop.f32.mrf.mxu1  ;;  %v10112_v53 = vor.u32 %v11245_v9, %v10109_v12  ;;  %v5734_v4 = vsel %vm5543_vm10, %v5670_v51, %v13237_v30  ;;  %v11667_v62 = vunpack.i.l.bf16 %v20710_v47  ;;  %v11265_v37 = vld [vmem:[%s20277_s6 + $0x1f4] sm:$0xf]  ;;  %v9999_v5 = vld [vmem:[%s20277_s6 + $0x88] sm:$0xf0]  ;;  %v20711_v56 = vld [vmem:[#allocation64_spill] sm:$0xff]  ;;  %v18300_v9 = vpop.permute.xlu2 %13275 }
 0x560   :  { %7087 = vmatpush.bf16.msra.mxu3 %v10036_v6  ;;  %v3978_v18 = vsel %vm3917_vm7, %v3913_v57, %v13252_v10  ;;  %v3979_v25 = vsel %vm3917_vm7, %v3914_v36, %v13253_v16  ;;  %v5735_v15 = vsel %vm5543_vm10, %v5671_v38, %v13238_v59  ;;  %v6191_v59 = vadd.f32 %v18284_v8, %v17850_v28  ;;  %v20712_v19 = vld [vmem:[#allocation75_spill] sm:$0xff]  ;;  %v20713_v38 = vld [vmem:[#allocation101_spill] sm:$0xff] }
 0x561   :  { %v6527_v13 = vadd.f32 %v17739_v2, %v6358_v55  ;;  %v11243_v2 = vld [vmem:[%s20277_s6 + $0x144] sm:$0xf]  ;;  %7005 = vmatpush.bf16.msra.mxu1 %v10010_v45  ;;  %v5837_v30 = vpack.c.bf16 %v5607_v54, %v5606_v22  ;;  %v11828_v58 = vunpack.i.h.bf16 %v20711_v56  ;;  %v11827_v11 = vunpack.i.l.bf16 %v20711_v56  ;;  %v13520_v57 = vld [vmem:[%s20272_s0 + $0x1f8] sm:$0xff]  ;;  %v13521_v45 = vld [vmem:[%s20272_s0 + $0x1f0] sm:$0xff] }
 0x562   :  { %v13256_v6 = vpop.permute.xlu1 %13255  ;;  %v11987_v14 = vunpack.i.l.bf16 %v20712_v19  ;;  %v5826_v16 = vpack.c.bf16 %v5735_v15, %v5734_v4  ;;  %v10104_v10 = vor.u32 %v11243_v2, %v10101_v32  ;;  %v11988_v51 = vunpack.i.h.bf16 %v20712_v19  ;;  %v10185_v47 = vld [vmem:[%s20277_s6 + $0x1e8] sm:$0xf0]  ;;  %v11218_v2 = vld [vmem:[%s20277_s6 + $0x74] sm:$0xf0]  ;;  %v6771_v15 = vld [vmem:[#allocation3 + $0x40] sm:$0xff] }
 0x563   :  { %v6629_v43 = vmax.f32 %v6527_v13, 0.0  ;;  %v13258_v29 = vunpack.i.h.bf16 %v13256_v6  ;;  %v13257_v48 = vunpack.i.l.bf16 %v13256_v6  ;;  %10062 = vmatmul.msk.bf16.vlgmr.msra.gmra.mxu3 %vm3982_vm8, %v18256_v27  ;;  %v12147_v20 = vunpack.i.l.bf16 %v20713_v38 }
 0x564   :  { %7246 = vmatpush.bf16.msrb.mxu3 %v10128_v44  ;;  %v18260_v44 = vpop.permute.xlu0 %13265  ;;  %v10196_v36 = vor.u32 %v11265_v37, %v10193_v23  ;;  %v3591_v13 = vsel %vm3527_vm2, %v13520_v57, %v11668_v33  ;;  %v3590_v6 = vsel %vm3527_vm2, %v13521_v45, %v11667_v62  ;;  %v12148_v22 = vunpack.i.h.bf16 %v20713_v38  ;;  %v10091_v57 = vld [vmem:[%s20277_s6 + $0x138] sm:$0xf0] }
 0x565   :  { %6693 = vst.msk [vmem:[#allocation3 + $0x130] sm:$0xff] %vm3982_vm8, %v6629_v43  ;;  %v4043_v40 = vsel %vm3982_vm8, %v3978_v18, %v13257_v48  ;;  %v4044_v41 = vsel %vm3982_vm8, %v3979_v25, %v13258_v29  ;;  %v3656_v33 = vsel %vm3592_vm3, %v3591_v13, %v11828_v58  ;;  %v3655_v43 = vsel %vm3592_vm3, %v3590_v6, %v11827_v11  ;;  %v11261_v58 = vld [vmem:[%s20277_s6 + $0x1d4] sm:$0xf]  ;;  %v13522_v11 = vld [vmem:[#allocation2 + $0x208] sm:$0xff] }
 0x566   :  { %v4077_v28 = vpack.c.bf16 %v4044_v41, %v4043_v40  ;;  %v6359_v55 = vpop.f32.mrf.mxu2  ;;  %v18302_v3 = vpop.f32.mrf.mxu3  ;;  %v13263_v29 = vunpack.i.h.bf16 %v18214_v39  ;;  %v13262_v48 = vunpack.i.l.bf16 %v18214_v39  ;;  %v3720_v62 = vsel %vm3657_vm4, %v3655_v43, %v11987_v14 }
 0x567   :  { %v6360_v12 = vadd.f32 %v6359_v55, %v6191_v59  ;;  %v13278_v18 = vunpack.i.h.bf16 %v18300_v9  ;;  %v3721_v39 = vsel %vm3657_vm4, %v3656_v33, %v11988_v51  ;;  %v3785_v37 = vsel %vm3722_vm0, %v3720_v62, %v12147_v20  ;;  %v6213_v23 = vpop.f32.mrf.mxu1  ;;  %v7176_v59 = vld [vmem:[#allocation3 + $0x78] sm:$0xff]  ;;  %v13523_v55 = vld [vmem:[#allocation2 + $0x200] sm:$0xff]  ;;  %v13291_v20 = vpop.permute.xlu2 %13290 }
 0x568   :  { %7247 = vmatpush.bf16.msrb.mxu3 %v10120_v60  ;;  %v10002_v60 = vor.u32 %v11219_v46, %v9999_v5  ;;  %6247 = vmatmul.bf16.gmra.mxu1 %v5837_v30  ;;  %v3786_v41 = vsel %vm3722_vm0, %v3721_v39, %v12148_v22  ;;  %v6194_v30 = vadd.f32 %v18284_v8, %v17873_v17  ;;  %v13268_v46 = vunpack.i.h.bf16 %v18260_v44  ;;  %v10261_v23 = vld [vmem:[%s20277_s6 + $0x278] sm:$0xf0] }
 0x569   :  { %9819 = vmatmul.msk.bf16.gmra.mxu0 %vm4119_vm9, %v4077_v28  ;;  %v6529_v54 = vadd.f32 %v17760_v49, %v6360_v12  ;;  %6396 = vmatmul.bf16.gmra.mxu2 %v5826_v16  ;;  %v9987_v49 = vld [vmem:[%s20277_s6 + $0x70] sm:$0xf]  ;;  %v13267_v5 = vunpack.i.l.bf16 %v18260_v44  ;;  %v5609_v28 = vsel %vm3722_vm0, %v13522_v11, %v13263_v29  ;;  %v13277_v17 = vunpack.i.l.bf16 %v18300_v9  ;;  %v10177_v44 = vld [vmem:[%s20277_s6 + $0x1d8] sm:$0xf0]  ;;  %v9979_v12 = vld [vmem:[%s20277_s6 + $0x60] sm:$0xf] }
 0x56a   :  { %7006 = vmatpush.bf16.msra.mxu1 %v10002_v60  ;;  %v18329_v4 = vpop.permute.xlu1 %13270  ;;  %v9988_v32 = vor.u32 %v11218_v2, %v9987_v49  ;;  %v5608_v60 = vsel %vm3722_vm0, %v13523_v55, %v13262_v48  ;;  %v18353_v14 = vpack.c.bf16 %v6771_v15, %v6771_v15  ;;  %v11216_v16 = vld [vmem:[%s20277_s6 + $0x64] sm:$0xf0]  ;;  %v18367_v9 = vpack.c.bf16 %v7176_v59, %v7176_v59  ;;  %v11259_v29 = vld [vmem:[%s20277_s6 + $0x1c4] sm:$0xf] }
 0x56b   :  { %v6630_v25 = vmax.f32 %v6529_v54, 0.0  ;;  %v9980_v13 = vor.u32 %v11216_v16, %v9979_v12  ;;  %v13273_v22 = vunpack.i.h.bf16 %v18329_v4  ;;  %v13272_v54 = vunpack.i.l.bf16 %v18329_v4  ;;  %v10169_v4 = vld [vmem:[%s20277_s6 + $0x1c8] sm:$0xf0]  ;;  %v11239_v11 = vld [vmem:[%s20277_s6 + $0x124] sm:$0xf] }
 0x56c   :  { %7248 = vmatpush.bf16.msrb.mxu3 %v10112_v53  ;;  %v11263_v53 = vld [vmem:[%s20277_s6 + $0x1e4] sm:$0xf]  ;;  %v13281_v56 = vpop.permute.xlu0 %13280  ;;  %6909 = vmatpush.bf16.msra.mxu0 %v9988_v32  ;;  %v10180_v43 = vor.u32 %v11261_v58, %v10177_v44  ;;  %v3850_v48 = vsel %vm3787_vm5, %v3785_v37, %v13277_v17  ;;  %v13293_v2 = vunpack.i.h.bf16 %v13291_v20  ;;  %v13292_v62 = vunpack.i.l.bf16 %v13291_v20  ;;  %v11281_v37 = vld [vmem:[%s20277_s6 + $0x274] sm:$0xf]  ;;  %v9963_v16 = vld [vmem:[%s20277_s6 + $0x40] sm:$0xf] }
 0x56d   :  { %v10188_v40 = vor.u32 %v11263_v53, %v10185_v47  ;;  %6694 = vst.msk [vmem:[#allocation3 + $0x138] sm:$0xff] %vm3982_vm8, %v6630_v25  ;;  %v13283_v45 = vunpack.i.h.bf16 %v13281_v56  ;;  %v13282_v6 = vunpack.i.l.bf16 %v13281_v56  ;;  %v5673_v53 = vsel %vm3982_vm8, %v5609_v28, %v13268_v46  ;;  %v11214_v25 = vld [vmem:[%s20277_s6 + $0x54] sm:$0xf0]  ;;  %v10083_v28 = vld [vmem:[%s20277_s6 + $0x128] sm:$0xf0] }
 0x56e   :  { %v6362_v19 = vpop.f32.mrf.mxu2  ;;  %v18365_v38 = vpop.f32.mrf.mxu3  ;;  %v5672_v47 = vsel %vm3982_vm8, %v5608_v60, %v13267_v5  ;;  %v5737_v46 = vsel %vm5543_vm10, %v5673_v53, %v13273_v22  ;;  %v10172_v44 = vor.u32 %v11259_v29, %v10169_v4  ;;  %v10264_v12 = vor.u32 %v11281_v37, %v10261_v23  ;;  %v10253_v22 = vld [vmem:[%s20277_s6 + $0x268] sm:$0xf0]  ;;  %v11237_v53 = vld [vmem:[%s20277_s6 + $0x114] sm:$0xf] }
 0x56f   :  { %v6363_v51 = vadd.f32 %v6362_v19, %v6194_v30  ;;  %v5736_v30 = vsel %vm5543_vm10, %v5672_v47, %v13272_v54  ;;  %v6215_v55 = vpop.f32.mrf.mxu1  ;;  %v10086_v54 = vor.u32 %v11239_v11, %v10083_v28  ;;  %v10075_v47 = vld [vmem:[%s20277_s6 + $0x118] sm:$0xf0]  ;;  %v13525_v4 = vld [vmem:[#allocation2 + $0x210] sm:$0xff] }
 0x570   :  { %7249 = vmatpush.bf16.msrb.mxu3 %v10104_v10  ;;  %v3851_v10 = vsel %vm3787_vm5, %v3786_v41, %v13278_v18  ;;  %6910 = vmatpush.bf16.msra.mxu0 %v9980_v13  ;;  %v3915_v41 = vsel %vm3852_vm6, %v3850_v48, %v13282_v6  ;;  %v11279_v6 = vld [vmem:[%s20277_s6 + $0x264] sm:$0xf]  ;;  %v13306_v48 = vpop.permute.xlu2 %13305  ;;  %v11297_v11 = vld [vmem:[%s20277_s6 + $0x2f4] sm:$0xf]  ;;  %v10329_v55 = vld [vmem:[%s20277_s6 + $0x2f8] sm:$0xf0] }
 0x571   :  { %v6532_v33 = vadd.f32 %v17792_v61, %v6363_v51  ;;  %v9971_v61 = vld [vmem:[%s20277_s6 + $0x50] sm:$0xf]  ;;  %v13308_v23 = vunpack.i.h.bf16 %v13306_v48 }
 0x572   :  { %v13286_v49 = vpop.permute.xlu1 %13285  ;;  %v9972_v59 = vor.u32 %v11214_v25, %v9971_v61  ;;  %v11277_v61 = vld [vmem:[%s20277_s6 + $0x254] sm:$0xf]  ;;  %v10245_v25 = vld [vmem:[%s20277_s6 + $0x258] sm:$0xf0] }
 0x573   :  { %v6631_v15 = vmax.f32 %v6532_v33, 0.0  ;;  %v13288_v32 = vunpack.i.h.bf16 %v13286_v49  ;;  %v13287_v39 = vunpack.i.l.bf16 %v13286_v49  ;;  %10130 = vmatmul.msk.bf16.vlgmr.msrb.gmra.mxu3 %vm3982_vm8, %v18367_v9  ;;  %v10256_v49 = vor.u32 %v11279_v6, %v10253_v22  ;;  %v11295_v6 = vld [vmem:[%s20277_s6 + $0x2e4] sm:$0xf] }
 0x574   :  { %7408 = vmatpush.bf16.msra.mxu3 %v10196_v36  ;;  %v11241_v36 = vld [vmem:[%s20277_s6 + $0x134] sm:$0xf]  ;;  %v13296_v58 = vpop.permute.xlu0 %13295  ;;  %6911 = vmatpush.bf16.msra.mxu0 %v9972_v59  ;;  %v13307_v59 = vunpack.i.l.bf16 %v13306_v48 }
 0x575   :  { %v10094_v18 = vor.u32 %v11241_v36, %v10091_v57  ;;  %6695 = vst.msk [vmem:[#allocation3 + $0x140] sm:$0xff] %vm3982_vm8, %v6631_v15  ;;  %v3980_v56 = vsel %vm3917_vm7, %v3915_v41, %v13287_v39  ;;  %v5829_v36 = vpack.c.bf16 %v5737_v46, %v5736_v30  ;;  %v13298_v13 = vunpack.i.h.bf16 %v13296_v58  ;;  %v10067_v39 = vld [vmem:[%s20277_s6 + $0x108] sm:$0xf0] }
 0x576   :  { %v4045_v60 = vsel %vm3982_vm8, %v3980_v56, %v13292_v62  ;;  %v6364_v19 = vpop.f32.mrf.mxu2  ;;  %v18422_v20 = vpop.f32.mrf.mxu3  ;;  %v10078_v15 = vor.u32 %v11237_v53, %v10075_v47  ;;  %v7338_v46 = vld [vmem:[#allocation3 + $0x88] sm:$0xff]  ;;  %v11275_v56 = vld [vmem:[%s20277_s6 + $0x244] sm:$0xf] }
 0x577   :  { %v18475_v19 = vpack.c.bf16 %v7338_v46, %v7338_v46  ;;  %v10321_v47 = vld [vmem:[%s20277_s6 + $0x2e8] sm:$0xf0] }
 0x578   :  { %7409 = vmatpush.bf16.msra.mxu3 %v10188_v40  ;;  %v3916_v40 = vsel %vm3852_vm6, %v3851_v10, %v13283_v45  ;;  %v11212_v10 = vld [vmem:[%s20277_s6 + $0x44] sm:$0xf0]  ;;  %9960 = vmatmul.msk.bf16.vlgmr.msrb.gmra.mxu1 %vm3982_vm8, %v18353_v14  ;;  %v13297_v45 = vunpack.i.l.bf16 %v13296_v58  ;;  %v10237_v58 = vld [vmem:[%s20277_s6 + $0x248] sm:$0xf0] }
 0x579   :  { %v3981_v5 = vsel %vm3917_vm7, %v3916_v40, %v13288_v32  ;;  %v9964_v57 = vor.u32 %v11212_v10, %v9963_v16  ;;  %7165 = vmatpush.bf16.msrb.mxu1 %v10094_v18  ;;  %6401 = vmatmul.bf16.gmra.mxu2 %v5829_v36  ;;  %v11235_v32 = vld [vmem:[%s20277_s6 + $0x104] sm:$0xf]  ;;  %v6933_v16 = vld [vmem:[#allocation3 + $0x50] sm:$0xff]  ;;  %v10240_v10 = vor.u32 %v11275_v56, %v10237_v58  ;;  %v11226_v36 = vld [vmem:[%s20277_s6 + $0xb4] sm:$0xf0]  ;;  %v13321_v58 = vpop.permute.xlu2 %13320 }
 0x57a   :  { %v4046_v17 = vsel %vm3982_vm8, %v3981_v5, %v13293_v2  ;;  %v13301_v33 = vpop.permute.xlu1 %13300  ;;  %v13524_v2 = vld [vmem:[#allocation2 + $0x218] sm:$0xff]  ;;  %v5610_v18 = vsel %vm3722_vm0, %v13525_v4, %v13297_v45  ;;  %v10248_v5 = vor.u32 %v11277_v61, %v10245_v25  ;;  %v10070_v28 = vor.u32 %v11235_v32, %v10067_v39 }
 0x57b   :  { %v4078_v51 = vpack.c.bf16 %v4046_v17, %v4045_v60  ;;  %6912 = vmatpush.bf16.msra.mxu0 %v9964_v57  ;;  %v13302_v29 = vunpack.i.l.bf16 %v13301_v33  ;;  %v5611_v62 = vsel %vm3722_vm0, %v13524_v2, %v13298_v13  ;;  %v11257_v60 = vld [vmem:[%s20277_s6 + $0x1b4] sm:$0xf]  ;;  %v10159_v17 = vld [vmem:[%s20277_s6 + $0x1b8] sm:$0xf0]  ;;  %v10332_v45 = vor.u32 %v11297_v11, %v10329_v55  ;;  %v10013_v2 = vld [vmem:[%s20277_s6 + $0xa0] sm:$0xf] }
 0x57c   :  { %7410 = vmatpush.bf16.msra.mxu3 %v10180_v43  ;;  %v13303_v43 = vunpack.i.h.bf16 %v13301_v33  ;;  %v13311_v13 = vpop.permute.xlu0 %13310  ;;  %v10162_v22 = vor.u32 %v11257_v60, %v10159_v17  ;;  %v18490_v53 = vpack.c.bf16 %v6933_v16, %v6933_v16  ;;  %v11255_v33 = vld [vmem:[%s20277_s6 + $0x1a4] sm:$0xf]  ;;  %v10324_v25 = vor.u32 %v11295_v6, %v10321_v47  ;;  %v10313_v32 = vld [vmem:[%s20277_s6 + $0x2d8] sm:$0xf0]  ;;  %v11222_v11 = vld [vmem:[%s20277_s6 + $0x94] sm:$0xf0] }
 0x57d   :  { %9820 = vmatmul.msk.bf16.gmra.mxu0 %vm4119_vm9, %v4078_v51  ;;  %7166 = vmatpush.bf16.msrb.mxu1 %v10086_v54  ;;  %v5674_v30 = vsel %vm3982_vm8, %v5610_v18, %v13302_v29  ;;  %v10021_v51 = vld [vmem:[%s20277_s6 + $0xb0] sm:$0xf]  ;;  %v13312_v18 = vunpack.i.l.bf16 %v13311_v13  ;;  %v13527_v55 = vld [vmem:[#allocation2 + $0x220] sm:$0xff]  ;;  %v11313_v6 = vld [vmem:[%s20277_s6 + $0x374] sm:$0xf] }
 0x57e   :  { %v18453_v37 = vpop.f32.mrf.mxu1  ;;  %v6568_v40 = vpop.f32.mrf.mxu3  ;;  %v5675_v41 = vsel %vm3982_vm8, %v5611_v62, %v13303_v43  ;;  %v10151_v43 = vld [vmem:[%s20277_s6 + $0x1a8] sm:$0xf0]  ;;  %v10022_v29 = vor.u32 %v11226_v36, %v10021_v51  ;;  %v11224_v62 = vld [vmem:[%s20277_s6 + $0xa4] sm:$0xf0]  ;;  %v11251_v16 = vld [vmem:[%s20277_s6 + $0x184] sm:$0xf]  ;;  %v13323_v51 = vunpack.i.h.bf16 %v13321_v58  ;;  %v13322_v36 = vunpack.i.l.bf16 %v13321_v58 }
 0x57f   :  { %v10154_v39 = vor.u32 %v11255_v33, %v10151_v43  ;;  %v10014_v40 = vor.u32 %v11224_v62, %v10013_v2  ;;  %v5612_v60 = vsel %vm3722_vm0, %v13527_v55, %v13312_v18  ;;  %v10397_v43 = vld [vmem:[%s20277_s6 + $0x378] sm:$0xf0]  ;;  %v11273_v18 = vld [vmem:[%s20277_s6 + $0x234] sm:$0xf] }
 0x580   :  { %7411 = vmatpush.bf16.msra.mxu3 %v10172_v44  ;;  %v5738_v44 = vsel %vm5543_vm10, %v5674_v30, %v13307_v59  ;;  %v10143_v59 = vld [vmem:[%s20277_s6 + $0x198] sm:$0xf0]  ;;  %v13526_v30 = vld [vmem:[#allocation2 + $0x228] sm:$0xff] }
 0x581   :  { %7167 = vmatpush.bf16.msrb.mxu1 %v10078_v15  ;;  %v11293_v15 = vld [vmem:[%s20277_s6 + $0x2d4] sm:$0xf] }
 0x582   :  { %v13316_v61 = vpop.permute.xlu1 %13315 }
 0x583   :  { %10198 = vmatmul.msk.bf16.vlgmr.msra.gmra.mxu3 %vm3982_vm8, %v18475_v19  ;;  %v13317_v56 = vunpack.i.l.bf16 %v13316_v61 }
 0x584   :  { %7570 = vmatpush.bf16.msrb.mxu3 %v10264_v12  ;;  %v5739_v12 = vsel %vm5543_vm10, %v5675_v41, %v13308_v23  ;;  %v6367_v57 = vpop.f32.mrf.mxu2  ;;  %v11253_v23 = vld [vmem:[%s20277_s6 + $0x194] sm:$0xf]  ;;  %v6201_v41 = vadd.f32 %v18284_v8, %v17987_v63  ;;  %v10316_v63 = vor.u32 %v11293_v15, %v10313_v32 }
 0x585   :  { %7168 = vmatpush.bf16.msrb.mxu1 %v10070_v28  ;;  %v5832_v54 = vpack.c.bf16 %v5739_v12, %v5738_v44  ;;  %v10146_v17 = vor.u32 %v11253_v23, %v10143_v59  ;;  %v7500_v12 = vld [vmem:[#allocation3 + $0x98] sm:$0xff]  ;;  %v11291_v57 = vld [vmem:[%s20277_s6 + $0x2c4] sm:$0xf]  ;;  %v5676_v33 = vsel %vm3982_vm8, %v5612_v60, %v13317_v56  ;;  %v18574_v23 = vpop.permute.xlu0 %13325  ;;  %v10400_v59 = vor.u32 %v11313_v6, %v10397_v43  ;;  %v10123_v43 = vld [vmem:[%s20277_s6 + $0x170] sm:$0xf] }
 0x586   :  { %v6571_v48 = vpop.f32.mrf.mxu3  ;;  %v18509_v4 = vpop.f32.mrf.mxu1  ;;  %v18562_v2 = vpack.c.bf16 %v7500_v12, %v7500_v12  ;;  %v5740_v15 = vsel %vm5543_vm10, %v5676_v33, %v13322_v36  ;;  %v6204_v56 = vadd.f32 %v18284_v8, %v18056_v34  ;;  %v13327_v55 = vunpack.i.l.bf16 %v18574_v23  ;;  %v11271_v60 = vld [vmem:[%s20277_s6 + $0x224] sm:$0xf]  ;;  %v10219_v34 = vld [vmem:[%s20277_s6 + $0x228] sm:$0xf0]  ;;  %v10081_v36 = vld [vmem:[%s20277_s6 + $0x120] sm:$0xf] }
 0x587   :  { %v11220_v48 = vld [vmem:[%s20277_s6 + $0x84] sm:$0xf0]  ;;  %v10222_v6 = vor.u32 %v11271_v60, %v10219_v34 }
 0x588   :  { %7571 = vmatpush.bf16.msrb.mxu3 %v10256_v49  ;;  %10028 = vmatmul.msk.bf16.vlgmr.msra.gmra.mxu1 %vm3982_vm8, %v18490_v53  ;;  %v13313_v49 = vunpack.i.h.bf16 %v13311_v13  ;;  %v10305_v13 = vld [vmem:[%s20277_s6 + $0x2c8] sm:$0xf0] }
 0x589   :  { %7327 = vmatpush.bf16.msra.mxu1 %v10162_v22  ;;  %6406 = vmatmul.bf16.gmra.mxu2 %v5832_v54  ;;  %v10308_v62 = vor.u32 %v11291_v57, %v10305_v13  ;;  %v11240_v57 = vld [vmem:[%s20277_s6 + $0x124] sm:$0xf0] }
 0x58a   :  { %v5613_v46 = vsel %vm3722_vm0, %v13526_v30, %v13313_v49  ;;  %v10389_v30 = vld [vmem:[%s20277_s6 + $0x368] sm:$0xf0] }
 0x58c   :  { %7572 = vmatpush.bf16.msrb.mxu3 %v10248_v5  ;;  %v13318_v5 = vunpack.i.h.bf16 %v13316_v61  ;;  %v6369_v28 = vpop.f32.mrf.mxu2  ;;  %v10227_v61 = vld [vmem:[%s20277_s6 + $0x238] sm:$0xf0] }
 0x58d   :  { %9959 = vmatmul.msk.bf16.vlgmr.msrb.gmra.mxu0 %vm3982_vm8, %v18353_v14  ;;  %v10005_v14 = vld [vmem:[%s20277_s6 + $0x90] sm:$0xf]  ;;  %7328 = vmatpush.bf16.msra.mxu1 %v10154_v39  ;;  %v6370_v44 = vadd.f32 %v6369_v28, %v6201_v41  ;;  %v7095_v39 = vld [vmem:[#allocation3 + $0x60] sm:$0xff]  ;;  %v10230_v58 = vor.u32 %v11273_v18, %v10227_v61  ;;  %v10373_v18 = vld [vmem:[%s20277_s6 + $0x348] sm:$0xf0] }
 0x58e   :  { %6990 = vmatpush.bf16.msrb.mxu0 %v10022_v29  ;;  %v6573_v54 = vpop.f32.mrf.mxu3  ;;  %v5677_v47 = vsel %vm3982_vm8, %v5613_v46, %v13318_v5  ;;  %v9997_v29 = vld [vmem:[%s20277_s6 + $0x80] sm:$0xf]  ;;  %v11311_v41 = vld [vmem:[%s20277_s6 + $0x364] sm:$0xf]  ;;  %v10089_v46 = vld [vmem:[%s20277_s6 + $0x130] sm:$0xf]  ;;  %v18593_v28 = vpack.c.bf16 %v7095_v39, %v7095_v39 }
 0x58f   :  { %v6539_v22 = vadd.f32 %v17859_v35, %v6370_v44  ;;  %v5741_v32 = vsel %vm5543_vm10, %v5677_v47, %v13323_v51  ;;  %v11242_v5 = vld [vmem:[%s20277_s6 + $0x134] sm:$0xf0]  ;;  %v10392_v44 = vor.u32 %v11311_v41, %v10389_v30  ;;  %v10381_v51 = vld [vmem:[%s20277_s6 + $0x358] sm:$0xf0]  ;;  %v13528_v54 = vld [vmem:[#allocation2 + $0x230] sm:$0xff] }
 0x590   :  { %7573 = vmatpush.bf16.msrb.mxu3 %v10240_v10  ;;  %v10135_v10 = vld [vmem:[%s20277_s6 + $0x188] sm:$0xf0]  ;;  %v10090_v12 = vor.u32 %v11242_v5, %v10089_v46  ;;  %v5614_v47 = vsel %vm3722_vm0, %v13528_v54, %v13327_v55  ;;  %v11238_v39 = vld [vmem:[%s20277_s6 + $0x114] sm:$0xf0]  ;;  %v11267_v46 = vld [vmem:[%s20277_s6 + $0x204] sm:$0xf] }
 0x591   :  { %7329 = vmatpush.bf16.msra.mxu1 %v10146_v17  ;;  %v10138_v35 = vor.u32 %v11251_v16, %v10135_v10  ;;  %v6634_v49 = vmax.f32 %v6539_v22, 0.0  ;;  %v18602_v17 = vpop.permute.xlu1 %13330  ;;  %v11309_v16 = vld [vmem:[%s20277_s6 + $0x354] sm:$0xf]  ;;  %v11248_v55 = vld [vmem:[%s20277_s6 + $0x164] sm:$0xf0] }
 0x592   :  { %6991 = vmatpush.bf16.msrb.mxu0 %v10014_v40  ;;  %v9998_v40 = vor.u32 %v11220_v48, %v9997_v29  ;;  %v11269_v22 = vld [vmem:[%s20277_s6 + $0x214] sm:$0xf]  ;;  %v13332_v33 = vunpack.i.l.bf16 %v18602_v17  ;;  %v11250_v29 = vld [vmem:[%s20277_s6 + $0x174] sm:$0xf0] }
 0x593   :  { %6698 = vst.msk [vmem:[#allocation3 + $0x158] sm:$0xff] %vm3982_vm8, %v6634_v49  ;;  %10266 = vmatmul.msk.bf16.vlgmr.msrb.gmra.mxu3 %vm3982_vm8, %v18562_v2  ;;  %v10082_v49 = vor.u32 %v11240_v57, %v10081_v36  ;;  %v10124_v61 = vor.u32 %v11250_v29, %v10123_v43  ;;  %v10065_v36 = vld [vmem:[%s20277_s6 + $0x100] sm:$0xf]  ;;  %v11236_v57 = vld [vmem:[%s20277_s6 + $0x104] sm:$0xf0] }
 0x594   :  { %7732 = vmatpush.bf16.msra.mxu3 %v10332_v45  ;;  %v10006_v45 = vor.u32 %v11222_v11, %v10005_v14  ;;  %v5835_v11 = vpack.c.bf16 %v5741_v32, %v5740_v15  ;;  %v13333_v15 = vunpack.i.h.bf16 %v18602_v17  ;;  %v10073_v32 = vld [vmem:[%s20277_s6 + $0x110] sm:$0xf] }
 0x595   :  { %7330 = vmatpush.bf16.msra.mxu1 %v10138_v35  ;;  %v6372_v14 = vpop.f32.mrf.mxu2  ;;  %v13336_v35 = vpop.permute.xlu2 %13335  ;;  %7233 = vmatpush.bf16.msra.mxu2 %v10124_v61  ;;  %v10074_v17 = vor.u32 %v11238_v39, %v10073_v32  ;;  %v11258_v61 = vld [vmem:[%s20277_s6 + $0x1b4] sm:$0xf0]  ;;  %v11287_v39 = vld [vmem:[%s20277_s6 + $0x2a4] sm:$0xf] }
 0x596   :  { %6992 = vmatpush.bf16.msrb.mxu0 %v10006_v45  ;;  %v6576_v10 = vpop.f32.mrf.mxu3  ;;  %v13328_v45 = vunpack.i.h.bf16 %v18574_v23  ;;  %v6206_v23 = vadd.f32 %v18284_v8, %v18103_v42  ;;  %v10203_v42 = vld [vmem:[%s20277_s6 + $0x208] sm:$0xf0]  ;;  %v13338_v34 = vunpack.i.h.bf16 %v13336_v35 }
 0x598   :  { %7733 = vmatpush.bf16.msra.mxu3 %v10324_v25  ;;  %v18570_v25 = vpop.f32.mrf.mxu1  ;;  %10096 = vmatmul.msk.bf16.vlgmr.msrb.gmra.mxu1 %vm3982_vm8, %v18593_v28 }
 0x599   :  { %7489 = vmatpush.bf16.msrb.mxu1 %v10230_v58  ;;  %6411 = vmatmul.bf16.gmra.mxu2 %v5835_v11  ;;  %v13337_v58 = vunpack.i.l.bf16 %v13336_v35  ;;  %v10115_v11 = vld [vmem:[%s20277_s6 + $0x160] sm:$0xf]  ;;  %v10066_v35 = vor.u32 %v11236_v57, %v10065_v36  ;;  %v11254_v36 = vld [vmem:[%s20277_s6 + $0x194] sm:$0xf0] }
 0x59a   :  { %6993 = vmatpush.bf16.msrb.mxu0 %v9998_v40  ;;  %v13529_v40 = vld [vmem:[#allocation2 + $0x238] sm:$0xff] }
 0x59b   :  { %v5615_v41 = vsel %vm3722_vm0, %v13529_v40, %v13328_v45  ;;  %v10206_v45 = vor.u32 %v11267_v46, %v10203_v42  ;;  %v11244_v46 = vld [vmem:[%s20277_s6 + $0x144] sm:$0xf0]  ;;  %v10449_v42 = vld [vmem:[%s20277_s6 + $0x3d8] sm:$0xf0] }
 0x59c   :  { %7734 = vmatpush.bf16.msra.mxu3 %v10316_v63  ;;  %v6373_v63 = vadd.f32 %v6372_v14, %v6204_v56  ;;  %v5678_v56 = vsel %vm3982_vm8, %v5614_v47, %v13332_v33  ;;  %v10295_v33 = vld [vmem:[%s20277_s6 + $0x2b8] sm:$0xf0] }
 0x59d   :  { %9993 = vmatmul.msk.bf16.vlgmr.msra.gmra.mxu0 %vm3982_vm8, %v18124_v52  ;;  %v10384_v52 = vor.u32 %v11309_v16, %v10381_v51  ;;  %7490 = vmatpush.bf16.msrb.mxu1 %v10222_v6  ;;  %v6374_v5 = vpop.f32.mrf.mxu2  ;;  %v10116_v16 = vor.u32 %v11248_v55, %v10115_v11  ;;  %v5679_v51 = vsel %vm3982_vm8, %v5615_v41, %v13333_v15  ;;  %v11289_v6 = vld [vmem:[%s20277_s6 + $0x2b4] sm:$0xf]  ;;  %v10287_v41 = vld [vmem:[%s20277_s6 + $0x2a8] sm:$0xf0]  ;;  %v10149_v11 = vld [vmem:[%s20277_s6 + $0x1a0] sm:$0xf] }
 0x59e   :  { %v6542_v13 = vadd.f32 %v17902_v1, %v6373_v63  ;;  %v10211_v1 = vld [vmem:[%s20277_s6 + $0x218] sm:$0xf0]  ;;  %7152 = vmatpush.bf16.msra.mxu0 %v10090_v12  ;;  %v6375_v60 = vadd.f32 %v6374_v5, %v6206_v23  ;;  %v6578_v10 = vpop.f32.mrf.mxu3  ;;  %v5742_v54 = vsel %vm5543_vm10, %v5678_v56, %v13337_v58  ;;  %v5743_v29 = vsel %vm5543_vm10, %v5679_v51, %v13338_v34  ;;  %v11325_v58 = vld [vmem:[%s20277_s6 + $0x3d4] sm:$0xf]  ;;  %v11256_v55 = vld [vmem:[%s20277_s6 + $0x1a4] sm:$0xf0] }
 0x59f   :  { %v10214_v30 = vor.u32 %v11269_v22, %v10211_v1  ;;  %v7662_v63 = vld [vmem:[#allocation3 + $0xb8] sm:$0xff]  ;;  %7234 = vmatpush.bf16.msra.mxu2 %v10116_v16  ;;  %v10298_v32 = vor.u32 %v11289_v6, %v10295_v33  ;;  %v5838_v23 = vpack.c.bf16 %v5743_v29, %v5742_v54  ;;  %v10290_v34 = vor.u32 %v11287_v39, %v10287_v41  ;;  %v11323_v16 = vld [vmem:[%s20277_s6 + $0x3c4] sm:$0xf]  ;;  %v10141_v51 = vld [vmem:[%s20277_s6 + $0x190] sm:$0xf] }
 0x5a0   :  { %7735 = vmatpush.bf16.msra.mxu3 %v10308_v62  ;;  %v6635_v48 = vmax.f32 %v6542_v13, 0.0  ;;  %v11307_v62 = vld [vmem:[%s20277_s6 + $0x344] sm:$0xf]  ;;  %v10465_v12 = vld [vmem:[%s20277_s6 + $0x3f8] sm:$0xf0]  ;;  %v6544_v13 = vadd.f32 %v17920_v24, %v6375_v60  ;;  %v18685_v22 = vpack.c.bf16 %v7662_v63, %v7662_v63  ;;  %v6209_v10 = vadd.f32 %v18284_v8, %v18178_v0  ;;  %v7419_v39 = vld [vmem:[#allocation3 + $0x90] sm:$0xff] }
 0x5a1   :  { %v10376_v14 = vor.u32 %v11307_v62, %v10373_v18  ;;  %7491 = vmatpush.bf16.msrb.mxu1 %v10214_v30  ;;  %v10107_v24 = vld [vmem:[%s20277_s6 + $0x150] sm:$0xf]  ;;  %v11246_v1 = vld [vmem:[%s20277_s6 + $0x154] sm:$0xf0]  ;;  %v10457_v62 = vld [vmem:[%s20277_s6 + $0x3e8] sm:$0xf0]  ;;  %v10142_v33 = vor.u32 %v11254_v36, %v10141_v51 }
 0x5a2   :  { %6699 = vst.msk [vmem:[#allocation3 + $0x160] sm:$0xff] %vm3982_vm8, %v6635_v48  ;;  %7153 = vmatpush.bf16.msra.mxu0 %v10082_v49  ;;  %v6636_v43 = vmax.f32 %v6544_v13, 0.0  ;;  %v7257_v48 = vld [vmem:[#allocation3 + $0x80] sm:$0xff]  ;;  %v10108_v49 = vor.u32 %v11246_v1, %v10107_v24  ;;  %v10157_v18 = vld [vmem:[%s20277_s6 + $0x1b0] sm:$0xf] }
 0x5a3   :  { %10334 = vmatmul.msk.bf16.vlgmr.msra.gmra.mxu3 %vm3982_vm8, %v18685_v22  ;;  %v18718_v40 = vpack.c.bf16 %v7257_v48, %v7257_v48  ;;  %v10099_v30 = vld [vmem:[%s20277_s6 + $0x140] sm:$0xf]  ;;  %v10158_v56 = vor.u32 %v11258_v61, %v10157_v18  ;;  %v11285_v63 = vld [vmem:[%s20277_s6 + $0x294] sm:$0xf]  ;;  %v11283_v0 = vld [vmem:[%s20277_s6 + $0x284] sm:$0xf] }
 0x5a4   :  { %7894 = vmatpush.bf16.msrb.mxu3 %v10400_v59  ;;  %v18652_v59 = vpop.f32.mrf.mxu1  ;;  %6700 = vst.msk [vmem:[#allocation3 + $0x168] sm:$0xff] %vm3982_vm8, %v6636_v43  ;;  %7235 = vmatpush.bf16.msra.mxu2 %v10108_v49  ;;  %v10100_v60 = vor.u32 %v11244_v46, %v10099_v30  ;;  %v10271_v54 = vld [vmem:[%s20277_s6 + $0x288] sm:$0xf0]  ;;  %v11345_v24 = vld [vmem:[%s20277_s6 + $0x474] sm:$0xf]  ;;  %v6211_v46 = vadd.f32 %v18284_v8, %v18254_v31 }
 0x5a5   :  { %7492 = vmatpush.bf16.msrb.mxu1 %v10206_v45  ;;  %v10533_v1 = vld [vmem:[%s20277_s6 + $0x478] sm:$0xf0]  ;;  %v7824_v48 = vld [vmem:[#allocation3 + $0xc8] sm:$0xff]  ;;  %v10274_v49 = vor.u32 %v11283_v0, %v10271_v54  ;;  %v11305_v61 = vld [vmem:[%s20277_s6 + $0x334] sm:$0xf] }
 0x5a6   :  { %7154 = vmatpush.bf16.msra.mxu0 %v10074_v17  ;;  %v10279_v17 = vld [vmem:[%s20277_s6 + $0x298] sm:$0xf0]  ;;  %v10536_v18 = vor.u32 %v11345_v24, %v10533_v1  ;;  %v11343_v41 = vld [vmem:[%s20277_s6 + $0x464] sm:$0xf]  ;;  %v10525_v30 = vld [vmem:[%s20277_s6 + $0x468] sm:$0xf0] }
 0x5a7   :  { %v10282_v45 = vor.u32 %v11285_v63, %v10279_v17  ;;  %v10225_v31 = vld [vmem:[%s20277_s6 + $0x230] sm:$0xf]  ;;  %v11274_v8 = vld [vmem:[%s20277_s6 + $0x234] sm:$0xf0]  ;;  %v10528_v63 = vor.u32 %v11343_v41, %v10525_v30  ;;  %v10183_v51 = vld [vmem:[%s20277_s6 + $0x1e0] sm:$0xf] }
 0x5a8   :  { %7895 = vmatpush.bf16.msrb.mxu3 %v10392_v44  ;;  %v11329_v44 = vld [vmem:[%s20277_s6 + $0x3f4] sm:$0xf]  ;;  %10164 = vmatmul.msk.bf16.vlgmr.msra.gmra.mxu1 %vm3982_vm8, %v18718_v40  ;;  %v11264_v36 = vld [vmem:[%s20277_s6 + $0x1e4] sm:$0xf0]  ;;  %v10347_v0 = vld [vmem:[%s20277_s6 + $0x318] sm:$0xf0] }
 0x5a9   :  { %v10468_v47 = vor.u32 %v11329_v44, %v10465_v12  ;;  %7651 = vmatpush.bf16.msra.mxu1 %v10298_v32  ;;  %6416 = vmatmul.bf16.gmra.mxu2 %v5838_v23  ;;  %v10452_v44 = vor.u32 %v11325_v58, %v10449_v42  ;;  %v10150_v12 = vor.u32 %v11256_v55, %v10149_v11  ;;  %v10175_v24 = vld [vmem:[%s20277_s6 + $0x1d0] sm:$0xf]  ;;  %v11262_v1 = vld [vmem:[%s20277_s6 + $0x1d4] sm:$0xf0]  ;;  %v7986_v30 = vld [vmem:[#allocation3 + $0xe8] sm:$0xff] }
 0x5aa   :  { %7155 = vmatpush.bf16.msra.mxu0 %v10066_v35  ;;  %7236 = vmatpush.bf16.msra.mxu2 %v10100_v60  ;;  %v10133_v35 = vld [vmem:[%s20277_s6 + $0x180] sm:$0xf]  ;;  %v18790_v32 = vpack.c.bf16 %v7824_v48, %v7824_v48  ;;  %v18815_v55 = vpack.c.bf16 %v7419_v39, %v7419_v39  ;;  %v11303_v60 = vld [vmem:[%s20277_s6 + $0x324] sm:$0xf]  ;;  %v11361_v39 = vld [vmem:[%s20277_s6 + $0x4f4] sm:$0xf] }
 0x5ab   :  { %v6377_v57 = vpop.f32.mrf.mxu2 }
 0x5ac   :  { %7896 = vmatpush.bf16.msrb.mxu3 %v10384_v52  ;;  %v11327_v52 = vld [vmem:[%s20277_s6 + $0x3e4] sm:$0xf]  ;;  %v18713_v15 = vpop.f32.mrf.mxu1  ;;  %v6378_v6 = vadd.f32 %v6377_v57, %v6209_v10  ;;  %v10226_v10 = vor.u32 %v11274_v8, %v10225_v31  ;;  %v11321_v8 = vld [vmem:[%s20277_s6 + $0x3b4] sm:$0xf] }
 0x5ad   :  { %v10460_v5 = vor.u32 %v11327_v52, %v10457_v62  ;;  %10027 = vmatmul.msk.bf16.vlgmr.msrb.gmra.mxu0 %vm3982_vm8, %v18490_v53  ;;  %v10441_v53 = vld [vmem:[%s20277_s6 + $0x3c8] sm:$0xf0]  ;;  %7652 = vmatpush.bf16.msra.mxu1 %v10290_v34  ;;  %v11252_v52 = vld [vmem:[%s20277_s6 + $0x184] sm:$0xf0] }
 0x5ae   :  { %7314 = vmatpush.bf16.msrb.mxu0 %v10158_v56  ;;  %v6547_v43 = vadd.f32 %v17966_v26, %v6378_v6  ;;  %v10363_v26 = vld [vmem:[%s20277_s6 + $0x338] sm:$0xf0]  ;;  %v10134_v23 = vor.u32 %v11252_v52, %v10133_v35  ;;  %v11266_v56 = vld [vmem:[%s20277_s6 + $0x1f4] sm:$0xf0]  ;;  %v10355_v34 = vld [vmem:[%s20277_s6 + $0x328] sm:$0xf0] }
 0x5af   :  { %v10366_v42 = vor.u32 %v11305_v61, %v10363_v26  ;;  %v10358_v57 = vor.u32 %v11303_v60, %v10355_v34  ;;  %v11301_v6 = vld [vmem:[%s20277_s6 + $0x314] sm:$0xf]  ;;  %v10209_v35 = vld [vmem:[%s20277_s6 + $0x210] sm:$0xf]  ;;  %v11270_v52 = vld [vmem:[%s20277_s6 + $0x214] sm:$0xf0]  ;;  %v10176_v26 = vor.u32 %v11262_v1, %v10175_v24  ;;  %v18903_v60 = vpack.c.bf16 %v7986_v30, %v7986_v30 }
 0x5b0   :  { %7897 = vmatpush.bf16.msrb.mxu3 %v10376_v14  ;;  %v6581_v14 = vpop.f32.mrf.mxu3  ;;  %v6637_v62 = vmax.f32 %v6547_v43, 0.0  ;;  %v10350_v48 = vor.u32 %v11301_v6, %v10347_v0  ;;  %v7581_v34 = vld [vmem:[#allocation3 + $0xb0] sm:$0xff]  ;;  %v11319_v0 = vld [vmem:[%s20277_s6 + $0x3a4] sm:$0xf]  ;;  %v10585_v1 = vld [vmem:[%s20277_s6 + $0x4d8] sm:$0xf0] }
 0x5b1   :  { %7653 = vmatpush.bf16.msra.mxu1 %v10282_v45  ;;  %v18930_v6 = vpack.c.bf16 %v7581_v34, %v7581_v34  ;;  %v10669_v34 = vld [vmem:[%s20277_s6 + $0x578] sm:$0xf0] }
 0x5b2   :  { %7315 = vmatpush.bf16.msrb.mxu0 %v10150_v12  ;;  %6701 = vst.msk [vmem:[#allocation3 + $0x170] sm:$0xff] %vm3982_vm8, %v6637_v62  ;;  %v11299_v62 = vld [vmem:[%s20277_s6 + $0x304] sm:$0xf] }
 0x5b3   :  { %10402 = vmatmul.msk.bf16.vlgmr.msrb.gmra.mxu3 %vm3982_vm8, %v18790_v32  ;;  %v6379_v58 = vpop.f32.mrf.mxu2 }
 0x5b4   :  { %8056 = vmatpush.bf16.msra.mxu3 %v10468_v47  ;;  %v6230_v13 = vpop.f32.mrf.mxu1  ;;  %v10444_v47 = vor.u32 %v11323_v16, %v10441_v53  ;;  %v6380_v11 = vadd.f32 %v6379_v58, %v6211_v46  ;;  %v10517_v53 = vld [vmem:[%s20277_s6 + $0x458] sm:$0xf0]  ;;  %v10210_v46 = vor.u32 %v11270_v52, %v10209_v35  ;;  %v10285_v35 = vld [vmem:[%s20277_s6 + $0x2a0] sm:$0xf]  ;;  %v11288_v52 = vld [vmem:[%s20277_s6 + $0x2a4] sm:$0xf0] }
 0x5b5   :  { %7654 = vmatpush.bf16.msra.mxu1 %v10274_v49  ;;  %v11272_v13 = vld [vmem:[%s20277_s6 + $0x224] sm:$0xf0] }
 0x5b6   :  { %7316 = vmatpush.bf16.msrb.mxu0 %v10142_v33  ;;  %v6549_v12 = vadd.f32 %v18000_v7, %v6380_v11  ;;  %v10217_v7 = vld [vmem:[%s20277_s6 + $0x220] sm:$0xf]  ;;  %v11339_v33 = vld [vmem:[%s20277_s6 + $0x444] sm:$0xf]  ;;  %v10431_v11 = vld [vmem:[%s20277_s6 + $0x3b8] sm:$0xf0] }
 0x5b8   :  { %8057 = vmatpush.bf16.msra.mxu3 %v10460_v5  ;;  %v6583_v29 = vpop.f32.mrf.mxu3  ;;  %v10191_v5 = vld [vmem:[%s20277_s6 + $0x1f0] sm:$0xf]  ;;  %10232 = vmatmul.msk.bf16.vlgmr.msrb.gmra.mxu1 %vm3982_vm8, %v18815_v55  ;;  %v6638_v45 = vmax.f32 %v6549_v12, 0.0  ;;  %v18914_v12 = vld [vmem:[%s20276_s5] ss:$0 sm:$0xff] }
 0x5b9   :  { %v10192_v17 = vor.u32 %v11266_v56, %v10191_v5  ;;  %7813 = vmatpush.bf16.msrb.mxu1 %v10366_v42  ;;  %10061 = vmatmul.msk.bf16.vlgmr.msrb.gmra.mxu2 %vm3982_vm8, %v18256_v27  ;;  %v10509_v27 = vld [vmem:[%s20277_s6 + $0x448] sm:$0xf0]  ;;  %v10167_v5 = vld [vmem:[%s20277_s6 + $0x1c0] sm:$0xf]  ;;  %v11260_v56 = vld [vmem:[%s20277_s6 + $0x1c4] sm:$0xf0] }
 0x5ba   :  { %7317 = vmatpush.bf16.msrb.mxu0 %v10134_v23  ;;  %6702 = vst.msk [vmem:[#allocation3 + $0x178] sm:$0xff] %vm3982_vm8, %v6638_v45  ;;  %v10512_v61 = vor.u32 %v11339_v33, %v10509_v27  ;;  %v10601_v23 = vld [vmem:[%s20277_s6 + $0x4f8] sm:$0xf0]  ;;  %v11268_v42 = vld [vmem:[%s20277_s6 + $0x204] sm:$0xf0] }
 0x5bb   :  { %7395 = vmatpush.bf16.msrb.mxu2 %v10192_v17  ;;  %v6382_v43 = vpop.f32.mrf.mxu2  ;;  %v10604_v31 = vor.u32 %v11361_v39, %v10601_v23  ;;  %v11359_v17 = vld [vmem:[%s20277_s6 + $0x4e4] sm:$0xf]  ;;  %v11357_v27 = vld [vmem:[%s20277_s6 + $0x4d4] sm:$0xf]  ;;  %v10286_v39 = vor.u32 %v11288_v52, %v10285_v35  ;;  %v10243_v23 = vld [vmem:[%s20277_s6 + $0x250] sm:$0xf] }
 0x5bc   :  { %8058 = vmatpush.bf16.msra.mxu3 %v10452_v44  ;;  %v6233_v14 = vpop.f32.mrf.mxu1  ;;  %v11341_v44 = vld [vmem:[%s20277_s6 + $0x454] sm:$0xf]  ;;  %v10251_v43 = vld [vmem:[%s20277_s6 + $0x260] sm:$0xf] }
 0x5bd   :  { %10095 = vmatmul.msk.bf16.vlgmr.msra.gmra.mxu0 %vm3982_vm8, %v18593_v28  ;;  %v10520_v54 = vor.u32 %v11341_v44, %v10517_v53  ;;  %v10218_v28 = vor.u32 %v11272_v13, %v10217_v7  ;;  %7814 = vmatpush.bf16.msrb.mxu1 %v10358_v57  ;;  %v10201_v14 = vld [vmem:[%s20277_s6 + $0x200] sm:$0xf]  ;;  %v10593_v44 = vld [vmem:[%s20277_s6 + $0x4e8] sm:$0xf0]  ;;  %v11282_v53 = vld [vmem:[%s20277_s6 + $0x274] sm:$0xf0]  ;;  %v10434_v57 = vor.u32 %v11321_v8, %v10431_v11 }
 0x5be   :  { %7476 = vmatpush.bf16.msra.mxu0 %v10226_v10  ;;  %v4369_v49 = vpop.f32.mrf.mxu0  ;;  %v10259_v10 = vld [vmem:[%s20277_s6 + $0x270] sm:$0xf]  ;;  %v11290_v13 = vld [vmem:[%s20277_s6 + $0x2b4] sm:$0xf0]  ;;  %v11377_v11 = vld [vmem:[%s20277_s6 + $0x574] sm:$0xf] }
 0x5bf   :  { %v10293_v7 = vld [vmem:[%s20277_s6 + $0x2b0] sm:$0xf]  ;;  %v10260_v33 = vor.u32 %v11282_v53, %v10259_v10  ;;  %v11317_v49 = vld [vmem:[%s20277_s6 + $0x394] sm:$0xf]  ;;  %v10235_v53 = vld [vmem:[%s20277_s6 + $0x240] sm:$0xf] }
 0x5c0   :  { %8059 = vmatpush.bf16.msra.mxu3 %v10444_v47  ;;  %v6586_v16 = vpop.f32.mrf.mxu3  ;;  %v10184_v47 = vor.u32 %v11264_v36, %v10183_v51  ;;  %v10294_v24 = vor.u32 %v11290_v13, %v10293_v7  ;;  %v10672_v13 = vor.u32 %v11377_v11, %v10669_v34  ;;  %v10483_v11 = vld [vmem:[%s20277_s6 + $0x418] sm:$0xf0] }
 0x5c1   :  { %7815 = vmatpush.bf16.msrb.mxu1 %v10350_v48  ;;  %v10202_v16 = vor.u32 %v11268_v42, %v10201_v14  ;;  %v11315_v14 = vld [vmem:[%s20277_s6 + $0x384] sm:$0xf]  ;;  %v10407_v42 = vld [vmem:[%s20277_s6 + $0x388] sm:$0xf0] }
 0x5c2   :  { %7396 = vmatpush.bf16.msrb.mxu2 %v10184_v47  ;;  %7477 = vmatpush.bf16.msra.mxu0 %v10218_v28  ;;  %v10596_v47 = vor.u32 %v11359_v17, %v10593_v44 }
 0x5c3   :  { %10470 = vmatmul.msk.bf16.vlgmr.msra.gmra.mxu3 %vm3982_vm8, %v18903_v60  ;;  %v6384_v51 = vpop.f32.mrf.mxu2 }
 0x5c4   :  { %8218 = vmatpush.bf16.msrb.mxu3 %v10536_v18  ;;  %v6235_v29 = vpop.f32.mrf.mxu1  ;;  %v10339_v18 = vld [vmem:[%s20277_s6 + $0x308] sm:$0xf0]  ;;  %v11276_v51 = vld [vmem:[%s20277_s6 + $0x244] sm:$0xf0] }
 0x5c5   :  { %v10342_v58 = vor.u32 %v11299_v62, %v10339_v18  ;;  %v11280_v29 = vld [vmem:[%s20277_s6 + $0x264] sm:$0xf0]  ;;  %v10415_v62 = vld [vmem:[%s20277_s6 + $0x398] sm:$0xf0]  ;;  %v10588_v18 = vor.u32 %v11357_v27, %v10585_v1  ;;  %v11375_v27 = vld [vmem:[%s20277_s6 + $0x564] sm:$0xf]  ;;  %v6221_v1 = vadd.f32 %v18914_v12, %v18509_v4 }
 0x5c6   :  { %7397 = vmatpush.bf16.msrb.mxu2 %v10176_v26  ;;  %7478 = vmatpush.bf16.msra.mxu0 %v10210_v46  ;;  %v4371_v45 = vpop.f32.mrf.mxu0  ;;  %v11355_v26 = vld [vmem:[%s20277_s6 + $0x4c4] sm:$0xf]  ;;  %v10361_v4 = vld [vmem:[%s20277_s6 + $0x330] sm:$0xf] }
 0x5c7   :  { %7816 = vmatpush.bf16.msrb.mxu1 %v10342_v58  ;;  %v11337_v45 = vld [vmem:[%s20277_s6 + $0x434] sm:$0xf] }
 0x5c8   :  { %8219 = vmatpush.bf16.msrb.mxu3 %v10528_v63  ;;  %v6588_v41 = vpop.f32.mrf.mxu3  ;;  %v10168_v63 = vor.u32 %v11260_v56, %v10167_v5  ;;  %10300 = vmatmul.msk.bf16.vlgmr.msra.gmra.mxu1 %vm3982_vm8, %v18930_v6  ;;  %v10418_v5 = vor.u32 %v11317_v49, %v10415_v62  ;;  %v10277_v56 = vld [vmem:[%s20277_s6 + $0x290] sm:$0xf]  ;;  %v11306_v62 = vld [vmem:[%s20277_s6 + $0x334] sm:$0xf0] }
 0x5c9   :  { %10129 = vmatmul.msk.bf16.vlgmr.msra.gmra.mxu2 %vm3982_vm8, %v18367_v9  ;;  %v10577_v9 = vld [vmem:[%s20277_s6 + $0x4c8] sm:$0xf0]  ;;  %v11278_v41 = vld [vmem:[%s20277_s6 + $0x254] sm:$0xf0] }
 0x5ca   :  { %7398 = vmatpush.bf16.msrb.mxu2 %v10168_v63  ;;  %7479 = vmatpush.bf16.msra.mxu0 %v10202_v16  ;;  %v10244_v8 = vor.u32 %v11278_v41, %v10243_v23  ;;  %v8148_v16 = vld [vmem:[#allocation3 + $0xf8] sm:$0xff]  ;;  %v11373_v23 = vld [vmem:[%s20277_s6 + $0x554] sm:$0xf] }
 0x5cb   :  { %7975 = vmatpush.bf16.msra.mxu1 %v10434_v57  ;;  %v11284_v57 = vld [vmem:[%s20277_s6 + $0x284] sm:$0xf0] }
 0x5cc   :  { %8220 = vmatpush.bf16.msrb.mxu3 %v10520_v54  ;;  %v6238_v36 = vpop.f32.mrf.mxu1  ;;  %v10423_v54 = vld [vmem:[%s20277_s6 + $0x3a8] sm:$0xf0]  ;;  %v6387_v30 = vpop.f32.mrf.mxu2 }
 0x5cd   :  { %v10426_v48 = vor.u32 %v11319_v0, %v10423_v54  ;;  %10163 = vmatmul.msk.bf16.vlgmr.msrb.gmra.mxu0 %vm3982_vm8, %v18718_v40  ;;  %v6219_v40 = vadd.f32 %v18914_v12, %v18453_v37  ;;  %v11286_v37 = vld [vmem:[%s20277_s6 + $0x294] sm:$0xf0]  ;;  %v10410_v36 = vor.u32 %v11315_v14, %v10407_v42  ;;  %v10499_v0 = vld [vmem:[%s20277_s6 + $0x438] sm:$0xf0]  ;;  %v19023_v54 = vpack.c.bf16 %v8148_v16, %v8148_v16  ;;  %v10353_v14 = vld [vmem:[%s20277_s6 + $0x320] sm:$0xf] }
 0x5ce   :  { %7557 = vmatpush.bf16.msra.mxu2 %v10260_v33  ;;  %7638 = vmatpush.bf16.msrb.mxu0 %v10294_v24  ;;  %v10278_v10 = vor.u32 %v11286_v37, %v10277_v56  ;;  %v10236_v33 = vor.u32 %v11276_v51, %v10235_v53  ;;  %v10661_v24 = vld [vmem:[%s20277_s6 + $0x568] sm:$0xf0]  ;;  %v10502_v49 = vor.u32 %v11337_v45, %v10499_v0  ;;  %v10653_v56 = vld [vmem:[%s20277_s6 + $0x558] sm:$0xf0]  ;;  %v10319_v37 = vld [vmem:[%s20277_s6 + $0x2e0] sm:$0xf] }
 0x5cf   :  { %7976 = vmatpush.bf16.msra.mxu1 %v10426_v48  ;;  %v6388_v58 = vadd.f32 %v6387_v30, %v6219_v40  ;;  %v4374_v44 = vpop.f32.mrf.mxu0  ;;  %v11298_v48 = vld [vmem:[%s20277_s6 + $0x2f4] sm:$0xf0]  ;;  %v10664_v40 = vor.u32 %v11375_v27, %v10661_v24  ;;  %v11304_v42 = vld [vmem:[%s20277_s6 + $0x324] sm:$0xf0]  ;;  %v10656_v34 = vor.u32 %v11373_v23, %v10653_v56  ;;  %v10475_v45 = vld [vmem:[%s20277_s6 + $0x408] sm:$0xf0] }
 0x5d0   :  { %8221 = vmatpush.bf16.msrb.mxu3 %v10512_v61  ;;  %v18941_v28 = vpop.f32.mrf.mxu3  ;;  %v10252_v61 = vor.u32 %v11280_v29, %v10251_v43  ;;  %v10327_v29 = vld [vmem:[%s20277_s6 + $0x2f0] sm:$0xf]  ;;  %v11371_v44 = vld [vmem:[%s20277_s6 + $0x544] sm:$0xf]  ;;  %v10354_v16 = vor.u32 %v11304_v42, %v10353_v14  ;;  %v11294_v53 = vld [vmem:[%s20277_s6 + $0x2d4] sm:$0xf0] }
 0x5d1   :  { %v6557_v63 = vadd.f32 %v18166_v50, %v6388_v58  ;;  %v10269_v50 = vld [vmem:[%s20277_s6 + $0x280] sm:$0xf]  ;;  %v10737_v27 = vld [vmem:[%s20277_s6 + $0x5f8] sm:$0xf0]  ;;  %v11391_v23 = vld [vmem:[%s20277_s6 + $0x5e4] sm:$0xf] }
 0x5d2   :  { %7558 = vmatpush.bf16.msra.mxu2 %v10252_v61  ;;  %7639 = vmatpush.bf16.msrb.mxu0 %v10286_v39  ;;  %v10270_v43 = vor.u32 %v11284_v57, %v10269_v50  ;;  %v10328_v39 = vor.u32 %v11298_v48, %v10327_v29  ;;  %v11302_v57 = vld [vmem:[%s20277_s6 + $0x314] sm:$0xf0]  ;;  %v10303_v48 = vld [vmem:[%s20277_s6 + $0x2c0] sm:$0xf]  ;;  %v10395_v56 = vld [vmem:[%s20277_s6 + $0x370] sm:$0xf] }
 0x5d3   :  { %7977 = vmatpush.bf16.msra.mxu1 %v10418_v5  ;;  %v6641_v7 = vmax.f32 %v6557_v63, 0.0  ;;  %10538 = vmatmul.msk.bf16.vlgmr.msrb.gmra.mxu3 %vm3982_vm8, %v19023_v54  ;;  %v10362_v5 = vor.u32 %v11306_v62, %v10361_v4  ;;  %v11322_v42 = vld [vmem:[%s20277_s6 + $0x3b4] sm:$0xf0] }
 0x5d4   :  { %8380 = vmatpush.bf16.msra.mxu3 %v10604_v31  ;;  %v6240_v46 = vpop.f32.mrf.mxu1  ;;  %v10580_v31 = vor.u32 %v11355_v26, %v10577_v9  ;;  %v6389_v35 = vpop.f32.mrf.mxu2  ;;  %v11335_v26 = vld [vmem:[%s20277_s6 + $0x424] sm:$0xf]  ;;  %v10491_v9 = vld [vmem:[%s20277_s6 + $0x428] sm:$0xf0] }
 0x5d5   :  { %6705 = vst.msk [vmem:[#allocation3 + $0x190] sm:$0xff] %vm3982_vm8, %v6641_v7  ;;  %v10494_v58 = vor.u32 %v11335_v26, %v10491_v9  ;;  %v10567_v26 = vld [vmem:[%s20277_s6 + $0x4b8] sm:$0xf0] }
 0x5d6   :  { %7559 = vmatpush.bf16.msra.mxu2 %v10244_v8  ;;  %7640 = vmatpush.bf16.msrb.mxu0 %v10278_v10  ;;  %v11333_v8 = vld [vmem:[%s20277_s6 + $0x414] sm:$0xf]  ;;  %v10311_v10 = vld [vmem:[%s20277_s6 + $0x2d0] sm:$0xf] }
 0x5d7   :  { %7978 = vmatpush.bf16.msra.mxu1 %v10410_v36  ;;  %v4376_v46 = vpop.f32.mrf.mxu0  ;;  %v10486_v50 = vor.u32 %v11333_v8, %v10483_v11 }
 0x5d8   :  { %8381 = vmatpush.bf16.msra.mxu3 %v10596_v47  ;;  %v19003_v17 = vpop.f32.mrf.mxu3  ;;  %v7743_v47 = vld [vmem:[#allocation3 + $0xc0] sm:$0xff]  ;;  %v6226_v46 = vadd.f32 %v18914_v12, %v18652_v59  ;;  %v10429_v59 = vld [vmem:[%s20277_s6 + $0x3b0] sm:$0xf] }
 0x5d9   :  { %v19048_v61 = vpack.c.bf16 %v7743_v47, %v7743_v47  ;;  %10197 = vmatmul.msk.bf16.vlgmr.msrb.gmra.mxu2 %vm3982_vm8, %v18475_v19  ;;  %v10645_v19 = vld [vmem:[%s20277_s6 + $0x548] sm:$0xf0]  ;;  %v10312_v47 = vor.u32 %v11294_v53, %v10311_v10  ;;  %v10430_v53 = vor.u32 %v11322_v42, %v10429_v59 }
 0x5da   :  { %7560 = vmatpush.bf16.msra.mxu2 %v10236_v33  ;;  %7641 = vmatpush.bf16.msrb.mxu0 %v10270_v43  ;;  %v10648_v0 = vor.u32 %v11371_v44, %v10645_v19  ;;  %v11393_v33 = vld [vmem:[%s20277_s6 + $0x5f4] sm:$0xf]  ;;  %v8310_v43 = vld [vmem:[#allocation3 + $0x108] sm:$0xff] }
 0x5db   :  { %10368 = vmatmul.msk.bf16.vlgmr.msrb.gmra.mxu1 %vm3982_vm8, %v19048_v61  ;;  %v10740_v62 = vor.u32 %v11393_v33, %v10737_v27  ;;  %v19141_v9 = vpack.c.bf16 %v8310_v43, %v8310_v43  ;;  %v10713_v33 = vld [vmem:[%s20277_s6 + $0x5c8] sm:$0xf0]  ;;  %v6229_v27 = vadd.f32 %v18914_v12, %v18713_v15  ;;  %v11310_v43 = vld [vmem:[%s20277_s6 + $0x354] sm:$0xf0]  ;;  %v10413_v15 = vld [vmem:[%s20277_s6 + $0x390] sm:$0xf] }
 0x5dc   :  { %8382 = vmatpush.bf16.msra.mxu3 %v10588_v18  ;;  %v6243_v52 = vpop.f32.mrf.mxu1  ;;  %v6390_v18 = vadd.f32 %v6389_v35, %v6221_v1  ;;  %8137 = vmatpush.bf16.msrb.mxu1 %v10502_v49  ;;  %v6392_v51 = vpop.f32.mrf.mxu2  ;;  %v11292_v35 = vld [vmem:[%s20277_s6 + $0x2c4] sm:$0xf0]  ;;  %v10337_v49 = vld [vmem:[%s20277_s6 + $0x300] sm:$0xf] }
 0x5dd   :  { %10231 = vmatmul.msk.bf16.vlgmr.msra.gmra.mxu0 %vm3982_vm8, %v18815_v55  ;;  %v6224_v55 = vadd.f32 %v18914_v12, %v18570_v25  ;;  %v10345_v25 = vld [vmem:[%s20277_s6 + $0x310] sm:$0xf]  ;;  %v11318_v12 = vld [vmem:[%s20277_s6 + $0x394] sm:$0xf0] }
 0x5de   :  { %v6559_v41 = vadd.f32 %v18227_v21, %v6390_v18  ;;  %v11296_v21 = vld [vmem:[%s20277_s6 + $0x2e4] sm:$0xf0]  ;;  %7719 = vmatpush.bf16.msrb.mxu2 %v10328_v39  ;;  %7800 = vmatpush.bf16.msra.mxu0 %v10362_v5  ;;  %v10346_v29 = vor.u32 %v11302_v57, %v10345_v25  ;;  %v11353_v18 = vld [vmem:[%s20277_s6 + $0x4b4] sm:$0xf]  ;;  %v10304_v39 = vor.u32 %v11292_v35, %v10303_v48  ;;  %v10421_v25 = vld [vmem:[%s20277_s6 + $0x3a0] sm:$0xf] }
 0x5df   :  { %v10320_v63 = vor.u32 %v11296_v21, %v10319_v37  ;;  %v6393_v7 = vadd.f32 %v6392_v51, %v6224_v55  ;;  %v11314_v37 = vld [vmem:[%s20277_s6 + $0x374] sm:$0xf0]  ;;  %v10570_v14 = vor.u32 %v11353_v18, %v10567_v26  ;;  %v11389_v55 = vld [vmem:[%s20277_s6 + $0x5d4] sm:$0xf]  ;;  %v10721_v51 = vld [vmem:[%s20277_s6 + $0x5d8] sm:$0xf0] }
 0x5e0   :  { %8383 = vmatpush.bf16.msra.mxu3 %v10580_v31  ;;  %v19060_v30 = vpop.f32.mrf.mxu3  ;;  %v6642_v31 = vmax.f32 %v6559_v41, 0.0  ;;  %8138 = vmatpush.bf16.msrb.mxu1 %v10494_v58  ;;  %v10729_v41 = vld [vmem:[%s20277_s6 + $0x5e8] sm:$0xf0]  ;;  %v10396_v19 = vor.u32 %v11314_v37, %v10395_v56  ;;  %v11320_v57 = vld [vmem:[%s20277_s6 + $0x3a4] sm:$0xf0] }
 0x5e1   :  { %v6562_v24 = vadd.f32 %v18302_v3, %v6393_v7  ;;  %v11300_v3 = vld [vmem:[%s20277_s6 + $0x304] sm:$0xf0]  ;;  %v10732_v44 = vor.u32 %v11391_v23, %v10729_v41  ;;  %v10371_v56 = vld [vmem:[%s20277_s6 + $0x340] sm:$0xf] }
 0x5e2   :  { %6706 = vst.msk [vmem:[#allocation3 + $0x198] sm:$0xff] %vm3982_vm8, %v6642_v31  ;;  %7720 = vmatpush.bf16.msrb.mxu2 %v10320_v63  ;;  %7801 = vmatpush.bf16.msra.mxu0 %v10354_v16  ;;  %v10338_v5 = vor.u32 %v11300_v3, %v10337_v49  ;;  %v10559_v63 = vld [vmem:[%s20277_s6 + $0x4a8] sm:$0xf0]  ;;  %v11308_v37 = vld [vmem:[%s20277_s6 + $0x344] sm:$0xf0] }
 0x5e3   :  { %v6643_v4 = vmax.f32 %v6562_v24, 0.0  ;;  %10606 = vmatmul.msk.bf16.vlgmr.msra.gmra.mxu3 %vm3982_vm8, %v19141_v9  ;;  %v10422_v24 = vor.u32 %v11320_v57, %v10421_v25  ;;  %v11338_v25 = vld [vmem:[%s20277_s6 + $0x434] sm:$0xf0] }
 0x5e4   :  { %8542 = vmatpush.bf16.msrb.mxu3 %v10672_v13  ;;  %v6245_v36 = vpop.f32.mrf.mxu1  ;;  %v11331_v13 = vld [vmem:[%s20277_s6 + $0x404] sm:$0xf]  ;;  %8139 = vmatpush.bf16.msrb.mxu1 %v10486_v50  ;;  %v6394_v21 = vpop.f32.mrf.mxu2  ;;  %v11312_v50 = vld [vmem:[%s20277_s6 + $0x364] sm:$0xf0] }
 0x5e5   :  { %v10478_v52 = vor.u32 %v11331_v13, %v10475_v45  ;;  %6707 = vst.msk [vmem:[#allocation3 + $0x1a0] sm:$0xff] %vm3982_vm8, %v6643_v4  ;;  %v6395_v31 = vadd.f32 %v6394_v21, %v6226_v46  ;;  %v10387_v36 = vld [vmem:[%s20277_s6 + $0x360] sm:$0xf]  ;;  %v11349_v13 = vld [vmem:[%s20277_s6 + $0x494] sm:$0xf]  ;;  %v8472_v46 = vld [vmem:[#allocation3 + $0x128] sm:$0xff] }
 0x5e6   :  { %7721 = vmatpush.bf16.msrb.mxu2 %v10312_v47  ;;  %7802 = vmatpush.bf16.msra.mxu0 %v10346_v29  ;;  %v4379_v8 = vpop.f32.mrf.mxu0  ;;  %v10551_v45 = vld [vmem:[%s20277_s6 + $0x498] sm:$0xf0]  ;;  %v10724_v47 = vor.u32 %v11389_v55, %v10721_v51  ;;  %v11347_v4 = vld [vmem:[%s20277_s6 + $0x484] sm:$0xf] }
 0x5e7   :  { %v6564_v16 = vadd.f32 %v18365_v38, %v6395_v31  ;;  %v10554_v35 = vor.u32 %v11349_v13, %v10551_v45  ;;  %v11369_v31 = vld [vmem:[%s20277_s6 + $0x534] sm:$0xf]  ;;  %v10635_v8 = vld [vmem:[%s20277_s6 + $0x538] sm:$0xf0]  ;;  %v11367_v13 = vld [vmem:[%s20277_s6 + $0x524] sm:$0xf] }
 0x5e8   :  { %8543 = vmatpush.bf16.msrb.mxu3 %v10664_v40  ;;  %v6929_v1 = vpop.f32.mrf.mxu3  ;;  %v7905_v40 = vld [vmem:[#allocation3 + $0xd0] sm:$0xff]  ;;  %8140 = vmatpush.bf16.msrb.mxu1 %v10478_v52  ;;  %v10627_v45 = vld [vmem:[%s20277_s6 + $0x528] sm:$0xf0] }
 0x5e9   :  { %v19166_v11 = vpack.c.bf16 %v7905_v40, %v7905_v40  ;;  %v6644_v7 = vmax.f32 %v6564_v16, 0.0  ;;  %10265 = vmatmul.msk.bf16.vlgmr.msra.gmra.mxu2 %vm3982_vm8, %v18562_v2  ;;  %v10388_v2 = vor.u32 %v11312_v50, %v10387_v36  ;;  %v10379_v1 = vld [vmem:[%s20277_s6 + $0x350] sm:$0xf]  ;;  %v11409_v40 = vld [vmem:[%s20277_s6 + $0x674] sm:$0xf]  ;;  %v10638_v50 = vor.u32 %v11369_v31, %v10635_v8 }
 0x5ea   :  { %7722 = vmatpush.bf16.msrb.mxu2 %v10304_v39  ;;  %7803 = vmatpush.bf16.msra.mxu0 %v10338_v5  ;;  %v10380_v26 = vor.u32 %v11310_v43, %v10379_v1  ;;  %v10805_v39 = vld [vmem:[%s20277_s6 + $0x678] sm:$0xf0]  ;;  %v10414_v5 = vor.u32 %v11318_v12, %v10413_v15  ;;  %v10463_v16 = vld [vmem:[%s20277_s6 + $0x3f0] sm:$0xf]  ;;  %v11336_v15 = vld [vmem:[%s20277_s6 + $0x424] sm:$0xf0] }
 0x5eb   :  { %10436 = vmatmul.msk.bf16.vlgmr.msra.gmra.mxu1 %vm3982_vm8, %v19166_v11  ;;  %6708 = vst.msk [vmem:[#allocation3 + $0x1a8] sm:$0xff] %vm3982_vm8, %v6644_v7  ;;  %v10808_v42 = vor.u32 %v11409_v40, %v10805_v39  ;;  %v10789_v43 = vld [vmem:[%s20277_s6 + $0x658] sm:$0xf0]  ;;  %v11365_v12 = vld [vmem:[%s20277_s6 + $0x514] sm:$0xf] }
 0x5ec   :  { %8544 = vmatpush.bf16.msrb.mxu3 %v10656_v34  ;;  %v6248_v58 = vpop.f32.mrf.mxu1  ;;  %v11351_v34 = vld [vmem:[%s20277_s6 + $0x4a4] sm:$0xf]  ;;  %8299 = vmatpush.bf16.msra.mxu1 %v10570_v14  ;;  %v6397_v29 = vpop.f32.mrf.mxu2  ;;  %v10439_v8 = vld [vmem:[%s20277_s6 + $0x3c0] sm:$0xf] }
 0x5ed   :  { %v10562_v38 = vor.u32 %v11351_v34, %v10559_v63  ;;  %10299 = vmatmul.msk.bf16.vlgmr.msrb.gmra.mxu0 %vm3982_vm8, %v18930_v6  ;;  %v11387_v6 = vld [vmem:[%s20277_s6 + $0x5c4] sm:$0xf]  ;;  %v6398_v49 = vadd.f32 %v6397_v29, %v6229_v27  ;;  %v10405_v58 = vld [vmem:[%s20277_s6 + $0x380] sm:$0xf]  ;;  %v19266_v34 = vpack.c.bf16 %v8472_v46, %v8472_v46  ;;  %v8067_v63 = vld [vmem:[#allocation3 + $0xf0] sm:$0xff] }
 0x5ee   :  { %7881 = vmatpush.bf16.msra.mxu2 %v10396_v19  ;;  %7962 = vmatpush.bf16.msrb.mxu0 %v10430_v53  ;;  %v4381_v3 = vpop.f32.mrf.mxu0  ;;  %v10716_v18 = vor.u32 %v11387_v6, %v10713_v33  ;;  %v10797_v19 = vld [vmem:[%s20277_s6 + $0x668] sm:$0xf0]  ;;  %v11330_v53 = vld [vmem:[%s20277_s6 + $0x3f4] sm:$0xf0]  ;;  %v19289_v7 = vpack.c.bf16 %v8067_v63, %v8067_v63  ;;  %v11405_v33 = vld [vmem:[%s20277_s6 + $0x654] sm:$0xf] }
 0x5ef   :  { %v6567_v23 = vadd.f32 %v18422_v20, %v6398_v49  ;;  %v11316_v20 = vld [vmem:[%s20277_s6 + $0x384] sm:$0xf0]  ;;  %v10464_v6 = vor.u32 %v11330_v53, %v10463_v16  ;;  %v10455_v29 = vld [vmem:[%s20277_s6 + $0x3e0] sm:$0xf]  ;;  %v10792_v49 = vor.u32 %v11405_v33, %v10789_v43  ;;  %v11363_v46 = vld [vmem:[%s20277_s6 + $0x504] sm:$0xf] }
 0x5f0   :  { %8545 = vmatpush.bf16.msrb.mxu3 %v10648_v0  ;;  %v19178_v10 = vpop.f32.mrf.mxu3  ;;  %v19210_v0 = vld [vmem:[%s20280_s8] sm:$0x3]  ;;  %8300 = vmatpush.bf16.msra.mxu1 %v10562_v38  ;;  %v10406_v55 = vor.u32 %v11316_v20, %v10405_v58  ;;  %v10497_v38 = vld [vmem:[%s20277_s6 + $0x430] sm:$0xf]  ;;  %v11425_v58 = vld [vmem:[%s20277_s6 + $0x6f4] sm:$0xf] }
 0x5f1   :  { %v6725_v52 = vperm.slane %v19210_v0, 1  ;;  %v6645_v59 = vmax.f32 %v6567_v23, 0.0  ;;  %v10498_v1 = vor.u32 %v11338_v25, %v10497_v38  ;;  %v10481_v23 = vld [vmem:[%s20277_s6 + $0x410] sm:$0xf]  ;;  %v10873_v20 = vld [vmem:[%s20277_s6 + $0x6f8] sm:$0xf0] }
 0x5f2   :  { %7882 = vmatpush.bf16.msra.mxu2 %v10388_v2  ;;  %7963 = vmatpush.bf16.msrb.mxu0 %v10422_v24  ;;  %v11324_v63 = vld [vmem:[%s20277_s6 + $0x3c4] sm:$0xf0]  ;;  %v11423_v16 = vld [vmem:[%s20277_s6 + $0x6e4] sm:$0xf]  ;;  %v11385_v53 = vld [vmem:[%s20277_s6 + $0x5b4] sm:$0xf] }
 0x5f3   :  { %v6769_v14 = vadd.f32 %v19003_v17, %v6725_v52  ;;  %v11407_v17 = vld [vmem:[%s20277_s6 + $0x664] sm:$0xf]  ;;  %6709 = vst.msk [vmem:[#allocation3 + $0x1b0] sm:$0xff] %vm3982_vm8, %v6645_v59  ;;  %10674 = vmatmul.msk.bf16.vlgmr.msrb.gmra.mxu3 %vm3982_vm8, %v19266_v34  ;;  %v10619_v52 = vld [vmem:[%s20277_s6 + $0x518] sm:$0xf0] }
 0x5f4   :  { %8704 = vmatpush.bf16.msra.mxu3 %v10740_v62  ;;  %v6250_v48 = vpop.f32.mrf.mxu1  ;;  %v10543_v62 = vld [vmem:[%s20277_s6 + $0x488] sm:$0xf0]  ;;  %8301 = vmatpush.bf16.msra.mxu1 %v10554_v35  ;;  %v6399_v51 = vpop.f32.mrf.mxu2  ;;  %v10800_v2 = vor.u32 %v11407_v17, %v10797_v19  ;;  %v10630_v35 = vor.u32 %v11367_v13, %v10627_v45  ;;  %v10622_v39 = vor.u32 %v11365_v12, %v10619_v52  ;;  %v10473_v17 = vld [vmem:[%s20277_s6 + $0x400] sm:$0xf]  ;;  %v10531_v25 = vld [vmem:[%s20277_s6 + $0x470] sm:$0xf] }
 0x5f5   :  { %v10546_v21 = vor.u32 %v11347_v4, %v10543_v62  ;;  %v11328_v48 = vld [vmem:[%s20277_s6 + $0x3e4] sm:$0xf0]  ;;  %v11403_v4 = vld [vmem:[%s20277_s6 + $0x644] sm:$0xf]  ;;  %v10447_v62 = vld [vmem:[%s20277_s6 + $0x3d0] sm:$0xf] }
 0x5f6   :  { %7883 = vmatpush.bf16.msra.mxu2 %v10380_v26  ;;  %7964 = vmatpush.bf16.msrb.mxu0 %v10414_v5  ;;  %v10456_v3 = vor.u32 %v11328_v48, %v10455_v29  ;;  %v10611_v5 = vld [vmem:[%s20277_s6 + $0x508] sm:$0xf0]  ;;  %v8229_v19 = vld [vmem:[#allocation3 + $0x100] sm:$0xff]  ;;  %v10703_v51 = vld [vmem:[%s20277_s6 + $0x5b8] sm:$0xf0] }
 0x5f7   :  { %v10865_v38 = vld [vmem:[%s20277_s6 + $0x6e8] sm:$0xf0]  ;;  %v11383_v29 = vld [vmem:[%s20277_s6 + $0x5a4] sm:$0xf] }
 0x5f8   :  { %8705 = vmatpush.bf16.msra.mxu3 %v10732_v44  ;;  %v7091_v41 = vpop.f32.mrf.mxu3  ;;  %v10372_v44 = vor.u32 %v11308_v37, %v10371_v56  ;;  %8302 = vmatpush.bf16.msra.mxu1 %v10546_v21  ;;  %v10695_v48 = vld [vmem:[%s20277_s6 + $0x5a8] sm:$0xf0] }
 0x5f9   :  { %10333 = vmatmul.msk.bf16.vlgmr.msrb.gmra.mxu2 %vm3982_vm8, %v18685_v22  ;;  %v10781_v22 = vld [vmem:[%s20277_s6 + $0x648] sm:$0xf0]  ;;  %v11334_v41 = vld [vmem:[%s20277_s6 + $0x414] sm:$0xf0] }
 0x5fa   :  { %7884 = vmatpush.bf16.msra.mxu2 %v10372_v44  ;;  %7965 = vmatpush.bf16.msrb.mxu0 %v10406_v55  ;;  %v10784_v37 = vor.u32 %v11403_v4, %v10781_v22  ;;  %v10482_v31 = vor.u32 %v11334_v41, %v10481_v23  ;;  %v10614_v44 = vor.u32 %v11363_v46, %v10611_v5  ;;  %v10857_v4 = vld [vmem:[%s20277_s6 + $0x6d8] sm:$0xf0]  ;;  %v10523_v22 = vld [vmem:[%s20277_s6 + $0x460] sm:$0xf]  ;;  %v11419_v41 = vld [vmem:[%s20277_s6 + $0x6c4] sm:$0xf] }
 0x5fb   :  { %10504 = vmatmul.msk.bf16.vlgmr.msrb.gmra.mxu1 %vm3982_vm8, %v19289_v7  ;;  %v10876_v55 = vor.u32 %v11425_v58, %v10873_v20  ;;  %v10515_v46 = vld [vmem:[%s20277_s6 + $0x450] sm:$0xf]  ;;  %v11342_v5 = vld [vmem:[%s20277_s6 + $0x454] sm:$0xf0] }
 0x5fc   :  { %8706 = vmatpush.bf16.msra.mxu3 %v10724_v47  ;;  %v6846_v36 = vpop.f32.mrf.mxu1  ;;  %v4384_v47 = vpop.f32.mrf.mxu0  ;;  %8461 = vmatpush.bf16.msrb.mxu1 %v10638_v50  ;;  %v10440_v50 = vor.u32 %v11324_v63, %v10439_v8  ;;  %v10549_v58 = vld [vmem:[%s20277_s6 + $0x490] sm:$0xf]  ;;  %v11350_v20 = vld [vmem:[%s20277_s6 + $0x494] sm:$0xf0]  ;;  %v10516_v8 = vor.u32 %v11342_v5, %v10515_v46  ;;  %v11441_v63 = vld [vmem:[%s20277_s6 + $0x774] sm:$0xf] }
 0x5fd   :  { %v6851_v57 = vadd.f32 %v6846_v36, %v6769_v14  ;;  %10367 = vmatmul.msk.bf16.vlgmr.msra.gmra.mxu0 %vm3982_vm8, %v19048_v61  ;;  %v6402_v26 = vpop.f32.mrf.mxu2  ;;  %v6724_v14 = vperm.slane %v19210_v0, 0  ;;  %v11332_v0 = vld [vmem:[%s20277_s6 + $0x404] sm:$0xf0]  ;;  %v10565_v47 = vld [vmem:[%s20277_s6 + $0x4b0] sm:$0xf] }
 0x5fe   :  { %8043 = vmatpush.bf16.msrb.mxu2 %v10464_v6  ;;  %8124 = vmatpush.bf16.msra.mxu0 %v10498_v1  ;;  %v10474_v45 = vor.u32 %v11332_v0, %v10473_v17  ;;  %v10706_v1 = vor.u32 %v11385_v53, %v10703_v51  ;;  %v11381_v26 = vld [vmem:[%s20277_s6 + $0x594] sm:$0xf]  ;;  %v8796_v0 = vld [vmem:[#allocation3 + $0x158] sm:$0xff]  ;;  %v10541_v51 = vld [vmem:[%s20277_s6 + $0x480] sm:$0xf] }
 0x5ff   :  { %v19305_v24 = vadd.f32 %v19060_v30, %v6851_v57  ;;  %v10489_v30 = vld [vmem:[%s20277_s6 + $0x420] sm:$0xf]  ;;  %v11346_v57 = vld [vmem:[%s20277_s6 + $0x474] sm:$0xf0]  ;;  %v6749_v13 = vadd.f32 %v18941_v28, %v6724_v14  ;;  %v19405_v28 = vpack.c.bf16 %v8229_v19, %v8229_v19  ;;  %v11379_v14 = vld [vmem:[%s20277_s6 + $0x584] sm:$0xf]  ;;  %v10550_v19 = vor.u32 %v11350_v20, %v10549_v58 }
 0x600   :  { %8707 = vmatpush.bf16.msra.mxu3 %v10716_v18  ;;  %v19300_v27 = vpop.f32.mrf.mxu3  ;;  %v10490_v61 = vor.u32 %v11336_v15, %v10489_v30  ;;  %v11326_v18 = vld [vmem:[%s20277_s6 + $0x3d4] sm:$0xf0]  ;;  %8462 = vmatpush.bf16.msrb.mxu1 %v10630_v35  ;;  %v10868_v30 = vor.u32 %v11423_v16, %v10865_v38  ;;  %v10532_v15 = vor.u32 %v11346_v57, %v10531_v25  ;;  %v11340_v16 = vld [vmem:[%s20277_s6 + $0x444] sm:$0xf0]  ;;  %v8391_v38 = vld [vmem:[#allocation3 + $0x120] sm:$0xff] }
 0x601   :  { %v10448_v21 = vor.u32 %v11326_v18, %v10447_v62  ;;  %v10698_v62 = vor.u32 %v11383_v29, %v10695_v48  ;;  %v11352_v18 = vld [vmem:[%s20277_s6 + $0x4a4] sm:$0xf0]  ;;  %v11439_v57 = vld [vmem:[%s20277_s6 + $0x764] sm:$0xf]  ;;  %v10633_v29 = vld [vmem:[%s20277_s6 + $0x530] sm:$0xf] }
 0x602   :  { %8044 = vmatpush.bf16.msrb.mxu2 %v10456_v3  ;;  %8125 = vmatpush.bf16.msra.mxu0 %v10490_v61  ;;  %v11344_v61 = vld [vmem:[%s20277_s6 + $0x464] sm:$0xf0]  ;;  %v11370_v48 = vld [vmem:[%s20277_s6 + $0x534] sm:$0xf0]  ;;  %v11397_v46 = vld [vmem:[%s20277_s6 + $0x614] sm:$0xf] }
 0x603   :  { %v10524_v23 = vor.u32 %v11344_v61, %v10523_v22  ;;  %v10763_v22 = vld [vmem:[%s20277_s6 + $0x628] sm:$0xf0]  ;;  %v10755_v5 = vld [vmem:[%s20277_s6 + $0x618] sm:$0xf0]  ;;  %v10583_v58 = vld [vmem:[%s20277_s6 + $0x4d0] sm:$0xf] }
 0x604   :  { %8866 = vmatpush.bf16.msrb.mxu3 %v10808_v42  ;;  %v6848_v40 = vpop.f32.mrf.mxu1  ;;  %v4386_v56 = vpop.f32.mrf.mxu0  ;;  %v8634_v42 = vld [vmem:[#allocation3 + $0x138] sm:$0xff]  ;;  %8463 = vmatpush.bf16.msrb.mxu1 %v10622_v39 }
 0x605   :  { %v19384_v36 = vpack.c.bf16 %v8634_v42, %v8634_v42  ;;  %v6404_v6 = vpop.f32.mrf.mxu2  ;;  %v10687_v40 = vld [vmem:[%s20277_s6 + $0x598] sm:$0xf0]  ;;  %v11358_v20 = vld [vmem:[%s20277_s6 + $0x4d4] sm:$0xf0] }
 0x606   :  { %8045 = vmatpush.bf16.msrb.mxu2 %v10448_v21  ;;  %8126 = vmatpush.bf16.msra.mxu0 %v10482_v31  ;;  %v10690_v21 = vor.u32 %v11381_v26, %v10687_v40  ;;  %v10933_v6 = vld [vmem:[%s20277_s6 + $0x768] sm:$0xf0] }
 0x607   :  { %10742 = vmatmul.msk.bf16.vlgmr.msra.gmra.mxu3 %vm3982_vm8, %v19384_v36 }
 0x608   :  { %8867 = vmatpush.bf16.msrb.mxu3 %v10800_v2  ;;  %v7253_v59 = vpop.f32.mrf.mxu3  ;;  %v11354_v2 = vld [vmem:[%s20277_s6 + $0x4b4] sm:$0xf0]  ;;  %8464 = vmatpush.bf16.msrb.mxu1 %v10614_v44  ;;  %v10941_v44 = vld [vmem:[%s20277_s6 + $0x778] sm:$0xf0] }
 0x609   :  { %v10566_v12 = vor.u32 %v11354_v2, %v10565_v47  ;;  %10401 = vmatmul.msk.bf16.vlgmr.msra.gmra.mxu2 %vm3982_vm8, %v18790_v32  ;;  %v10849_v32 = vld [vmem:[%s20277_s6 + $0x6c8] sm:$0xf0]  ;;  %v10944_v25 = vor.u32 %v11441_v63, %v10941_v44  ;;  %v19501_v47 = vpack.c.bf16 %v8796_v0, %v8796_v0  ;;  %v11395_v63 = vld [vmem:[%s20277_s6 + $0x604] sm:$0xf] }
 0x60a   :  { %8046 = vmatpush.bf16.msrb.mxu2 %v10440_v50  ;;  %8127 = vmatpush.bf16.msra.mxu0 %v10474_v45  ;;  %v10679_v59 = vld [vmem:[%s20277_s6 + $0x588] sm:$0xf0]  ;;  %v10852_v31 = vor.u32 %v11419_v41, %v10849_v32  ;;  %v11348_v50 = vld [vmem:[%s20277_s6 + $0x484] sm:$0xf0]  ;;  %v10771_v45 = vld [vmem:[%s20277_s6 + $0x638] sm:$0xf0] }
 0x60b   :  { %10572 = vmatmul.msk.bf16.vlgmr.msra.gmra.mxu1 %vm3982_vm8, %v19405_v28  ;;  %v10682_v53 = vor.u32 %v11379_v14, %v10679_v59  ;;  %v10591_v41 = vld [vmem:[%s20277_s6 + $0x4e0] sm:$0xf]  ;;  %v10747_v44 = vld [vmem:[%s20277_s6 + $0x608] sm:$0xf0] }
 0x60c   :  { %8868 = vmatpush.bf16.msrb.mxu3 %v10792_v49  ;;  %v7008_v33 = vpop.f32.mrf.mxu1  ;;  %v6833_v35 = vpop.f32.mrf.mxu0  ;;  %8623 = vmatpush.bf16.msra.mxu1 %v10706_v1  ;;  %v11362_v1 = vld [vmem:[%s20277_s6 + $0x4f4] sm:$0xf0] }
 0x60d   :  { %v7013_v43 = vadd.f32 %v7008_v33, %v19305_v24  ;;  %v11421_v24 = vld [vmem:[%s20277_s6 + $0x6d4] sm:$0xf]  ;;  %v19418_v49 = vadd.f32 %v6833_v35, %v6749_v13  ;;  %10435 = vmatmul.msk.bf16.vlgmr.msrb.gmra.mxu0 %vm3982_vm8, %v19166_v11  ;;  %v6407_v56 = vpop.f32.mrf.mxu2  ;;  %v10599_v33 = vld [vmem:[%s20277_s6 + $0x4f0] sm:$0xf] }
 0x60e   :  { %8205 = vmatpush.bf16.msra.mxu2 %v10532_v15  ;;  %v10860_v39 = vor.u32 %v11421_v24, %v10857_v4  ;;  %8286 = vmatpush.bf16.msrb.mxu0 %v10566_v12  ;;  %v11401_v13 = vld [vmem:[%s20277_s6 + $0x634] sm:$0xf]  ;;  %v19521_v24 = vpack.c.bf16 %v8391_v38, %v8391_v38  ;;  %v11399_v4 = vld [vmem:[%s20277_s6 + $0x624] sm:$0xf]  ;;  %v10575_v38 = vld [vmem:[%s20277_s6 + $0x4c0] sm:$0xf] }
 0x60f   :  { %v19423_v3 = vadd.f32 %v19178_v10, %v7013_v43  ;;  %v10557_v10 = vld [vmem:[%s20277_s6 + $0x4a0] sm:$0xf]  ;;  %v10542_v43 = vor.u32 %v11348_v50, %v10541_v51  ;;  %v10774_v15 = vor.u32 %v11401_v13, %v10771_v45  ;;  %v10766_v32 = vor.u32 %v11399_v4, %v10763_v22  ;;  %v8958_v51 = vld [vmem:[#allocation3 + $0x168] sm:$0xff]  ;;  %v10701_v4 = vld [vmem:[%s20277_s6 + $0x5b0] sm:$0xf] }
 0x610   :  { %8869 = vmatpush.bf16.msrb.mxu3 %v10784_v37  ;;  %v19416_v52 = vpop.f32.mrf.mxu3  ;;  %v10558_v11 = vor.u32 %v11352_v18, %v10557_v10  ;;  %8624 = vmatpush.bf16.msra.mxu1 %v10698_v62  ;;  %v10936_v62 = vor.u32 %v11439_v57, %v10933_v6  ;;  %v10600_v10 = vor.u32 %v11362_v1, %v10599_v33  ;;  %v10609_v13 = vld [vmem:[%s20277_s6 + $0x500] sm:$0xf]  ;;  %v11364_v45 = vld [vmem:[%s20277_s6 + $0x504] sm:$0xf0]  ;;  %v11455_v33 = vld [vmem:[%s20277_s6 + $0x7e4] sm:$0xf] }
 0x611   :  { %v10634_v18 = vor.u32 %v11370_v48, %v10633_v29  ;;  %v10750_v57 = vor.u32 %v11395_v63, %v10747_v44  ;;  %v11417_v1 = vld [vmem:[%s20277_s6 + $0x6b4] sm:$0xf]  ;;  %v19618_v29 = vpack.c.bf16 %v8958_v51, %v8958_v51  ;;  %v11386_v22 = vld [vmem:[%s20277_s6 + $0x5b4] sm:$0xf0] }
 0x612   :  { %8206 = vmatpush.bf16.msra.mxu2 %v10524_v23  ;;  %8287 = vmatpush.bf16.msrb.mxu0 %v10558_v11  ;;  %v10925_v23 = vld [vmem:[%s20277_s6 + $0x758] sm:$0xf0]  ;;  %v11368_v11 = vld [vmem:[%s20277_s6 + $0x524] sm:$0xf0] }
 0x614   :  { %9028 = vmatpush.bf16.msra.mxu3 %v10876_v55  ;;  %v7010_v37 = vpop.f32.mrf.mxu1  ;;  %v6835_v42 = vpop.f32.mrf.mxu0  ;;  %v10507_v55 = vld [vmem:[%s20277_s6 + $0x440] sm:$0xf]  ;;  %8625 = vmatpush.bf16.msra.mxu1 %v10690_v21  ;;  %v11435_v21 = vld [vmem:[%s20277_s6 + $0x744] sm:$0xf] }
 0x615   :  { %v10508_v2 = vor.u32 %v11340_v16, %v10507_v55  ;;  %v6409_v35 = vpop.f32.mrf.mxu2  ;;  %v10758_v42 = vor.u32 %v11397_v46, %v10755_v5  ;;  %v11457_v55 = vld [vmem:[%s20277_s6 + $0x7f4] sm:$0xf]  ;;  %v11009_v16 = vld [vmem:[%s20277_s6 + $0x7f8] sm:$0xf0] }
 0x616   :  { %8207 = vmatpush.bf16.msra.mxu2 %v10516_v8  ;;  %8288 = vmatpush.bf16.msrb.mxu0 %v10550_v19  ;;  %v11366_v8 = vld [vmem:[%s20277_s6 + $0x514] sm:$0xf0]  ;;  %v10584_v19 = vor.u32 %v11358_v20, %v10583_v58  ;;  %v11012_v6 = vor.u32 %v11457_v55, %v11009_v16  ;;  %v11001_v35 = vld [vmem:[%s20277_s6 + $0x7e8] sm:$0xf0]  ;;  %v11413_v58 = vld [vmem:[%s20277_s6 + $0x694] sm:$0xf] }
 0x617   :  { %10810 = vmatmul.msk.bf16.vlgmr.msrb.gmra.mxu3 %vm3982_vm8, %v19501_v47  ;;  %v10823_v20 = vld [vmem:[%s20277_s6 + $0x698] sm:$0xf0]  ;;  %v11411_v55 = vld [vmem:[%s20277_s6 + $0x684] sm:$0xf]  ;;  %v10815_v16 = vld [vmem:[%s20277_s6 + $0x688] sm:$0xf0] }
 0x618   :  { %9029 = vmatpush.bf16.msra.mxu3 %v10868_v30  ;;  %v7415_v17 = vpop.f32.mrf.mxu3  ;;  %8626 = vmatpush.bf16.msra.mxu1 %v10682_v53 }
 0x619   :  { %10469 = vmatmul.msk.bf16.vlgmr.msrb.gmra.mxu2 %vm3982_vm8, %v18903_v60  ;;  %v10917_v60 = vld [vmem:[%s20277_s6 + $0x748] sm:$0xf0] }
 0x61a   :  { %8208 = vmatpush.bf16.msra.mxu2 %v10508_v2  ;;  %8289 = vmatpush.bf16.msrb.mxu0 %v10542_v43  ;;  %v10920_v0 = vor.u32 %v11435_v21, %v10917_v60  ;;  %v8553_v2 = vld [vmem:[#allocation3 + $0x130] sm:$0xff]  ;;  %v10839_v43 = vld [vmem:[%s20277_s6 + $0x6b8] sm:$0xf0]  ;;  %v10659_v21 = vld [vmem:[%s20277_s6 + $0x560] sm:$0xf] }
 0x61b   :  { %10640 = vmatmul.msk.bf16.vlgmr.msrb.gmra.mxu1 %vm3982_vm8, %v19521_v24 }
 0x61c   :  { %9030 = vmatpush.bf16.msra.mxu3 %v10860_v39  ;;  %v7170_v30 = vpop.f32.mrf.mxu1  ;;  %v6914_v61 = vpop.f32.mrf.mxu0  ;;  %8785 = vmatpush.bf16.msrb.mxu1 %v10774_v15  ;;  %v11378_v15 = vld [vmem:[%s20277_s6 + $0x574] sm:$0xf0] }
 0x61d   :  { %v7175_v12 = vadd.f32 %v7170_v30, %v19423_v3  ;;  %v11437_v3 = vld [vmem:[%s20277_s6 + $0x754] sm:$0xf]  ;;  %v19535_v40 = vadd.f32 %v6914_v61, %v19418_v49  ;;  %v11360_v49 = vld [vmem:[%s20277_s6 + $0x4e4] sm:$0xf0]  ;;  %10503 = vmatmul.msk.bf16.vlgmr.msra.gmra.mxu0 %vm3982_vm8, %v19289_v7  ;;  %v6412_v14 = vpop.f32.mrf.mxu2  ;;  %v10667_v30 = vld [vmem:[%s20277_s6 + $0x570] sm:$0xf] }
 0x61e   :  { %8367 = vmatpush.bf16.msrb.mxu2 %v10600_v10  ;;  %v10928_v56 = vor.u32 %v11437_v3, %v10925_v23  ;;  %v10592_v37 = vor.u32 %v11360_v49, %v10591_v41  ;;  %8448 = vmatpush.bf16.msra.mxu0 %v10634_v18  ;;  %v10842_v10 = vor.u32 %v11417_v1, %v10839_v43  ;;  %v11415_v23 = vld [vmem:[%s20277_s6 + $0x6a4] sm:$0xf]  ;;  %v10831_v41 = vld [vmem:[%s20277_s6 + $0x6a8] sm:$0xf0]  ;;  %v10677_v1 = vld [vmem:[%s20277_s6 + $0x580] sm:$0xf] }
 0x61f   :  { %v19540_v39 = vadd.f32 %v19300_v27, %v7175_v12  ;;  %v10625_v27 = vld [vmem:[%s20277_s6 + $0x520] sm:$0xf]  ;;  %v10610_v12 = vor.u32 %v11364_v45, %v10609_v13  ;;  %v19638_v3 = vpack.c.bf16 %v8553_v2, %v8553_v2  ;;  %v10834_v60 = vor.u32 %v11415_v23, %v10831_v41  ;;  %v9120_v13 = vld [vmem:[#allocation3 + $0x178] sm:$0xff]  ;;  %v11380_v43 = vld [vmem:[%s20277_s6 + $0x584] sm:$0xf0] }
 0x620   :  { %9031 = vmatpush.bf16.msra.mxu3 %v10852_v31  ;;  %v19532_v26 = vpop.f32.mrf.mxu3  ;;  %v10626_v7 = vor.u32 %v11368_v11, %v10625_v27  ;;  %8786 = vmatpush.bf16.msrb.mxu1 %v10766_v32  ;;  %v10617_v31 = vld [vmem:[%s20277_s6 + $0x510] sm:$0xf]  ;;  %v11004_v32 = vor.u32 %v11455_v33, %v11001_v35  ;;  %v10668_v27 = vor.u32 %v11378_v15, %v10667_v30  ;;  %v10643_v2 = vld [vmem:[%s20277_s6 + $0x540] sm:$0xf]  ;;  %v11433_v35 = vld [vmem:[%s20277_s6 + $0x734] sm:$0xf] }
 0x621   :  { %v10618_v50 = vor.u32 %v11366_v8, %v10617_v31  ;;  %v10702_v11 = vor.u32 %v11386_v22, %v10701_v4  ;;  %v10651_v31 = vld [vmem:[%s20277_s6 + $0x550] sm:$0xf]  ;;  %v11374_v8 = vld [vmem:[%s20277_s6 + $0x554] sm:$0xf0]  ;;  %v10818_v33 = vor.u32 %v11411_v55, %v10815_v16  ;;  %v10907_v30 = vld [vmem:[%s20277_s6 + $0x738] sm:$0xf0]  ;;  %v19732_v15 = vpack.c.bf16 %v9120_v13, %v9120_v13 }
 0x622   :  { %8368 = vmatpush.bf16.msrb.mxu2 %v10592_v37  ;;  %8449 = vmatpush.bf16.msra.mxu0 %v10626_v7  ;;  %v10993_v37 = vld [vmem:[%s20277_s6 + $0x7d8] sm:$0xf0]  ;;  %v11384_v7 = vld [vmem:[%s20277_s6 + $0x5a4] sm:$0xf0]  ;;  %v11471_v22 = vld [vmem:[%s20277_s6 + $0x864] sm:$0xf] }
 0x624   :  { %9190 = vmatpush.bf16.msrb.mxu3 %v10944_v25  ;;  %v7172_v59 = vpop.f32.mrf.mxu1  ;;  %v6916_v17 = vpop.f32.mrf.mxu0  ;;  %v11356_v25 = vld [vmem:[%s20277_s6 + $0x4c4] sm:$0xf0]  ;;  %8787 = vmatpush.bf16.msrb.mxu1 %v10758_v42  ;;  %v11451_v42 = vld [vmem:[%s20277_s6 + $0x7c4] sm:$0xf] }
 0x625   :  { %v10576_v48 = vor.u32 %v11356_v25, %v10575_v38  ;;  %v6414_v61 = vpop.f32.mrf.mxu2  ;;  %v10826_v17 = vor.u32 %v11413_v58, %v10823_v20  ;;  %v11473_v38 = vld [vmem:[%s20277_s6 + $0x874] sm:$0xf]  ;;  %v11077_v25 = vld [vmem:[%s20277_s6 + $0x878] sm:$0xf0] }
 0x626   :  { %8369 = vmatpush.bf16.msrb.mxu2 %v10584_v19  ;;  %8450 = vmatpush.bf16.msra.mxu0 %v10618_v50  ;;  %v11382_v19 = vld [vmem:[%s20277_s6 + $0x594] sm:$0xf0]  ;;  %v10652_v50 = vor.u32 %v11374_v8, %v10651_v31  ;;  %v11069_v61 = vld [vmem:[%s20277_s6 + $0x868] sm:$0xf0]  ;;  %v11429_v31 = vld [vmem:[%s20277_s6 + $0x714] sm:$0xf] }
 0x627   :  { %10878 = vmatmul.msk.bf16.vlgmr.msra.gmra.mxu3 %vm3982_vm8, %v19618_v29  ;;  %v10891_v8 = vld [vmem:[%s20277_s6 + $0x718] sm:$0xf0] }
 0x628   :  { %9191 = vmatpush.bf16.msrb.mxu3 %v10936_v62  ;;  %v7577_v53 = vpop.f32.mrf.mxu3  ;;  %8788 = vmatpush.bf16.msrb.mxu1 %v10750_v57 }
 0x629   :  { %10537 = vmatmul.msk.bf16.vlgmr.msra.gmra.mxu2 %vm3982_vm8, %v19023_v54  ;;  %v10985_v54 = vld [vmem:[%s20277_s6 + $0x7c8] sm:$0xf0] }
 0x62a   :  { %8370 = vmatpush.bf16.msrb.mxu2 %v10576_v48  ;;  %8451 = vmatpush.bf16.msra.mxu0 %v10610_v12  ;;  %v10988_v51 = vor.u32 %v11451_v42, %v10985_v54  ;;  %v11080_v48 = vor.u32 %v11473_v38, %v11077_v25  ;;  %v8715_v12 = vld [vmem:[#allocation3 + $0x140] sm:$0xff]  ;;  %v11392_v42 = vld [vmem:[%s20277_s6 + $0x5e4] sm:$0xf0] }
 0x62b   :  { %10708 = vmatmul.msk.bf16.vlgmr.msra.gmra.mxu1 %vm3982_vm8, %v19638_v3  ;;  %v11427_v25 = vld [vmem:[%s20277_s6 + $0x704] sm:$0xf] }
 0x62c   :  { %9192 = vmatpush.bf16.msrb.mxu3 %v10928_v56  ;;  %v7332_v62 = vpop.f32.mrf.mxu1  ;;  %v6995_v49 = vpop.f32.mrf.mxu0  ;;  %8947 = vmatpush.bf16.msra.mxu1 %v10842_v10  ;;  %v10735_v10 = vld [vmem:[%s20277_s6 + $0x5f0] sm:$0xf] }
 0x62d   :  { %v7337_v18 = vadd.f32 %v7332_v62, %v19540_v39  ;;  %v11453_v39 = vld [vmem:[%s20277_s6 + $0x7d4] sm:$0xf]  ;;  %v19652_v5 = vadd.f32 %v6995_v49, %v19535_v40  ;;  %v11376_v40 = vld [vmem:[%s20277_s6 + $0x564] sm:$0xf0]  ;;  %10571 = vmatmul.msk.bf16.vlgmr.msrb.gmra.mxu0 %vm3982_vm8, %v19405_v28  ;;  %v6417_v63 = vpop.f32.mrf.mxu2  ;;  %v10678_v62 = vor.u32 %v11380_v43, %v10677_v1  ;;  %v10910_v49 = vor.u32 %v11433_v35, %v10907_v30  ;;  %v10745_v30 = vld [vmem:[%s20277_s6 + $0x600] sm:$0xf] }
 0x62e   :  { %8529 = vmatpush.bf16.msra.mxu2 %v10668_v27  ;;  %v10996_v14 = vor.u32 %v11453_v39, %v10993_v37  ;;  %v10660_v59 = vor.u32 %v11376_v40, %v10659_v21  ;;  %8610 = vmatpush.bf16.msrb.mxu0 %v10702_v11  ;;  %v11402_v27 = vld [vmem:[%s20277_s6 + $0x634] sm:$0xf0]  ;;  %v19755_v39 = vpack.c.bf16 %v8715_v12, %v8715_v12  ;;  %v11431_v37 = vld [vmem:[%s20277_s6 + $0x724] sm:$0xf]  ;;  %v10899_v21 = vld [vmem:[%s20277_s6 + $0x728] sm:$0xf0] }
 0x62f   :  { %v19657_v56 = vadd.f32 %v19416_v52, %v7337_v18  ;;  %v10693_v52 = vld [vmem:[%s20277_s6 + $0x5a0] sm:$0xf]  ;;  %v11394_v18 = vld [vmem:[%s20277_s6 + $0x5f4] sm:$0xf0]  ;;  %v10902_v54 = vor.u32 %v11431_v37, %v10899_v21  ;;  %v11396_v12 = vld [vmem:[%s20277_s6 + $0x604] sm:$0xf0] }
 0x630   :  { %9193 = vmatpush.bf16.msrb.mxu3 %v10920_v0  ;;  %v19649_v46 = vpop.f32.mrf.mxu3  ;;  %v10694_v28 = vor.u32 %v11384_v7, %v10693_v52  ;;  %8948 = vmatpush.bf16.msra.mxu1 %v10834_v60  ;;  %v10685_v0 = vld [vmem:[%s20277_s6 + $0x590] sm:$0xf]  ;;  %v11072_v60 = vor.u32 %v11471_v22, %v11069_v61  ;;  %v10736_v52 = vor.u32 %v11394_v18, %v10735_v10  ;;  %v11469_v7 = vld [vmem:[%s20277_s6 + $0x854] sm:$0xf]  ;;  %v10975_v22 = vld [vmem:[%s20277_s6 + $0x7b8] sm:$0xf0] }
 0x631   :  { %v10686_v45 = vor.u32 %v11382_v19, %v10685_v0  ;;  %v10719_v0 = vld [vmem:[%s20277_s6 + $0x5d0] sm:$0xf]  ;;  %v11390_v19 = vld [vmem:[%s20277_s6 + $0x5d4] sm:$0xf0] }
 0x632   :  { %8530 = vmatpush.bf16.msra.mxu2 %v10660_v59  ;;  %8611 = vmatpush.bf16.msrb.mxu0 %v10694_v28  ;;  %v10727_v59 = vld [vmem:[%s20277_s6 + $0x5e0] sm:$0xf]  ;;  %v11400_v28 = vld [vmem:[%s20277_s6 + $0x624] sm:$0xf0]  ;;  %v10803_v18 = vld [vmem:[%s20277_s6 + $0x670] sm:$0xf] }
 0x634   :  { %9352 = vmatpush.bf16.msra.mxu3 %v11012_v6  ;;  %v7334_v44 = vpop.f32.mrf.mxu1  ;;  %v6997_v53 = vpop.f32.mrf.mxu0  ;;  %v11372_v6 = vld [vmem:[%s20277_s6 + $0x544] sm:$0xf0]  ;;  %8949 = vmatpush.bf16.msra.mxu1 %v10826_v17  ;;  %v11467_v17 = vld [vmem:[%s20277_s6 + $0x844] sm:$0xf] }
 0x635   :  { %v10644_v4 = vor.u32 %v11372_v6, %v10643_v2  ;;  %v6419_v23 = vpop.f32.mrf.mxu2  ;;  %v10728_v44 = vor.u32 %v11392_v42, %v10727_v59  ;;  %v10894_v53 = vor.u32 %v11429_v31, %v10891_v8  ;;  %v10720_v2 = vor.u32 %v11390_v19, %v10719_v0  ;;  %v10795_v59 = vld [vmem:[%s20277_s6 + $0x660] sm:$0xf]  ;;  %v10959_v8 = vld [vmem:[%s20277_s6 + $0x798] sm:$0xf0] }
 0x636   :  { %8531 = vmatpush.bf16.msra.mxu2 %v10652_v50  ;;  %8612 = vmatpush.bf16.msrb.mxu0 %v10686_v45  ;;  %v11398_v50 = vld [vmem:[%s20277_s6 + $0x614] sm:$0xf0]  ;;  %v10746_v23 = vor.u32 %v11396_v12, %v10745_v30 }
 0x637   :  { %10946 = vmatmul.msk.bf16.vlgmr.msrb.gmra.mxu3 %vm3982_vm8, %v19732_v15 }
 0x638   :  { %9353 = vmatpush.bf16.msra.mxu3 %v11004_v32  ;;  %v7739_v57 = vpop.f32.mrf.mxu3  ;;  %8950 = vmatpush.bf16.msra.mxu1 %v10818_v33  ;;  %v10769_v32 = vld [vmem:[%s20277_s6 + $0x630] sm:$0xf]  ;;  %v9282_v33 = vld [vmem:[#allocation3 + $0x198] sm:$0xff] }
 0x639   :  { %v10770_v20 = vor.u32 %v11402_v27, %v10769_v32  ;;  %10605 = vmatmul.msk.bf16.vlgmr.msrb.gmra.mxu2 %vm3982_vm8, %v19141_v9  ;;  %v11053_v9 = vld [vmem:[%s20277_s6 + $0x848] sm:$0xf0]  ;;  %v19841_v61 = vpack.c.bf16 %v9282_v33, %v9282_v33  ;;  %v11418_v32 = vld [vmem:[%s20277_s6 + $0x6b4] sm:$0xf0]  ;;  %v11412_v33 = vld [vmem:[%s20277_s6 + $0x684] sm:$0xf0] }
 0x63a   :  { %8532 = vmatpush.bf16.msra.mxu2 %v10644_v4  ;;  %8613 = vmatpush.bf16.msrb.mxu0 %v10678_v62  ;;  %v10883_v57 = vld [vmem:[%s20277_s6 + $0x708] sm:$0xf0]  ;;  %v11056_v45 = vor.u32 %v11467_v17, %v11053_v9  ;;  %v11449_v4 = vld [vmem:[%s20277_s6 + $0x7b4] sm:$0xf]  ;;  %v8877_v62 = vld [vmem:[#allocation3 + $0x160] sm:$0xff] }
 0x63b   :  { %10776 = vmatmul.msk.bf16.vlgmr.msrb.gmra.mxu1 %vm3982_vm8, %v19755_v39  ;;  %v10886_v35 = vor.u32 %v11427_v25, %v10883_v57  ;;  %v10978_v37 = vor.u32 %v11449_v4, %v10975_v22  ;;  %v10787_v17 = vld [vmem:[%s20277_s6 + $0x650] sm:$0xf]  ;;  %v11414_v9 = vld [vmem:[%s20277_s6 + $0x694] sm:$0xf0]  ;;  %v10779_v57 = vld [vmem:[%s20277_s6 + $0x640] sm:$0xf] }
 0x63c   :  { %9354 = vmatpush.bf16.msra.mxu3 %v10996_v14  ;;  %v7494_v41 = vpop.f32.mrf.mxu1  ;;  %v7157_v40 = vpop.f32.mrf.mxu0  ;;  %v11061_v14 = vld [vmem:[%s20277_s6 + $0x858] sm:$0xf0]  ;;  %9109 = vmatpush.bf16.msrb.mxu1 %v10910_v49  ;;  %v10837_v49 = vld [vmem:[%s20277_s6 + $0x6b0] sm:$0xf]  ;;  %v11426_v22 = vld [vmem:[%s20277_s6 + $0x6f4] sm:$0xf0] }
 0x63d   :  { %v7499_v11 = vadd.f32 %v7494_v41, %v19657_v56  ;;  %10639 = vmatmul.msk.bf16.vlgmr.msra.gmra.mxu0 %vm3982_vm8, %v19521_v24  ;;  %v11064_v63 = vor.u32 %v11469_v7, %v11061_v14  ;;  %v7076_v55 = vpop.f32.mrf.mxu2  ;;  %v11410_v41 = vld [vmem:[%s20277_s6 + $0x674] sm:$0xf0]  ;;  %v10838_v14 = vor.u32 %v11418_v32, %v10837_v49  ;;  %v10871_v4 = vld [vmem:[%s20277_s6 + $0x6f0] sm:$0xf] }
 0x63e   :  { %8691 = vmatpush.bf16.msrb.mxu2 %v10736_v52  ;;  %8772 = vmatpush.bf16.msra.mxu0 %v10770_v20  ;;  %v7093_v38 = vadd.f32 %v7076_v55, %v19652_v5  ;;  %v10711_v5 = vld [vmem:[%s20277_s6 + $0x5c0] sm:$0xf]  ;;  %v10967_v52 = vld [vmem:[%s20277_s6 + $0x7a8] sm:$0xf0]  ;;  %v10804_v20 = vor.u32 %v11410_v41, %v10803_v18 }
 0x63f   :  { %v19771_v58 = vadd.f32 %v19532_v26, %v7499_v11  ;;  %v10761_v26 = vld [vmem:[%s20277_s6 + $0x620] sm:$0xf] }
 0x640   :  { %9355 = vmatpush.bf16.msra.mxu3 %v10988_v51  ;;  %v19766_v56 = vpop.f32.mrf.mxu3  ;;  %v10762_v24 = vor.u32 %v11400_v28, %v10761_v26  ;;  %9110 = vmatpush.bf16.msrb.mxu1 %v10902_v54  ;;  %v10753_v51 = vld [vmem:[%s20277_s6 + $0x610] sm:$0xf]  ;;  %v7174_v1 = vadd.f32 %v7157_v40, %v7093_v38  ;;  %v19858_v40 = vpack.c.bf16 %v8877_v62, %v8877_v62  ;;  %v11408_v54 = vld [vmem:[%s20277_s6 + $0x664] sm:$0xf0]  ;;  %v10829_v26 = vld [vmem:[%s20277_s6 + $0x6a0] sm:$0xf] }
 0x641   :  { %v10754_v43 = vor.u32 %v11398_v50, %v10753_v51  ;;  %v11416_v28 = vld [vmem:[%s20277_s6 + $0x6a4] sm:$0xf0]  ;;  %v10905_v62 = vld [vmem:[%s20277_s6 + $0x730] sm:$0xf] }
 0x642   :  { %8692 = vmatpush.bf16.msrb.mxu2 %v10728_v44  ;;  %8773 = vmatpush.bf16.msra.mxu0 %v10762_v24  ;;  %v10830_v44 = vor.u32 %v11416_v28, %v10829_v26  ;;  %v9444_v50 = vld [vmem:[#allocation3 + $0x1a8] sm:$0xff]  ;;  %v11027_v26 = vld [vmem:[%s20277_s6 + $0x818] sm:$0xf0] }
 0x644   :  { %9514 = vmatpush.bf16.msrb.mxu3 %v11080_v48  ;;  %v7496_v16 = vpop.f32.mrf.mxu1  ;;  %v7159_v13 = vpop.f32.mrf.mxu0  ;;  %v11388_v48 = vld [vmem:[%s20277_s6 + $0x5c4] sm:$0xf0]  ;;  %9111 = vmatpush.bf16.msrb.mxu1 %v10894_v53  ;;  %v10951_v53 = vld [vmem:[%s20277_s6 + $0x788] sm:$0xf0] }
 0x645   :  { %v10712_v10 = vor.u32 %v11388_v48, %v10711_v5  ;;  %v7078_v27 = vpop.f32.mrf.mxu2  ;;  %v11443_v16 = vld [vmem:[%s20277_s6 + $0x784] sm:$0xf]  ;;  %v11043_v5 = vld [vmem:[%s20277_s6 + $0x838] sm:$0xf0]  ;;  %v19929_v48 = vpack.c.bf16 %v9444_v50, %v9444_v50  ;;  %v10881_v50 = vld [vmem:[%s20277_s6 + $0x700] sm:$0xf] }
 0x646   :  { %8693 = vmatpush.bf16.msrb.mxu2 %v10720_v2  ;;  %8774 = vmatpush.bf16.msra.mxu0 %v10754_v43  ;;  %v11404_v2 = vld [vmem:[%s20277_s6 + $0x644] sm:$0xf0]  ;;  %v11465_v43 = vld [vmem:[%s20277_s6 + $0x834] sm:$0xf]  ;;  %v11463_v27 = vld [vmem:[%s20277_s6 + $0x824] sm:$0xf] }
 0x647   :  { %11014 = vmatmul.msk.bf16.vlgmr.msra.gmra.mxu3 %vm3982_vm8, %v19841_v61  ;;  %v10780_v30 = vor.u32 %v11404_v2, %v10779_v57  ;;  %v11046_v41 = vor.u32 %v11465_v43, %v11043_v5  ;;  %v11481_v57 = vld [vmem:[%s20277_s6 + $0x8b4] sm:$0xf]  ;;  %v10973_v43 = vld [vmem:[%s20277_s6 + $0x7b0] sm:$0xf]  ;;  %v11450_v5 = vld [vmem:[%s20277_s6 + $0x7b4] sm:$0xf0] }
 0x648   :  { %9515 = vmatpush.bf16.msrb.mxu3 %v11072_v60  ;;  %v7901_v6 = vpop.f32.mrf.mxu3  ;;  %9112 = vmatpush.bf16.msrb.mxu1 %v10886_v35  ;;  %v11447_v60 = vld [vmem:[%s20277_s6 + $0x7a4] sm:$0xf]  ;;  %v9039_v35 = vld [vmem:[#allocation3 + $0x170] sm:$0xff] }
 0x649   :  { %v10970_v31 = vor.u32 %v11447_v60, %v10967_v52  ;;  %10673 = vmatmul.msk.bf16.vlgmr.msra.gmra.mxu2 %vm3982_vm8, %v19266_v34  ;;  %v11406_v34 = vld [vmem:[%s20277_s6 + $0x654] sm:$0xf0]  ;;  %v10813_v6 = vld [vmem:[%s20277_s6 + $0x680] sm:$0xf]  ;;  %v19945_v32 = vpack.c.bf16 %v9039_v35, %v9039_v35 }
 0x64a   :  { %8694 = vmatpush.bf16.msrb.mxu2 %v10712_v10  ;;  %8775 = vmatpush.bf16.msra.mxu0 %v10746_v23  ;;  %v10788_v38 = vor.u32 %v11406_v34, %v10787_v17  ;;  %v10814_v12 = vor.u32 %v11412_v33, %v10813_v6  ;;  %v11434_v10 = vld [vmem:[%s20277_s6 + $0x734] sm:$0xf0]  ;;  %v10863_v52 = vld [vmem:[%s20277_s6 + $0x6e0] sm:$0xf]  ;;  %v10939_v33 = vld [vmem:[%s20277_s6 + $0x770] sm:$0xf] }
 0x64b   :  { %10844 = vmatmul.msk.bf16.vlgmr.msra.gmra.mxu1 %vm3982_vm8, %v19858_v40  ;;  %v10906_v60 = vor.u32 %v11434_v10, %v10905_v62  ;;  %v11479_v62 = vld [vmem:[%s20277_s6 + $0x8a4] sm:$0xf]  ;;  %v11103_v10 = vld [vmem:[%s20277_s6 + $0x8a8] sm:$0xf0] }
 0x64c   :  { %9516 = vmatpush.bf16.msrb.mxu3 %v11064_v63  ;;  %v7656_v11 = vpop.f32.mrf.mxu1  ;;  %v7319_v7 = vpop.f32.mrf.mxu0  ;;  %9271 = vmatpush.bf16.msra.mxu1 %v10978_v37  ;;  %v10796_v63 = vor.u32 %v11408_v54, %v10795_v59  ;;  %v10897_v59 = vld [vmem:[%s20277_s6 + $0x720] sm:$0xf] }
 0x64d   :  { %v7661_v21 = vadd.f32 %v7656_v11, %v19771_v58  ;;  %10707 = vmatmul.msk.bf16.vlgmr.msrb.gmra.mxu0 %vm3982_vm8, %v19638_v3  ;;  %v10821_v3 = vld [vmem:[%s20277_s6 + $0x690] sm:$0xf]  ;;  %v7238_v24 = vpop.f32.mrf.mxu2  ;;  %v11035_v11 = vld [vmem:[%s20277_s6 + $0x828] sm:$0xf0] }
 0x64e   :  { %8853 = vmatpush.bf16.msra.mxu2 %v10804_v20  ;;  %8934 = vmatpush.bf16.msrb.mxu0 %v10838_v14  ;;  %v7255_v55 = vadd.f32 %v7238_v24, %v7174_v1  ;;  %v10822_v25 = vor.u32 %v11414_v9, %v10821_v3  ;;  %v10954_v1 = vor.u32 %v11443_v16, %v10951_v53  ;;  %v11424_v14 = vld [vmem:[%s20277_s6 + $0x6e4] sm:$0xf0]  ;;  %v11459_v3 = vld [vmem:[%s20277_s6 + $0x804] sm:$0xf]  ;;  %v11019_v9 = vld [vmem:[%s20277_s6 + $0x808] sm:$0xf0] }
 0x64f   :  { %v7742_v58 = vadd.f32 %v19649_v46, %v7661_v21  ;;  %v11445_v46 = vld [vmem:[%s20277_s6 + $0x794] sm:$0xf]  ;;  %v10872_v21 = vor.u32 %v11426_v22, %v10871_v4  ;;  %v11038_v54 = vor.u32 %v11463_v27, %v11035_v11  ;;  %v10864_v28 = vor.u32 %v11424_v14, %v10863_v52 }
 0x650   :  { %9517 = vmatpush.bf16.msrb.mxu3 %v11056_v45  ;;  %v19869_v42 = vpop.f32.mrf.mxu3  ;;  %9272 = vmatpush.bf16.msra.mxu1 %v10970_v31  ;;  %v10962_v19 = vor.u32 %v11445_v46, %v10959_v8  ;;  %v7336_v45 = vadd.f32 %v7319_v7, %v7255_v55  ;;  %v10855_v46 = vld [vmem:[%s20277_s6 + $0x6d0] sm:$0xf]  ;;  %v11430_v8 = vld [vmem:[%s20277_s6 + $0x714] sm:$0xf0]  ;;  %v10847_v55 = vld [vmem:[%s20277_s6 + $0x6c0] sm:$0xf]  ;;  %v11106_v52 = vor.u32 %v11479_v62, %v11103_v10 }
 0x651   :  { %v10991_v62 = vld [vmem:[%s20277_s6 + $0x7d0] sm:$0xf]  ;;  %v11454_v10 = vld [vmem:[%s20277_s6 + $0x7d4] sm:$0xf0] }
 0x652   :  { %8854 = vmatpush.bf16.msra.mxu2 %v10796_v63  ;;  %8935 = vmatpush.bf16.msrb.mxu0 %v10830_v44 }
 0x654   :  { %v7658_v0 = vpop.f32.mrf.mxu1  ;;  %v7321_v51 = vpop.f32.mrf.mxu0  ;;  %9273 = vmatpush.bf16.msra.mxu1 %v10962_v19 }
 0x655   :  { %v7240_v18 = vpop.f32.mrf.mxu2  ;;  %v11420_v51 = vld [vmem:[%s20277_s6 + $0x6c4] sm:$0xf0] }
 0x656   :  { %8855 = vmatpush.bf16.msra.mxu2 %v10788_v38  ;;  %8936 = vmatpush.bf16.msrb.mxu0 %v10822_v25  ;;  %v11428_v38 = vld [vmem:[%s20277_s6 + $0x704] sm:$0xf0]  ;;  %v11022_v25 = vor.u32 %v11459_v3, %v11019_v9  ;;  %v10848_v2 = vor.u32 %v11420_v51, %v10847_v55  ;;  %v10949_v9 = vld [vmem:[%s20277_s6 + $0x780] sm:$0xf]  ;;  %v11458_v51 = vld [vmem:[%s20277_s6 + $0x7f4] sm:$0xf0] }
 0x657   :  { %11082 = vmatmul.msk.bf16.vlgmr.msrb.gmra.mxu3 %vm3982_vm8, %v19929_v48  ;;  %v10882_v6 = vor.u32 %v11428_v38, %v10881_v50  ;;  %v11436_v3 = vld [vmem:[%s20277_s6 + $0x744] sm:$0xf0]  ;;  %v11041_v50 = vld [vmem:[%s20277_s6 + $0x830] sm:$0xf]  ;;  %v11466_v38 = vld [vmem:[%s20277_s6 + $0x834] sm:$0xf0] }
 0x658   :  { %v8063_v13 = vpop.f32.mrf.mxu3  ;;  %9274 = vmatpush.bf16.msra.mxu1 %v10954_v1  ;;  %v11442_v1 = vld [vmem:[%s20277_s6 + $0x774] sm:$0xf0] }
 0x659   :  { %10741 = vmatmul.msk.bf16.vlgmr.msrb.gmra.mxu2 %vm3982_vm8, %v19384_v36  ;;  %v11422_v36 = vld [vmem:[%s20277_s6 + $0x6d4] sm:$0xf0]  ;;  %v11111_v13 = vld [vmem:[%s20277_s6 + $0x8b8] sm:$0xf0] }
 0x65a   :  { %8856 = vmatpush.bf16.msra.mxu2 %v10780_v30  ;;  %8937 = vmatpush.bf16.msrb.mxu0 %v10814_v12  ;;  %v10856_v0 = vor.u32 %v11422_v36, %v10855_v46  ;;  %v11114_v12 = vor.u32 %v11481_v57, %v11111_v13  ;;  %v11475_v46 = vld [vmem:[%s20277_s6 + $0x884] sm:$0xf]  ;;  %v11087_v36 = vld [vmem:[%s20277_s6 + $0x888] sm:$0xf0] }
 0x65b   :  { %10912 = vmatmul.msk.bf16.vlgmr.msrb.gmra.mxu1 %vm3982_vm8, %v19945_v32 }
 0x65c   :  { %v7818_v23 = vpop.f32.mrf.mxu1  ;;  %v7481_v37 = vpop.f32.mrf.mxu0  ;;  %9433 = vmatpush.bf16.msrb.mxu1 %v11046_v41  ;;  %v10974_v41 = vor.u32 %v11450_v5, %v10973_v43 }
 0x65d   :  { %v7823_v49 = vadd.f32 %v7818_v23, %v7742_v58  ;;  %v11432_v58 = vld [vmem:[%s20277_s6 + $0x724] sm:$0xf0]  ;;  %10775 = vmatmul.msk.bf16.vlgmr.msra.gmra.mxu0 %vm3982_vm8, %v19755_v39  ;;  %v10889_v39 = vld [vmem:[%s20277_s6 + $0x710] sm:$0xf]  ;;  %v7400_v63 = vpop.f32.mrf.mxu2  ;;  %v10940_v23 = vor.u32 %v11442_v1, %v10939_v33  ;;  %v11042_v33 = vor.u32 %v11466_v38, %v11041_v50  ;;  %v10999_v1 = vld [vmem:[%s20277_s6 + $0x7e0] sm:$0xf] }
 0x65e   :  { %9015 = vmatpush.bf16.msrb.mxu2 %v10872_v21  ;;  %9096 = vmatpush.bf16.msra.mxu0 %v10906_v60  ;;  %v10898_v31 = vor.u32 %v11432_v58, %v10897_v59  ;;  %v7417_v34 = vadd.f32 %v7400_v63, %v7336_v45  ;;  %v10890_v19 = vor.u32 %v11430_v8, %v10889_v39  ;;  %v9201_v45 = vld [vmem:[#allocation3 + $0x190] sm:$0xff]  ;;  %v10965_v21 = vld [vmem:[%s20277_s6 + $0x7a0] sm:$0xf]  ;;  %v11448_v60 = vld [vmem:[%s20277_s6 + $0x7a4] sm:$0xf0] }
 0x65f   :  { %v7904_v20 = vadd.f32 %v19766_v56, %v7823_v49  ;;  %v11461_v56 = vld [vmem:[%s20277_s6 + $0x814] sm:$0xf]  ;;  %v20028_v22 = vpack.c.bf16 %v9201_v45, %v9201_v45  ;;  %v10931_v49 = vld [vmem:[%s20277_s6 + $0x760] sm:$0xf]  ;;  %v10966_v59 = vor.u32 %v11448_v60, %v10965_v21  ;;  %v10923_v58 = vld [vmem:[%s20277_s6 + $0x750] sm:$0xf] }
 0x660   :  { %v19956_v7 = vpop.f32.mrf.mxu3  ;;  %9434 = vmatpush.bf16.msrb.mxu1 %v11038_v54  ;;  %v11030_v17 = vor.u32 %v11461_v56, %v11027_v26  ;;  %v7498_v53 = vadd.f32 %v7481_v37, %v7417_v34  ;;  %v11440_v37 = vld [vmem:[%s20277_s6 + $0x764] sm:$0xf0]  ;;  %v11446_v54 = vld [vmem:[%s20277_s6 + $0x794] sm:$0xf0]  ;;  %v10983_v21 = vld [vmem:[%s20277_s6 + $0x7c0] sm:$0xf] }
 0x661   :  { %v10932_v14 = vor.u32 %v11440_v37, %v10931_v49 }
 0x662   :  { %9016 = vmatpush.bf16.msrb.mxu2 %v10864_v28  ;;  %9097 = vmatpush.bf16.msra.mxu0 %v10898_v31 }
 0x664   :  { %v7820_v44 = vpop.f32.mrf.mxu1  ;;  %v7483_v24 = vpop.f32.mrf.mxu0  ;;  %9435 = vmatpush.bf16.msrb.mxu1 %v11030_v17 }
 0x665   :  { %v7402_v35 = vpop.f32.mrf.mxu2  ;;  %v10915_v44 = vld [vmem:[%s20277_s6 + $0x740] sm:$0xf]  ;;  %v11444_v24 = vld [vmem:[%s20277_s6 + $0x784] sm:$0xf0] }
 0x666   :  { %9017 = vmatpush.bf16.msrb.mxu2 %v10856_v0  ;;  %9098 = vmatpush.bf16.msra.mxu0 %v10890_v19  ;;  %v11090_v0 = vor.u32 %v11475_v46, %v11087_v36  ;;  %v9363_v19 = vld [vmem:[#allocation3 + $0x1a0] sm:$0xff]  ;;  %v10916_v55 = vor.u32 %v11436_v3, %v10915_v44  ;;  %v11456_v35 = vld [vmem:[%s20277_s6 + $0x7e4] sm:$0xf0] }
 0x667   :  { %v20105_v45 = vpack.c.bf16 %v9363_v19, %v9363_v19  ;;  %v11067_v44 = vld [vmem:[%s20277_s6 + $0x860] sm:$0xf]  ;;  %v11472_v3 = vld [vmem:[%s20277_s6 + $0x864] sm:$0xf0]  ;;  %v11059_v19 = vld [vmem:[%s20277_s6 + $0x850] sm:$0xf] }
 0x668   :  { %v8225_v16 = vpop.f32.mrf.mxu3  ;;  %9436 = vmatpush.bf16.msrb.mxu1 %v11022_v25 }
 0x669   :  { %10809 = vmatmul.msk.bf16.vlgmr.msra.gmra.mxu2 %vm3982_vm8, %v19501_v47  ;;  %v11438_v47 = vld [vmem:[%s20277_s6 + $0x754] sm:$0xf0]  ;;  %v10950_v16 = vor.u32 %v11444_v24, %v10949_v9  ;;  %v11101_v9 = vld [vmem:[%s20277_s6 + $0x8a0] sm:$0xf]  ;;  %v11480_v24 = vld [vmem:[%s20277_s6 + $0x8a4] sm:$0xf0] }
 0x66a   :  { %9018 = vmatpush.bf16.msrb.mxu2 %v10848_v2  ;;  %9099 = vmatpush.bf16.msra.mxu0 %v10882_v6  ;;  %v10924_v8 = vor.u32 %v11438_v47, %v10923_v58 }
 0x66b   :  { %10980 = vmatmul.msk.bf16.vlgmr.msra.gmra.mxu1 %vm3982_vm8, %v20028_v22 }
 0x66c   :  { %v7980_v30 = vpop.f32.mrf.mxu1  ;;  %v7643_v18 = vpop.f32.mrf.mxu0  ;;  %9595 = vmatpush.bf16.msra.mxu1 %v11114_v12  ;;  %v11464_v12 = vld [vmem:[%s20277_s6 + $0x824] sm:$0xf0] }
 0x66d   :  { %v7985_v4 = vadd.f32 %v7980_v30, %v7904_v20  ;;  %10843 = vmatmul.msk.bf16.vlgmr.msrb.gmra.mxu0 %vm3982_vm8, %v19858_v40  ;;  %v11095_v20 = vld [vmem:[%s20277_s6 + $0x898] sm:$0xf0]  ;;  %v10957_v40 = vld [vmem:[%s20277_s6 + $0x790] sm:$0xf]  ;;  %v7562_v56 = vpop.f32.mrf.mxu2  ;;  %v11033_v30 = vld [vmem:[%s20277_s6 + $0x820] sm:$0xf] }
 0x66e   :  { %9177 = vmatpush.bf16.msra.mxu2 %v10940_v23  ;;  %9258 = vmatpush.bf16.msrb.mxu0 %v10974_v41  ;;  %v7579_v31 = vadd.f32 %v7562_v56, %v7498_v53  ;;  %v10958_v63 = vor.u32 %v11446_v54, %v10957_v40  ;;  %v11007_v53 = vld [vmem:[%s20277_s6 + $0x7f0] sm:$0xf]  ;;  %v11474_v54 = vld [vmem:[%s20277_s6 + $0x874] sm:$0xf0] }
 0x66f   :  { %v8066_v11 = vadd.f32 %v19869_v42, %v7985_v4  ;;  %v11477_v42 = vld [vmem:[%s20277_s6 + $0x894] sm:$0xf]  ;;  %v11008_v6 = vor.u32 %v11458_v51, %v11007_v53  ;;  %v11034_v4 = vor.u32 %v11464_v12, %v11033_v30  ;;  %v11075_v40 = vld [vmem:[%s20277_s6 + $0x870] sm:$0xf] }
 0x670   :  { %v20039_v27 = vpop.f32.mrf.mxu3  ;;  %9596 = vmatpush.bf16.msra.mxu1 %v11106_v52  ;;  %v11098_v28 = vor.u32 %v11477_v42, %v11095_v20  ;;  %v7660_v34 = vadd.f32 %v7643_v18, %v7579_v31  ;;  %v11025_v18 = vld [vmem:[%s20277_s6 + $0x810] sm:$0xf]  ;;  %v11452_v42 = vld [vmem:[%s20277_s6 + $0x7c4] sm:$0xf0]  ;;  %v11017_v20 = vld [vmem:[%s20277_s6 + $0x800] sm:$0xf] }
 0x671   :  { %v10984_v58 = vor.u32 %v11452_v42, %v10983_v21  ;;  %v11109_v56 = vld [vmem:[%s20277_s6 + $0x8b0] sm:$0xf] }
 0x672   :  { %9178 = vmatpush.bf16.msra.mxu2 %v10932_v14  ;;  %9259 = vmatpush.bf16.msrb.mxu0 %v10966_v59  ;;  %v11460_v14 = vld [vmem:[%s20277_s6 + $0x804] sm:$0xf0]  ;;  %v9525_v59 = vld [vmem:[#allocation3 + $0x1b0] sm:$0xff] }
 0x673   :  { %v11018_v47 = vor.u32 %v11460_v14, %v11017_v20  ;;  %v20164_v36 = vpack.c.bf16 %v9525_v59, %v9525_v59 }
 0x674   :  { %v7982_v26 = vpop.f32.mrf.mxu1  ;;  %v7645_v39 = vpop.f32.mrf.mxu0  ;;  %9597 = vmatpush.bf16.msra.mxu1 %v11098_v28 }
 0x675   :  { %v7564_v25 = vpop.f32.mrf.mxu2  ;;  %v11482_v26 = vld [vmem:[%s20277_s6 + $0x8b4] sm:$0xf0] }
 0x676   :  { %9179 = vmatpush.bf16.msra.mxu2 %v10924_v8  ;;  %9260 = vmatpush.bf16.msrb.mxu0 %v10958_v63  ;;  %v11076_v8 = vor.u32 %v11474_v54, %v11075_v40  ;;  %v11110_v63 = vor.u32 %v11482_v26, %v11109_v56 }
 0x678   :  { %v8387_v17 = vpop.f32.mrf.mxu3  ;;  %9598 = vmatpush.bf16.msra.mxu1 %v11090_v0  ;;  %v11102_v0 = vor.u32 %v11480_v24, %v11101_v9 }
 0x679   :  { %10877 = vmatmul.msk.bf16.vlgmr.msrb.gmra.mxu2 %vm3982_vm8, %v19618_v29  ;;  %v11462_v29 = vld [vmem:[%s20277_s6 + $0x814] sm:$0xf0] }
 0x67a   :  { %9180 = vmatpush.bf16.msra.mxu2 %v10916_v55  ;;  %9261 = vmatpush.bf16.msrb.mxu0 %v10950_v16  ;;  %v11026_v37 = vor.u32 %v11462_v29, %v11025_v18  ;;  %v11470_v55 = vld [vmem:[%s20277_s6 + $0x854] sm:$0xf0]  ;;  %v11093_v16 = vld [vmem:[%s20277_s6 + $0x890] sm:$0xf] }
 0x67b   :  { %11048 = vmatmul.msk.bf16.vlgmr.msrb.gmra.mxu1 %vm3982_vm8, %v20105_v45  ;;  %v11060_v38 = vor.u32 %v11470_v55, %v11059_v19 }
 0x67c   :  { %v8142_v57 = vpop.f32.mrf.mxu1  ;;  %v7805_v2 = vpop.f32.mrf.mxu0 }
 0x67d   :  { %v8147_v13 = vadd.f32 %v8142_v57, %v8066_v11  ;;  %10911 = vmatmul.msk.bf16.vlgmr.msra.gmra.mxu0 %vm3982_vm8, %v19945_v32  ;;  %v7724_v32 = vpop.f32.mrf.mxu2  ;;  %v10992_v11 = vor.u32 %v11454_v10, %v10991_v62  ;;  %v11051_v57 = vld [vmem:[%s20277_s6 + $0x840] sm:$0xf] }
 0x67e   :  { %9339 = vmatpush.bf16.msrb.mxu2 %v11008_v6  ;;  %9420 = vmatpush.bf16.msra.mxu0 %v11042_v33  ;;  %v7741_v41 = vadd.f32 %v7724_v32, %v7660_v34  ;;  %v11468_v6 = vld [vmem:[%s20277_s6 + $0x844] sm:$0xf0]  ;;  %v11085_v33 = vld [vmem:[%s20277_s6 + $0x880] sm:$0xf] }
 0x67f   :  { %v8228_v5 = vadd.f32 %v19956_v7, %v8147_v13  ;;  %v11000_v7 = vor.u32 %v11456_v35, %v10999_v1  ;;  %v11476_v1 = vld [vmem:[%s20277_s6 + $0x884] sm:$0xf0] }
 0x680   :  { %v20110_v43 = vpop.f32.mrf.mxu3  ;;  %v7822_v52 = vadd.f32 %v7805_v2, %v7741_v41  ;;  %v11086_v35 = vor.u32 %v11476_v1, %v11085_v33  ;;  %v11494_v1 = vld [vmem:[%s20281_s9 + $0x58] sm:$0xff] }
 0x682   :  { %9340 = vmatpush.bf16.msrb.mxu2 %v11000_v7  ;;  %9421 = vmatpush.bf16.msra.mxu0 %v11034_v4 }
 0x684   :  { %v8144_v23 = vpop.f32.mrf.mxu1  ;;  %v7807_v49 = vpop.f32.mrf.mxu0 }
 0x685   :  { %v7726_v28 = vpop.f32.mrf.mxu2 }
 0x686   :  { %9341 = vmatpush.bf16.msrb.mxu2 %v10992_v11  ;;  %9422 = vmatpush.bf16.msra.mxu0 %v11026_v37 }
 0x688   :  { %v8549_v60 = vpop.f32.mrf.mxu3 }
 0x689   :  { %10945 = vmatmul.msk.bf16.vlgmr.msra.gmra.mxu2 %vm3982_vm8, %v19732_v15  ;;  %v11478_v15 = vld [vmem:[%s20277_s6 + $0x894] sm:$0xf0] }
 0x68a   :  { %9342 = vmatpush.bf16.msrb.mxu2 %v10984_v58  ;;  %9423 = vmatpush.bf16.msra.mxu0 %v11018_v47  ;;  %v11094_v25 = vor.u32 %v11478_v15, %v11093_v16  ;;  %v11497_v15 = vld [vmem:[%s20281_s9 + $0x70] sm:$0xff] }
 0x68b   :  { %11116 = vmatmul.msk.bf16.vlgmr.msra.gmra.mxu1 %vm3982_vm8, %v20164_v36 }
 0x68c   :  { %v8304_v31 = vpop.f32.mrf.mxu1  ;;  %v7967_v39 = vpop.f32.mrf.mxu0 }
 0x68d   :  { %v8309_v46 = vadd.f32 %v8304_v31, %v8228_v5  ;;  %10979 = vmatmul.msk.bf16.vlgmr.msrb.gmra.mxu0 %vm3982_vm8, %v20028_v22  ;;  %v7886_v22 = vpop.f32.mrf.mxu2  ;;  %v11052_v5 = vor.u32 %v11468_v6, %v11051_v57 }
 0x68e   :  { %9501 = vmatpush.bf16.msra.mxu2 %v11076_v8  ;;  %9582 = vmatpush.bf16.msrb.mxu0 %v11110_v63  ;;  %v7903_v51 = vadd.f32 %v7886_v22, %v7822_v52 }
 0x68f   :  { %v8390_v34 = vadd.f32 %v20039_v27, %v8309_v46  ;;  %v11068_v27 = vor.u32 %v11472_v3, %v11067_v44 }
 0x690   :  { %v8709_v17 = vpop.f32.mrf.mxu3  ;;  %v7984_v2 = vadd.f32 %v7967_v39, %v7903_v51 }
 0x692   :  { %9502 = vmatpush.bf16.msra.mxu2 %v11068_v27  ;;  %9583 = vmatpush.bf16.msrb.mxu0 %v11102_v0  ;;  %v11498_v0 = vld [vmem:[%s20281_s9 + $0x78] sm:$0xff] }
 0x693   :  { %9755 = vmatpush.bf16.msra.mxu3 %v11498_v0 }
 0x694   :  { %v8306_v53 = vpop.f32.mrf.mxu1  ;;  %v7969_v50 = vpop.f32.mrf.mxu0 }
 0x695   :  { %v7888_v30 = vpop.f32.mrf.mxu2  ;;  %v11496_v50 = vld [vmem:[%s20281_s9 + $0x68] sm:$0xff] }
 0x696   :  { %9503 = vmatpush.bf16.msra.mxu2 %v11060_v38  ;;  %9584 = vmatpush.bf16.msrb.mxu0 %v11094_v25 }
 0x697   :  { %9756 = vmatpush.bf16.msra.mxu3 %v11497_v15 }
 0x698   :  { %v8711_v13 = vpop.f32.mrf.mxu3 }
 0x699   :  { %11013 = vmatmul.msk.bf16.vlgmr.msrb.gmra.mxu2 %vm3982_vm8, %v19841_v61  ;;  %v11495_v13 = vld [vmem:[%s20281_s9 + $0x60] sm:$0xff] }
 0x69a   :  { %9504 = vmatpush.bf16.msra.mxu2 %v11052_v5  ;;  %9585 = vmatpush.bf16.msrb.mxu0 %v11086_v35 }
 0x69b   :  { %9757 = vmatpush.bf16.msra.mxu3 %v11496_v50 }
 0x69c   :  { %v8466_v12 = vpop.f32.mrf.mxu1  ;;  %v8129_v4 = vpop.f32.mrf.mxu0 }
 0x69d   :  { %v8471_v7 = vadd.f32 %v8466_v12, %v8390_v34  ;;  %11047 = vmatmul.msk.bf16.vlgmr.msra.gmra.mxu0 %vm3982_vm8, %v20105_v45  ;;  %v8048_v18 = vpop.f32.mrf.mxu2  ;;  %v11493_v12 = vld [vmem:[%s20281_s9 + $0x50] sm:$0xff] }
 0x69e   :  { %v8065_v32 = vadd.f32 %v8048_v18, %v7984_v2  ;;  %v11491_v18 = vld [vmem:[%s20281_s9 + $0x40] sm:$0xff] }
 0x69f   :  { %v8552_v10 = vadd.f32 %v20110_v43, %v8471_v7  ;;  %9758 = vmatpush.bf16.msra.mxu3 %v11495_v13 }
 0x6a0   :  { %v8871_v62 = vpop.f32.mrf.mxu3  ;;  %v8146_v49 = vadd.f32 %v8129_v4, %v8065_v32 }
 0x6a3   :  { %9759 = vmatpush.bf16.msra.mxu3 %v11494_v1 }
 0x6a4   :  { %v8468_v29 = vpop.f32.mrf.mxu1  ;;  %v8131_v23 = vpop.f32.mrf.mxu0 }
 0x6a5   :  { %v8050_v11 = vpop.f32.mrf.mxu2 }
 0x6a6   :  { %v11490_v11 = vld [vmem:[%s20281_s9 + $0x38] sm:$0xff] }
 0x6a7   :  { %9760 = vmatpush.bf16.msra.mxu3 %v11493_v12  ;;  %9742 = vmatpush.bf16.msrb.mxu2 %v11490_v11 }
 0x6a8   :  { %v8873_v41 = vpop.f32.mrf.mxu3 }
 0x6a9   :  { %11081 = vmatmul.msk.bf16.vlgmr.msra.gmra.mxu2 %vm3982_vm8, %v19929_v48 }
 0x6ac   :  { %v8628_v37 = vpop.f32.mrf.mxu1  ;;  %v8291_v60 = vpop.f32.mrf.mxu0 }
 0x6ad   :  { %v8633_v21 = vadd.f32 %v8628_v37, %v8552_v10  ;;  %11115 = vmatmul.msk.bf16.vlgmr.msrb.gmra.mxu0 %vm3982_vm8, %v20164_v36  ;;  %v8210_v61 = vpop.f32.mrf.mxu2  ;;  %v11492_v10 = vld [vmem:[%s20281_s9 + $0x48] sm:$0xff] }
 0x6ae   :  { %v8227_v43 = vadd.f32 %v8210_v61, %v8146_v49  ;;  %9761 = vmatpush.bf16.msra.mxu3 %v11492_v10 }
 0x6af   :  { %v8714_v42 = vadd.f32 %v8709_v17, %v8633_v21  ;;  %v11489_v21 = vld [vmem:[%s20281_s9 + $0x30] sm:$0xff] }
 0x6b0   :  { %v9033_v52 = vpop.f32.mrf.mxu3  ;;  %v8308_v59 = vadd.f32 %v8291_v60, %v8227_v43  ;;  %9743 = vmatpush.bf16.msrb.mxu2 %v11489_v21 }
 0x6b2   :  { %9762 = vmatpush.bf16.msra.mxu3 %v11491_v18 }
 0x6b4   :  { %v8630_v45 = vpop.f32.mrf.mxu1  ;;  %v8293_v20 = vpop.f32.mrf.mxu0 }
 0x6b5   :  { %v8212_v58 = vpop.f32.mrf.mxu2  ;;  %v11488_v45 = vld [vmem:[%s20281_s9 + $0x28] sm:$0xff] }
 0x6b6   :  { %9744 = vmatpush.bf16.msrb.mxu2 %v11488_v45 }
 0x6b8   :  { %v9035_v14 = vpop.f32.mrf.mxu3 }
 0x6b9   :  { %v11487_v14 = vld [vmem:[%s20281_s9 + $0x20] sm:$0xff] }
 0x6ba   :  { %9745 = vmatpush.bf16.msrb.mxu2 %v11487_v14 }
 0x6bc   :  { %v8790_v47 = vpop.f32.mrf.mxu1  ;;  %v8453_v54 = vpop.f32.mrf.mxu0 }
 0x6bd   :  { %v8795_v40 = vadd.f32 %v8790_v47, %v8714_v42  ;;  %v8372_v28 = vpop.f32.mrf.mxu2 }
 0x6be   :  { %v8389_v46 = vadd.f32 %v8372_v28, %v8308_v59  ;;  %v11485_v28 = vld [vmem:[%s20281_s9 + $0x10] sm:$0xff] }
 0x6bf   :  { %v8876_v26 = vadd.f32 %v8871_v62, %v8795_v40  ;;  %v11486_v40 = vld [vmem:[%s20281_s9 + $0x18] sm:$0xff] }
 0x6c0   :  { %v9195_v56 = vpop.f32.mrf.mxu3  ;;  %v8470_v8 = vadd.f32 %v8453_v54, %v8389_v46  ;;  %9746 = vmatpush.bf16.msrb.mxu2 %v11486_v40 }
 0x6c4   :  { %v8792_v31 = vpop.f32.mrf.mxu1  ;;  %v8455_v39 = vpop.f32.mrf.mxu0  ;;  %9747 = vmatpush.bf16.msrb.mxu2 %v11485_v28 }
 0x6c5   :  { %v8374_v63 = vpop.f32.mrf.mxu2 }
 0x6c6   :  { %v11483_v63 = vld [vmem:[%s20281_s9] sm:$0xff] }
 0x6c8   :  { %v9197_v48 = vpop.f32.mrf.mxu3 }
 0x6cc   :  { %v8952_v36 = vpop.f32.mrf.mxu1  ;;  %v8615_v17 = vpop.f32.mrf.mxu0 }
 0x6cd   :  { %v8957_v44 = vadd.f32 %v8952_v36, %v8876_v26  ;;  %v8534_v9 = vpop.f32.mrf.mxu2 }
 0x6ce   :  { %v8551_v27 = vadd.f32 %v8534_v9, %v8470_v8  ;;  %v11484_v8 = vld [vmem:[%s20281_s9 + $0x8] sm:$0xff] }
 0x6cf   :  { %v9038_v3 = vadd.f32 %v9033_v52, %v8957_v44  ;;  %9748 = vmatpush.bf16.msrb.mxu2 %v11484_v8 }
 0x6d0   :  { %v9357_v34 = vpop.f32.mrf.mxu3  ;;  %v8632_v16 = vadd.f32 %v8615_v17, %v8551_v27 }
 0x6d3   :  { %9749 = vmatpush.bf16.msrb.mxu2 %v11483_v63 }
 0x6d4   :  { %v8954_v24 = vpop.f32.mrf.mxu1  ;;  %v8617_v19 = vpop.f32.mrf.mxu0 }
 0x6d5   :  { %v8536_v22 = vpop.f32.mrf.mxu2 }
 0x6d8   :  { %v9359_v55 = vpop.f32.mrf.mxu3 }
 0x6dc   :  { %v9114_v53 = vpop.f32.mrf.mxu1  ;;  %v8777_v38 = vpop.f32.mrf.mxu0 }
 0x6dd   :  { %v9119_v51 = vadd.f32 %v9114_v53, %v9038_v3  ;;  %v8696_v2 = vpop.f32.mrf.mxu2 }
 0x6de   :  { %v8713_v33 = vadd.f32 %v8696_v2, %v8632_v16 }
 0x6df   :  { %v9200_v57 = vadd.f32 %v9195_v56, %v9119_v51 }
 0x6e0   :  { %v9519_v25 = vpop.f32.mrf.mxu3  ;;  %v8794_v30 = vadd.f32 %v8777_v38, %v8713_v33  ;;  %v13341_v33 = vld [vmem:[%s20282_s10] ss:$0 sm:$0xff] }
 0x6e4   :  { %v9116_v6 = vpop.f32.mrf.mxu1  ;;  %v8779_v5 = vpop.f32.mrf.mxu0 }
 0x6e5   :  { %v8698_v7 = vpop.f32.mrf.mxu2 }
 0x6e8   :  { %v9521_v35 = vpop.f32.mrf.mxu3 }
 0x6ec   :  { %v9276_v4 = vpop.f32.mrf.mxu1  ;;  %v8939_v62 = vpop.f32.mrf.mxu0 }
 0x6ed   :  { %v8858_v29 = vpop.f32.mrf.mxu2  ;;  %v9281_v60 = vadd.f32 %v9276_v4, %v9200_v57 }
 0x6ee   :  { %v8875_v44 = vadd.f32 %v8858_v29, %v8794_v30 }
 0x6ef   :  { %v9362_v61 = vadd.f32 %v9357_v34, %v9281_v60 }
 0x6f0   :  { %v8956_v34 = vadd.f32 %v8939_v62, %v8875_v44 }
 0x6f4   :  { %v9278_v32 = vpop.f32.mrf.mxu1  ;;  %v8941_v23 = vpop.f32.mrf.mxu0 }
 0x6f5   :  { %v8860_v41 = vpop.f32.mrf.mxu2 }
 0x6fc   :  { %v9438_v49 = vpop.f32.mrf.mxu1  ;;  %v9101_v37 = vpop.f32.mrf.mxu0 }
 0x6fd   :  { %v9020_v52 = vpop.f32.mrf.mxu2  ;;  %v9443_v20 = vadd.f32 %v9438_v49, %v9362_v61 }
 0x6fe   :  { %v9037_v3 = vadd.f32 %v9020_v52, %v8956_v34 }
 0x6ff   :  { %v9524_v59 = vadd.f32 %v9519_v25, %v9443_v20 }
 0x700   :  { %v9118_v27 = vadd.f32 %v9101_v37, %v9037_v3 }
 0x704   :  { %v9440_v42 = vpop.f32.mrf.mxu1  ;;  %v9103_v43 = vpop.f32.mrf.mxu0 }
 0x705   :  { %v9022_v58 = vpop.f32.mrf.mxu2 }
 0x70c   :  { %v9600_v47 = vpop.f32.mrf.mxu1  ;;  %v9263_v56 = vpop.f32.mrf.mxu0 }
 0x70d   :  { %v9605_v54 = vadd.f32 %v9600_v47, %v9524_v59  ;;  %v9182_v46 = vpop.f32.mrf.mxu2 }
 0x70e   :  { %v9199_v0 = vadd.f32 %v9182_v46, %v9118_v27 }
 0x70f   :  { %v9607_v26 = vmax.f32 %v9605_v54, 0.0 }
 0x710   :  { %v9280_v55 = vadd.f32 %v9263_v56, %v9199_v0 }
 0x711   :  { %v9609_v31 = vpack.c.bf16 %v9607_v26, %v9607_v26 }
 0x713   :  { %9763 = vmatmul.bf16.vlgmr.msra.gmra.mxu3 %v9609_v31 }
 0x714   :  { %v9602_v39 = vpop.f32.mrf.mxu1  ;;  %v9265_v48 = vpop.f32.mrf.mxu0 }
 0x715   :  { %v9184_v36 = vpop.f32.mrf.mxu2 }
 0x71c   :  { %v9425_v17 = vpop.f32.mrf.mxu0 }
 0x71d   :  { %v9344_v9 = vpop.f32.mrf.mxu2 }
 0x71e   :  { %v9361_v15 = vadd.f32 %v9344_v9, %v9280_v55 }
 0x720   :  { %v9442_v22 = vadd.f32 %v9425_v17, %v9361_v15 }
 0x724   :  { %v9427_v24 = vpop.f32.mrf.mxu0 }
 0x725   :  { %v9346_v19 = vpop.f32.mrf.mxu2 }
 0x72c   :  { %v9587_v16 = vpop.f32.mrf.mxu0 }
 0x72d   :  { %v9506_v53 = vpop.f32.mrf.mxu2 }
 0x72e   :  { %v9523_v51 = vadd.f32 %v9506_v53, %v9442_v22 }
 0x730   :  { %v9604_v38 = vadd.f32 %v9587_v16, %v9523_v51 }
 0x732   :  { %v9606_v25 = vmax.f32 %v9604_v38, 0.0 }
 0x734   :  { %v9589_v50 = vpop.f32.mrf.mxu0  ;;  %v9608_v57 = vpack.c.bf16 %v9606_v25, %v9606_v25 }
 0x735   :  { %v9508_v13 = vpop.f32.mrf.mxu2 }
 0x736   :  { %9750 = vmatmul.bf16.vlgmr.msrb.gmra.mxu2 %v9608_v57 }
 0x796   :  { %v9764_v2 = vpop.f32.mrf.mxu3 }
 0x79e   :  { %v9766_v6 = vpop.f32.mrf.mxu3 }
 0x7b9   :  { %v9751_v1 = vpop.f32.mrf.mxu2 }
 0x7ba   :  { %v9752_v5 = vadd.f32 %v13341_v33, %v9751_v1 }
 0x7bc   :  { %v9765_v35 = vadd.f32 %v9764_v2, %v9752_v5 }
 0x7be   :  { %9768 = vst [vmem:[%s20283_s11] sm:$0xff] %v9765_v35 }
 0x7c1   :  { %v9753_v30 = vpop.f32.mrf.mxu2 }

</bundles_post_ra>
